<compile_context>
chip_gen: v7x
topology: tpu7x:2x2x1
jax: 0.10.0
libtpu: 0.0.40
codegen_flags: <defaults>
</compile_context>

<pallas_src>
import jax
import jax.numpy as jnp
from jax import lax
from jax.experimental import pallas as pl
from jax.experimental.pallas import tpu as pltpu  # noqa: F401  (TPU backend)

BN_EPS = 1e-5
HIDDEN = 30
C_REAL = 100          # module's pool_dim (number of clusters)
C_PAD = 128           # cluster dim padded to a full lane tile
FPAD = 160            # fused level-1 feature width: 30 (node) + 128 (assign, padded) -> 160
NEG_INF = -1e30


def _make_fused_kernel(B, N):
    """Fused forward kernel for static batch size B and N nodes per graph."""
    BN_ROWS = B * N
    CP = C_PAD
    hd = HIDDEN

    def _eye(M):
        r = lax.broadcasted_iota(jnp.int32, (M, M), 0)
        c = lax.broadcasted_iota(jnp.int32, (M, M), 1)
        return (r == c).astype(jnp.float32)

    def _norm_adj(a, ey):
        # GCN normalization with "remaining" self loops: D^-1/2 (A + I_missing) D^-1/2.
        # `ey` is hoisted by the caller and reused.
        diag = jnp.sum(a * ey, axis=-1, keepdims=True)                 # [M,1] lane reduce
        a2 = a + jnp.where(diag == 0.0, 1.0, 0.0) * ey
        deg_r = jnp.sum(a2, axis=-1, keepdims=True)                    # [M,1]
        # a2 is symmetric; the column sum is kept (instead of a [M,1] transpose)
        # purely for lowering robustness — it is a single extra XLU reduce per call.
        deg_c = jnp.sum(a2, axis=0, keepdims=True)                     # [1,M]
        dr = jnp.where(deg_r > 0.0, lax.rsqrt(deg_r), 0.0)
        dc = jnp.where(deg_c > 0.0, lax.rsqrt(deg_c), 0.0)
        return a2 * dr * dc

    def _gcn_bn(a_hat, h, w, bias, gamma, beta, mask=None, count=None):
        # GCNConv (bias after aggregation) + BatchNorm1d with single-pass batch stats.
        xw = jnp.dot(h, w, preferred_element_type=jnp.float32)
        y = jnp.dot(a_hat, xw, preferred_element_type=jnp.float32) + bias
        if mask is None:
            y_stat, cnt = y, float(y.shape[0])
        else:
            y_stat, cnt = y * mask, count            # pad rows excluded from stats
        s1 = jnp.sum(y_stat, axis=0, keepdims=True)
        s2 = jnp.sum(y_stat * y_stat, axis=0, keepdims=True)
        mean = s1 * (1.0 / cnt)
        var = jnp.maximum(s2 * (1.0 / cnt) - mean * mean, 0.0)
        return (y - mean) * (lax.rsqrt(var + BN_EPS) * gamma) + beta

    def kernel(adj_ref, h0_ref, w1_ref, v1_ref, pfc_ref, w2_ref, v2_ref,
               f1a_ref, f1b_ref, f2w_ref, miscb_ref, out_ref, reg_ref):
        f32 = jnp.float32

        # ---------------- level-1 normalized block-diag adjacency (shared, built once)
        adj_blk = adj_ref[...]                                   # raw, block diagonal
        a1_hat = _norm_adj(adj_blk, _eye(BN_ROWS))

        # ---------------- 3 fused (node | assignment) GCN+BN layers over all B*N rows
        h = h0_ref[...]                                          # [B*N, FPAD]
        hs = []
        for k in range(3):
            h = _gcn_bn(a1_hat, h, w1_ref[k],
                        v1_ref[3 * k + 0:3 * k + 1, :],
                        v1_ref[3 * k + 1:3 * k + 2, :],
                        v1_ref[3 * k + 2:3 * k + 3, :])
            hs.append(h)
        h1, h2, h3 = hs          # cols 0:30 node tower (x1k), cols 30:* assignment (s1k)

        # ---------------- pool_fc over cat(s11,s12,s13) via zero-padded chunk weights
        logits = (jnp.dot(h1, pfc_ref[0], preferred_element_type=f32)
                  + jnp.dot(h2, pfc_ref[1], preferred_element_type=f32)
                  + jnp.dot(h3, pfc_ref[2], preferred_element_type=f32)
                  + miscb_ref[0:1, :])         # pad-cluster bias = -1e30 masks softmax

        # ---------------- softmax + entropy from the log-softmax (no extra vlog pass)
        mx = jnp.max(logits, axis=-1, keepdims=True)
        sh = logits - mx
        e = jnp.exp(sh)                                          # pad cols -> exactly 0
        denom = jnp.sum(e, axis=-1, keepdims=True)
        s_all = e / denom                                        # [B*N, C_PAD]
        log_s = sh - jnp.log(denom)
        ent_tot = jnp.sum(jnp.sum(-s_all * log_s, axis=-1, keepdims=True),
                          axis=0, keepdims=True)                 # [1,1]

        # ---------------- dense_diff_pool pieces (+ modularity substitute)
        # adj_blk is block-diagonal, so rows b*N:(b+1)*N of adj_blk @ S equal A_b @ S_b.
        a_s = jnp.dot(adj_blk, s_all, preferred_element_type=f32)     # [B*N, C_PAD]
        deg = jnp.sum(adj_blk, axis=-1, keepdims=True)                # [B*N, 1]
        x13 = h3[:, 0:hd]                                             # [B*N, 30]

        q_tot = jnp.zeros((1, 1), f32)
        p1x_blocks, p1adj_blocks = [], []
        for b in range(B):
            r0, r1 = b * N, (b + 1) * N
            s_b, as_b = s_all[r0:r1, :], a_s[r0:r1, :]
            x_b, d_b = x13[r0:r1, :], deg[r0:r1, :]
            p1x_blocks.append(lax.dot_general(                        # S^T X  -> [C_PAD,30]
                s_b, x_b, (((0,), (0,)), ((), ())), preferred_element_type=f32))
            p1adj_blocks.append(lax.dot_general(                      # S^T A S -> [C_PAD,C_PAD]
                s_b, as_b, (((0,), (0,)), ((), ())), preferred_element_type=f32))
            # link loss intentionally NOT computed: unused in the module's forward.
            # TODO(synk): modularity_reg source unavailable; standard soft modularity
            #             Q(S) of the softmaxed assignment is used instead.
            two_m = jnp.maximum(jnp.sum(d_b, axis=0, keepdims=True), 1e-12)
            tr_sas = jnp.sum(jnp.sum(s_b * as_b, axis=-1, keepdims=True),
                             axis=0, keepdims=True)
            ds = jnp.sum(d_b * s_b, axis=0, keepdims=True)            # [1, C_PAD]
            tr_null = jnp.sum(ds * ds, axis=-1, keepdims=True) / two_m
            q_tot = q_tot + (tr_sas - tr_null) / two_m

        # ---------------- pooled block-diagonal adjacency/features (padded clusters)
        zc = jnp.zeros((CP, CP), f32)
        rows = []
        for b in range(B):
            rows.append(jnp.concatenate(
                [p1adj_blocks[b] if bb == b else zc for bb in range(B)], axis=1))
        p1adj_blk = jnp.concatenate(rows, axis=0)                     # [B*CP, B*CP]
        a2_hat = _norm_adj(p1adj_blk, _eye(B * CP))                   # normalized once
        p1x = jnp.concatenate(p1x_blocks, axis=0)                     # [B*CP, 30]

        # real-cluster row mask: pad clusters excluded from BN stats and readouts
        rid = lax.broadcasted_iota(jnp.int32, (B * CP, 1), 0)
        maskC = (jnp.bitwise_and(rid, CP - 1) < C_REAL).astype(f32)   # CP is a power of 2
        cntC = float(B * C_REAL)

        # ---------------- level-2 GCN tower (one matmul per layer on the block-diag)
        g = p1x
        x2s = []
        for k in range(3):
            g = _gcn_bn(a2_hat, g, w2_ref[k],
                        v2_ref[3 * k + 0:3 * k + 1, :],
                        v2_ref[3 * k + 1:3 * k + 2, :],
                        v2_ref[3 * k + 2:3 * k + 3, :],
                        mask=maskC, count=cntC)
            x2s.append(g)

        # ---------------- per-graph max readouts (stacked to [B,F]) + batched head
        def stack_max(x, rows_per_graph, mask=None):
            xm = x if mask is None else jnp.where(mask > 0.0, x, NEG_INF)
            return jnp.concatenate(
                [jnp.max(xm[b * rows_per_graph:(b + 1) * rows_per_graph, :],
                         axis=0, keepdims=True) for b in range(B)], axis=0)

        m1 = stack_max(h1, N)          # [B, FPAD]; fc1 chunks are zero outside node cols
        m2 = stack_max(h2, N)
        m3 = stack_max(h3, N)
        m21 = stack_max(x2s[0], CP, maskC)     # [B, 30]
        m22 = stack_max(x2s[1], CP, maskC)
        m23 = stack_max(x2s[2], CP, maskC)

        n_fc1 = f2w_ref.shape[0]
        n_cls = f2w_ref.shape[1]
        hfc = (jnp.dot(m1, f1a_ref[0], preferred_element_type=f32)
               + jnp.dot(m2, f1a_ref[1], preferred_element_type=f32)
               + jnp.dot(m3, f1a_ref[2], preferred_element_type=f32)
               + jnp.dot(m21, f1b_ref[0], preferred_element_type=f32)
               + jnp.dot(m22, f1b_ref[1], preferred_element_type=f32)
               + jnp.dot(m23, f1b_ref[2], preferred_element_type=f32)
               + miscb_ref[1:2, 0:n_fc1])
        hfc = jnp.maximum(hfc, 0.0)                      # dropout p=0 -> identity
        out_ref[...] = (jnp.dot(hfc, f2w_ref[...], preferred_element_type=f32)
                        + miscb_ref[2:3, 0:n_cls])

        # ---------------- regularizers
        ent_loss = ent_tot * (1.0 / float(B * N))        # dense_diff_pool entropy (mean)
        mod_loss = -q_tot * (1.0 / float(B))
        reg_ref[...] = ent_loss + mod_loss

    return kernel


@jax.jit
def assembly_forward(params, x, pos, adj):
    f32 = jnp.float32
    B, N, fx = x.shape
    fp = pos.shape[-1]
    BN_ROWS = B * N
    hd = HIDDEN

    # ---- raw block-diagonal batch adjacency (what PyG batching produces)
    adj_blk = jnp.zeros((BN_ROWS, BN_ROWS), f32)
    for b in range(B):
        adj_blk = adj_blk.at[b * N:(b + 1) * N, b * N:(b + 1) * N].set(adj[b])

    # ---- fused node|pos input, padded to FPAD lanes
    h0 = jnp.zeros((BN_ROWS, FPAD), f32)
    h0 = h0.at[:, 0:fx].set(x.reshape(BN_ROWS, fx))
    h0 = h0.at[:, fx:fx + fp].set(pos.reshape(BN_ROWS, fp))

    # ---- level-1 fused block-diagonal layer weights, stacked [3, FPAD, FPAD]
    w1 = jnp.zeros((3, FPAD, FPAD), f32)
    w1 = w1.at[0, 0:fx, 0:hd].set(params["conv11_w"])
    w1 = w1.at[0, fx:fx + fp, hd:2 * hd].set(params["pool_conv11_w"])
    w1 = w1.at[1, 0:hd, 0:hd].set(params["conv12_w"])
    w1 = w1.at[1, hd:2 * hd, hd:2 * hd].set(params["pool_conv12_w"])
    w1 = w1.at[2, 0:hd, 0:hd].set(params["conv13_w"])
    w1 = w1.at[2, hd:2 * hd, hd:hd + C_REAL].set(params["pool_conv13_w"])

    # ---- level-1 bias/gamma/beta rows, stacked [9, FPAD]
    def vrow(node_v, pool_v, fill):
        r = jnp.full((FPAD,), fill, f32)
        r = r.at[0:hd].set(node_v)
        r = r.at[hd:hd + pool_v.shape[0]].set(pool_v)
        return r

    v1 = jnp.stack([
        vrow(params["conv11_b"], params["pool_conv11_b"], 0.0),
        vrow(params["norm11_g"], params["norm_p11_g"], 1.0),
        vrow(params["norm11_bt"], params["norm_p11_bt"], 0.0),
        vrow(params["conv12_b"], params["pool_conv12_b"], 0.0),
        vrow(params["norm12_g"], params["norm_p12_g"], 1.0),
        vrow(params["norm12_bt"], params["norm_p12_bt"], 0.0),
        vrow(params["conv13_b"], params["pool_conv13_b"], 0.0),
        vrow(params["norm13_g"], params["norm_p13_g"], 1.0),
        vrow(params["norm13_bt"], params["norm_p13_bt"], 0.0),
    ], axis=0)

    # ---- pool_fc chunk weights (act on full h1/h2/h3 rows; zero outside s-columns)
    pw = params["pool_fc_w"]                            # [160, 100]: s11 | s12 | s13
    pfc = jnp.zeros((3, FPAD, C_PAD), f32)
    pfc = pfc.at[0, hd:2 * hd, 0:C_REAL].set(pw[0:hd])
    pfc = pfc.at[1, hd:2 * hd, 0:C_REAL].set(pw[hd:2 * hd])
    pfc = pfc.at[2, hd:hd + C_REAL, 0:C_REAL].set(pw[2 * hd:2 * hd + C_REAL])

    # ---- level-2 GCN weights & BN params
    w2 = jnp.stack([params["conv21_w"], params["conv22_w"], params["conv23_w"]], axis=0)
    v2 = jnp.stack([
        params["conv21_b"], params["norm21_g"], params["norm21_bt"],
        params["conv22_b"], params["norm22_g"], params["norm22_bt"],
        params["conv23_b"], params["norm23_g"], params["norm23_bt"],
    ], axis=0)

    # ---- fc1 chunk weights (level-1 chunks padded to FPAD rows, zero outside x-cols)
    f1w = params["fc1_w"]                               # [180,50]: x11|x12|x13|x21|x22|x23
    nf1 = f1w.shape[1]
    f1a = jnp.zeros((3, FPAD, nf1), f32)
    for k in range(3):
        f1a = f1a.at[k, 0:hd, :].set(f1w[k * hd:(k + 1) * hd])
    f1b = jnp.stack([f1w[(3 + k) * hd:(4 + k) * hd] for k in range(3)], axis=0)

    # ---- misc bias rows: [pool_fc_b with -inf pads, fc1_b, fc2_b]
    f2w = params["fc2_w"]
    ncls = f2w.shape[1]
    miscb = jnp.zeros((3, C_PAD), f32)
    miscb = miscb.at[0, :].set(
        jnp.full((C_PAD,), NEG_INF, f32).at[0:C_REAL].set(params["pool_fc_b"]))
    miscb = miscb.at[1, 0:nf1].set(params["fc1_b"])
    miscb = miscb.at[2, 0:ncls].set(params["fc2_b"])

    out, reg = pl.pallas_call(
        _make_fused_kernel(B, N),
        out_shape=(jax.ShapeDtypeStruct((B, ncls), f32),
                   jax.ShapeDtypeStruct((1, 1), f32)),
    )(adj_blk, h0, w1, v1, pfc, w2, v2, f1a, f1b, f2w, miscb)
    return out, reg[0, 0]


def init_params(key):
    hd = HIDDEN
    lin_dims = {
        "conv11": (3, hd), "conv12": (hd, hd), "conv13": (hd, hd),
        "pool_conv11": (44, 30), "pool_conv12": (30, 30), "pool_conv13": (30, 100),
        "pool_fc": (160, 100),
        "conv21": (hd, hd), "conv22": (hd, hd), "conv23": (hd, hd),
        "fc1": (180, 50), "fc2": (50, 6),
    }
    bn_dims = {
        "norm11": hd, "norm12": hd, "norm13": hd,
        "norm_p11": 30, "norm_p12": 30, "norm_p13": 100,
        "norm21": hd, "norm22": hd, "norm23": hd,
    }
    params = {}
    keys = jax.random.split(key, 2 * len(lin_dims) + 2 * len(bn_dims))
    ki = iter(keys)
    for name, (fi, fo) in lin_dims.items():
        params[name + "_w"] = jax.random.normal(next(ki), (fi, fo), jnp.float32) / jnp.sqrt(float(fi))
        params[name + "_b"] = 0.01 * jax.random.normal(next(ki), (fo,), jnp.float32)
    for name, f in bn_dims.items():
        params[name + "_g"] = 1.0 + 0.1 * jax.random.normal(next(ki), (f,), jnp.float32)
        params[name + "_bt"] = 0.1 * jax.random.normal(next(ki), (f,), jnp.float32)
    return params


if __name__ == "__main__":
    key = jax.random.PRNGKey(0)
    kp, kx, kpos, ka = jax.random.split(key, 4)

    B, N = 2, 16  # 2 graphs, 16 nodes each
    params = init_params(kp)
    x = jax.random.normal(kx, (B, N, 3), jnp.float32)       # ENZYMES node features (3)
    pos = jax.random.normal(kpos, (B, N, 44), jnp.float32)  # batch.pos features (44)
    r = jax.random.uniform(ka, (B, N, N))
    r = 0.5 * (r + jnp.swapaxes(r, 1, 2))
    adj = (r > 0.6).astype(jnp.float32) * (1.0 - jnp.eye(N, dtype=jnp.float32)[None])

    out, reg = assembly_forward(params, x, pos, adj)
    out, reg = jax.block_until_ready((out, reg))

    assert out.shape == (B, 6)
    assert bool(jnp.isfinite(out).all()) and bool(jnp.isfinite(reg))
    print("KERNEL_OK")
</pallas_src>

<mosaic_0001>
module attributes {stable_mosaic.version = 11 : i64} {
  func.func @kernel(%arg0: memref<32x32xf32, #tpu.memory_space<vmem>>, %arg1: memref<32x160xf32, #tpu.memory_space<vmem>>, %arg2: memref<3x160x160xf32, #tpu.memory_space<vmem>>, %arg3: memref<9x160xf32, #tpu.memory_space<vmem>>, %arg4: memref<3x160x128xf32, #tpu.memory_space<vmem>>, %arg5: memref<3x30x30xf32, #tpu.memory_space<vmem>>, %arg6: memref<9x30xf32, #tpu.memory_space<vmem>>, %arg7: memref<3x160x50xf32, #tpu.memory_space<vmem>>, %arg8: memref<3x30x50xf32, #tpu.memory_space<vmem>>, %arg9: memref<50x6xf32, #tpu.memory_space<vmem>>, %arg10: memref<3x128xf32, #tpu.memory_space<vmem>>, %arg11: memref<2x6xf32, #tpu.memory_space<vmem>>, %arg12: memref<1x1xf32, #tpu.memory_space<vmem>>) attributes {dimension_semantics = [], scalar_prefetch = 0 : i64, scratch_operands = 0 : i64, tpu.core_type = #tpu.core_type<tc>} {
    %c0 = arith.constant 0 : index
    %c0_0 = arith.constant 0 : index
    %0 = vector.load %arg0[%c0, %c0_0] : memref<32x32xf32, #tpu.memory_space<vmem>>, vector<32x32xf32>
    %1 = tpu.iota {dimensions = array<i32: 0>} : vector<32x32xi32>
    %2 = tpu.iota {dimensions = array<i32: 1>} : vector<32x32xi32>
    %3 = arith.cmpi eq, %1, %2 : vector<32x32xi32>
    %4 = arith.extui %3 : vector<32x32xi1> to vector<32x32xi32>
    %5 = arith.sitofp %4 : vector<32x32xi32> to vector<32x32xf32>
    %6 = arith.mulf %0, %5 : vector<32x32xf32>
    %cst = arith.constant dense<0.000000e+00> : vector<32xf32>
    %7 = vector.multi_reduction <add>, %6, %cst [1] : vector<32x32xf32> to vector<32xf32>
    %8 = vector.shape_cast %7 : vector<32xf32> to vector<32x1xf32>
    %cst_1 = arith.constant 0.000000e+00 : f32
    %9 = vector.broadcast %cst_1 : f32 to vector<32x1xf32>
    %10 = arith.cmpf oeq, %8, %9 : vector<32x1xf32>
    %cst_2 = arith.constant 1.000000e+00 : f32
    %cst_3 = arith.constant 0.000000e+00 : f32
    %11 = vector.broadcast %cst_2 : f32 to vector<32x1xf32>
    %12 = vector.broadcast %cst_3 : f32 to vector<32x1xf32>
    %13 = arith.select %10, %11, %12 : vector<32x1xi1>, vector<32x1xf32>
    %14 = vector.broadcast %13 : vector<32x1xf32> to vector<32x32xf32>
    %15 = arith.mulf %14, %5 : vector<32x32xf32>
    %16 = arith.addf %0, %15 : vector<32x32xf32>
    %cst_4 = arith.constant dense<0.000000e+00> : vector<32xf32>
    %17 = vector.multi_reduction <add>, %16, %cst_4 [1] : vector<32x32xf32> to vector<32xf32>
    %18 = vector.shape_cast %17 : vector<32xf32> to vector<32x1xf32>
    %cst_5 = arith.constant dense<0.000000e+00> : vector<32xf32>
    %19 = vector.multi_reduction <add>, %16, %cst_5 [0] : vector<32x32xf32> to vector<32xf32>
    %20 = vector.shape_cast %19 : vector<32xf32> to vector<1x32xf32>
    %cst_6 = arith.constant 0.000000e+00 : f32
    %21 = vector.broadcast %cst_6 : f32 to vector<32x1xf32>
    %22 = arith.cmpf ogt, %18, %21 : vector<32x1xf32>
    %23 = math.rsqrt %18 : vector<32x1xf32>
    %cst_7 = arith.constant 0.000000e+00 : f32
    %24 = vector.broadcast %cst_7 : f32 to vector<32x1xf32>
    %25 = arith.select %22, %23, %24 : vector<32x1xi1>, vector<32x1xf32>
    %cst_8 = arith.constant 0.000000e+00 : f32
    %26 = vector.broadcast %cst_8 : f32 to vector<1x32xf32>
    %27 = arith.cmpf ogt, %20, %26 : vector<1x32xf32>
    %28 = math.rsqrt %20 : vector<1x32xf32>
    %cst_9 = arith.constant 0.000000e+00 : f32
    %29 = vector.broadcast %cst_9 : f32 to vector<1x32xf32>
    %30 = arith.select %27, %28, %29 : vector<1x32xi1>, vector<1x32xf32>
    %31 = vector.broadcast %25 : vector<32x1xf32> to vector<32x32xf32>
    %32 = arith.mulf %16, %31 : vector<32x32xf32>
    %33 = vector.broadcast %30 : vector<1x32xf32> to vector<32x32xf32>
    %34 = arith.mulf %32, %33 : vector<32x32xf32>
    %c0_10 = arith.constant 0 : index
    %c0_11 = arith.constant 0 : index
    %35 = vector.load %arg1[%c0_10, %c0_11] : memref<32x160xf32, #tpu.memory_space<vmem>>, vector<32x160xf32>
    %c0_12 = arith.constant 0 : index
    %c0_13 = arith.constant 0 : index
    %c0_14 = arith.constant 0 : index
    %36 = vector.load %arg2[%c0_12, %c0_13, %c0_14] : memref<3x160x160xf32, #tpu.memory_space<vmem>>, vector<1x160x160xf32>
    %37 = vector.shape_cast %36 : vector<1x160x160xf32> to vector<160x160xf32>
    %c0_15 = arith.constant 0 : index
    %c0_16 = arith.constant 0 : index
    %38 = vector.load %arg3[%c0_15, %c0_16] : memref<9x160xf32, #tpu.memory_space<vmem>>, vector<1x160xf32>
    %c1 = arith.constant 1 : index
    %c0_17 = arith.constant 0 : index
    %39 = vector.load %arg3[%c1, %c0_17] : memref<9x160xf32, #tpu.memory_space<vmem>>, vector<1x160xf32>
    %c2 = arith.constant 2 : index
    %c0_18 = arith.constant 0 : index
    %40 = vector.load %arg3[%c2, %c0_18] : memref<9x160xf32, #tpu.memory_space<vmem>>, vector<1x160xf32>
    %cst_19 = arith.constant dense<0.000000e+00> : vector<32x160xf32>
    %41 = tpu.matmul %35, %37, %cst_19 {dimension_numbers = #tpu.dot_dimension_numbers<[1], [0], [0], [1], [0, 0, 1, 1], [], []>} : vector<32x160xf32>, vector<160x160xf32>, vector<32x160xf32> -> vector<32x160xf32>
    %cst_20 = arith.constant dense<0.000000e+00> : vector<32x160xf32>
    %42 = tpu.matmul %34, %41, %cst_20 {dimension_numbers = #tpu.dot_dimension_numbers<[1], [0], [0], [1], [0, 0, 1, 1], [], []>} : vector<32x32xf32>, vector<32x160xf32>, vector<32x160xf32> -> vector<32x160xf32>
    %43 = vector.broadcast %38 : vector<1x160xf32> to vector<32x160xf32>
    %44 = arith.addf %42, %43 : vector<32x160xf32>
    %cst_21 = arith.constant dense<0.000000e+00> : vector<160xf32>
    %45 = vector.multi_reduction <add>, %44, %cst_21 [0] : vector<32x160xf32> to vector<160xf32>
    %46 = vector.shape_cast %45 : vector<160xf32> to vector<1x160xf32>
    %47 = arith.mulf %44, %44 : vector<32x160xf32>
    %cst_22 = arith.constant dense<0.000000e+00> : vector<160xf32>
    %48 = vector.multi_reduction <add>, %47, %cst_22 [0] : vector<32x160xf32> to vector<160xf32>
    %49 = vector.shape_cast %48 : vector<160xf32> to vector<1x160xf32>
    %cst_23 = arith.constant 3.125000e-02 : f32
    %50 = vector.broadcast %cst_23 : f32 to vector<1x160xf32>
    %51 = arith.mulf %46, %50 : vector<1x160xf32>
    %cst_24 = arith.constant 3.125000e-02 : f32
    %52 = vector.broadcast %cst_24 : f32 to vector<1x160xf32>
    %53 = arith.mulf %49, %52 : vector<1x160xf32>
    %54 = arith.mulf %51, %51 : vector<1x160xf32>
    %55 = arith.subf %53, %54 : vector<1x160xf32>
    %cst_25 = arith.constant 0.000000e+00 : f32
    %56 = vector.broadcast %cst_25 : f32 to vector<1x160xf32>
    %57 = arith.maximumf %55, %56 : vector<1x160xf32>
    %58 = vector.broadcast %51 : vector<1x160xf32> to vector<32x160xf32>
    %59 = arith.subf %44, %58 : vector<32x160xf32>
    %cst_26 = arith.constant 9.99999974E-6 : f32
    %60 = vector.broadcast %cst_26 : f32 to vector<1x160xf32>
    %61 = arith.addf %57, %60 : vector<1x160xf32>
    %62 = math.rsqrt %61 : vector<1x160xf32>
    %63 = arith.mulf %62, %39 : vector<1x160xf32>
    %64 = vector.broadcast %63 : vector<1x160xf32> to vector<32x160xf32>
    %65 = arith.mulf %59, %64 : vector<32x160xf32>
    %66 = vector.broadcast %40 : vector<1x160xf32> to vector<32x160xf32>
    %67 = arith.addf %65, %66 : vector<32x160xf32>
    %c1_27 = arith.constant 1 : index
    %c0_28 = arith.constant 0 : index
    %c0_29 = arith.constant 0 : index
    %68 = vector.load %arg2[%c1_27, %c0_28, %c0_29] : memref<3x160x160xf32, #tpu.memory_space<vmem>>, vector<1x160x160xf32>
    %69 = vector.shape_cast %68 : vector<1x160x160xf32> to vector<160x160xf32>
    %c3 = arith.constant 3 : index
    %c0_30 = arith.constant 0 : index
    %70 = vector.load %arg3[%c3, %c0_30] : memref<9x160xf32, #tpu.memory_space<vmem>>, vector<1x160xf32>
    %c4 = arith.constant 4 : index
    %c0_31 = arith.constant 0 : index
    %71 = vector.load %arg3[%c4, %c0_31] : memref<9x160xf32, #tpu.memory_space<vmem>>, vector<1x160xf32>
    %c5 = arith.constant 5 : index
    %c0_32 = arith.constant 0 : index
    %72 = vector.load %arg3[%c5, %c0_32] : memref<9x160xf32, #tpu.memory_space<vmem>>, vector<1x160xf32>
    %cst_33 = arith.constant dense<0.000000e+00> : vector<32x160xf32>
    %73 = tpu.matmul %67, %69, %cst_33 {dimension_numbers = #tpu.dot_dimension_numbers<[1], [0], [0], [1], [0, 0, 1, 1], [], []>} : vector<32x160xf32>, vector<160x160xf32>, vector<32x160xf32> -> vector<32x160xf32>
    %cst_34 = arith.constant dense<0.000000e+00> : vector<32x160xf32>
    %74 = tpu.matmul %34, %73, %cst_34 {dimension_numbers = #tpu.dot_dimension_numbers<[1], [0], [0], [1], [0, 0, 1, 1], [], []>} : vector<32x32xf32>, vector<32x160xf32>, vector<32x160xf32> -> vector<32x160xf32>
    %75 = vector.broadcast %70 : vector<1x160xf32> to vector<32x160xf32>
    %76 = arith.addf %74, %75 : vector<32x160xf32>
    %cst_35 = arith.constant dense<0.000000e+00> : vector<160xf32>
    %77 = vector.multi_reduction <add>, %76, %cst_35 [0] : vector<32x160xf32> to vector<160xf32>
    %78 = vector.shape_cast %77 : vector<160xf32> to vector<1x160xf32>
    %79 = arith.mulf %76, %76 : vector<32x160xf32>
    %cst_36 = arith.constant dense<0.000000e+00> : vector<160xf32>
    %80 = vector.multi_reduction <add>, %79, %cst_36 [0] : vector<32x160xf32> to vector<160xf32>
    %81 = vector.shape_cast %80 : vector<160xf32> to vector<1x160xf32>
    %cst_37 = arith.constant 3.125000e-02 : f32
    %82 = vector.broadcast %cst_37 : f32 to vector<1x160xf32>
    %83 = arith.mulf %78, %82 : vector<1x160xf32>
    %cst_38 = arith.constant 3.125000e-02 : f32
    %84 = vector.broadcast %cst_38 : f32 to vector<1x160xf32>
    %85 = arith.mulf %81, %84 : vector<1x160xf32>
    %86 = arith.mulf %83, %83 : vector<1x160xf32>
    %87 = arith.subf %85, %86 : vector<1x160xf32>
    %cst_39 = arith.constant 0.000000e+00 : f32
    %88 = vector.broadcast %cst_39 : f32 to vector<1x160xf32>
    %89 = arith.maximumf %87, %88 : vector<1x160xf32>
    %90 = vector.broadcast %83 : vector<1x160xf32> to vector<32x160xf32>
    %91 = arith.subf %76, %90 : vector<32x160xf32>
    %cst_40 = arith.constant 9.99999974E-6 : f32
    %92 = vector.broadcast %cst_40 : f32 to vector<1x160xf32>
    %93 = arith.addf %89, %92 : vector<1x160xf32>
    %94 = math.rsqrt %93 : vector<1x160xf32>
    %95 = arith.mulf %94, %71 : vector<1x160xf32>
    %96 = vector.broadcast %95 : vector<1x160xf32> to vector<32x160xf32>
    %97 = arith.mulf %91, %96 : vector<32x160xf32>
    %98 = vector.broadcast %72 : vector<1x160xf32> to vector<32x160xf32>
    %99 = arith.addf %97, %98 : vector<32x160xf32>
    %c2_41 = arith.constant 2 : index
    %c0_42 = arith.constant 0 : index
    %c0_43 = arith.constant 0 : index
    %100 = vector.load %arg2[%c2_41, %c0_42, %c0_43] : memref<3x160x160xf32, #tpu.memory_space<vmem>>, vector<1x160x160xf32>
    %101 = vector.shape_cast %100 : vector<1x160x160xf32> to vector<160x160xf32>
    %c6 = arith.constant 6 : index
    %c0_44 = arith.constant 0 : index
    %102 = vector.load %arg3[%c6, %c0_44] : memref<9x160xf32, #tpu.memory_space<vmem>>, vector<1x160xf32>
    %c7 = arith.constant 7 : index
    %c0_45 = arith.constant 0 : index
    %103 = vector.load %arg3[%c7, %c0_45] : memref<9x160xf32, #tpu.memory_space<vmem>>, vector<1x160xf32>
    %c8 = arith.constant 8 : index
    %c0_46 = arith.constant 0 : index
    %104 = vector.load %arg3[%c8, %c0_46] : memref<9x160xf32, #tpu.memory_space<vmem>>, vector<1x160xf32>
    %cst_47 = arith.constant dense<0.000000e+00> : vector<32x160xf32>
    %105 = tpu.matmul %99, %101, %cst_47 {dimension_numbers = #tpu.dot_dimension_numbers<[1], [0], [0], [1], [0, 0, 1, 1], [], []>} : vector<32x160xf32>, vector<160x160xf32>, vector<32x160xf32> -> vector<32x160xf32>
    %cst_48 = arith.constant dense<0.000000e+00> : vector<32x160xf32>
    %106 = tpu.matmul %34, %105, %cst_48 {dimension_numbers = #tpu.dot_dimension_numbers<[1], [0], [0], [1], [0, 0, 1, 1], [], []>} : vector<32x32xf32>, vector<32x160xf32>, vector<32x160xf32> -> vector<32x160xf32>
    %107 = vector.broadcast %102 : vector<1x160xf32> to vector<32x160xf32>
    %108 = arith.addf %106, %107 : vector<32x160xf32>
    %cst_49 = arith.constant dense<0.000000e+00> : vector<160xf32>
    %109 = vector.multi_reduction <add>, %108, %cst_49 [0] : vector<32x160xf32> to vector<160xf32>
    %110 = vector.shape_cast %109 : vector<160xf32> to vector<1x160xf32>
    %111 = arith.mulf %108, %108 : vector<32x160xf32>
    %cst_50 = arith.constant dense<0.000000e+00> : vector<160xf32>
    %112 = vector.multi_reduction <add>, %111, %cst_50 [0] : vector<32x160xf32> to vector<160xf32>
    %113 = vector.shape_cast %112 : vector<160xf32> to vector<1x160xf32>
    %cst_51 = arith.constant 3.125000e-02 : f32
    %114 = vector.broadcast %cst_51 : f32 to vector<1x160xf32>
    %115 = arith.mulf %110, %114 : vector<1x160xf32>
    %cst_52 = arith.constant 3.125000e-02 : f32
    %116 = vector.broadcast %cst_52 : f32 to vector<1x160xf32>
    %117 = arith.mulf %113, %116 : vector<1x160xf32>
    %118 = arith.mulf %115, %115 : vector<1x160xf32>
    %119 = arith.subf %117, %118 : vector<1x160xf32>
    %cst_53 = arith.constant 0.000000e+00 : f32
    %120 = vector.broadcast %cst_53 : f32 to vector<1x160xf32>
    %121 = arith.maximumf %119, %120 : vector<1x160xf32>
    %122 = vector.broadcast %115 : vector<1x160xf32> to vector<32x160xf32>
    %123 = arith.subf %108, %122 : vector<32x160xf32>
    %cst_54 = arith.constant 9.99999974E-6 : f32
    %124 = vector.broadcast %cst_54 : f32 to vector<1x160xf32>
    %125 = arith.addf %121, %124 : vector<1x160xf32>
    %126 = math.rsqrt %125 : vector<1x160xf32>
    %127 = arith.mulf %126, %103 : vector<1x160xf32>
    %128 = vector.broadcast %127 : vector<1x160xf32> to vector<32x160xf32>
    %129 = arith.mulf %123, %128 : vector<32x160xf32>
    %130 = vector.broadcast %104 : vector<1x160xf32> to vector<32x160xf32>
    %131 = arith.addf %129, %130 : vector<32x160xf32>
    %c0_55 = arith.constant 0 : index
    %c0_56 = arith.constant 0 : index
    %c0_57 = arith.constant 0 : index
    %132 = vector.load %arg4[%c0_55, %c0_56, %c0_57] : memref<3x160x128xf32, #tpu.memory_space<vmem>>, vector<1x160x128xf32>
    %133 = vector.shape_cast %132 : vector<1x160x128xf32> to vector<160x128xf32>
    %cst_58 = arith.constant dense<0.000000e+00> : vector<32x128xf32>
    %134 = tpu.matmul %67, %133, %cst_58 {dimension_numbers = #tpu.dot_dimension_numbers<[1], [0], [0], [1], [0, 0, 1, 1], [], []>} : vector<32x160xf32>, vector<160x128xf32>, vector<32x128xf32> -> vector<32x128xf32>
    %c1_59 = arith.constant 1 : index
    %c0_60 = arith.constant 0 : index
    %c0_61 = arith.constant 0 : index
    %135 = vector.load %arg4[%c1_59, %c0_60, %c0_61] : memref<3x160x128xf32, #tpu.memory_space<vmem>>, vector<1x160x128xf32>
    %136 = vector.shape_cast %135 : vector<1x160x128xf32> to vector<160x128xf32>
    %cst_62 = arith.constant dense<0.000000e+00> : vector<32x128xf32>
    %137 = tpu.matmul %99, %136, %cst_62 {dimension_numbers = #tpu.dot_dimension_numbers<[1], [0], [0], [1], [0, 0, 1, 1], [], []>} : vector<32x160xf32>, vector<160x128xf32>, vector<32x128xf32> -> vector<32x128xf32>
    %138 = arith.addf %134, %137 : vector<32x128xf32>
    %c2_63 = arith.constant 2 : index
    %c0_64 = arith.constant 0 : index
    %c0_65 = arith.constant 0 : index
    %139 = vector.load %arg4[%c2_63, %c0_64, %c0_65] : memref<3x160x128xf32, #tpu.memory_space<vmem>>, vector<1x160x128xf32>
    %140 = vector.shape_cast %139 : vector<1x160x128xf32> to vector<160x128xf32>
    %cst_66 = arith.constant dense<0.000000e+00> : vector<32x128xf32>
    %141 = tpu.matmul %131, %140, %cst_66 {dimension_numbers = #tpu.dot_dimension_numbers<[1], [0], [0], [1], [0, 0, 1, 1], [], []>} : vector<32x160xf32>, vector<160x128xf32>, vector<32x128xf32> -> vector<32x128xf32>
    %142 = arith.addf %138, %141 : vector<32x128xf32>
    %c0_67 = arith.constant 0 : index
    %c0_68 = arith.constant 0 : index
    %143 = vector.load %arg10[%c0_67, %c0_68] : memref<3x128xf32, #tpu.memory_space<vmem>>, vector<1x128xf32>
    %144 = vector.broadcast %143 : vector<1x128xf32> to vector<32x128xf32>
    %145 = arith.addf %142, %144 : vector<32x128xf32>
    %cst_69 = arith.constant dense<0xFF800000> : vector<32xf32>
    %146 = vector.multi_reduction <maximumf>, %145, %cst_69 [1] : vector<32x128xf32> to vector<32xf32>
    %147 = vector.shape_cast %146 : vector<32xf32> to vector<32x1xf32>
    %148 = vector.broadcast %147 : vector<32x1xf32> to vector<32x128xf32>
    %149 = arith.subf %145, %148 : vector<32x128xf32>
    %150 = math.exp %149 : vector<32x128xf32>
    %cst_70 = arith.constant dense<0.000000e+00> : vector<32xf32>
    %151 = vector.multi_reduction <add>, %150, %cst_70 [1] : vector<32x128xf32> to vector<32xf32>
    %152 = vector.shape_cast %151 : vector<32xf32> to vector<32x1xf32>
    %153 = vector.broadcast %152 : vector<32x1xf32> to vector<32x128xf32>
    %154 = arith.divf %150, %153 : vector<32x128xf32>
    %155 = math.log %152 : vector<32x1xf32>
    %156 = vector.broadcast %155 : vector<32x1xf32> to vector<32x128xf32>
    %157 = arith.subf %149, %156 : vector<32x128xf32>
    %cst_71 = arith.constant 0.000000e+00 : f32
    %158 = vector.broadcast %cst_71 : f32 to vector<32x128xf32>
    %159 = arith.subf %158, %154 : vector<32x128xf32>
    %160 = arith.mulf %159, %157 : vector<32x128xf32>
    %cst_72 = arith.constant dense<0.000000e+00> : vector<32xf32>
    %161 = vector.multi_reduction <add>, %160, %cst_72 [1] : vector<32x128xf32> to vector<32xf32>
    %162 = vector.shape_cast %161 : vector<32xf32> to vector<32x1xf32>
    %cst_73 = arith.constant dense<0.000000e+00> : vector<1xf32>
    %163 = vector.multi_reduction <add>, %162, %cst_73 [0] : vector<32x1xf32> to vector<1xf32>
    %164 = vector.shape_cast %163 : vector<1xf32> to vector<1x1xf32>
    %cst_74 = arith.constant dense<0.000000e+00> : vector<32x128xf32>
    %165 = tpu.matmul %0, %154, %cst_74 {dimension_numbers = #tpu.dot_dimension_numbers<[1], [0], [0], [1], [0, 0, 1, 1], [], []>} : vector<32x32xf32>, vector<32x128xf32>, vector<32x128xf32> -> vector<32x128xf32>
    %cst_75 = arith.constant dense<0.000000e+00> : vector<32xf32>
    %166 = vector.multi_reduction <add>, %0, %cst_75 [1] : vector<32x32xf32> to vector<32xf32>
    %167 = vector.shape_cast %166 : vector<32xf32> to vector<32x1xf32>
    %168 = vector.extract_strided_slice %131 {offsets = [0, 0], sizes = [32, 30], strides = [1, 1]} : vector<32x160xf32> to vector<32x30xf32>
    %cst_76 = arith.constant 0.000000e+00 : f32
    %169 = vector.broadcast %cst_76 : f32 to vector<1x1xf32>
    %170 = vector.extract_strided_slice %154 {offsets = [0, 0], sizes = [16, 128], strides = [1, 1]} : vector<32x128xf32> to vector<16x128xf32>
    %171 = vector.extract_strided_slice %165 {offsets = [0, 0], sizes = [16, 128], strides = [1, 1]} : vector<32x128xf32> to vector<16x128xf32>
    %172 = vector.extract_strided_slice %168 {offsets = [0, 0], sizes = [16, 30], strides = [1, 1]} : vector<32x30xf32> to vector<16x30xf32>
    %173 = vector.extract_strided_slice %167 {offsets = [0, 0], sizes = [16, 1], strides = [1, 1]} : vector<32x1xf32> to vector<16x1xf32>
    %cst_77 = arith.constant dense<0.000000e+00> : vector<128x30xf32>
    %174 = tpu.matmul %170, %172, %cst_77 {dimension_numbers = #tpu.dot_dimension_numbers<[0], [0], [1], [1], [0, 1, 1, 1], [], []>} : vector<16x128xf32>, vector<16x30xf32>, vector<128x30xf32> -> vector<128x30xf32>
    %cst_78 = arith.constant dense<0.000000e+00> : vector<128x128xf32>
    %175 = tpu.matmul %170, %171, %cst_78 {dimension_numbers = #tpu.dot_dimension_numbers<[0], [0], [1], [1], [0, 1, 1, 1], [], []>} : vector<16x128xf32>, vector<16x128xf32>, vector<128x128xf32> -> vector<128x128xf32>
    %cst_79 = arith.constant dense<0.000000e+00> : vector<1xf32>
    %176 = vector.multi_reduction <add>, %173, %cst_79 [0] : vector<16x1xf32> to vector<1xf32>
    %177 = vector.shape_cast %176 : vector<1xf32> to vector<1x1xf32>
    %cst_80 = arith.constant 9.99999996E-13 : f32
    %178 = vector.broadcast %cst_80 : f32 to vector<1x1xf32>
    %179 = arith.maximumf %177, %178 : vector<1x1xf32>
    %180 = arith.mulf %170, %171 : vector<16x128xf32>
    %cst_81 = arith.constant dense<0.000000e+00> : vector<16xf32>
    %181 = vector.multi_reduction <add>, %180, %cst_81 [1] : vector<16x128xf32> to vector<16xf32>
    %182 = vector.shape_cast %181 : vector<16xf32> to vector<16x1xf32>
    %cst_82 = arith.constant dense<0.000000e+00> : vector<1xf32>
    %183 = vector.multi_reduction <add>, %182, %cst_82 [0] : vector<16x1xf32> to vector<1xf32>
    %184 = vector.shape_cast %183 : vector<1xf32> to vector<1x1xf32>
    %185 = vector.broadcast %173 : vector<16x1xf32> to vector<16x128xf32>
    %186 = arith.mulf %185, %170 : vector<16x128xf32>
    %cst_83 = arith.constant dense<0.000000e+00> : vector<128xf32>
    %187 = vector.multi_reduction <add>, %186, %cst_83 [0] : vector<16x128xf32> to vector<128xf32>
    %188 = vector.shape_cast %187 : vector<128xf32> to vector<1x128xf32>
    %189 = arith.mulf %188, %188 : vector<1x128xf32>
    %cst_84 = arith.constant dense<0.000000e+00> : vector<1xf32>
    %190 = vector.multi_reduction <add>, %189, %cst_84 [1] : vector<1x128xf32> to vector<1xf32>
    %191 = vector.shape_cast %190 : vector<1xf32> to vector<1x1xf32>
    %192 = arith.divf %191, %179 : vector<1x1xf32>
    %193 = arith.subf %184, %192 : vector<1x1xf32>
    %194 = arith.divf %193, %179 : vector<1x1xf32>
    %195 = arith.addf %169, %194 : vector<1x1xf32>
    %196 = vector.extract_strided_slice %154 {offsets = [16, 0], sizes = [16, 128], strides = [1, 1]} : vector<32x128xf32> to vector<16x128xf32>
    %197 = vector.extract_strided_slice %165 {offsets = [16, 0], sizes = [16, 128], strides = [1, 1]} : vector<32x128xf32> to vector<16x128xf32>
    %198 = vector.extract_strided_slice %168 {offsets = [16, 0], sizes = [16, 30], strides = [1, 1]} : vector<32x30xf32> to vector<16x30xf32>
    %199 = vector.extract_strided_slice %167 {offsets = [16, 0], sizes = [16, 1], strides = [1, 1]} : vector<32x1xf32> to vector<16x1xf32>
    %cst_85 = arith.constant dense<0.000000e+00> : vector<128x30xf32>
    %200 = tpu.matmul %196, %198, %cst_85 {dimension_numbers = #tpu.dot_dimension_numbers<[0], [0], [1], [1], [0, 1, 1, 1], [], []>} : vector<16x128xf32>, vector<16x30xf32>, vector<128x30xf32> -> vector<128x30xf32>
    %cst_86 = arith.constant dense<0.000000e+00> : vector<128x128xf32>
    %201 = tpu.matmul %196, %197, %cst_86 {dimension_numbers = #tpu.dot_dimension_numbers<[0], [0], [1], [1], [0, 1, 1, 1], [], []>} : vector<16x128xf32>, vector<16x128xf32>, vector<128x128xf32> -> vector<128x128xf32>
    %cst_87 = arith.constant dense<0.000000e+00> : vector<1xf32>
    %202 = vector.multi_reduction <add>, %199, %cst_87 [0] : vector<16x1xf32> to vector<1xf32>
    %203 = vector.shape_cast %202 : vector<1xf32> to vector<1x1xf32>
    %cst_88 = arith.constant 9.99999996E-13 : f32
    %204 = vector.broadcast %cst_88 : f32 to vector<1x1xf32>
    %205 = arith.maximumf %203, %204 : vector<1x1xf32>
    %206 = arith.mulf %196, %197 : vector<16x128xf32>
    %cst_89 = arith.constant dense<0.000000e+00> : vector<16xf32>
    %207 = vector.multi_reduction <add>, %206, %cst_89 [1] : vector<16x128xf32> to vector<16xf32>
    %208 = vector.shape_cast %207 : vector<16xf32> to vector<16x1xf32>
    %cst_90 = arith.constant dense<0.000000e+00> : vector<1xf32>
    %209 = vector.multi_reduction <add>, %208, %cst_90 [0] : vector<16x1xf32> to vector<1xf32>
    %210 = vector.shape_cast %209 : vector<1xf32> to vector<1x1xf32>
    %211 = vector.broadcast %199 : vector<16x1xf32> to vector<16x128xf32>
    %212 = arith.mulf %211, %196 : vector<16x128xf32>
    %cst_91 = arith.constant dense<0.000000e+00> : vector<128xf32>
    %213 = vector.multi_reduction <add>, %212, %cst_91 [0] : vector<16x128xf32> to vector<128xf32>
    %214 = vector.shape_cast %213 : vector<128xf32> to vector<1x128xf32>
    %215 = arith.mulf %214, %214 : vector<1x128xf32>
    %cst_92 = arith.constant dense<0.000000e+00> : vector<1xf32>
    %216 = vector.multi_reduction <add>, %215, %cst_92 [1] : vector<1x128xf32> to vector<1xf32>
    %217 = vector.shape_cast %216 : vector<1xf32> to vector<1x1xf32>
    %218 = arith.divf %217, %205 : vector<1x1xf32>
    %219 = arith.subf %210, %218 : vector<1x1xf32>
    %220 = arith.divf %219, %205 : vector<1x1xf32>
    %221 = arith.addf %195, %220 : vector<1x1xf32>
    %cst_93 = arith.constant 0.000000e+00 : f32
    %222 = vector.broadcast %cst_93 : f32 to vector<128x128xf32>
    %223 = tpu.concatenate %175, %222 in 1 : vector<128x128xf32>, vector<128x128xf32> -> vector<128x256xf32>
    %224 = tpu.concatenate %222, %201 in 1 : vector<128x128xf32>, vector<128x128xf32> -> vector<128x256xf32>
    %225 = tpu.concatenate %223, %224 in 0 : vector<128x256xf32>, vector<128x256xf32> -> vector<256x256xf32>
    %226 = tpu.iota {dimensions = array<i32: 0>} : vector<256x256xi32>
    %227 = tpu.iota {dimensions = array<i32: 1>} : vector<256x256xi32>
    %228 = arith.cmpi eq, %226, %227 : vector<256x256xi32>
    %229 = arith.extui %228 : vector<256x256xi1> to vector<256x256xi32>
    %230 = arith.sitofp %229 : vector<256x256xi32> to vector<256x256xf32>
    %231 = arith.mulf %225, %230 : vector<256x256xf32>
    %cst_94 = arith.constant dense<0.000000e+00> : vector<256xf32>
    %232 = vector.multi_reduction <add>, %231, %cst_94 [1] : vector<256x256xf32> to vector<256xf32>
    %233 = vector.shape_cast %232 : vector<256xf32> to vector<256x1xf32>
    %cst_95 = arith.constant 0.000000e+00 : f32
    %234 = vector.broadcast %cst_95 : f32 to vector<256x1xf32>
    %235 = arith.cmpf oeq, %233, %234 : vector<256x1xf32>
    %cst_96 = arith.constant 1.000000e+00 : f32
    %cst_97 = arith.constant 0.000000e+00 : f32
    %236 = vector.broadcast %cst_96 : f32 to vector<256x1xf32>
    %237 = vector.broadcast %cst_97 : f32 to vector<256x1xf32>
    %238 = arith.select %235, %236, %237 : vector<256x1xi1>, vector<256x1xf32>
    %239 = vector.broadcast %238 : vector<256x1xf32> to vector<256x256xf32>
    %240 = arith.mulf %239, %230 : vector<256x256xf32>
    %241 = arith.addf %225, %240 : vector<256x256xf32>
    %cst_98 = arith.constant dense<0.000000e+00> : vector<256xf32>
    %242 = vector.multi_reduction <add>, %241, %cst_98 [1] : vector<256x256xf32> to vector<256xf32>
    %243 = vector.shape_cast %242 : vector<256xf32> to vector<256x1xf32>
    %cst_99 = arith.constant dense<0.000000e+00> : vector<256xf32>
    %244 = vector.multi_reduction <add>, %241, %cst_99 [0] : vector<256x256xf32> to vector<256xf32>
    %245 = vector.shape_cast %244 : vector<256xf32> to vector<1x256xf32>
    %cst_100 = arith.constant 0.000000e+00 : f32
    %246 = vector.broadcast %cst_100 : f32 to vector<256x1xf32>
    %247 = arith.cmpf ogt, %243, %246 : vector<256x1xf32>
    %248 = math.rsqrt %243 : vector<256x1xf32>
    %cst_101 = arith.constant 0.000000e+00 : f32
    %249 = vector.broadcast %cst_101 : f32 to vector<256x1xf32>
    %250 = arith.select %247, %248, %249 : vector<256x1xi1>, vector<256x1xf32>
    %cst_102 = arith.constant 0.000000e+00 : f32
    %251 = vector.broadcast %cst_102 : f32 to vector<1x256xf32>
    %252 = arith.cmpf ogt, %245, %251 : vector<1x256xf32>
    %253 = math.rsqrt %245 : vector<1x256xf32>
    %cst_103 = arith.constant 0.000000e+00 : f32
    %254 = vector.broadcast %cst_103 : f32 to vector<1x256xf32>
    %255 = arith.select %252, %253, %254 : vector<1x256xi1>, vector<1x256xf32>
    %256 = vector.broadcast %250 : vector<256x1xf32> to vector<256x256xf32>
    %257 = arith.mulf %241, %256 : vector<256x256xf32>
    %258 = vector.broadcast %255 : vector<1x256xf32> to vector<256x256xf32>
    %259 = arith.mulf %257, %258 : vector<256x256xf32>
    %260 = tpu.concatenate %174, %200 in 0 : vector<128x30xf32>, vector<128x30xf32> -> vector<256x30xf32>
    %261 = tpu.iota {dimensions = array<i32: 0>} : vector<256x1xi32>
    %c127_i32 = arith.constant 127 : i32
    %262 = vector.broadcast %c127_i32 : i32 to vector<256x1xi32>
    %263 = arith.andi %261, %262 : vector<256x1xi32>
    %c100_i32 = arith.constant 100 : i32
    %264 = vector.broadcast %c100_i32 : i32 to vector<256x1xi32>
    %265 = arith.cmpi slt, %263, %264 : vector<256x1xi32>
    %266 = arith.extui %265 : vector<256x1xi1> to vector<256x1xi32>
    %267 = arith.sitofp %266 : vector<256x1xi32> to vector<256x1xf32>
    %c0_104 = arith.constant 0 : index
    %c0_105 = arith.constant 0 : index
    %c0_106 = arith.constant 0 : index
    %268 = vector.load %arg5[%c0_104, %c0_105, %c0_106] : memref<3x30x30xf32, #tpu.memory_space<vmem>>, vector<1x30x30xf32>
    %269 = vector.shape_cast %268 : vector<1x30x30xf32> to vector<30x30xf32>
    %c0_107 = arith.constant 0 : index
    %c0_108 = arith.constant 0 : index
    %270 = vector.load %arg6[%c0_107, %c0_108] : memref<9x30xf32, #tpu.memory_space<vmem>>, vector<1x30xf32>
    %c1_109 = arith.constant 1 : index
    %c0_110 = arith.constant 0 : index
    %271 = vector.load %arg6[%c1_109, %c0_110] : memref<9x30xf32, #tpu.memory_space<vmem>>, vector<1x30xf32>
    %c2_111 = arith.constant 2 : index
    %c0_112 = arith.constant 0 : index
    %272 = vector.load %arg6[%c2_111, %c0_112] : memref<9x30xf32, #tpu.memory_space<vmem>>, vector<1x30xf32>
    %cst_113 = arith.constant dense<0.000000e+00> : vector<256x30xf32>
    %273 = tpu.matmul %260, %269, %cst_113 {dimension_numbers = #tpu.dot_dimension_numbers<[1], [0], [0], [1], [0, 0, 1, 1], [], []>} : vector<256x30xf32>, vector<30x30xf32>, vector<256x30xf32> -> vector<256x30xf32>
    %cst_114 = arith.constant dense<0.000000e+00> : vector<256x30xf32>
    %274 = tpu.matmul %259, %273, %cst_114 {dimension_numbers = #tpu.dot_dimension_numbers<[1], [0], [0], [1], [0, 0, 1, 1], [], []>} : vector<256x256xf32>, vector<256x30xf32>, vector<256x30xf32> -> vector<256x30xf32>
    %275 = vector.broadcast %270 : vector<1x30xf32> to vector<256x30xf32>
    %276 = arith.addf %274, %275 : vector<256x30xf32>
    %277 = vector.broadcast %267 : vector<256x1xf32> to vector<256x30xf32>
    %278 = arith.mulf %276, %277 : vector<256x30xf32>
    %cst_115 = arith.constant dense<0.000000e+00> : vector<30xf32>
    %279 = vector.multi_reduction <add>, %278, %cst_115 [0] : vector<256x30xf32> to vector<30xf32>
    %280 = vector.shape_cast %279 : vector<30xf32> to vector<1x30xf32>
    %281 = arith.mulf %278, %278 : vector<256x30xf32>
    %cst_116 = arith.constant dense<0.000000e+00> : vector<30xf32>
    %282 = vector.multi_reduction <add>, %281, %cst_116 [0] : vector<256x30xf32> to vector<30xf32>
    %283 = vector.shape_cast %282 : vector<30xf32> to vector<1x30xf32>
    %cst_117 = arith.constant 5.000000e-03 : f32
    %284 = vector.broadcast %cst_117 : f32 to vector<1x30xf32>
    %285 = arith.mulf %280, %284 : vector<1x30xf32>
    %cst_118 = arith.constant 5.000000e-03 : f32
    %286 = vector.broadcast %cst_118 : f32 to vector<1x30xf32>
    %287 = arith.mulf %283, %286 : vector<1x30xf32>
    %288 = arith.mulf %285, %285 : vector<1x30xf32>
    %289 = arith.subf %287, %288 : vector<1x30xf32>
    %cst_119 = arith.constant 0.000000e+00 : f32
    %290 = vector.broadcast %cst_119 : f32 to vector<1x30xf32>
    %291 = arith.maximumf %289, %290 : vector<1x30xf32>
    %292 = vector.broadcast %285 : vector<1x30xf32> to vector<256x30xf32>
    %293 = arith.subf %276, %292 : vector<256x30xf32>
    %cst_120 = arith.constant 9.99999974E-6 : f32
    %294 = vector.broadcast %cst_120 : f32 to vector<1x30xf32>
    %295 = arith.addf %291, %294 : vector<1x30xf32>
    %296 = math.rsqrt %295 : vector<1x30xf32>
    %297 = arith.mulf %296, %271 : vector<1x30xf32>
    %298 = vector.broadcast %297 : vector<1x30xf32> to vector<256x30xf32>
    %299 = arith.mulf %293, %298 : vector<256x30xf32>
    %300 = vector.broadcast %272 : vector<1x30xf32> to vector<256x30xf32>
    %301 = arith.addf %299, %300 : vector<256x30xf32>
    %c1_121 = arith.constant 1 : index
    %c0_122 = arith.constant 0 : index
    %c0_123 = arith.constant 0 : index
    %302 = vector.load %arg5[%c1_121, %c0_122, %c0_123] : memref<3x30x30xf32, #tpu.memory_space<vmem>>, vector<1x30x30xf32>
    %303 = vector.shape_cast %302 : vector<1x30x30xf32> to vector<30x30xf32>
    %c3_124 = arith.constant 3 : index
    %c0_125 = arith.constant 0 : index
    %304 = vector.load %arg6[%c3_124, %c0_125] : memref<9x30xf32, #tpu.memory_space<vmem>>, vector<1x30xf32>
    %c4_126 = arith.constant 4 : index
    %c0_127 = arith.constant 0 : index
    %305 = vector.load %arg6[%c4_126, %c0_127] : memref<9x30xf32, #tpu.memory_space<vmem>>, vector<1x30xf32>
    %c5_128 = arith.constant 5 : index
    %c0_129 = arith.constant 0 : index
    %306 = vector.load %arg6[%c5_128, %c0_129] : memref<9x30xf32, #tpu.memory_space<vmem>>, vector<1x30xf32>
    %cst_130 = arith.constant dense<0.000000e+00> : vector<256x30xf32>
    %307 = tpu.matmul %301, %303, %cst_130 {dimension_numbers = #tpu.dot_dimension_numbers<[1], [0], [0], [1], [0, 0, 1, 1], [], []>} : vector<256x30xf32>, vector<30x30xf32>, vector<256x30xf32> -> vector<256x30xf32>
    %cst_131 = arith.constant dense<0.000000e+00> : vector<256x30xf32>
    %308 = tpu.matmul %259, %307, %cst_131 {dimension_numbers = #tpu.dot_dimension_numbers<[1], [0], [0], [1], [0, 0, 1, 1], [], []>} : vector<256x256xf32>, vector<256x30xf32>, vector<256x30xf32> -> vector<256x30xf32>
    %309 = vector.broadcast %304 : vector<1x30xf32> to vector<256x30xf32>
    %310 = arith.addf %308, %309 : vector<256x30xf32>
    %311 = vector.broadcast %267 : vector<256x1xf32> to vector<256x30xf32>
    %312 = arith.mulf %310, %311 : vector<256x30xf32>
    %cst_132 = arith.constant dense<0.000000e+00> : vector<30xf32>
    %313 = vector.multi_reduction <add>, %312, %cst_132 [0] : vector<256x30xf32> to vector<30xf32>
    %314 = vector.shape_cast %313 : vector<30xf32> to vector<1x30xf32>
    %315 = arith.mulf %312, %312 : vector<256x30xf32>
    %cst_133 = arith.constant dense<0.000000e+00> : vector<30xf32>
    %316 = vector.multi_reduction <add>, %315, %cst_133 [0] : vector<256x30xf32> to vector<30xf32>
    %317 = vector.shape_cast %316 : vector<30xf32> to vector<1x30xf32>
    %cst_134 = arith.constant 5.000000e-03 : f32
    %318 = vector.broadcast %cst_134 : f32 to vector<1x30xf32>
    %319 = arith.mulf %314, %318 : vector<1x30xf32>
    %cst_135 = arith.constant 5.000000e-03 : f32
    %320 = vector.broadcast %cst_135 : f32 to vector<1x30xf32>
    %321 = arith.mulf %317, %320 : vector<1x30xf32>
    %322 = arith.mulf %319, %319 : vector<1x30xf32>
    %323 = arith.subf %321, %322 : vector<1x30xf32>
    %cst_136 = arith.constant 0.000000e+00 : f32
    %324 = vector.broadcast %cst_136 : f32 to vector<1x30xf32>
    %325 = arith.maximumf %323, %324 : vector<1x30xf32>
    %326 = vector.broadcast %319 : vector<1x30xf32> to vector<256x30xf32>
    %327 = arith.subf %310, %326 : vector<256x30xf32>
    %cst_137 = arith.constant 9.99999974E-6 : f32
    %328 = vector.broadcast %cst_137 : f32 to vector<1x30xf32>
    %329 = arith.addf %325, %328 : vector<1x30xf32>
    %330 = math.rsqrt %329 : vector<1x30xf32>
    %331 = arith.mulf %330, %305 : vector<1x30xf32>
    %332 = vector.broadcast %331 : vector<1x30xf32> to vector<256x30xf32>
    %333 = arith.mulf %327, %332 : vector<256x30xf32>
    %334 = vector.broadcast %306 : vector<1x30xf32> to vector<256x30xf32>
    %335 = arith.addf %333, %334 : vector<256x30xf32>
    %c2_138 = arith.constant 2 : index
    %c0_139 = arith.constant 0 : index
    %c0_140 = arith.constant 0 : index
    %336 = vector.load %arg5[%c2_138, %c0_139, %c0_140] : memref<3x30x30xf32, #tpu.memory_space<vmem>>, vector<1x30x30xf32>
    %337 = vector.shape_cast %336 : vector<1x30x30xf32> to vector<30x30xf32>
    %c6_141 = arith.constant 6 : index
    %c0_142 = arith.constant 0 : index
    %338 = vector.load %arg6[%c6_141, %c0_142] : memref<9x30xf32, #tpu.memory_space<vmem>>, vector<1x30xf32>
    %c7_143 = arith.constant 7 : index
    %c0_144 = arith.constant 0 : index
    %339 = vector.load %arg6[%c7_143, %c0_144] : memref<9x30xf32, #tpu.memory_space<vmem>>, vector<1x30xf32>
    %c8_145 = arith.constant 8 : index
    %c0_146 = arith.constant 0 : index
    %340 = vector.load %arg6[%c8_145, %c0_146] : memref<9x30xf32, #tpu.memory_space<vmem>>, vector<1x30xf32>
    %cst_147 = arith.constant dense<0.000000e+00> : vector<256x30xf32>
    %341 = tpu.matmul %335, %337, %cst_147 {dimension_numbers = #tpu.dot_dimension_numbers<[1], [0], [0], [1], [0, 0, 1, 1], [], []>} : vector<256x30xf32>, vector<30x30xf32>, vector<256x30xf32> -> vector<256x30xf32>
    %cst_148 = arith.constant dense<0.000000e+00> : vector<256x30xf32>
    %342 = tpu.matmul %259, %341, %cst_148 {dimension_numbers = #tpu.dot_dimension_numbers<[1], [0], [0], [1], [0, 0, 1, 1], [], []>} : vector<256x256xf32>, vector<256x30xf32>, vector<256x30xf32> -> vector<256x30xf32>
    %343 = vector.broadcast %338 : vector<1x30xf32> to vector<256x30xf32>
    %344 = arith.addf %342, %343 : vector<256x30xf32>
    %345 = vector.broadcast %267 : vector<256x1xf32> to vector<256x30xf32>
    %346 = arith.mulf %344, %345 : vector<256x30xf32>
    %cst_149 = arith.constant dense<0.000000e+00> : vector<30xf32>
    %347 = vector.multi_reduction <add>, %346, %cst_149 [0] : vector<256x30xf32> to vector<30xf32>
    %348 = vector.shape_cast %347 : vector<30xf32> to vector<1x30xf32>
    %349 = arith.mulf %346, %346 : vector<256x30xf32>
    %cst_150 = arith.constant dense<0.000000e+00> : vector<30xf32>
    %350 = vector.multi_reduction <add>, %349, %cst_150 [0] : vector<256x30xf32> to vector<30xf32>
    %351 = vector.shape_cast %350 : vector<30xf32> to vector<1x30xf32>
    %cst_151 = arith.constant 5.000000e-03 : f32
    %352 = vector.broadcast %cst_151 : f32 to vector<1x30xf32>
    %353 = arith.mulf %348, %352 : vector<1x30xf32>
    %cst_152 = arith.constant 5.000000e-03 : f32
    %354 = vector.broadcast %cst_152 : f32 to vector<1x30xf32>
    %355 = arith.mulf %351, %354 : vector<1x30xf32>
    %356 = arith.mulf %353, %353 : vector<1x30xf32>
    %357 = arith.subf %355, %356 : vector<1x30xf32>
    %cst_153 = arith.constant 0.000000e+00 : f32
    %358 = vector.broadcast %cst_153 : f32 to vector<1x30xf32>
    %359 = arith.maximumf %357, %358 : vector<1x30xf32>
    %360 = vector.broadcast %353 : vector<1x30xf32> to vector<256x30xf32>
    %361 = arith.subf %344, %360 : vector<256x30xf32>
    %cst_154 = arith.constant 9.99999974E-6 : f32
    %362 = vector.broadcast %cst_154 : f32 to vector<1x30xf32>
    %363 = arith.addf %359, %362 : vector<1x30xf32>
    %364 = math.rsqrt %363 : vector<1x30xf32>
    %365 = arith.mulf %364, %339 : vector<1x30xf32>
    %366 = vector.broadcast %365 : vector<1x30xf32> to vector<256x30xf32>
    %367 = arith.mulf %361, %366 : vector<256x30xf32>
    %368 = vector.broadcast %340 : vector<1x30xf32> to vector<256x30xf32>
    %369 = arith.addf %367, %368 : vector<256x30xf32>
    %370 = vector.extract_strided_slice %67 {offsets = [0, 0], sizes = [16, 160], strides = [1, 1]} : vector<32x160xf32> to vector<16x160xf32>
    %cst_155 = arith.constant dense<0xFF800000> : vector<160xf32>
    %371 = vector.multi_reduction <maximumf>, %370, %cst_155 [0] : vector<16x160xf32> to vector<160xf32>
    %372 = vector.shape_cast %371 : vector<160xf32> to vector<1x160xf32>
    %373 = vector.extract_strided_slice %67 {offsets = [16, 0], sizes = [16, 160], strides = [1, 1]} : vector<32x160xf32> to vector<16x160xf32>
    %cst_156 = arith.constant dense<0xFF800000> : vector<160xf32>
    %374 = vector.multi_reduction <maximumf>, %373, %cst_156 [0] : vector<16x160xf32> to vector<160xf32>
    %375 = vector.shape_cast %374 : vector<160xf32> to vector<1x160xf32>
    %376 = tpu.concatenate %372, %375 in 0 : vector<1x160xf32>, vector<1x160xf32> -> vector<2x160xf32>
    %377 = vector.extract_strided_slice %99 {offsets = [0, 0], sizes = [16, 160], strides = [1, 1]} : vector<32x160xf32> to vector<16x160xf32>
    %cst_157 = arith.constant dense<0xFF800000> : vector<160xf32>
    %378 = vector.multi_reduction <maximumf>, %377, %cst_157 [0] : vector<16x160xf32> to vector<160xf32>
    %379 = vector.shape_cast %378 : vector<160xf32> to vector<1x160xf32>
    %380 = vector.extract_strided_slice %99 {offsets = [16, 0], sizes = [16, 160], strides = [1, 1]} : vector<32x160xf32> to vector<16x160xf32>
    %cst_158 = arith.constant dense<0xFF800000> : vector<160xf32>
    %381 = vector.multi_reduction <maximumf>, %380, %cst_158 [0] : vector<16x160xf32> to vector<160xf32>
    %382 = vector.shape_cast %381 : vector<160xf32> to vector<1x160xf32>
    %383 = tpu.concatenate %379, %382 in 0 : vector<1x160xf32>, vector<1x160xf32> -> vector<2x160xf32>
    %384 = vector.extract_strided_slice %131 {offsets = [0, 0], sizes = [16, 160], strides = [1, 1]} : vector<32x160xf32> to vector<16x160xf32>
    %cst_159 = arith.constant dense<0xFF800000> : vector<160xf32>
    %385 = vector.multi_reduction <maximumf>, %384, %cst_159 [0] : vector<16x160xf32> to vector<160xf32>
    %386 = vector.shape_cast %385 : vector<160xf32> to vector<1x160xf32>
    %387 = vector.extract_strided_slice %131 {offsets = [16, 0], sizes = [16, 160], strides = [1, 1]} : vector<32x160xf32> to vector<16x160xf32>
    %cst_160 = arith.constant dense<0xFF800000> : vector<160xf32>
    %388 = vector.multi_reduction <maximumf>, %387, %cst_160 [0] : vector<16x160xf32> to vector<160xf32>
    %389 = vector.shape_cast %388 : vector<160xf32> to vector<1x160xf32>
    %390 = tpu.concatenate %386, %389 in 0 : vector<1x160xf32>, vector<1x160xf32> -> vector<2x160xf32>
    %cst_161 = arith.constant 0.000000e+00 : f32
    %391 = vector.broadcast %cst_161 : f32 to vector<256x1xf32>
    %392 = arith.cmpf ogt, %267, %391 : vector<256x1xf32>
    %cst_162 = arith.constant -1.000000e+30 : f32
    %393 = vector.shape_cast %392 : vector<256x1xi1> to vector<256x1xi1>
    %394 = vector.broadcast %393 : vector<256x1xi1> to vector<256x30xi1>
    %395 = vector.broadcast %cst_162 : f32 to vector<256x30xf32>
    %396 = arith.select %394, %301, %395 : vector<256x30xi1>, vector<256x30xf32>
    %397 = vector.extract_strided_slice %396 {offsets = [0, 0], sizes = [128, 30], strides = [1, 1]} : vector<256x30xf32> to vector<128x30xf32>
    %cst_163 = arith.constant dense<0xFF800000> : vector<30xf32>
    %398 = vector.multi_reduction <maximumf>, %397, %cst_163 [0] : vector<128x30xf32> to vector<30xf32>
    %399 = vector.shape_cast %398 : vector<30xf32> to vector<1x30xf32>
    %400 = vector.extract_strided_slice %396 {offsets = [128, 0], sizes = [128, 30], strides = [1, 1]} : vector<256x30xf32> to vector<128x30xf32>
    %cst_164 = arith.constant dense<0xFF800000> : vector<30xf32>
    %401 = vector.multi_reduction <maximumf>, %400, %cst_164 [0] : vector<128x30xf32> to vector<30xf32>
    %402 = vector.shape_cast %401 : vector<30xf32> to vector<1x30xf32>
    %403 = tpu.concatenate %399, %402 in 0 : vector<1x30xf32>, vector<1x30xf32> -> vector<2x30xf32>
    %cst_165 = arith.constant 0.000000e+00 : f32
    %404 = vector.broadcast %cst_165 : f32 to vector<256x1xf32>
    %405 = arith.cmpf ogt, %267, %404 : vector<256x1xf32>
    %cst_166 = arith.constant -1.000000e+30 : f32
    %406 = vector.shape_cast %405 : vector<256x1xi1> to vector<256x1xi1>
    %407 = vector.broadcast %406 : vector<256x1xi1> to vector<256x30xi1>
    %408 = vector.broadcast %cst_166 : f32 to vector<256x30xf32>
    %409 = arith.select %407, %335, %408 : vector<256x30xi1>, vector<256x30xf32>
    %410 = vector.extract_strided_slice %409 {offsets = [0, 0], sizes = [128, 30], strides = [1, 1]} : vector<256x30xf32> to vector<128x30xf32>
    %cst_167 = arith.constant dense<0xFF800000> : vector<30xf32>
    %411 = vector.multi_reduction <maximumf>, %410, %cst_167 [0] : vector<128x30xf32> to vector<30xf32>
    %412 = vector.shape_cast %411 : vector<30xf32> to vector<1x30xf32>
    %413 = vector.extract_strided_slice %409 {offsets = [128, 0], sizes = [128, 30], strides = [1, 1]} : vector<256x30xf32> to vector<128x30xf32>
    %cst_168 = arith.constant dense<0xFF800000> : vector<30xf32>
    %414 = vector.multi_reduction <maximumf>, %413, %cst_168 [0] : vector<128x30xf32> to vector<30xf32>
    %415 = vector.shape_cast %414 : vector<30xf32> to vector<1x30xf32>
    %416 = tpu.concatenate %412, %415 in 0 : vector<1x30xf32>, vector<1x30xf32> -> vector<2x30xf32>
    %cst_169 = arith.constant 0.000000e+00 : f32
    %417 = vector.broadcast %cst_169 : f32 to vector<256x1xf32>
    %418 = arith.cmpf ogt, %267, %417 : vector<256x1xf32>
    %cst_170 = arith.constant -1.000000e+30 : f32
    %419 = vector.shape_cast %418 : vector<256x1xi1> to vector<256x1xi1>
    %420 = vector.broadcast %419 : vector<256x1xi1> to vector<256x30xi1>
    %421 = vector.broadcast %cst_170 : f32 to vector<256x30xf32>
    %422 = arith.select %420, %369, %421 : vector<256x30xi1>, vector<256x30xf32>
    %423 = vector.extract_strided_slice %422 {offsets = [0, 0], sizes = [128, 30], strides = [1, 1]} : vector<256x30xf32> to vector<128x30xf32>
    %cst_171 = arith.constant dense<0xFF800000> : vector<30xf32>
    %424 = vector.multi_reduction <maximumf>, %423, %cst_171 [0] : vector<128x30xf32> to vector<30xf32>
    %425 = vector.shape_cast %424 : vector<30xf32> to vector<1x30xf32>
    %426 = vector.extract_strided_slice %422 {offsets = [128, 0], sizes = [128, 30], strides = [1, 1]} : vector<256x30xf32> to vector<128x30xf32>
    %cst_172 = arith.constant dense<0xFF800000> : vector<30xf32>
    %427 = vector.multi_reduction <maximumf>, %426, %cst_172 [0] : vector<128x30xf32> to vector<30xf32>
    %428 = vector.shape_cast %427 : vector<30xf32> to vector<1x30xf32>
    %429 = tpu.concatenate %425, %428 in 0 : vector<1x30xf32>, vector<1x30xf32> -> vector<2x30xf32>
    %c0_173 = arith.constant 0 : index
    %c0_174 = arith.constant 0 : index
    %c0_175 = arith.constant 0 : index
    %430 = vector.load %arg7[%c0_173, %c0_174, %c0_175] : memref<3x160x50xf32, #tpu.memory_space<vmem>>, vector<1x160x50xf32>
    %431 = vector.shape_cast %430 : vector<1x160x50xf32> to vector<160x50xf32>
    %cst_176 = arith.constant dense<0.000000e+00> : vector<2x50xf32>
    %432 = tpu.matmul %376, %431, %cst_176 {dimension_numbers = #tpu.dot_dimension_numbers<[1], [0], [0], [1], [0, 0, 1, 1], [], []>} : vector<2x160xf32>, vector<160x50xf32>, vector<2x50xf32> -> vector<2x50xf32>
    %c1_177 = arith.constant 1 : index
    %c0_178 = arith.constant 0 : index
    %c0_179 = arith.constant 0 : index
    %433 = vector.load %arg7[%c1_177, %c0_178, %c0_179] : memref<3x160x50xf32, #tpu.memory_space<vmem>>, vector<1x160x50xf32>
    %434 = vector.shape_cast %433 : vector<1x160x50xf32> to vector<160x50xf32>
    %cst_180 = arith.constant dense<0.000000e+00> : vector<2x50xf32>
    %435 = tpu.matmul %383, %434, %cst_180 {dimension_numbers = #tpu.dot_dimension_numbers<[1], [0], [0], [1], [0, 0, 1, 1], [], []>} : vector<2x160xf32>, vector<160x50xf32>, vector<2x50xf32> -> vector<2x50xf32>
    %436 = arith.addf %432, %435 : vector<2x50xf32>
    %c2_181 = arith.constant 2 : index
    %c0_182 = arith.constant 0 : index
    %c0_183 = arith.constant 0 : index
    %437 = vector.load %arg7[%c2_181, %c0_182, %c0_183] : memref<3x160x50xf32, #tpu.memory_space<vmem>>, vector<1x160x50xf32>
    %438 = vector.shape_cast %437 : vector<1x160x50xf32> to vector<160x50xf32>
    %cst_184 = arith.constant dense<0.000000e+00> : vector<2x50xf32>
    %439 = tpu.matmul %390, %438, %cst_184 {dimension_numbers = #tpu.dot_dimension_numbers<[1], [0], [0], [1], [0, 0, 1, 1], [], []>} : vector<2x160xf32>, vector<160x50xf32>, vector<2x50xf32> -> vector<2x50xf32>
    %440 = arith.addf %436, %439 : vector<2x50xf32>
    %c0_185 = arith.constant 0 : index
    %c0_186 = arith.constant 0 : index
    %c0_187 = arith.constant 0 : index
    %441 = vector.load %arg8[%c0_185, %c0_186, %c0_187] : memref<3x30x50xf32, #tpu.memory_space<vmem>>, vector<1x30x50xf32>
    %442 = vector.shape_cast %441 : vector<1x30x50xf32> to vector<30x50xf32>
    %cst_188 = arith.constant dense<0.000000e+00> : vector<2x50xf32>
    %443 = tpu.matmul %403, %442, %cst_188 {dimension_numbers = #tpu.dot_dimension_numbers<[1], [0], [0], [1], [0, 0, 1, 1], [], []>} : vector<2x30xf32>, vector<30x50xf32>, vector<2x50xf32> -> vector<2x50xf32>
    %444 = arith.addf %440, %443 : vector<2x50xf32>
    %c1_189 = arith.constant 1 : index
    %c0_190 = arith.constant 0 : index
    %c0_191 = arith.constant 0 : index
    %445 = vector.load %arg8[%c1_189, %c0_190, %c0_191] : memref<3x30x50xf32, #tpu.memory_space<vmem>>, vector<1x30x50xf32>
    %446 = vector.shape_cast %445 : vector<1x30x50xf32> to vector<30x50xf32>
    %cst_192 = arith.constant dense<0.000000e+00> : vector<2x50xf32>
    %447 = tpu.matmul %416, %446, %cst_192 {dimension_numbers = #tpu.dot_dimension_numbers<[1], [0], [0], [1], [0, 0, 1, 1], [], []>} : vector<2x30xf32>, vector<30x50xf32>, vector<2x50xf32> -> vector<2x50xf32>
    %448 = arith.addf %444, %447 : vector<2x50xf32>
    %c2_193 = arith.constant 2 : index
    %c0_194 = arith.constant 0 : index
    %c0_195 = arith.constant 0 : index
    %449 = vector.load %arg8[%c2_193, %c0_194, %c0_195] : memref<3x30x50xf32, #tpu.memory_space<vmem>>, vector<1x30x50xf32>
    %450 = vector.shape_cast %449 : vector<1x30x50xf32> to vector<30x50xf32>
    %cst_196 = arith.constant dense<0.000000e+00> : vector<2x50xf32>
    %451 = tpu.matmul %429, %450, %cst_196 {dimension_numbers = #tpu.dot_dimension_numbers<[1], [0], [0], [1], [0, 0, 1, 1], [], []>} : vector<2x30xf32>, vector<30x50xf32>, vector<2x50xf32> -> vector<2x50xf32>
    %452 = arith.addf %448, %451 : vector<2x50xf32>
    %c1_197 = arith.constant 1 : index
    %c0_198 = arith.constant 0 : index
    %453 = vector.load %arg10[%c1_197, %c0_198] : memref<3x128xf32, #tpu.memory_space<vmem>>, vector<1x50xf32>
    %454 = vector.broadcast %453 : vector<1x50xf32> to vector<2x50xf32>
    %455 = arith.addf %452, %454 : vector<2x50xf32>
    %cst_199 = arith.constant 0.000000e+00 : f32
    %456 = vector.broadcast %cst_199 : f32 to vector<2x50xf32>
    %457 = arith.maximumf %455, %456 : vector<2x50xf32>
    %c0_200 = arith.constant 0 : index
    %c0_201 = arith.constant 0 : index
    %458 = vector.load %arg9[%c0_200, %c0_201] : memref<50x6xf32, #tpu.memory_space<vmem>>, vector<50x6xf32>
    %cst_202 = arith.constant dense<0.000000e+00> : vector<2x6xf32>
    %459 = tpu.matmul %457, %458, %cst_202 {dimension_numbers = #tpu.dot_dimension_numbers<[1], [0], [0], [1], [0, 0, 1, 1], [], []>} : vector<2x50xf32>, vector<50x6xf32>, vector<2x6xf32> -> vector<2x6xf32>
    %c2_203 = arith.constant 2 : index
    %c0_204 = arith.constant 0 : index
    %460 = vector.load %arg10[%c2_203, %c0_204] : memref<3x128xf32, #tpu.memory_space<vmem>>, vector<1x6xf32>
    %461 = vector.broadcast %460 : vector<1x6xf32> to vector<2x6xf32>
    %462 = arith.addf %459, %461 : vector<2x6xf32>
    %c0_205 = arith.constant 0 : index
    %c0_206 = arith.constant 0 : index
    %463 = vector.load %arg11[%c0_205, %c0_206] : memref<2x6xf32, #tpu.memory_space<vmem>>, vector<2x6xf32>
    tpu.vector_store %arg11[%c0_205, %c0_206], %462 {strides = array<i32>} : memref<2x6xf32, #tpu.memory_space<vmem>>, vector<2x6xf32>,
    %cst_207 = arith.constant 3.125000e-02 : f32
    %464 = vector.broadcast %cst_207 : f32 to vector<1x1xf32>
    %465 = arith.mulf %164, %464 : vector<1x1xf32>
    %cst_208 = arith.constant 0.000000e+00 : f32
    %466 = vector.broadcast %cst_208 : f32 to vector<1x1xf32>
    %467 = arith.subf %466, %221 : vector<1x1xf32>
    %cst_209 = arith.constant 5.000000e-01 : f32
    %468 = vector.broadcast %cst_209 : f32 to vector<1x1xf32>
    %469 = arith.mulf %467, %468 : vector<1x1xf32>
    %470 = arith.addf %465, %469 : vector<1x1xf32>
    %c0_210 = arith.constant 0 : index
    %c0_211 = arith.constant 0 : index
    %471 = vector.load %arg12[%c0_210, %c0_211] : memref<1x1xf32, #tpu.memory_space<vmem>>, vector<1x1xf32>
    tpu.vector_store %arg12[%c0_210, %c0_211], %470 {strides = array<i32>} : memref<1x1xf32, #tpu.memory_space<vmem>>, vector<1x1xf32>,
    return
  }
}

</mosaic_0001>

<bundles_post_ra>
// kernel: assembly_forward.1
= control target key start
LH: loop header
LB: loop body
LE: loop exit
PB: predicated region body
PF: predicated region fallthrough
CT: control target
= control target key end

     0   :  { %18 = vsyncpa [#allocation3], 0  ;;  %v46_v0 = vlaneseq  ;;  %v13660_v4 = vmov 0.0   ;;  %vm69_vm0 = vcmask 261120   ;;  %s13647_s0 = inlined_call_operand.vmem [shape: f32[32,32], index: 0, kind: input, shape index: {}]   ;;  %s13648_s1 = inlined_call_operand.vmem [shape: f32[32,160], index: 1, kind: input, shape index: {}]   ;;  %s13649_s2 = inlined_call_operand.vmem [shape: f32[3,160,160], index: 2, kind: input, shape index: {}]   ;;  %s13650_s3 = inlined_call_operand.vmem [shape: f32[9,160], index: 3, kind: input, shape index: {}]   ;;  %s13651_s4 = inlined_call_operand.vmem [shape: f32[3,160,128], index: 4, kind: input, shape index: {}]   ;;  %s13652_s5 = inlined_call_operand.vmem [shape: f32[3,30,30], index: 5, kind: input, shape index: {}]   ;;  %s13653_s6 = inlined_call_operand.vmem [shape: f32[9,30], index: 6, kind: input, shape index: {}]   ;;  %s13654_s7 = inlined_call_operand.vmem [shape: f32[3,160,50], index: 7, kind: input, shape index: {}]   ;;  %s13655_s8 = inlined_call_operand.vmem [shape: f32[3,30,50], index: 8, kind: input, shape index: {}]   ;;  %s13656_s9 = inlined_call_operand.vmem [shape: f32[50,6], index: 9, kind: input, shape index: {}]   ;;  %s13657_s10 = inlined_call_operand.vmem [shape: f32[3,128], index: 10, kind: input, shape index: {}]   ;;  %s13658_s11 = inlined_call_operand.hbm [shape: f32[2,6], index: 11, kind: output, shape index: {0}]   ;;  %s13659_s12 = inlined_call_operand.hbm [shape: f32[1,1], index: 12, kind: output, shape index: {1}]  }
   0x1   :  { %v9318_v1 = vld [vmem:[%s13647_s0] sm:$0xff]  ;;  %v151_v2 = vld [vmem:[%s13649_s2 + $0x8] sm:$0xff]  ;;  %v153_v3 = vld [vmem:[%s13649_s2 + $0x18] sm:$0xff]  ;;  %383 = vmatprep.mubr.f32.mxu1 %v13660_v4 }
   0x2   :  { %v9327_v5 = vshrl.u32 %v46_v0, 7  ;;  %v9329_v6 = vand.u32 127, %v46_v0  ;;  %v8502_v7 = vpack.c.bf16 %v153_v3, %v151_v2  ;;  %v150_v8 = vld [vmem:[%s13649_s2] sm:$0xff]  ;;  %v152_v9 = vld [vmem:[%s13649_s2 + $0x10] sm:$0xff]  ;;  %v155_v10 = vld [vmem:[%s13649_s2 + $0x28] sm:$0xff] }
   0x3   :  { %v8504_v11 = vpack.c.bf16 %v152_v9, %v150_v8  ;;  %v157_v12 = vld [vmem:[%s13649_s2 + $0x38] sm:$0xff]  ;;  %v154_v13 = vld [vmem:[%s13649_s2 + $0x20] sm:$0xff]  ;;  %v156_v14 = vld [vmem:[%s13649_s2 + $0x30] sm:$0xff] }
   0x4   :  { %vm53_vm1 = vcmp.eq.s32.totalorder %v9327_v5, %v9329_v6  ;;  %v49_v15 = vadd.s32 16, %v9327_v5  ;;  %v48_v16 = vadd.s32 8, %v9327_v5  ;;  %v50_v17 = vadd.s32 24, %v9327_v5  ;;  %8503 = vmatprep.subr.bf16.mxu0 %v8502_v7  ;;  %v159_v18 = vld [vmem:[%s13649_s2 + $0x48] sm:$0xff]  ;;  %v161_v19 = vld [vmem:[%s13649_s2 + $0x58] sm:$0xff]  ;;  %v9366_v21 = vld [vmem:[%s13647_s0 + $0x10] sm:$0xff] }
   0x5   :  { %v9361_v20 = vsel %vm53_vm1, 1.0, %v13660_v4  ;;  %v9371_v22 = vld [vmem:[%s13647_s0 + $0x8] sm:$0xff]  ;;  %v9376_v23 = vld [vmem:[%s13647_s0 + $0x18] sm:$0xff]  ;;  %8505 = vmatpush1.bf16.msra.mxu0 %v8504_v11  ;;  %v8506_v24 = vpack.c.bf16 %v157_v12, %v155_v10  ;;  %v8508_v25 = vpack.c.bf16 %v156_v14, %v154_v13  ;;  %v8510_v26 = vpack.c.bf16 %v161_v19, %v159_v18  ;;  %v158_v28 = vld [vmem:[%s13649_s2 + $0x40] sm:$0xff] }
   0x6   :  { %v65_v27 = vmul.f32 %v9361_v20, %v9318_v1  ;;  %vm55_vm2 = vcmp.eq.s32.totalorder %v49_v15, %v9329_v6  ;;  %vm54_vm3 = vcmp.eq.s32.totalorder %v48_v16, %v9329_v6  ;;  %vm56_vm4 = vcmp.eq.s32.totalorder %v50_v17, %v9329_v6  ;;  %v160_v29 = vld [vmem:[%s13649_s2 + $0x50] sm:$0xff]  ;;  %v163_v33 = vld [vmem:[%s13649_s2 + $0x68] sm:$0xff]  ;;  %v165_v34 = vld [vmem:[%s13649_s2 + $0x78] sm:$0xff] }
   0x7   :  { %v9390_v30 = vsel %vm55_vm2, 1.0, %v13660_v4  ;;  %v9393_v31 = vsel %vm54_vm3, 1.0, %v13660_v4  ;;  %v9396_v32 = vsel %vm56_vm4, 1.0, %v13660_v4  ;;  %8507 = vmatprep.subr.bf16.mxu0 %v8506_v24  ;;  %v8512_v39 = vpack.c.bf16 %v160_v29, %v158_v28  ;;  %v162_v43 = vld [vmem:[%s13649_s2 + $0x60] sm:$0xff]  ;;  %v164_v44 = vld [vmem:[%s13649_s2 + $0x70] sm:$0xff]  ;;  %v167_v45 = vld [vmem:[%s13649_s2 + $0x88] sm:$0xff] }
   0x8   :  { %v70_v35 = vsel %vm69_vm0, %v65_v27, 0.0  ;;  %v67_v36 = vmul.f32 %v9390_v30, %v9366_v21  ;;  %v66_v37 = vmul.f32 %v9393_v31, %v9371_v22  ;;  %v68_v38 = vmul.f32 %v9396_v32, %v9376_v23  ;;  %v169_v46 = vld [vmem:[%s13649_s2 + $0x98] sm:$0xff]  ;;  %v166_v50 = vld [vmem:[%s13649_s2 + $0x80] sm:$0xff]  ;;  %v168_v51 = vld [vmem:[%s13649_s2 + $0x90] sm:$0xff] }
   0x9   :  { %71 = vadd.xlane.f32.xlu0 %v70_v35  ;;  %8509 = vmatpush1.bf16.msra.mxu0 %v8508_v25  ;;  %v8514_v42 = vpack.c.bf16 %v165_v34, %v163_v33  ;;  %v8516_v48 = vpack.c.bf16 %v164_v44, %v162_v43  ;;  %v8518_v49 = vpack.c.bf16 %v169_v46, %v167_v45  ;;  %v143_v52 = vld [vmem:[%s13648_s1 + $0x8] sm:$0xff]  ;;  %v173_v54 = vld [vmem:[%s13649_s2 + $0xb8] sm:$0xff] }
   0xa   :  { %v76_v40 = vsel %vm69_vm0, %v67_v36, 0.0  ;;  %v73_v41 = vsel %vm69_vm0, %v66_v37, 0.0  ;;  %8511 = vmatprep.subr.bf16.mxu0 %v8510_v26  ;;  %v79_v47 = vsel %vm69_vm0, %v68_v38, 0.0  ;;  %v171_v53 = vld [vmem:[%s13649_s2 + $0xa8] sm:$0xff]  ;;  %7512 = vmatprep.mubr.msk.f32.mxu0 %vm69_vm0, %v143_v52  ;;  %v8520_v55 = vpack.c.bf16 %v168_v51, %v166_v50 }
   0xb   :  { %77 = vadd.xlane.f32.xlu1 %v76_v40 }
   0xd   :  { %74 = vadd.xlane.f32.xlu0 %v73_v41  ;;  %8513 = vmatpush1.bf16.msra.mxu0 %v8512_v39 }
   0xe   :  { %8515 = vmatprep.subr.bf16.mxu0 %v8514_v42 }
   0xf   :  { %80 = vadd.xlane.f32.xlu1 %v79_v47 }
  0x11   :  { %8517 = vmatpush1.bf16.msra.mxu0 %v8516_v48 }
  0x12   :  { %19 = vsyncpa [#allocation5], 0  ;;  %8519 = vmatprep.subr.bf16.mxu0 %v8518_v49  ;;  %v8522_v56 = vpack.c.bf16 %v173_v54, %v171_v53  ;;  %v170_v57 = vld [vmem:[%s13649_s2 + $0xa0] sm:$0xff]  ;;  %v172_v58 = vld [vmem:[%s13649_s2 + $0xb0] sm:$0xff]  ;;  %vm6358_vm14 = vcmask 1040384   ;;  %vm1826_vm15 = vcmask 130048  }
  0x13   :  { %v175_v59 = vld [vmem:[%s13649_s2 + $0xc8] sm:$0xff]  ;;  %v177_v60 = vld [vmem:[%s13649_s2 + $0xd8] sm:$0xff]  ;;  %v8524_v61 = vpack.c.bf16 %v172_v58, %v170_v57  ;;  %v174_v63 = vld [vmem:[%s13649_s2 + $0xc0] sm:$0xff]  ;;  %vm3804_vm1 = vcmask 1045504   ;;  %vm9245_vm2 = vmmov 1   ;;  %vm3707_vm4 = vcmask 244736  }
  0x14   :  { %v8526_v62 = vpack.c.bf16 %v177_v60, %v175_v59  ;;  %v176_v0 = vld [vmem:[%s13649_s2 + $0xd0] sm:$0xff]  ;;  %v179_v2 = vld [vmem:[%s13649_s2 + $0xe8] sm:$0xff]  ;;  %v181_v3 = vld [vmem:[%s13649_s2 + $0xf8] sm:$0xff]  ;;  %s9248_s26 = smov [#allocation4]  }
  0x15   :  { %8521 = vmatpush1.bf16.msra.mxu0 %v8520_v55  ;;  %v8528_v7 = vpack.c.bf16 %v176_v0, %v174_v63  ;;  %v8530_v8 = vpack.c.bf16 %v181_v3, %v179_v2  ;;  %v178_v9 = vld [vmem:[%s13649_s2 + $0xe0] sm:$0xff]  ;;  %v180_v10 = vld [vmem:[%s13649_s2 + $0xf0] sm:$0xff]  ;;  %v183_v11 = vld [vmem:[%s13649_s2 + $0x108] sm:$0xff]  ;;  %s7494_s27 = sshll.u32 %s9248_s26, 4  ;;  %s7495_s27 = int_to_ptr.vmem [resolvable:$true] %s7494_s27 }
  0x16   :  { %8523 = vmatprep.subr.bf16.mxu0 %v8522_v56  ;;  %v185_v12 = vld [vmem:[%s13649_s2 + $0x118] sm:$0xff]  ;;  %v8532_v13 = vpack.c.bf16 %v180_v10, %v178_v9  ;;  %v182_v15 = vld [vmem:[%s13649_s2 + $0x100] sm:$0xff]  ;;  %v184_v16 = vld [vmem:[%s13649_s2 + $0x110] sm:$0xff]  ;;  %s9195_s28 = scalar_lea.vmem %s7495_s27, 16  ;;  %p9200_p1 = scmp.lt.s32.totalorder %s7495_s27, %s7495_s27 }
  0x17   :  { %v8534_v14 = vpack.c.bf16 %v185_v12, %v183_v11  ;;  %v187_v17 = vld [vmem:[%s13649_s2 + $0x128] sm:$0xff]  ;;  %v189_v18 = vld [vmem:[%s13649_s2 + $0x138] sm:$0xff]  ;;  %v8536_v19 = vpack.c.bf16 %v184_v16, %v182_v15  ;;  %v186_v25 = vld [vmem:[%s13649_s2 + $0x120] sm:$0xff]  ;;  %p9196_p0 = scmp.ne.s32.totalorder %s7495_s27, %s9195_s28 }
  0x18   :  { %v8538_v24 = vpack.c.bf16 %v189_v18, %v187_v17  ;;  %v188_v26 = vld [vmem:[%s13649_s2 + $0x130] sm:$0xff]  ;;  %v142_v28 = vld [vmem:[%s13648_s1] sm:$0xff]  ;;  %v145_v29 = vld [vmem:[%s13648_s1 + $0x18] sm:$0xff] }
  0x19   :  { %8525 = vmatpush1.bf16.msra.mxu0 %v8524_v61  ;;  %v8540_v27 = vpack.c.bf16 %v188_v26, %v186_v25  ;;  %v144_v33 = vld [vmem:[%s13648_s1 + $0x10] sm:$0xff]  ;;  %v147_v34 = vld [vmem:[%s13648_s1 + $0x28] sm:$0xff]  ;;  %v146_v35 = vld [vmem:[%s13648_s1 + $0x20] sm:$0xff] }
  0x1a   :  { %8527 = vmatprep.subr.bf16.mxu0 %v8526_v62  ;;  %v149_v36 = vld [vmem:[%s13648_s1 + $0x38] sm:$0xff]  ;;  %v148_v37 = vld [vmem:[%s13648_s1 + $0x30] sm:$0xff]  ;;  %vm10536_vm3 = vmpackc.low %vm3804_vm1, %vm9245_vm2 }
  0x1d   :  { %8529 = vmatpush1.bf16.msra.mxu0 %v8528_v7 }
  0x1e   :  { %8531 = vmatprep.subr.bf16.mxu0 %v8530_v8 }
  0x21   :  { %8533 = vmatpush1.bf16.msra.mxu0 %v8532_v13 }
  0x22   :  { %8535 = vmatprep.subr.bf16.mxu0 %v8534_v14 }
  0x25   :  { %8537 = vmatpush1.bf16.msra.mxu0 %v8536_v19 }
  0x26   :  { %8539 = vmatprep.subr.bf16.mxu0 %v8538_v24 }
  0x29   :  { %8541 = vmatpush1.bf16.msra.mxu0 %v8540_v27 }
  0x2c   :  { %272 = vmatmul.mubr.f32.vlgmr.msra.gmra.mrb[0].mxu0 %v142_v28 }
  0x2d   :  { %7513 = vmatprep.mubr.msk.f32.mxu0 %vm69_vm0, %v145_v29 }
  0x30   :  { %278 = vmatmul.mubr.f32.gmra.mrb[2].mxu0 %v144_v33 }
  0x31   :  { %7514 = vmatprep.mubr.msk.f32.mxu0 %vm69_vm0, %v147_v34 }
  0x34   :  { %284 = vmatmul.mubr.f32.gmra.mrb[4].mxu0 %v146_v35 }
  0x35   :  { %7515 = vmatprep.mubr.msk.f32.mxu0 %vm69_vm0, %v149_v36 }
  0x38   :  { %290 = vmatmul.mubr.f32.gmra.mrb[6].mxu0 %v148_v37 }
  0x39   :  { %753 = vmatprep.mubr.f32.mxu0 %v13660_v4 }
  0x96   :  { %v72_v38 = vpop.xlane.xlu0 %71 }
  0x97   :  { %vm82_vm5 = vcmp.eq.f32.partialorder %v72_v38, 0.0 }
  0x98   :  { %v86_v39 = vsel %vm82_vm5, 1.0, %v13660_v4  ;;  %v78_v40 = vpop.xlane.xlu1 %77 }
  0x99   :  { %v90_v41 = vmul.f32 %v9361_v20, %v86_v39  ;;  %vm84_vm6 = vcmp.eq.f32.partialorder %v78_v40, 0.0 }
  0x9a   :  { %v88_v42 = vsel %vm84_vm6, 1.0, %v13660_v4  ;;  %v75_v43 = vpop.xlane.xlu0 %74 }
  0x9b   :  { %v92_v44 = vmul.f32 %v9390_v30, %v88_v42  ;;  %vm83_vm7 = vcmp.eq.f32.partialorder %v75_v43, 0.0  ;;  %v94_v45 = vadd.f32 %v90_v41, %v9318_v1 }
  0x9c   :  { %v87_v46 = vsel %vm83_vm7, 1.0, %v13660_v4  ;;  %v81_v47 = vpop.xlane.xlu1 %80 }
  0x9d   :  { %v91_v48 = vmul.f32 %v9393_v31, %v87_v46  ;;  %vm85_vm8 = vcmp.eq.f32.partialorder %v81_v47, 0.0  ;;  %v98_v49 = vsel %vm69_vm0, %v94_v45, 0.0  ;;  %v9530_v50 = vadd.f32 %v92_v44, %v9366_v21  ;;  %v7521_v44 = vld [vmem:[%s13649_s2 + $0x148] sm:$0xff]  ;;  %v7520_v47 = vld [vmem:[%s13649_s2 + $0x140] sm:$0xff] }
  0x9e   :  { %v89_v51 = vsel %vm85_vm8, 1.0, %v13660_v4  ;;  %99 = vadd.xlane.f32.xlu0 %v98_v49 }
  0x9f   :  { %v93_v52 = vmul.f32 %v9396_v32, %v89_v51  ;;  %v104_v53 = vsel %vm69_vm0, %v9530_v50, 0.0  ;;  %v95_v1 = vadd.f32 %v91_v48, %v9371_v22  ;;  %v7522_v48 = vld [vmem:[%s13649_s2 + $0x150] sm:$0xff]  ;;  %v7527_v51 = vld [vmem:[%s13649_s2 + $0x178] sm:$0xff] }
  0xa1   :  { %v101_v54 = vsel %vm69_vm0, %v95_v1, 0.0  ;;  %v9539_v55 = vadd.f32 %v93_v52, %v9376_v23 }
  0xa2   :  { %105 = vadd.xlane.f32.xlu0 %v104_v53  ;;  %102 = vadd.xlane.f32.xlu1 %v101_v54  ;;  %v110_v56 = vadd.f32 %v101_v54, %v98_v49  ;;  %v8552_v49 = vpack.c.bf16 %v7522_v48, %v7520_v47  ;;  %v7556_v48 = vld [vmem:[%s13649_s2 + $0x260] sm:$0xff] }
  0xa3   :  { %v107_v21 = vsel %vm69_vm0, %v9539_v55, 0.0 }
  0xa4   :  { %v111_v57 = vadd.f32 %v110_v56, %v104_v53  ;;  %v7524_v53 = vld [vmem:[%s13649_s2 + $0x160] sm:$0xff]  ;;  %v7531_v56 = vld [vmem:[%s13649_s2 + $0x198] sm:$0xff] }
  0xa6   :  { %108 = vadd.xlane.f32.xlu1 %v107_v21  ;;  %v112_v58 = vadd.f32 %v111_v57, %v107_v21  ;;  %v7528_v57 = vld [vmem:[%s13649_s2 + $0x180] sm:$0xff] }
  0xa8   :  { %v113_v9 = vrot.slane %v112_v58, 4 }
  0xaa   :  { %v114_v10 = vadd.f32 %v113_v9, %v112_v58  ;;  %v7530_v58 = vld [vmem:[%s13649_s2 + $0x190] sm:$0xff] }
  0xac   :  { %v115_v11 = vrot.slane %v114_v10, 2 }
  0xae   :  { %v116_v12 = vadd.f32 %v115_v11, %v114_v10  ;;  %v7541_v10 = vld [vmem:[%s13649_s2 + $0x1e8] sm:$0xff]  ;;  %v7543_v11 = vld [vmem:[%s13649_s2 + $0x1f8] sm:$0xff] }
  0xb0   :  { %v117_v13 = vrot.slane %v116_v12, 1 }
  0xb2   :  { %v118_v14 = vadd.f32 %v117_v13, %v116_v12  ;;  %v8570_v12 = vpack.c.bf16 %v7543_v11, %v7541_v10  ;;  %v7540_v13 = vld [vmem:[%s13649_s2 + $0x1e0] sm:$0xff] }
  0xb4   :  { %9063 = vrsqrt.f32 %v118_v14  ;;  %vm131_vm10 = vcmp.gt.f32.partialorder %v118_v14, 0.0  ;;  %v7542_v14 = vld [vmem:[%s13649_s2 + $0x1f0] sm:$0xff] }
  0xbe   :  { %v9064_v19 = vpop.eup %9063 }
  0xbf   :  { %v133_v27 = vsel %vm131_vm10, %v9064_v19, 0.0  ;;  %v7544_v19 = vld [vmem:[%s13649_s2 + $0x200] sm:$0xff] }
  0xff   :  { %v273_v59 = vpop.f32.mrb[0].mxu0 }
 0x100   :  { %v275_v60 = vpop.f32.mrb[1].mxu0 }
 0x103   :  { %v279_v61 = vpop.f32.mrb[2].mxu0 }
 0x104   :  { %v8544_v62 = vpack.c.bf16 %v279_v61, %v273_v59  ;;  %v281_v63 = vpop.f32.mrb[3].mxu0  ;;  %v8560_v59 = vpack.c.bf16 %v7530_v58, %v7528_v57  ;;  %v7535_v61 = vld [vmem:[%s13649_s2 + $0x1b8] sm:$0xff] }
 0x105   :  { %v8542_v22 = vpack.c.bf16 %v281_v63, %v275_v60  ;;  %v7533_v60 = vld [vmem:[%s13649_s2 + $0x1a8] sm:$0xff]  ;;  %v7532_v63 = vld [vmem:[%s13649_s2 + $0x1a0] sm:$0xff] }
 0x107   :  { %8543 = vmatprep.subr.bf16.mxu1 %v8542_v22  ;;  %v285_v0 = vpop.f32.mrb[4].mxu0  ;;  %v7534_v22 = vld [vmem:[%s13649_s2 + $0x1b0] sm:$0xff] }
 0x108   :  { %8545 = vmatpush1.bf16.msra.mxu1 %v8544_v62  ;;  %v287_v23 = vpop.f32.mrb[5].mxu0  ;;  %v8562_v62 = vpack.c.bf16 %v7535_v61, %v7533_v60 }
 0x10b   :  { %v291_v2 = vpop.f32.mrb[6].mxu0 }
 0x10c   :  { %v8548_v3 = vpack.c.bf16 %v291_v2, %v285_v0  ;;  %v293_v7 = vpop.f32.mrb[7].mxu0  ;;  %v8564_v0 = vpack.c.bf16 %v7534_v22, %v7532_v63  ;;  %v7539_v2 = vld [vmem:[%s13649_s2 + $0x1d8] sm:$0xff] }
 0x10d   :  { %v8546_v8 = vpack.c.bf16 %v293_v7, %v287_v23  ;;  %v7537_v23 = vld [vmem:[%s13649_s2 + $0x1c8] sm:$0xff]  ;;  %v7536_v7 = vld [vmem:[%s13649_s2 + $0x1c0] sm:$0xff] }
 0x10f   :  { %8547 = vmatprep.subr.bf16.mxu1 %v8546_v8  ;;  %v7538_v8 = vld [vmem:[%s13649_s2 + $0x1d0] sm:$0xff] }
 0x110   :  { %8549 = vmatpush1.bf16.msra.mxu1 %v8548_v3  ;;  %v8566_v3 = vpack.c.bf16 %v7539_v2, %v7537_v23  ;;  %v8568_v9 = vpack.c.bf16 %v7538_v8, %v7536_v7 }
 0x12b   :  { %v100_v15 = vpop.xlane.xlu0 %99 }
 0x12c   :  { %9065 = vrsqrt.f32 %v100_v15  ;;  %vm119_vm9 = vcmp.gt.f32.partialorder %v100_v15, 0.0  ;;  %v8572_v15 = vpack.c.bf16 %v7542_v14, %v7540_v13 }
 0x12f   :  { %v103_v16 = vpop.xlane.xlu1 %102  ;;  %v106_v17 = vpop.xlane.xlu0 %105 }
 0x130   :  { %9067 = vrsqrt.f32 %v103_v16  ;;  %vm120_vm11 = vcmp.gt.f32.partialorder %v103_v16, 0.0  ;;  %vm121_vm12 = vcmp.gt.f32.partialorder %v106_v17, 0.0  ;;  %v7545_v16 = vld [vmem:[%s13649_s2 + $0x208] sm:$0xff] }
 0x131   :  { %9069 = vrsqrt.f32 %v106_v17  ;;  %v7547_v17 = vld [vmem:[%s13649_s2 + $0x218] sm:$0xff] }
 0x133   :  { %v109_v18 = vpop.xlane.xlu1 %108 }
 0x134   :  { %9071 = vrsqrt.f32 %v109_v18  ;;  %vm122_vm13 = vcmp.gt.f32.partialorder %v109_v18, 0.0  ;;  %v8574_v18 = vpack.c.bf16 %v7547_v17, %v7545_v16 }
 0x136   :  { %v9066_v24 = vpop.eup %9065 }
 0x137   :  { %v127_v25 = vsel %vm119_vm9, %v9066_v24, 0.0  ;;  %v7546_v24 = vld [vmem:[%s13649_s2 + $0x210] sm:$0xff] }
 0x138   :  { %v134_v26 = vmul.f32 %v127_v25, %v94_v45  ;;  %v7523_v45 = vld [vmem:[%s13649_s2 + $0x158] sm:$0xff]  ;;  %v8576_v25 = vpack.c.bf16 %v7546_v24, %v7544_v19 }
 0x139   :  { %v8550_v46 = vpack.c.bf16 %v7523_v45, %v7521_v44  ;;  %v7557_v45 = vld [vmem:[%s13649_s2 + $0x268] sm:$0xff] }
 0x13a   :  { %v9068_v28 = vpop.eup %9067  ;;  %v9543_v29 = vmul.f32 %v134_v26, %v133_v27  ;;  %v7549_v26 = vld [vmem:[%s13649_s2 + $0x228] sm:$0xff] }
 0x13b   :  { %v9070_v33 = vpop.eup %9069  ;;  %v128_v34 = vsel %vm120_vm11, %v9068_v28, 0.0  ;;  %8551 = vmatprep.subr.bf16.mxu1 %v8550_v46  ;;  %v7559_v46 = vld [vmem:[%s13649_s2 + $0x278] sm:$0xff] }
 0x13c   :  { %v135_v35 = vmul.f32 %v128_v34, %v95_v1  ;;  %v129_v36 = vsel %vm121_vm12, %v9070_v33, 0.0  ;;  %7516 = vmatmul.mubr.msk.f32.vlgmr.msra.gmra.mrb[0].mxu1 %vm69_vm0, %v9543_v29  ;;  %v7526_v1 = vld [vmem:[%s13649_s2 + $0x170] sm:$0xff]  ;;  %v7548_v33 = vld [vmem:[%s13649_s2 + $0x220] sm:$0xff]  ;;  %v8586_v47 = vpack.c.bf16 %v7559_v46, %v7557_v45 }
 0x13d   :  { %389 = vmatprep.mubr.f32.mxu1 %v13660_v4  ;;  %v136_v38 = vmul.f32 %v129_v36, %v9530_v50  ;;  %8553 = vmatpush1.bf16.msra.mxu1 %v8552_v49  ;;  %v7525_v50 = vld [vmem:[%s13649_s2 + $0x168] sm:$0xff]  ;;  %v8556_v54 = vpack.c.bf16 %v7526_v1, %v7524_v53  ;;  %v7550_v34 = vld [vmem:[%s13649_s2 + $0x230] sm:$0xff]  ;;  %v9691_v53 = vsub.s32 0, %v9327_v5 }
 0x13e   :  { %v9072_v37 = vpop.eup %9071  ;;  %v9549_v39 = vmul.f32 %v135_v35, %v133_v27  ;;  %v8554_v52 = vpack.c.bf16 %v7527_v51, %v7525_v50  ;;  %v8580_v35 = vpack.c.bf16 %v7550_v34, %v7548_v33  ;;  %v7553_v36 = vld [vmem:[%s13649_s2 + $0x248] sm:$0xff]  ;;  %v7558_v49 = vld [vmem:[%s13649_s2 + $0x270] sm:$0xff]  ;;  %v9685_v51 = vsub.s32 1, %v9327_v5 }
 0x13f   :  { %v130_v40 = vsel %vm122_vm13, %v9072_v37, 0.0  ;;  %v9555_v42 = vmul.f32 %v136_v38, %v133_v27  ;;  %v7555_v37 = vld [vmem:[%s13649_s2 + $0x258] sm:$0xff]  ;;  %v8588_v50 = vpack.c.bf16 %v7558_v49, %v7556_v48  ;;  %13875 = vst [vmem:[#allocation8_spill] sm:$0xff] %v9691_v53 }
 0x140   :  { %7517 = vmatmul.mubr.msk.f32.gmra.mrb[2].mxu1 %vm69_vm0, %v9549_v39  ;;  %v137_v41 = vmul.f32 %v130_v40, %v9539_v55  ;;  %8555 = vmatprep.subr.bf16.mxu1 %v8554_v52  ;;  %v7529_v55 = vld [vmem:[%s13649_s2 + $0x188] sm:$0xff]  ;;  %v8582_v38 = vpack.c.bf16 %v7555_v37, %v7553_v36  ;;  %v7552_v40 = vld [vmem:[%s13649_s2 + $0x240] sm:$0xff] }
 0x141   :  { %395 = vmatprep.mubr.f32.mxu1 %v13660_v4  ;;  %8557 = vmatpush1.bf16.msra.mxu1 %v8556_v54  ;;  %v8558_v21 = vpack.c.bf16 %v7531_v56, %v7529_v55  ;;  %v190_v52 = vld [vmem:[%s13650_s3] ss:$8 sm:$0x3] }
 0x142   :  { %v9560_v43 = vmul.f32 %v137_v41, %v133_v27  ;;  %v7551_v27 = vld [vmem:[%s13649_s2 + $0x238] sm:$0xff]  ;;  %v7554_v41 = vld [vmem:[%s13649_s2 + $0x250] sm:$0xff]  ;;  %v304_v1 = vrot.slane %v190_v52, %v9685_v51  ;;  %v300_v54 = vrot.slane %v190_v52, %v9691_v53 }
 0x143   :  { %8559 = vmatprep.subr.bf16.mxu1 %v8558_v21  ;;  %v8578_v28 = vpack.c.bf16 %v7551_v27, %v7549_v26  ;;  %v8584_v44 = vpack.c.bf16 %v7554_v41, %v7552_v40 }
 0x144   :  { %7518 = vmatmul.mubr.msk.f32.gmra.mrb[4].mxu1 %vm69_vm0, %v9555_v42 }
 0x145   :  { %401 = vmatprep.mubr.f32.mxu1 %v13660_v4  ;;  %8561 = vmatpush1.bf16.msra.mxu1 %v8560_v59 }
 0x146   :  { %8563 = vmatprep.subr.bf16.mxu1 %v8562_v62 }
 0x148   :  { %7519 = vmatmul.mubr.msk.f32.gmra.mrb[6].mxu1 %vm69_vm0, %v9560_v43 }
 0x149   :  { %8565 = vmatpush1.bf16.msra.mxu1 %v8564_v0 }
 0x14a   :  { %8567 = vmatprep.subr.bf16.mxu1 %v8566_v3 }
 0x14d   :  { %8569 = vmatpush1.bf16.msra.mxu1 %v8568_v9 }
 0x14e   :  { %8571 = vmatprep.subr.bf16.mxu1 %v8570_v12 }
 0x151   :  { %8573 = vmatpush1.bf16.msra.mxu1 %v8572_v15 }
 0x152   :  { %8575 = vmatprep.subr.bf16.mxu1 %v8574_v18 }
 0x155   :  { %8577 = vmatpush1.bf16.msra.mxu1 %v8576_v25 }
 0x156   :  { %8579 = vmatprep.subr.bf16.mxu1 %v8578_v28 }
 0x159   :  { %8581 = vmatpush1.bf16.msra.mxu1 %v8580_v35 }
 0x15a   :  { %8583 = vmatprep.subr.bf16.mxu1 %v8582_v38 }
 0x15d   :  { %8585 = vmatpush1.bf16.msra.mxu1 %v8584_v44 }
 0x15e   :  { %8587 = vmatprep.subr.bf16.mxu1 %v8586_v47 }
 0x161   :  { %8589 = vmatpush1.bf16.msra.mxu1 %v8588_v50 }
 0x20f   :  { %v385_v55 = vpop.f32.mrb[0].mxu1 }
 0x210   :  { %v387_v56 = vpop.f32.mrb[1].mxu1  ;;  %v9697_v57 = vadd.f32 %v385_v55, %v300_v54 }
 0x211   :  { %v9695_v21 = vadd.f32 %v387_v56, %v304_v1 }
 0x212   :  { %v430_v63 = vmul.f32 %v9697_v57, %v9697_v57 }
 0x213   :  { %v391_v58 = vpop.f32.mrb[2].mxu1  ;;  %v431_v61 = vmul.f32 %v9695_v21, %v9695_v21  ;;  %v417_v23 = vsel %vm69_vm0, %v9695_v21, 0.0 }
 0x214   :  { %v9699_v59 = vadd.f32 %v391_v58, %v300_v54  ;;  %v393_v60 = vpop.f32.mrb[3].mxu1 }
 0x215   :  { %v9703_v62 = vadd.f32 %v393_v60, %v304_v1  ;;  %v447_v12 = vsel %vm69_vm0, %v431_v61, 0.0 }
 0x216   :  { %v408_v22 = vadd.f32 %v9699_v59, %v9697_v57  ;;  %v432_v0 = vmul.f32 %v9699_v59, %v9699_v59 }
 0x217   :  { %v418_v2 = vsel %vm69_vm0, %v9703_v62, 0.0  ;;  %v433_v3 = vmul.f32 %v9703_v62, %v9703_v62  ;;  %v397_v7 = vpop.f32.mrb[4].mxu1 }
 0x218   :  { %v438_v8 = vadd.f32 %v432_v0, %v430_v63  ;;  %v419_v9 = vadd.f32 %v418_v2, %v417_v23  ;;  %v9717_v10 = vadd.f32 %v397_v7, %v300_v54  ;;  %v399_v11 = vpop.f32.mrb[5].mxu1 }
 0x219   :  { %v448_v13 = vsel %vm69_vm0, %v433_v3, 0.0  ;;  %v9721_v14 = vadd.f32 %v399_v11, %v304_v1 }
 0x21a   :  { %v449_v15 = vadd.f32 %v448_v13, %v447_v12  ;;  %v409_v16 = vadd.f32 %v408_v22, %v9717_v10  ;;  %v434_v17 = vmul.f32 %v9717_v10, %v9717_v10 }
 0x21b   :  { %v420_v18 = vsel %vm69_vm0, %v9721_v14, 0.0  ;;  %v435_v19 = vmul.f32 %v9721_v14, %v9721_v14  ;;  %v403_v24 = vpop.f32.mrb[6].mxu1 }
 0x21c   :  { %v439_v25 = vadd.f32 %v438_v8, %v434_v17  ;;  %v421_v26 = vadd.f32 %v420_v18, %v419_v9  ;;  %v9730_v27 = vadd.f32 %v403_v24, %v300_v54  ;;  %v405_v28 = vpop.f32.mrb[7].mxu1 }
 0x21d   :  { %v450_v33 = vsel %vm69_vm0, %v435_v19, 0.0  ;;  %v9733_v34 = vadd.f32 %v405_v28, %v304_v1 }
 0x21e   :  { %v451_v35 = vadd.f32 %v450_v33, %v449_v15  ;;  %v410_v36 = vadd.f32 %v409_v16, %v9730_v27  ;;  %v436_v37 = vmul.f32 %v9730_v27, %v9730_v27 }
 0x21f   :  { %v422_v38 = vsel %vm69_vm0, %v9733_v34, 0.0  ;;  %v437_v40 = vmul.f32 %v9733_v34, %v9733_v34 }
 0x220   :  { %v411_v41 = vrot.slane %v410_v36, 4  ;;  %v440_v44 = vadd.f32 %v439_v25, %v436_v37  ;;  %v423_v45 = vadd.f32 %v422_v38, %v421_v26 }
 0x221   :  { %v452_v46 = vsel %vm69_vm0, %v437_v40, 0.0 }
 0x222   :  { %v412_v47 = vadd.f32 %v411_v41, %v410_v36  ;;  %v441_v48 = vrot.slane %v440_v44, 4  ;;  %v424_v49 = vrot.slane %v423_v45, 4  ;;  %v453_v50 = vadd.f32 %v452_v46, %v451_v35 }
 0x224   :  { %v413_v52 = vrot.slane %v412_v47, 2  ;;  %v442_v1 = vadd.f32 %v441_v48, %v440_v44  ;;  %v425_v54 = vadd.f32 %v424_v49, %v423_v45  ;;  %v454_v55 = vrot.slane %v453_v50, 4  ;;  %v7511_v48 = vld [vmem:[%s13650_s3 + $0x2] ss:$8 sm:$0x3] }
 0x226   :  { %v414_v56 = vadd.f32 %v413_v52, %v412_v47  ;;  %v443_v58 = vrot.slane %v442_v1, 2  ;;  %v426_v60 = vrot.slane %v425_v54, 2  ;;  %v455_v61 = vadd.f32 %v454_v55, %v453_v50 }
 0x227   :  { %v519_v55 = vrot.slane %v7511_v48, %v9685_v51 }
 0x228   :  { %v415_v63 = vrot.slane %v414_v56, 1  ;;  %v444_v22 = vadd.f32 %v443_v58, %v442_v1  ;;  %v427_v0 = vadd.f32 %v426_v60, %v425_v54  ;;  %v456_v23 = vrot.slane %v455_v61, 2 }
 0x22a   :  { %v416_v2 = vadd.f32 %v415_v63, %v414_v56  ;;  %v445_v3 = vrot.slane %v444_v22, 1  ;;  %v428_v7 = vrot.slane %v427_v0, 1  ;;  %v457_v8 = vadd.f32 %v456_v23, %v455_v61 }
 0x22b   :  { %v515_v56 = vrot.slane %v7511_v48, %v9691_v53  ;;  %v7586_v48 = vld [vmem:[%s13649_s2 + $0x2f8] sm:$0xff] }
 0x22c   :  { %v446_v9 = vadd.f32 %v445_v3, %v444_v22  ;;  %v460_v11 = vmul.f32 0.03125, %v416_v2  ;;  %v429_v12 = vadd.f32 %v428_v7, %v427_v0  ;;  %v458_v13 = vrot.slane %v457_v8, 1 }
 0x22e   :  { %v462_v15 = vmul.f32 0.03125, %v446_v9  ;;  %v464_v16 = vmul.f32 %v460_v11, %v460_v11  ;;  %v476_v17 = vsub.f32 %v9730_v27, %v460_v11  ;;  %v459_v18 = vadd.f32 %v458_v13, %v457_v8 }
 0x22f   :  { %v461_v19 = vmul.f32 0.03125, %v429_v12  ;;  %v470_v24 = vsub.f32 %v9697_v57, %v460_v11  ;;  %v472_v25 = vsub.f32 %v9699_v59, %v460_v11  ;;  %v474_v26 = vsub.f32 %v9717_v10, %v460_v11  ;;  %v7510_v59 = vld [vmem:[%s13650_s3 + $0x1] ss:$8 sm:$0x3] }
 0x230   :  { %v466_v28 = vsub.f32 %v462_v15, %v464_v16  ;;  %v463_v33 = vmul.f32 0.03125, %v459_v18  ;;  %v486_v10 = vrot.slane %v7510_v59, %v9691_v53 }
 0x231   :  { %v465_v35 = vmul.f32 %v461_v19, %v461_v19  ;;  %v477_v36 = vsub.f32 %v9733_v34, %v461_v19  ;;  %v471_v37 = vsub.f32 %v9695_v21, %v461_v19  ;;  %v473_v38 = vsub.f32 %v9703_v62, %v461_v19 }
 0x232   :  { %v468_v40 = vmax.f32 %v466_v28, 0.0  ;;  %v475_v27 = vsub.f32 %v9721_v14, %v461_v19  ;;  %v490_v21 = vrot.slane %v7510_v59, %v9685_v51 }
 0x233   :  { %v467_v41 = vsub.f32 %v463_v33, %v465_v35  ;;  %v7572_v33 = vld [vmem:[%s13649_s2 + $0x288] sm:$0xff]  ;;  %v7574_v35 = vld [vmem:[%s13649_s2 + $0x298] sm:$0xff] }
 0x234   :  { %v478_v44 = vadd.f32 1e-05, %v468_v40 }
 0x235   :  { %v469_v45 = vmax.f32 %v467_v41, 0.0  ;;  %v7578_v41 = vld [vmem:[%s13649_s2 + $0x2b8] sm:$0xff] }
 0x236   :  { %9073 = vrsqrt.f32 %v478_v44 }
 0x237   :  { %v479_v57 = vadd.f32 1e-05, %v469_v45  ;;  %v7575_v45 = vld [vmem:[%s13649_s2 + $0x2a0] sm:$0xff] }
 0x239   :  { %9075 = vrsqrt.f32 %v479_v57  ;;  %v7577_v57 = vld [vmem:[%s13649_s2 + $0x2b0] sm:$0xff] }
 0x23a   :  { %v8604_v59 = vpack.c.bf16 %v7577_v57, %v7575_v45  ;;  %v7605_v45 = vld [vmem:[%s13649_s2 + $0x390] sm:$0xff] }
 0x240   :  { %v9074_v34 = vpop.eup %9073 }
 0x241   :  { %v493_v46 = vmul.f32 %v9074_v34, %v486_v10  ;;  %v7580_v10 = vld [vmem:[%s13649_s2 + $0x2c8] sm:$0xff]  ;;  %v7582_v34 = vld [vmem:[%s13649_s2 + $0x2d8] sm:$0xff] }
 0x243   :  { %v9076_v62 = vpop.eup %9075  ;;  %v498_v47 = vrot.slane %v493_v46, %v9691_v53  ;;  %v7579_v46 = vld [vmem:[%s13649_s2 + $0x2c0] sm:$0xff] }
 0x244   :  { %v494_v14 = vmul.f32 %v9076_v62, %v490_v21  ;;  %v8606_v21 = vpack.c.bf16 %v7582_v34, %v7580_v10  ;;  %v7581_v62 = vld [vmem:[%s13649_s2 + $0x2d0] sm:$0xff]  ;;  %v7610_v10 = vld [vmem:[%s13649_s2 + $0x3b8] sm:$0xff] }
 0x245   :  { %v503_v49 = vmul.f32 %v498_v47, %v470_v24  ;;  %v505_v50 = vmul.f32 %v498_v47, %v472_v25  ;;  %v507_v52 = vmul.f32 %v498_v47, %v474_v26  ;;  %v509_v1 = vmul.f32 %v498_v47, %v476_v17 }
 0x246   :  { %v502_v54 = vrot.slane %v494_v14, %v9691_v53  ;;  %v8608_v47 = vpack.c.bf16 %v7581_v62, %v7579_v46  ;;  %v7584_v14 = vld [vmem:[%s13649_s2 + $0x2e8] sm:$0xff]  ;;  %v7609_v46 = vld [vmem:[%s13649_s2 + $0x3b0] sm:$0xff] }
 0x247   :  { %v9765_v0 = vadd.f32 %v515_v56, %v503_v49  ;;  %v9774_v2 = vadd.f32 %v515_v56, %v505_v50  ;;  %v9781_v7 = vadd.f32 %v515_v56, %v507_v52  ;;  %v9788_v9 = vadd.f32 %v515_v56, %v509_v1  ;;  %v7583_v50 = vld [vmem:[%s13649_s2 + $0x2e0] sm:$0xff]  ;;  %v7585_v52 = vld [vmem:[%s13649_s2 + $0x2f0] sm:$0xff] }
 0x248   :  { %v510_v58 = vmul.f32 %v502_v54, %v477_v36  ;;  %v504_v60 = vmul.f32 %v502_v54, %v471_v37  ;;  %v506_v61 = vmul.f32 %v502_v54, %v473_v38  ;;  %v508_v63 = vmul.f32 %v502_v54, %v475_v27  ;;  %v7571_v37 = vld [vmem:[%s13649_s2 + $0x280] sm:$0xff]  ;;  %v7573_v38 = vld [vmem:[%s13649_s2 + $0x290] sm:$0xff]  ;;  %v7576_v27 = vld [vmem:[%s13649_s2 + $0x2a8] sm:$0xff] }
 0x249   :  { %13877 = vst [vmem:[#allocation10_spill] sm:$0xff] %v9765_v0  ;;  %13879 = vst [vmem:[#allocation12_spill] sm:$0xff] %v9774_v2  ;;  %v8598_v36 = vpack.c.bf16 %v7574_v35, %v7572_v33  ;;  %v8600_v40 = vpack.c.bf16 %v7573_v38, %v7571_v37  ;;  %v8602_v44 = vpack.c.bf16 %v7578_v41, %v7576_v27  ;;  %v7588_v54 = vld [vmem:[%s13649_s2 + $0x308] sm:$0xff]  ;;  %v7602_v33 = vld [vmem:[%s13649_s2 + $0x378] sm:$0xff] }
 0x24a   :  { %v9763_v22 = vadd.f32 %v519_v55, %v504_v60  ;;  %v9769_v23 = vadd.f32 %v519_v55, %v506_v61  ;;  %v9776_v3 = vadd.f32 %v519_v55, %v508_v63  ;;  %13881 = vst [vmem:[#allocation14_spill] sm:$0xff] %v9781_v7  ;;  %v9783_v8 = vadd.f32 %v519_v55, %v510_v58  ;;  %v7590_v55 = vld [vmem:[%s13649_s2 + $0x318] sm:$0xff]  ;;  %v7587_v58 = vld [vmem:[%s13649_s2 + $0x300] sm:$0xff]  ;;  %v7589_v60 = vld [vmem:[%s13649_s2 + $0x310] sm:$0xff] }
 0x24b   :  { %13883 = vst [vmem:[#allocation16_spill] sm:$0xff] %v9788_v9  ;;  %8599 = vmatprep.subr.bf16.mxu1 %v8598_v36  ;;  %v8610_v49 = vpack.c.bf16 %v7586_v48, %v7584_v14  ;;  %v8612_v1 = vpack.c.bf16 %v7585_v52, %v7583_v50  ;;  %v8614_v56 = vpack.c.bf16 %v7590_v55, %v7588_v54  ;;  %v7592_v63 = vld [vmem:[%s13649_s2 + $0x328] sm:$0xff]  ;;  %v7599_v36 = vld [vmem:[%s13649_s2 + $0x360] sm:$0xff]  ;;  %v7601_v37 = vld [vmem:[%s13649_s2 + $0x370] sm:$0xff] }
 0x24c   :  { %13876 = vst [vmem:[#allocation9_spill] sm:$0xff] %v9763_v22  ;;  %7563 = vmatprep.mubr.msk.f32.mxu1 %vm69_vm0, %v9763_v22  ;;  %13878 = vst [vmem:[#allocation11_spill] sm:$0xff] %v9769_v23  ;;  %v8616_v61 = vpack.c.bf16 %v7589_v60, %v7587_v58  ;;  %v8628_v38 = vpack.c.bf16 %v7601_v37, %v7599_v36  ;;  %v7606_v27 = vld [vmem:[%s13649_s2 + $0x398] sm:$0xff]  ;;  %v7560_v14 = vld [vmem:[%s13650_s3 + $0x3] ss:$8 sm:$0x3] }
 0x24d   :  { %654 = vmatmul.mubr.f32.vlgmr.msra.gmra.mrb[8].mxu1 %v9765_v0  ;;  %13880 = vst [vmem:[#allocation13_spill] sm:$0xff] %v9776_v3  ;;  %13882 = vst [vmem:[#allocation15_spill] sm:$0xff] %v9783_v8  ;;  %v686_v48 = vrot.slane %v7560_v14, %v9685_v51 }
 0x24e   :  { %7564 = vmatprep.mubr.msk.f32.mxu1 %vm69_vm0, %v9769_v23  ;;  %8601 = vmatpush1.bf16.msra.mxu1 %v8600_v40  ;;  %v7604_v40 = vld [vmem:[%s13649_s2 + $0x388] sm:$0xff] }
 0x24f   :  { %8603 = vmatprep.subr.bf16.mxu1 %v8602_v44  ;;  %v8630_v41 = vpack.c.bf16 %v7606_v27, %v7604_v40  ;;  %v7603_v44 = vld [vmem:[%s13649_s2 + $0x380] sm:$0xff] }
 0x250   :  { %v8632_v57 = vpack.c.bf16 %v7605_v45, %v7603_v44 }
 0x251   :  { %660 = vmatmul.mubr.f32.gmra.mrb[10].mxu1 %v9774_v2 }
 0x252   :  { %7565 = vmatprep.mubr.msk.f32.mxu1 %vm69_vm0, %v9776_v3  ;;  %8605 = vmatpush1.bf16.msra.mxu1 %v8604_v59  ;;  %v7608_v59 = vld [vmem:[%s13649_s2 + $0x3a8] sm:$0xff] }
 0x253   :  { %8607 = vmatprep.subr.bf16.mxu1 %v8606_v21  ;;  %v8634_v34 = vpack.c.bf16 %v7610_v10, %v7608_v59  ;;  %v7607_v21 = vld [vmem:[%s13649_s2 + $0x3a0] sm:$0xff] }
 0x254   :  { %v8636_v62 = vpack.c.bf16 %v7609_v46, %v7607_v21 }
 0x255   :  { %666 = vmatmul.mubr.f32.gmra.mrb[12].mxu1 %v9781_v7 }
 0x256   :  { %7566 = vmatprep.mubr.msk.f32.mxu1 %vm69_vm0, %v9783_v8  ;;  %8609 = vmatpush1.bf16.msra.mxu1 %v8608_v47  ;;  %v13662_v47 = vmov 0.0|0.0  }
 0x257   :  { %8611 = vmatprep.subr.bf16.mxu1 %v8610_v49  ;;  %v682_v49 = vrot.slane %v7560_v14, %v9691_v53 }
 0x259   :  { %672 = vmatmul.mubr.f32.gmra.mrb[14].mxu1 %v9788_v9 }
 0x25a   :  { %8613 = vmatpush1.bf16.msra.mxu1 %v8612_v1 }
 0x25b   :  { %8615 = vmatprep.subr.bf16.mxu1 %v8614_v56 }
 0x25e   :  { %8617 = vmatpush1.bf16.msra.mxu1 %v8616_v61 }
 0x320   :  { %v655_v11 = vpop.f32.mrb[8].mxu1 }
 0x321   :  { %v657_v12 = vpop.f32.mrb[9].mxu1 }
 0x324   :  { %v661_v13 = vpop.f32.mrb[10].mxu1 }
 0x325   :  { %v8592_v15 = vpack.c.bf16 %v661_v13, %v655_v11  ;;  %v663_v16 = vpop.f32.mrb[11].mxu1  ;;  %v7594_v11 = vld [vmem:[%s13649_s2 + $0x338] sm:$0xff]  ;;  %v7591_v13 = vld [vmem:[%s13649_s2 + $0x320] sm:$0xff] }
 0x326   :  { %v8590_v17 = vpack.c.bf16 %v663_v16, %v657_v12  ;;  %v8618_v12 = vpack.c.bf16 %v7594_v11, %v7592_v63 }
 0x328   :  { %v667_v18 = vpop.f32.mrb[12].mxu1  ;;  %8591 = vmatprep.subr.bf16.mxu0 %v8590_v17  ;;  %8619 = vmatprep.subr.bf16.mxu1 %v8618_v12  ;;  %v7596_v17 = vld [vmem:[%s13649_s2 + $0x348] sm:$0xff] }
 0x329   :  { %v669_v19 = vpop.f32.mrb[13].mxu1  ;;  %8593 = vmatpush1.bf16.msra.mxu0 %v8592_v15  ;;  %v7593_v15 = vld [vmem:[%s13649_s2 + $0x330] sm:$0xff] }
 0x32a   :  { %v8620_v16 = vpack.c.bf16 %v7593_v15, %v7591_v13 }
 0x32c   :  { %v673_v24 = vpop.f32.mrb[14].mxu1  ;;  %8621 = vmatpush1.bf16.msra.mxu1 %v8620_v16 }
 0x32d   :  { %v8596_v25 = vpack.c.bf16 %v673_v24, %v667_v18  ;;  %v675_v26 = vpop.f32.mrb[15].mxu1  ;;  %v7598_v18 = vld [vmem:[%s13649_s2 + $0x358] sm:$0xff]  ;;  %v7595_v24 = vld [vmem:[%s13649_s2 + $0x340] sm:$0xff] }
 0x32e   :  { %v8594_v28 = vpack.c.bf16 %v675_v26, %v669_v19  ;;  %v8622_v19 = vpack.c.bf16 %v7598_v18, %v7596_v17 }
 0x330   :  { %8595 = vmatprep.subr.bf16.mxu0 %v8594_v28  ;;  %8623 = vmatprep.subr.bf16.mxu1 %v8622_v19  ;;  %v7600_v28 = vld [vmem:[%s13649_s2 + $0x368] sm:$0xff] }
 0x331   :  { %8597 = vmatpush1.bf16.msra.mxu0 %v8596_v25  ;;  %v7597_v25 = vld [vmem:[%s13649_s2 + $0x350] sm:$0xff]  ;;  %v8626_v35 = vpack.c.bf16 %v7602_v33, %v7600_v28 }
 0x332   :  { %v8624_v26 = vpack.c.bf16 %v7597_v25, %v7595_v24 }
 0x334   :  { %7567 = vmatmul.mubr.msk.f32.vlgmr.msra.gmra.mrb[8].mxu0 %vm69_vm0, %v9543_v29  ;;  %8625 = vmatpush1.bf16.msra.mxu1 %v8624_v26 }
 0x335   :  { %759 = vmatprep.mubr.f32.mxu0 %v13660_v4  ;;  %8627 = vmatprep.subr.bf16.mxu1 %v8626_v35 }
 0x338   :  { %7568 = vmatmul.mubr.msk.f32.gmra.mrb[10].mxu0 %vm69_vm0, %v9549_v39  ;;  %8629 = vmatpush1.bf16.msra.mxu1 %v8628_v38 }
 0x339   :  { %765 = vmatprep.mubr.f32.mxu0 %v13660_v4  ;;  %8631 = vmatprep.subr.bf16.mxu1 %v8630_v41 }
 0x33c   :  { %7569 = vmatmul.mubr.msk.f32.gmra.mrb[12].mxu0 %vm69_vm0, %v9555_v42  ;;  %8633 = vmatpush1.bf16.msra.mxu1 %v8632_v57 }
 0x33d   :  { %771 = vmatprep.mubr.f32.mxu0 %v13660_v4  ;;  %8635 = vmatprep.subr.bf16.mxu1 %v8634_v34 }
 0x340   :  { %7570 = vmatmul.mubr.msk.f32.gmra.mrb[14].mxu0 %vm69_vm0, %v9560_v43  ;;  %8637 = vmatpush1.bf16.msra.mxu1 %v8636_v62 }
 0x341   :  { %1123 = vmatprep.mubr.f32.mxu0 %v13660_v4  ;;  %8676 = vmatprep.subr.bf16.mxu1 %v13662_v47 }
 0x407   :  { %v755_v50 = vpop.f32.mrb[8].mxu0 }
 0x408   :  { %v757_v52 = vpop.f32.mrb[9].mxu0  ;;  %v9931_v54 = vadd.f32 %v755_v50, %v682_v49 }
 0x409   :  { %v9929_v1 = vadd.f32 %v757_v52, %v686_v48 }
 0x40a   :  { %v800_v63 = vmul.f32 %v9931_v54, %v9931_v54 }
 0x40b   :  { %v761_v55 = vpop.f32.mrb[10].mxu0  ;;  %v801_v60 = vmul.f32 %v9929_v1, %v9929_v1  ;;  %v787_v13 = vsel %vm69_vm0, %v9929_v1, 0.0 }
 0x40c   :  { %v9933_v56 = vadd.f32 %v761_v55, %v682_v49  ;;  %v763_v58 = vpop.f32.mrb[11].mxu0 }
 0x40d   :  { %v9937_v61 = vadd.f32 %v763_v58, %v686_v48  ;;  %v817_v26 = vsel %vm69_vm0, %v801_v60, 0.0 }
 0x40e   :  { %v778_v11 = vadd.f32 %v9933_v56, %v9931_v54  ;;  %v802_v12 = vmul.f32 %v9933_v56, %v9933_v56 }
 0x40f   :  { %v788_v15 = vsel %vm69_vm0, %v9937_v61, 0.0  ;;  %v803_v16 = vmul.f32 %v9937_v61, %v9937_v61  ;;  %v767_v17 = vpop.f32.mrb[12].mxu0 }
 0x410   :  { %v808_v18 = vadd.f32 %v802_v12, %v800_v63  ;;  %v789_v19 = vadd.f32 %v788_v15, %v787_v13  ;;  %v9951_v24 = vadd.f32 %v767_v17, %v682_v49  ;;  %v769_v25 = vpop.f32.mrb[13].mxu0 }
 0x411   :  { %v818_v28 = vsel %vm69_vm0, %v803_v16, 0.0  ;;  %v9955_v33 = vadd.f32 %v769_v25, %v686_v48 }
 0x412   :  { %v819_v35 = vadd.f32 %v818_v28, %v817_v26  ;;  %v779_v36 = vadd.f32 %v778_v11, %v9951_v24  ;;  %v804_v37 = vmul.f32 %v9951_v24, %v9951_v24 }
 0x413   :  { %v790_v38 = vsel %vm69_vm0, %v9955_v33, 0.0  ;;  %v805_v40 = vmul.f32 %v9955_v33, %v9955_v33  ;;  %v773_v27 = vpop.f32.mrb[14].mxu0 }
 0x414   :  { %v809_v41 = vadd.f32 %v808_v18, %v804_v37  ;;  %v791_v44 = vadd.f32 %v790_v38, %v789_v19  ;;  %v9964_v45 = vadd.f32 %v773_v27, %v682_v49  ;;  %v775_v57 = vpop.f32.mrb[15].mxu0 }
 0x415   :  { %v820_v59 = vsel %vm69_vm0, %v805_v40, 0.0  ;;  %v9967_v10 = vadd.f32 %v775_v57, %v686_v48 }
 0x416   :  { %v821_v34 = vadd.f32 %v820_v59, %v819_v35  ;;  %v780_v21 = vadd.f32 %v779_v36, %v9964_v45  ;;  %v806_v46 = vmul.f32 %v9964_v45, %v9964_v45 }
 0x417   :  { %v792_v62 = vsel %vm69_vm0, %v9967_v10, 0.0  ;;  %v807_v14 = vmul.f32 %v9967_v10, %v9967_v10 }
 0x418   :  { %v781_v50 = vrot.slane %v780_v21, 4  ;;  %v810_v49 = vadd.f32 %v809_v41, %v806_v46  ;;  %v793_v52 = vadd.f32 %v792_v62, %v791_v44 }
 0x419   :  { %v822_v55 = vsel %vm69_vm0, %v807_v14, 0.0 }
 0x41a   :  { %v782_v58 = vadd.f32 %v781_v50, %v780_v21  ;;  %v811_v48 = vrot.slane %v810_v49, 4  ;;  %v794_v60 = vrot.slane %v793_v52, 4  ;;  %v823_v63 = vadd.f32 %v822_v55, %v821_v34 }
 0x41c   :  { %v783_v11 = vrot.slane %v782_v58, 2  ;;  %v812_v12 = vadd.f32 %v811_v48, %v810_v49  ;;  %v795_v13 = vadd.f32 %v794_v60, %v793_v52  ;;  %v824_v15 = vrot.slane %v823_v63, 4 }
 0x41e   :  { %v784_v16 = vadd.f32 %v783_v11, %v782_v58  ;;  %v813_v17 = vrot.slane %v812_v12, 2  ;;  %v796_v18 = vrot.slane %v795_v13, 2  ;;  %v825_v19 = vadd.f32 %v824_v15, %v823_v63 }
 0x420   :  { %v785_v25 = vrot.slane %v784_v16, 1  ;;  %v814_v26 = vadd.f32 %v813_v17, %v812_v12  ;;  %v797_v28 = vadd.f32 %v796_v18, %v795_v13  ;;  %v826_v35 = vrot.slane %v825_v19, 2  ;;  %v7562_v18 = vld [vmem:[%s13650_s3 + $0x5] ss:$8 sm:$0x3] }
 0x422   :  { %v786_v36 = vadd.f32 %v785_v25, %v784_v16  ;;  %v815_v37 = vrot.slane %v814_v26, 1  ;;  %v798_v38 = vrot.slane %v797_v28, 1  ;;  %v827_v40 = vadd.f32 %v826_v35, %v825_v19 }
 0x424   :  { %v816_v27 = vadd.f32 %v815_v37, %v814_v26  ;;  %v830_v41 = vmul.f32 0.03125, %v786_v36  ;;  %v799_v44 = vadd.f32 %v798_v38, %v797_v28  ;;  %v828_v57 = vrot.slane %v827_v40, 1  ;;  %v1270_v38 = vld [vmem:[%s13651_s4] sm:$0xff] }
 0x425   :  { %v889_v36 = vrot.slane %v7562_v18, %v9685_v51  ;;  %v885_v37 = vrot.slane %v7562_v18, %v9691_v53  ;;  %v1285_v18 = vld [vmem:[%s13651_s4 + $0x78] sm:$0xff] }
 0x426   :  { %v832_v59 = vmul.f32 0.03125, %v816_v27  ;;  %v834_v34 = vmul.f32 %v830_v41, %v830_v41  ;;  %v846_v21 = vsub.f32 %v9964_v45, %v830_v41  ;;  %v829_v46 = vadd.f32 %v828_v57, %v827_v40  ;;  %v1271_v40 = vld [vmem:[%s13651_s4 + $0x8] sm:$0xff] }
 0x427   :  { %v831_v62 = vmul.f32 0.03125, %v799_v44  ;;  %v840_v14 = vsub.f32 %v9931_v54, %v830_v41  ;;  %v842_v50 = vsub.f32 %v9933_v56, %v830_v41  ;;  %v844_v49 = vsub.f32 %v9951_v24, %v830_v41  ;;  %v7561_v56 = vld [vmem:[%s13650_s3 + $0x4] ss:$8 sm:$0x3] }
 0x428   :  { %v836_v52 = vsub.f32 %v832_v59, %v834_v34  ;;  %v833_v55 = vmul.f32 0.03125, %v829_v46  ;;  %v856_v24 = vrot.slane %v7561_v56, %v9691_v53  ;;  %v8677_v34 = vpack.c.bf16 %v1271_v40, %v1270_v38  ;;  %v1272_v46 = vld [vmem:[%s13651_s4 + $0x10] sm:$0xff]  ;;  %v9187_v38 = vld [vmem:[%s13647_s0] sm:$0xff] }
 0x429   :  { %v835_v58 = vmul.f32 %v831_v62, %v831_v62  ;;  %v847_v48 = vsub.f32 %v9967_v10, %v831_v62  ;;  %v841_v60 = vsub.f32 %v9929_v1, %v831_v62  ;;  %v843_v63 = vsub.f32 %v9937_v61, %v831_v62 }
 0x42a   :  { %v838_v11 = vmax.f32 %v836_v52, 0.0  ;;  %v845_v45 = vsub.f32 %v9955_v33, %v831_v62  ;;  %v860_v1 = vrot.slane %v7561_v56, %v9685_v51  ;;  %v1273_v62 = vld [vmem:[%s13651_s4 + $0x18] sm:$0xff]  ;;  %v1274_v52 = vld [vmem:[%s13651_s4 + $0x20] sm:$0xff] }
 0x42b   :  { %v837_v12 = vsub.f32 %v833_v55, %v835_v58  ;;  %v1275_v55 = vld [vmem:[%s13651_s4 + $0x28] sm:$0xff] }
 0x42c   :  { %v848_v13 = vadd.f32 1e-05, %v838_v11  ;;  %v1277_v11 = vld [vmem:[%s13651_s4 + $0x38] sm:$0xff] }
 0x42d   :  { %v839_v15 = vmax.f32 %v837_v12, 0.0 }
 0x42e   :  { %9077 = vrsqrt.f32 %v848_v13 }
 0x42f   :  { %v849_v54 = vadd.f32 1e-05, %v839_v15  ;;  %v1278_v15 = vld [vmem:[%s13651_s4 + $0x40] sm:$0xff] }
 0x431   :  { %9079 = vrsqrt.f32 %v849_v54  ;;  %v1279_v54 = vld [vmem:[%s13651_s4 + $0x48] sm:$0xff] }
 0x432   :  { %v8689_v56 = vpack.c.bf16 %v1279_v54, %v1278_v15  ;;  %v7624_v15 = vld [vmem:[%s13651_s4 + $0xb0] sm:$0xff]  ;;  %v7625_v54 = vld [vmem:[%s13651_s4 + $0xb8] sm:$0xff] }
 0x438   :  { %v9078_v10 = vpop.eup %9077 }
 0x439   :  { %v863_v16 = vmul.f32 %v9078_v10, %v856_v24  ;;  %v1280_v24 = vld [vmem:[%s13651_s4 + $0x50] sm:$0xff]  ;;  %v1281_v10 = vld [vmem:[%s13651_s4 + $0x58] sm:$0xff] }
 0x43b   :  { %v9080_v61 = vpop.eup %9079  ;;  %v868_v17 = vrot.slane %v863_v16, %v9691_v53  ;;  %v1282_v16 = vld [vmem:[%s13651_s4 + $0x60] sm:$0xff] }
 0x43c   :  { %v864_v33 = vmul.f32 %v9080_v61, %v860_v1  ;;  %v8692_v1 = vpack.c.bf16 %v1281_v10, %v1280_v24  ;;  %v1283_v61 = vld [vmem:[%s13651_s4 + $0x68] sm:$0xff]  ;;  %v7626_v24 = vld [vmem:[%s13651_s4 + $0xc0] sm:$0xff] }
 0x43d   :  { %v873_v19 = vmul.f32 %v868_v17, %v840_v14  ;;  %v875_v25 = vmul.f32 %v868_v17, %v842_v50  ;;  %v877_v26 = vmul.f32 %v868_v17, %v844_v49  ;;  %v879_v28 = vmul.f32 %v868_v17, %v846_v21  ;;  %v7627_v10 = vld [vmem:[%s13651_s4 + $0xc8] sm:$0xff] }
 0x43e   :  { %v872_v35 = vrot.slane %v864_v33, %v9691_v53  ;;  %v8680_v50 = vpack.c.bf16 %v1273_v62, %v1272_v46  ;;  %v8695_v17 = vpack.c.bf16 %v1283_v61, %v1282_v16  ;;  %v1284_v33 = vld [vmem:[%s13651_s4 + $0x70] sm:$0xff]  ;;  %v7629_v16 = vld [vmem:[%s13651_s4 + $0xd8] sm:$0xff]  ;;  %v7630_v61 = vld [vmem:[%s13651_s4 + $0xe0] sm:$0xff] }
 0x43f   :  { %v10005_v21 = vadd.f32 %v885_v37, %v873_v19  ;;  %v10021_v49 = vadd.f32 %v885_v37, %v875_v25  ;;  %v10049_v13 = vadd.f32 %v885_v37, %v879_v28  ;;  %v8698_v19 = vpack.c.bf16 %v1285_v18, %v1284_v33  ;;  %v1286_v25 = vld [vmem:[%s13651_s4 + $0x80] sm:$0xff]  ;;  %v7632_v33 = vld [vmem:[%s13651_s4 + $0xf0] sm:$0xff]  ;;  %v7633_v18 = vld [vmem:[%s13651_s4 + $0xf8] sm:$0xff] }
 0x440   :  { %v880_v27 = vmul.f32 %v872_v35, %v847_v48  ;;  %v874_v41 = vmul.f32 %v872_v35, %v841_v60  ;;  %v876_v44 = vmul.f32 %v872_v35, %v843_v63  ;;  %v878_v57 = vmul.f32 %v872_v35, %v845_v45  ;;  %v1276_v63 = vld [vmem:[%s13651_s4 + $0x30] sm:$0xff] }
 0x441   :  { %13885 = vst [vmem:[#allocation18_spill] sm:$0xff] %v10005_v21  ;;  %13887 = vst [vmem:[#allocation20_spill] sm:$0xff] %v10021_v49  ;;  %v8683_v48 = vpack.c.bf16 %v1275_v55, %v1274_v52  ;;  %v10035_v60 = vadd.f32 %v885_v37, %v877_v26  ;;  %v8686_v12 = vpack.c.bf16 %v1277_v11, %v1276_v63  ;;  %v1287_v26 = vld [vmem:[%s13651_s4 + $0x88] sm:$0xff]  ;;  %v1288_v35 = vld [vmem:[%s13651_s4 + $0x90] sm:$0xff] }
 0x442   :  { %v10003_v59 = vadd.f32 %v889_v36, %v874_v41  ;;  %v10015_v14 = vadd.f32 %v889_v36, %v876_v44  ;;  %v10029_v58 = vadd.f32 %v889_v36, %v878_v57  ;;  %v10043_v45 = vadd.f32 %v889_v36, %v880_v27  ;;  %13891 = vst [vmem:[#allocation24_spill] sm:$0xff] %v10049_v13  ;;  %v1289_v36 = vld [vmem:[%s13651_s4 + $0x98] sm:$0xff]  ;;  %v7622_v63 = vld [vmem:[%s13651_s4 + $0xa0] sm:$0xff]  ;;  %v7623_v11 = vld [vmem:[%s13651_s4 + $0xa8] sm:$0xff] }
 0x443   :  { %13889 = vst [vmem:[#allocation22_spill] sm:$0xff] %v10035_v60  ;;  %v8701_v28 = vpack.c.bf16 %v1287_v26, %v1286_v25  ;;  %v8704_v37 = vpack.c.bf16 %v1289_v36, %v1288_v35  ;;  %v7635_v25 = vld [vmem:[%s13651_s4 + $0x108] sm:$0xff]  ;;  %v7636_v36 = vld [vmem:[%s13651_s4 + $0x110] sm:$0xff] }
 0x444   :  { %13884 = vst [vmem:[#allocation17_spill] sm:$0xff] %v10003_v59  ;;  %7614 = vmatprep.mubr.msk.f32.mxu1 %vm69_vm0, %v10003_v59  ;;  %13886 = vst [vmem:[#allocation19_spill] sm:$0xff] %v10015_v14 }
 0x445   :  { %1024 = vmatmul.mubr.f32.vlgmr.msra.gmra.mrb[16].mxu1 %v10005_v21  ;;  %13888 = vst [vmem:[#allocation21_spill] sm:$0xff] %v10029_v58  ;;  %13890 = vst [vmem:[#allocation23_spill] sm:$0xff] %v10043_v45 }
 0x446   :  { %8678 = vmatpush1.bf16.msra.mxu1 %v8677_v34  ;;  %7615 = vmatprep.mubr.msk.f32.mxu1 %vm69_vm0, %v10015_v14 }
 0x447   :  { %8679 = vmatprep.subr.bf16.mxu1 %v13662_v47 }
 0x449   :  { %1030 = vmatmul.mubr.f32.gmra.mrb[18].mxu1 %v10021_v49 }
 0x44a   :  { %8681 = vmatpush1.bf16.msra.mxu1 %v8680_v50  ;;  %7616 = vmatprep.mubr.msk.f32.mxu1 %vm69_vm0, %v10029_v58 }
 0x44b   :  { %8682 = vmatprep.subr.bf16.mxu1 %v13662_v47 }
 0x44d   :  { %1036 = vmatmul.mubr.f32.gmra.mrb[20].mxu1 %v10035_v60 }
 0x44e   :  { %8684 = vmatpush1.bf16.msra.mxu1 %v8683_v48  ;;  %7617 = vmatprep.mubr.msk.f32.mxu1 %vm69_vm0, %v10043_v45 }
 0x44f   :  { %8685 = vmatprep.subr.bf16.mxu1 %v13662_v47 }
 0x451   :  { %1042 = vmatmul.mubr.f32.gmra.mrb[22].mxu1 %v10049_v13 }
 0x452   :  { %8687 = vmatpush1.bf16.msra.mxu1 %v8686_v12  ;;  %7646 = vmatprep.mubr.msk.f32.mxu1 %vm69_vm0, %v9763_v22  ;;  %v8647_v12 = vpack.c.bf16 %v7623_v11, %v7622_v63  ;;  %v7650_v63 = vld [vmem:[%s13651_s4 + $0x140] sm:$0xff]  ;;  %v7651_v11 = vld [vmem:[%s13651_s4 + $0x148] sm:$0xff] }
 0x453   :  { %8688 = vmatprep.subr.bf16.mxu1 %v13662_v47 }
 0x456   :  { %8690 = vmatpush1.bf16.msra.mxu1 %v8689_v56  ;;  %v8650_v56 = vpack.c.bf16 %v7625_v54, %v7624_v15  ;;  %v7652_v15 = vld [vmem:[%s13651_s4 + $0x150] sm:$0xff]  ;;  %v7653_v54 = vld [vmem:[%s13651_s4 + $0x158] sm:$0xff] }
 0x457   :  { %8691 = vmatprep.subr.bf16.mxu1 %v13662_v47 }
 0x45a   :  { %8693 = vmatpush1.bf16.msra.mxu1 %v8692_v1  ;;  %v7628_v1 = vld [vmem:[%s13651_s4 + $0xd0] sm:$0xff] }
 0x45b   :  { %8694 = vmatprep.subr.bf16.mxu1 %v13662_v47 }
 0x45e   :  { %8696 = vmatpush1.bf16.msra.mxu1 %v8695_v17  ;;  %v7631_v17 = vld [vmem:[%s13651_s4 + $0xe8] sm:$0xff] }
 0x45f   :  { %8697 = vmatprep.subr.bf16.mxu1 %v13662_v47 }
 0x462   :  { %8699 = vmatpush1.bf16.msra.mxu1 %v8698_v19  ;;  %v8662_v19 = vpack.c.bf16 %v7633_v18, %v7632_v33  ;;  %v7660_v33 = vld [vmem:[%s13651_s4 + $0x190] sm:$0xff]  ;;  %v7661_v18 = vld [vmem:[%s13651_s4 + $0x198] sm:$0xff] }
 0x463   :  { %8700 = vmatprep.subr.bf16.mxu1 %v13662_v47 }
 0x466   :  { %8702 = vmatpush1.bf16.msra.mxu1 %v8701_v28 }
 0x467   :  { %8703 = vmatprep.subr.bf16.mxu1 %v13662_v47 }
 0x46a   :  { %8705 = vmatpush1.bf16.msra.mxu1 %v8704_v37  ;;  %v7637_v37 = vld [vmem:[%s13651_s4 + $0x118] sm:$0xff] }
 0x46d   :  { %1461 = vmatmul.mubr.f32.vlgmr.msra.gmra.mrb[24].mxu1 %v9765_v0 }
 0x46e   :  { %7647 = vmatprep.mubr.msk.f32.mxu1 %vm69_vm0, %v9769_v23  ;;  %v2623_v23 = vadd.s32 128, %v9327_v5 }
 0x471   :  { %1466 = vmatmul.mubr.f32.gmra.mrb[26].mxu1 %v9774_v2 }
 0x472   :  { %7648 = vmatprep.mubr.msk.f32.mxu1 %vm69_vm0, %v9776_v3 }
 0x475   :  { %1471 = vmatmul.mubr.f32.gmra.mrb[28].mxu1 %v9781_v7 }
 0x476   :  { %7649 = vmatprep.mubr.msk.f32.mxu1 %vm69_vm0, %v9783_v8 }
 0x479   :  { %1476 = vmatmul.mubr.f32.gmra.mrb[30].mxu1 %v9788_v9 }
 0x47a   :  { %8166 = vmatprep.mubr.msk.f32.mxu1 %vm69_vm0, %v9187_v38 }
 0x518   :  { %v1025_v40 = vpop.f32.mrb[16].mxu1 }
 0x519   :  { %v1027_v27 = vpop.f32.mrb[17].mxu1 }
 0x51c   :  { %v1031_v41 = vpop.f32.mrb[18].mxu1 }
 0x51d   :  { %v8640_v44 = vpack.c.bf16 %v1031_v41, %v1025_v40  ;;  %v1033_v57 = vpop.f32.mrb[19].mxu1  ;;  %v7638_v41 = vld [vmem:[%s13651_s4 + $0x120] sm:$0xff] }
 0x51e   :  { %v8638_v34 = vpack.c.bf16 %v1033_v57, %v1027_v27  ;;  %v8668_v27 = vpack.c.bf16 %v7637_v37, %v7636_v36  ;;  %v7665_v36 = vld [vmem:[%s13651_s4 + $0x1b8] sm:$0xff] }
 0x520   :  { %v1037_v46 = vpop.f32.mrb[20].mxu1  ;;  %8639 = vmatprep.subr.bf16.mxu0 %v8638_v34 }
 0x521   :  { %v1039_v62 = vpop.f32.mrb[21].mxu1  ;;  %8641 = vmatpush1.bf16.msra.mxu0 %v8640_v44  ;;  %v7639_v44 = vld [vmem:[%s13651_s4 + $0x128] sm:$0xff] }
 0x524   :  { %v1043_v50 = vpop.f32.mrb[22].mxu1 }
 0x525   :  { %v8644_v52 = vpack.c.bf16 %v1043_v50, %v1037_v46  ;;  %v1045_v55 = vpop.f32.mrb[23].mxu1  ;;  %v8671_v46 = vpack.c.bf16 %v7639_v44, %v7638_v41  ;;  %v7641_v50 = vld [vmem:[%s13651_s4 + $0x138] sm:$0xff]  ;;  %v7668_v44 = vld [vmem:[%s13651_s4 + $0x1d0] sm:$0xff] }
 0x526   :  { %v8642_v48 = vpack.c.bf16 %v1045_v55, %v1039_v62  ;;  %v7640_v62 = vld [vmem:[%s13651_s4 + $0x130] sm:$0xff] }
 0x528   :  { %8643 = vmatprep.subr.bf16.mxu0 %v8642_v48  ;;  %v8674_v48 = vpack.c.bf16 %v7641_v50, %v7640_v62  ;;  %v7611_v62 = vld [vmem:[%s13650_s3 + $0x6] ss:$8 sm:$0x3] }
 0x529   :  { %8645 = vmatpush1.bf16.msra.mxu0 %v8644_v52  ;;  %v1056_v50 = vrot.slane %v7611_v62, %v9685_v51 }
 0x52a   :  { %8646 = vmatprep.subr.bf16.mxu0 %v13662_v47 }
 0x52c   :  { %7618 = vmatmul.mubr.msk.f32.vlgmr.msra.gmra.mrb[16].mxu0 %vm69_vm0, %v9543_v29  ;;  %v8653_v29 = vpack.c.bf16 %v7627_v10, %v7626_v24  ;;  %v7654_v24 = vld [vmem:[%s13651_s4 + $0x160] sm:$0xff]  ;;  %v7655_v10 = vld [vmem:[%s13651_s4 + $0x168] sm:$0xff] }
 0x52d   :  { %8648 = vmatpush1.bf16.msra.mxu0 %v8647_v12  ;;  %1129 = vmatprep.mubr.f32.mxu0 %v13660_v4  ;;  %v8707_v12 = vpack.c.bf16 %v7651_v11, %v7650_v63 }
 0x52e   :  { %8649 = vmatprep.subr.bf16.mxu0 %v13662_v47 }
 0x530   :  { %7619 = vmatmul.mubr.msk.f32.gmra.mrb[18].mxu0 %vm69_vm0, %v9549_v39  ;;  %v8656_v39 = vpack.c.bf16 %v7629_v16, %v7628_v1  ;;  %v7656_v1 = vld [vmem:[%s13651_s4 + $0x170] sm:$0xff]  ;;  %v7657_v16 = vld [vmem:[%s13651_s4 + $0x178] sm:$0xff] }
 0x531   :  { %8651 = vmatpush1.bf16.msra.mxu0 %v8650_v56  ;;  %1135 = vmatprep.mubr.f32.mxu0 %v13660_v4  ;;  %v8710_v56 = vpack.c.bf16 %v7653_v54, %v7652_v15 }
 0x532   :  { %8652 = vmatprep.subr.bf16.mxu0 %v13662_v47 }
 0x534   :  { %7620 = vmatmul.mubr.msk.f32.gmra.mrb[20].mxu0 %vm69_vm0, %v9555_v42  ;;  %v8659_v42 = vpack.c.bf16 %v7631_v17, %v7630_v61  ;;  %v7658_v61 = vld [vmem:[%s13651_s4 + $0x180] sm:$0xff]  ;;  %v7659_v17 = vld [vmem:[%s13651_s4 + $0x188] sm:$0xff] }
 0x535   :  { %8654 = vmatpush1.bf16.msra.mxu0 %v8653_v29  ;;  %1141 = vmatprep.mubr.f32.mxu0 %v13660_v4  ;;  %v8713_v29 = vpack.c.bf16 %v7655_v10, %v7654_v24 }
 0x536   :  { %8655 = vmatprep.subr.bf16.mxu0 %v13662_v47 }
 0x538   :  { %7621 = vmatmul.mubr.msk.f32.gmra.mrb[22].mxu0 %vm69_vm0, %v9560_v43  ;;  %v7634_v43 = vld [vmem:[%s13651_s4 + $0x100] sm:$0xff] }
 0x539   :  { %8657 = vmatpush1.bf16.msra.mxu0 %v8656_v39  ;;  %7642 = vmatprep.mubr.msk.f32.mxu0 %vm69_vm0, %v10003_v59  ;;  %v8665_v35 = vpack.c.bf16 %v7635_v25, %v7634_v43  ;;  %v8716_v39 = vpack.c.bf16 %v7657_v16, %v7656_v1  ;;  %v7662_v43 = vld [vmem:[%s13651_s4 + $0x1a0] sm:$0xff]  ;;  %v7663_v25 = vld [vmem:[%s13651_s4 + $0x1a8] sm:$0xff] }
 0x53a   :  { %8658 = vmatprep.subr.bf16.mxu0 %v13662_v47 }
 0x53d   :  { %8660 = vmatpush1.bf16.msra.mxu0 %v8659_v42  ;;  %v8719_v42 = vpack.c.bf16 %v7659_v17, %v7658_v61 }
 0x53e   :  { %8661 = vmatprep.subr.bf16.mxu0 %v13662_v47 }
 0x540   :  { %v10171_v26 = vpop.f32.mrb[24].mxu1 }
 0x541   :  { %v1464_v28 = vpop.f32.mrb[25].mxu1  ;;  %8663 = vmatpush1.bf16.msra.mxu0 %v8662_v19  ;;  %v8722_v19 = vpack.c.bf16 %v7661_v18, %v7660_v33 }
 0x542   :  { %8664 = vmatprep.subr.bf16.mxu0 %v13662_v47  ;;  %v8725_v28 = vpack.c.bf16 %v7663_v25, %v7662_v43 }
 0x544   :  { %v10180_v38 = vpop.f32.mrb[26].mxu1 }
 0x545   :  { %v1469_v40 = vpop.f32.mrb[27].mxu1  ;;  %8666 = vmatpush1.bf16.msra.mxu0 %v8665_v35  ;;  %v7664_v35 = vld [vmem:[%s13651_s4 + $0x1b0] sm:$0xff] }
 0x546   :  { %8667 = vmatprep.subr.bf16.mxu0 %v13662_v47  ;;  %v8728_v37 = vpack.c.bf16 %v7665_v36, %v7664_v35  ;;  %v7666_v40 = vld [vmem:[%s13651_s4 + $0x1c0] sm:$0xff] }
 0x548   :  { %v10189_v57 = vpop.f32.mrb[28].mxu1 }
 0x549   :  { %v1474_v34 = vpop.f32.mrb[29].mxu1  ;;  %8669 = vmatpush1.bf16.msra.mxu0 %v8668_v27  ;;  %v7667_v27 = vld [vmem:[%s13651_s4 + $0x1c8] sm:$0xff] }
 0x54a   :  { %8670 = vmatprep.subr.bf16.mxu0 %v13662_v47  ;;  %v8731_v41 = vpack.c.bf16 %v7667_v27, %v7666_v40  ;;  %v7669_v34 = vld [vmem:[%s13651_s4 + $0x1d8] sm:$0xff] }
 0x54c   :  { %v10198_v52 = vpop.f32.mrb[30].mxu1 }
 0x54d   :  { %v1479_v55 = vpop.f32.mrb[31].mxu1  ;;  %8672 = vmatpush1.bf16.msra.mxu0 %v8671_v46  ;;  %v8734_v46 = vpack.c.bf16 %v7669_v34, %v7668_v44 }
 0x54e   :  { %8673 = vmatprep.subr.bf16.mxu0 %v13662_v47  ;;  %v1052_v55 = vrot.slane %v7611_v62, %v9691_v53 }
 0x551   :  { %8675 = vmatpush1.bf16.msra.mxu0 %v8674_v48 }
 0x552   :  { %8706 = vmatprep.subr.bf16.mxu0 %v13662_v47 }
 0x554   :  { %1376 = vmatmul.mubr.f32.vlgmr.msra.gmra.mrb[24].mxu0 %v10005_v21 }
 0x555   :  { %7643 = vmatprep.mubr.msk.f32.mxu0 %vm69_vm0, %v10015_v14  ;;  %8708 = vmatpush1.bf16.msra.mxu0 %v8707_v12 }
 0x556   :  { %8709 = vmatprep.subr.bf16.mxu0 %v13662_v47 }
 0x558   :  { %1381 = vmatmul.mubr.f32.gmra.mrb[26].mxu0 %v10021_v49 }
 0x559   :  { %7644 = vmatprep.mubr.msk.f32.mxu0 %vm69_vm0, %v10029_v58  ;;  %8711 = vmatpush1.bf16.msra.mxu0 %v8710_v56 }
 0x55a   :  { %8712 = vmatprep.subr.bf16.mxu0 %v13662_v47 }
 0x55c   :  { %1386 = vmatmul.mubr.f32.gmra.mrb[28].mxu0 %v10035_v60 }
 0x55d   :  { %7645 = vmatprep.mubr.msk.f32.mxu0 %vm69_vm0, %v10043_v45  ;;  %8714 = vmatpush1.bf16.msra.mxu0 %v8713_v29 }
 0x55e   :  { %8715 = vmatprep.subr.bf16.mxu0 %v13662_v47 }
 0x560   :  { %1391 = vmatmul.mubr.f32.gmra.mrb[30].mxu0 %v10049_v13 }
 0x561   :  { %8717 = vmatpush1.bf16.msra.mxu0 %v8716_v39 }
 0x562   :  { %8718 = vmatprep.subr.bf16.mxu0 %v13662_v47 }
 0x565   :  { %8720 = vmatpush1.bf16.msra.mxu0 %v8719_v42 }
 0x566   :  { %8721 = vmatprep.subr.bf16.mxu0 %v13662_v47 }
 0x569   :  { %8723 = vmatpush1.bf16.msra.mxu0 %v8722_v19 }
 0x56a   :  { %8724 = vmatprep.subr.bf16.mxu0 %v13662_v47 }
 0x56d   :  { %8726 = vmatpush1.bf16.msra.mxu0 %v8725_v28 }
 0x56e   :  { %8727 = vmatprep.subr.bf16.mxu0 %v13662_v47 }
 0x571   :  { %8729 = vmatpush1.bf16.msra.mxu0 %v8728_v37 }
 0x572   :  { %8730 = vmatprep.subr.bf16.mxu0 %v13662_v47 }
 0x575   :  { %8732 = vmatpush1.bf16.msra.mxu0 %v8731_v41 }
 0x576   :  { %8733 = vmatprep.subr.bf16.mxu0 %v13662_v47 }
 0x579   :  { %8735 = vmatpush1.bf16.msra.mxu0 %v8734_v46 }
 0x5ff   :  { %v1125_v48 = vpop.f32.mrb[16].mxu0 }
 0x600   :  { %v1127_v63 = vpop.f32.mrb[17].mxu0  ;;  %v10288_v12 = vadd.f32 %v1125_v48, %v1052_v55 }
 0x601   :  { %v10286_v11 = vadd.f32 %v1127_v63, %v1056_v50 }
 0x602   :  { %v1170_v29 = vmul.f32 %v10288_v12, %v10288_v12 }
 0x603   :  { %v1131_v15 = vpop.f32.mrb[18].mxu0  ;;  %v1171_v24 = vmul.f32 %v10286_v11, %v10286_v11  ;;  %v1157_v39 = vsel %vm69_vm0, %v10286_v11, 0.0 }
 0x604   :  { %v10290_v54 = vadd.f32 %v1131_v15, %v1052_v55  ;;  %v1133_v56 = vpop.f32.mrb[19].mxu0 }
 0x605   :  { %v10294_v10 = vadd.f32 %v1133_v56, %v1056_v50  ;;  %v1187_v25 = vsel %vm69_vm0, %v1171_v24, 0.0 }
 0x606   :  { %v1148_v1 = vadd.f32 %v10290_v54, %v10288_v12  ;;  %v1172_v16 = vmul.f32 %v10290_v54, %v10290_v54 }
 0x607   :  { %v1158_v61 = vsel %vm69_vm0, %v10294_v10, 0.0  ;;  %v1173_v17 = vmul.f32 %v10294_v10, %v10294_v10  ;;  %v1137_v42 = vpop.f32.mrb[20].mxu0 }
 0x608   :  { %v1178_v33 = vadd.f32 %v1172_v16, %v1170_v29  ;;  %v1159_v18 = vadd.f32 %v1158_v61, %v1157_v39  ;;  %v10308_v19 = vadd.f32 %v1137_v42, %v1052_v55  ;;  %v1139_v43 = vpop.f32.mrb[21].mxu0 }
 0x609   :  { %v1188_v28 = vsel %vm69_vm0, %v1173_v17, 0.0  ;;  %v10312_v35 = vadd.f32 %v1139_v43, %v1056_v50 }
 0x60a   :  { %v1189_v36 = vadd.f32 %v1188_v28, %v1187_v25  ;;  %v1149_v37 = vadd.f32 %v1148_v1, %v10308_v19  ;;  %v1174_v40 = vmul.f32 %v10308_v19, %v10308_v19 }
 0x60b   :  { %v1160_v27 = vsel %vm69_vm0, %v10312_v35, 0.0  ;;  %v1175_v41 = vmul.f32 %v10312_v35, %v10312_v35  ;;  %v1143_v44 = vpop.f32.mrb[22].mxu0 }
 0x60c   :  { %v1179_v34 = vadd.f32 %v1178_v33, %v1174_v40  ;;  %v1161_v46 = vadd.f32 %v1160_v27, %v1159_v18  ;;  %v10321_v62 = vadd.f32 %v1143_v44, %v1052_v55  ;;  %v1145_v48 = vpop.f32.mrb[23].mxu0 }
 0x60d   :  { %v1190_v63 = vsel %vm69_vm0, %v1175_v41, 0.0  ;;  %v10324_v15 = vadd.f32 %v1145_v48, %v1056_v50 }
 0x60e   :  { %v1191_v56 = vadd.f32 %v1190_v63, %v1189_v36  ;;  %v1150_v24 = vadd.f32 %v1149_v37, %v10321_v62  ;;  %v1176_v29 = vmul.f32 %v10321_v62, %v10321_v62 }
 0x60f   :  { %v1162_v1 = vsel %vm69_vm0, %v10324_v15, 0.0  ;;  %v1177_v16 = vmul.f32 %v10324_v15, %v10324_v15 }
 0x610   :  { %v1151_v39 = vrot.slane %v1150_v24, 4  ;;  %v1180_v55 = vadd.f32 %v1179_v34, %v1176_v29  ;;  %v1163_v61 = vadd.f32 %v1162_v1, %v1161_v46 }
 0x611   :  { %v1192_v17 = vsel %vm69_vm0, %v1177_v16, 0.0 }
 0x612   :  { %v1152_v42 = vadd.f32 %v1151_v39, %v1150_v24  ;;  %v1181_v50 = vrot.slane %v1180_v55, 4  ;;  %v1164_v33 = vrot.slane %v1163_v61, 4  ;;  %v1193_v18 = vadd.f32 %v1192_v17, %v1191_v56 }
 0x614   :  { %v1153_v43 = vrot.slane %v1152_v42, 2  ;;  %v1182_v25 = vadd.f32 %v1181_v50, %v1180_v55  ;;  %v1165_v28 = vadd.f32 %v1164_v33, %v1163_v61  ;;  %v1194_v36 = vrot.slane %v1193_v18, 4 }
 0x616   :  { %v1154_v37 = vadd.f32 %v1153_v43, %v1152_v42  ;;  %v1183_v40 = vrot.slane %v1182_v25, 2  ;;  %v1166_v27 = vrot.slane %v1165_v28, 2  ;;  %v1195_v41 = vadd.f32 %v1194_v36, %v1193_v18 }
 0x618   :  { %v1155_v44 = vrot.slane %v1154_v37, 1  ;;  %v1184_v48 = vadd.f32 %v1183_v40, %v1182_v25  ;;  %v1167_v63 = vadd.f32 %v1166_v27, %v1165_v28  ;;  %v1196_v4 = vrot.slane %v1195_v41, 2 }
 0x61a   :  { %v1156_v34 = vadd.f32 %v1155_v44, %v1154_v37  ;;  %v1185_v46 = vrot.slane %v1184_v48, 1  ;;  %v1168_v29 = vrot.slane %v1167_v63, 1  ;;  %v1197_v1 = vadd.f32 %v1196_v4, %v1195_v41 }
 0x61c   :  { %v1186_v24 = vadd.f32 %v1185_v46, %v1184_v48  ;;  %v1200_v16 = vmul.f32 0.03125, %v1156_v34  ;;  %v1169_v39 = vadd.f32 %v1168_v29, %v1167_v63  ;;  %v1198_v56 = vrot.slane %v1197_v1, 1 }
 0x61e   :  { %v1202_v17 = vmul.f32 0.03125, %v1186_v24  ;;  %v1204_v55 = vmul.f32 %v1200_v16, %v1200_v16  ;;  %v1216_v61 = vsub.f32 %v10321_v62, %v1200_v16  ;;  %v1199_v42 = vadd.f32 %v1198_v56, %v1197_v1 }
 0x61f   :  { %v1201_v50 = vmul.f32 0.03125, %v1169_v39  ;;  %v1210_v33 = vsub.f32 %v10288_v12, %v1200_v16  ;;  %v1212_v18 = vsub.f32 %v10290_v54, %v1200_v16  ;;  %v1214_v43 = vsub.f32 %v10308_v19, %v1200_v16  ;;  %v7613_v16 = vld [vmem:[%s13650_s3 + $0x10] ss:$8 sm:$0x3] }
 0x620   :  { %v1206_v25 = vsub.f32 %v1202_v17, %v1204_v55  ;;  %v1203_v28 = vmul.f32 0.03125, %v1199_v42 }
 0x621   :  { %v1205_v36 = vmul.f32 %v1201_v50, %v1201_v50  ;;  %v1217_v4 = vsub.f32 %v10324_v15, %v1201_v50  ;;  %v1211_v37 = vsub.f32 %v10286_v11, %v1201_v50  ;;  %v1213_v40 = vsub.f32 %v10294_v10, %v1201_v50  ;;  %v7612_v11 = vld [vmem:[%s13650_s3 + $0x7] ss:$8 sm:$0x3] }
 0x622   :  { %v1208_v27 = vmax.f32 %v1206_v25, 0.0  ;;  %v1215_v62 = vsub.f32 %v10312_v35, %v1201_v50  ;;  %v1226_v34 = vrot.slane %v7612_v11, %v9691_v53  ;;  %v1230_v1 = vrot.slane %v7612_v11, %v9685_v51 }
 0x623   :  { %v1207_v41 = vsub.f32 %v1203_v28, %v1205_v36 }
 0x624   :  { %v1218_v44 = vadd.f32 1e-05, %v1208_v27 }
 0x625   :  { %v1209_v48 = vmax.f32 %v1207_v41, 0.0 }
 0x626   :  { %9081 = vrsqrt.f32 %v1218_v44  ;;  %v1259_v44 = vrot.slane %v7613_v16, %v9685_v51 }
 0x627   :  { %v1219_v12 = vadd.f32 1e-05, %v1209_v48  ;;  %v1377_v54 = vpop.f32.mrb[24].mxu0 }
 0x628   :  { %v10343_v19 = vadd.f32 %v10171_v26, %v1377_v54  ;;  %v1379_v63 = vpop.f32.mrb[25].mxu0 }
 0x629   :  { %9083 = vrsqrt.f32 %v1219_v12 }
 0x62b   :  { %v1382_v15 = vpop.f32.mrb[26].mxu0 }
 0x62c   :  { %v10349_v10 = vadd.f32 %v10180_v38, %v1382_v15  ;;  %v1384_v35 = vpop.f32.mrb[27].mxu0  ;;  %v1255_v38 = vrot.slane %v7613_v16, %v9691_v53 }
 0x62f   :  { %v1387_v46 = vpop.f32.mrb[28].mxu0 }
 0x630   :  { %v9082_v29 = vpop.eup %9081  ;;  %v10354_v26 = vadd.f32 %v10189_v57, %v1387_v46  ;;  %v1389_v24 = vpop.f32.mrb[29].mxu0 }
 0x631   :  { %v1233_v39 = vmul.f32 %v9082_v29, %v1226_v34 }
 0x633   :  { %v9084_v56 = vpop.eup %9083  ;;  %v1392_v17 = vpop.f32.mrb[30].mxu0  ;;  %v1238_v55 = vrot.slane %v1233_v39, %v9691_v53 }
 0x634   :  { %v1234_v42 = vmul.f32 %v9084_v56, %v1230_v1  ;;  %v10362_v50 = vadd.f32 %v10198_v52, %v1392_v17  ;;  %v1394_v25 = vpop.f32.mrb[31].mxu0 }
 0x635   :  { %v1243_v28 = vmul.f32 %v1238_v55, %v1210_v33  ;;  %v1245_v57 = vmul.f32 %v1238_v55, %v1212_v18  ;;  %v1247_v36 = vmul.f32 %v1238_v55, %v1214_v43  ;;  %v1249_v27 = vmul.f32 %v1238_v55, %v1216_v61 }
 0x636   :  { %v1242_v41 = vrot.slane %v1234_v42, %v9691_v53 }
 0x637   :  { %v1262_v48 = vadd.f32 %v1255_v38, %v1243_v28  ;;  %v1264_v12 = vadd.f32 %v1255_v38, %v1245_v57  ;;  %v1266_v54 = vadd.f32 %v1255_v38, %v1247_v36  ;;  %v1268_v63 = vadd.f32 %v1255_v38, %v1249_v27 }
 0x638   :  { %v1250_v11 = vmul.f32 %v1242_v41, %v1217_v4  ;;  %v1244_v15 = vmul.f32 %v1242_v41, %v1211_v37  ;;  %v1246_v35 = vmul.f32 %v1242_v41, %v1213_v40  ;;  %v1248_v34 = vmul.f32 %v1242_v41, %v1215_v62 }
 0x639   :  { %v6395_v46 = vmax.f32 %v1262_v48, %v1264_v12  ;;  %v6411_v52 = vmax.f32 %v1266_v54, %v1268_v63  ;;  %v10366_v29 = vpack.c.bf16 %v1264_v12, %v1262_v48  ;;  %v10368_v33 = vpack.c.bf16 %v1268_v63, %v1266_v54 }
 0x63a   :  { %v1263_v18 = vadd.f32 %v1259_v44, %v1244_v15  ;;  %v1265_v61 = vadd.f32 %v1259_v44, %v1246_v35  ;;  %v1267_v43 = vadd.f32 %v1259_v44, %v1248_v34  ;;  %v1269_v1 = vadd.f32 %v1259_v44, %v1250_v11 }
 0x63b   :  { %v6396_v24 = vrot.slane %v6395_v46, 4  ;;  %v6412_v51 = vrot.slane %v6411_v52, 4 }
 0x63c   :  { %7670 = vmatprep.mubr.msk.f32.mxu0 %vm69_vm0, %v1263_v18  ;;  %v6402_v16 = vsel %vm69_vm0, %v1263_v18, -inf  ;;  %v6403_v4 = vsel %vm69_vm0, %v1265_v61, -inf  ;;  %v6418_v37 = vsel %vm69_vm0, %v1267_v43, -inf  ;;  %v6419_v40 = vsel %vm69_vm0, %v1269_v1, -inf }
 0x63d   :  { %1579 = vmatmul.mubr.f32.vlgmr.msra.gmra.mrb[32].mxu0 %v1262_v48  ;;  %v6404_v62 = vmax.f32 %v6402_v16, %v6403_v4  ;;  %v6397_v39 = vmax.f32 %v6395_v46, %v6396_v24  ;;  %v6420_v56 = vmax.f32 %v6418_v37, %v6419_v40  ;;  %v6413_v17 = vmax.f32 %v6411_v52, %v6412_v51 }
 0x63e   :  { %7671 = vmatprep.mubr.msk.f32.mxu0 %vm69_vm0, %v1265_v61 }
 0x63f   :  { %v6405_v38 = vrot.slane %v6404_v62, 4  ;;  %v6421_v55 = vrot.slane %v6420_v56, 4  ;;  %v6398_v42 = vrot.slane %v6397_v39, 2  ;;  %v6414_v25 = vrot.slane %v6413_v17, 2 }
 0x641   :  { %1584 = vmatmul.mubr.f32.gmra.mrb[34].mxu0 %v1264_v12  ;;  %v6406_v28 = vmax.f32 %v6404_v62, %v6405_v38  ;;  %v6422_v57 = vmax.f32 %v6420_v56, %v6421_v55  ;;  %v6399_v36 = vmax.f32 %v6397_v39, %v6398_v42  ;;  %v6415_v27 = vmax.f32 %v6413_v17, %v6414_v25 }
 0x642   :  { %7672 = vmatprep.mubr.msk.f32.mxu0 %vm69_vm0, %v1267_v43 }
 0x643   :  { %v6407_v41 = vrot.slane %v6406_v28, 2  ;;  %v6423_v44 = vrot.slane %v6422_v57, 2  ;;  %v6400_v48 = vrot.slane %v6399_v36, 1  ;;  %v6416_v11 = vrot.slane %v6415_v27, 1 }
 0x645   :  { %1589 = vmatmul.mubr.f32.gmra.mrb[36].mxu0 %v1266_v54  ;;  %v6408_v15 = vmax.f32 %v6406_v28, %v6407_v41  ;;  %v6424_v35 = vmax.f32 %v6422_v57, %v6423_v44  ;;  %v6401_v34 = vmax.f32 %v6399_v36, %v6400_v48  ;;  %v6417_v46 = vmax.f32 %v6415_v27, %v6416_v11  ;;  %v7674_v54 = vld [vmem:[%s13657_s10] ss:$0 sm:$0xff] }
 0x646   :  { %7673 = vmatprep.mubr.msk.f32.mxu0 %vm69_vm0, %v1269_v1 }
 0x647   :  { %v6409_v52 = vrot.slane %v6408_v15, 1  ;;  %v6425_v12 = vrot.slane %v6424_v35, 1  ;;  %v10379_v18 = vsel %vm6358_vm14, %v6401_v34, %v6417_v46 }
 0x648   :  { %13892 = vst [vmem:[#allocation25_spill] sm:$0xff] %v10379_v18 }
 0x649   :  { %1594 = vmatmul.mubr.f32.gmra.mrb[38].mxu0 %v1268_v63  ;;  %v6410_v61 = vmax.f32 %v6408_v15, %v6409_v52  ;;  %v6426_v43 = vmax.f32 %v6424_v35, %v6425_v12 }
 0x64b   :  { %v10382_v24 = vsel %vm6358_vm14, %v6410_v61, %v6426_v43 }
 0x64c   :  { %13893 = vst [vmem:[#allocation26_spill] sm:$0xff] %v10382_v24 }
 0x710   :  { %v1580_v51 = vpop.f32.mrb[32].mxu0 }
 0x711   :  { %v1599_v16 = vadd.f32 %v1580_v51, %v10343_v19  ;;  %v1582_v1 = vpop.f32.mrb[33].mxu0 }
 0x713   :  { %v1608_v4 = vadd.f32 %v7674_v54, %v1599_v16 }
 0x714   :  { %v1585_v37 = vpop.f32.mrb[34].mxu0 }
 0x715   :  { %v1600_v40 = vadd.f32 %v1585_v37, %v10349_v10  ;;  %1612 = vmax.xlane.f32.xlu0 %v1608_v4  ;;  %v1587_v62 = vpop.f32.mrb[35].mxu0 }
 0x717   :  { %v1609_v63 = vadd.f32 %v7674_v54, %v1600_v40 }
 0x718   :  { %v1590_v39 = vpop.f32.mrb[36].mxu0 }
 0x719   :  { %v1601_v56 = vadd.f32 %v1590_v39, %v10354_v26  ;;  %1614 = vmax.xlane.f32.xlu1 %v1609_v63  ;;  %v1592_v17 = vpop.f32.mrb[37].mxu0 }
 0x71a   :  { %v9188_v17 = vld [vmem:[%s13647_s0 + $0x8] sm:$0xff] }
 0x71b   :  { %v1610_v38 = vadd.f32 %v7674_v54, %v1601_v56 }
 0x71c   :  { %v1595_v55 = vpop.f32.mrb[38].mxu0 }
 0x71d   :  { %v1602_v42 = vadd.f32 %v1595_v55, %v10362_v50  ;;  %1616 = vmax.xlane.f32.xlu0 %v1610_v38  ;;  %v1597_v25 = vpop.f32.mrb[39].mxu0  ;;  %v9190_v55 = vld [vmem:[%s13647_s0 + $0x18] sm:$0xff] }
 0x71f   :  { %v1611_v19 = vadd.f32 %v7674_v54, %v1602_v42 }
 0x721   :  { %1618 = vmax.xlane.f32.xlu1 %v1611_v19 }
 0x7a2   :  { %v1613_v28 = vpop.xlane.xlu0 %1612 }
 0x7a3   :  { %v10391_v57 = vsub.f32 %v1608_v4, %v1613_v28 }
 0x7a5   :  { %13894 = vst [vmem:[#allocation27_spill] sm:$0xff] %v10391_v57  ;;  %v1624_v10 = vmul.f32 1.442695, %v10391_v57 }
 0x7a6   :  { %v1615_v36 = vpop.xlane.xlu1 %1614 }
 0x7a7   :  { %9085 = vpow2.f32 %v1624_v10  ;;  %v10394_v27 = vsub.f32 %v1609_v63, %v1615_v36 }
 0x7a9   :  { %13895 = vst [vmem:[#allocation28_spill] sm:$0xff] %v10394_v27  ;;  %v1626_v26 = vmul.f32 1.442695, %v10394_v27 }
 0x7aa   :  { %v1617_v41 = vpop.xlane.xlu0 %1616 }
 0x7ab   :  { %9087 = vpow2.f32 %v1626_v26  ;;  %v10397_v44 = vsub.f32 %v1610_v38, %v1617_v41  ;;  %v9189_v38 = vld [vmem:[%s13647_s0 + $0x10] sm:$0xff] }
 0x7ad   :  { %13896 = vst [vmem:[#allocation29_spill] sm:$0xff] %v10397_v44  ;;  %v1628_v50 = vmul.f32 1.442695, %v10397_v44 }
 0x7ae   :  { %v1619_v48 = vpop.xlane.xlu1 %1618 }
 0x7af   :  { %9089 = vpow2.f32 %v1628_v50  ;;  %v10400_v11 = vsub.f32 %v1611_v19, %v1619_v48 }
 0x7b1   :  { %13897 = vst [vmem:[#allocation30_spill] sm:$0xff] %v10400_v11  ;;  %v9086_v15 = vpop.eup %9085  ;;  %v1630_v35 = vmul.f32 1.442695, %v10400_v11 }
 0x7b2   :  { %1632 = vadd.xlane.f32.xlu0 %v9086_v15 }
 0x7b3   :  { %9091 = vpow2.f32 %v1630_v35 }
 0x7b5   :  { %v9088_v34 = vpop.eup %9087 }
 0x7b6   :  { %1634 = vadd.xlane.f32.xlu1 %v9088_v34 }
 0x7b9   :  { %v9090_v46 = vpop.eup %9089 }
 0x7ba   :  { %1636 = vadd.xlane.f32.xlu0 %v9090_v46 }
 0x7bd   :  { %v9092_v52 = vpop.eup %9091 }
 0x7be   :  { %1638 = vadd.xlane.f32.xlu1 %v9092_v52 }
 0x83f   :  { %v10403_v12 = vpop.xlane.xlu0 %1632 }
 0x840   :  { %13898 = vst [vmem:[#allocation31_spill] sm:$0xff] %v10403_v12  ;;  %9093 = vrcp.f32 %v10403_v12 }
 0x843   :  { %v10406_v61 = vpop.xlane.xlu1 %1634 }
 0x844   :  { %13899 = vst [vmem:[#allocation32_spill] sm:$0xff] %v10406_v61  ;;  %9095 = vrcp.f32 %v10406_v61 }
 0x847   :  { %v10409_v43 = vpop.xlane.xlu0 %1636 }
 0x848   :  { %13900 = vst [vmem:[#allocation33_spill] sm:$0xff] %v10409_v43  ;;  %9097 = vrcp.f32 %v10409_v43 }
 0x84a   :  { %v9094_v51 = vpop.eup %9093 }
 0x84b   :  { %v10412_v54 = vpop.xlane.xlu1 %1638  ;;  %v10414_v16 = vmul.f32 %v9094_v51, %v9086_v15 }
 0x84c   :  { %13901 = vst [vmem:[#allocation34_spill] sm:$0xff] %v10412_v54  ;;  %9099 = vrcp.f32 %v10412_v54 }
 0x84d   :  { %13902 = vst [vmem:[#allocation35_spill] sm:$0xff] %v10414_v16  ;;  %1794 = vxpose.xlu0.b32.start [1/2] (short) %v10414_v16, 128 }
 0x84e   :  { %v9096_v1 = vpop.eup %9095 }
 0x84f   :  { %v10418_v4 = vmul.f32 %v9096_v1, %v9088_v34 }
 0x851   :  { %13903 = vst [vmem:[#allocation36_spill] sm:$0xff] %v10418_v4  ;;  %1795 = vxpose.xlu0.b32.end [2/2] (short) %v10418_v4, 128  ;;  %v8736_v37 = vpack.c.bf16 %v10418_v4, %v10414_v16 }
 0x852   :  { %v9098_v40 = vpop.eup %9097 }
 0x853   :  { %8737 = vmatprep.subr.bf16.mxu1 %v8736_v37  ;;  %v10423_v62 = vmul.f32 %v9098_v40, %v9090_v46 }
 0x854   :  { %8739 = vmatpush3.bf16.msra.mxu1 %v8736_v37 }
 0x855   :  { %13904 = vst [vmem:[#allocation37_spill] sm:$0xff] %v10423_v62  ;;  %2203 = vxpose.xlu1.b32.start [1/2] (short) %v10423_v62, 128 }
 0x856   :  { %v9100_v63 = vpop.eup %9099 }
 0x857   :  { %v10426_v39 = vmul.f32 %v9100_v63, %v9092_v52 }
 0x859   :  { %13905 = vst [vmem:[#allocation38_spill] sm:$0xff] %v10426_v39  ;;  %2204 = vxpose.xlu1.b32.end [2/2] (short) %v10426_v39, 128  ;;  %v8740_v56 = vpack.c.bf16 %v10426_v39, %v10423_v62 }
 0x85b   :  { %8741 = vmatprep.subr.bf16.mxu1 %v8740_v56 }
 0x85c   :  { %8743 = vmatpush3.bf16.msra.mxu1 %v8740_v56 }
 0x85d   :  { %8745 = vmatprep.subr.bf16.mxu1 %v10366_v29 }
 0x85f   :  { %8167 = vmatmul.mubr.msk.f32.vlgmr.msra.gmra.mrb[32].mxu1 %vm69_vm0, %v9188_v17 }
 0x860   :  { %8747 = vmatpush3.bf16.msra.mxu1 %v10366_v29  ;;  %8169 = vmatprep.mubr.msk.f32.mxu1 %vm69_vm0, %v9189_v38 }
 0x863   :  { %8170 = vmatmul.mubr.msk.f32.gmra.mrb[34].mxu1 %vm69_vm0, %v9190_v55 }
 0x8cd   :  { %v1810_v42 = vpop.trf.xlu0 }
 0x8ce   :  { %8176 = vmatprep.mubr.msk.f32.mxu1 %vm1826_vm15, %v1810_v42  ;;  %8204 = vmatprep.mubr.msk.f32.mxu0 %vm1826_vm15, %v1810_v42 }
 0x8d1   :  { %v1811_v25 = vpop.trf.xlu0 }
 0x8d2   :  { %8177 = vmatmul.mubr.msk.f32.vlgmr.msra.gmra.mrb[36].mxu1 %vm1826_vm15, %v1811_v25 }
 0x8d5   :  { %v1812_v29 = vpop.trf.xlu0  ;;  %v2219_v34 = vpop.trf.xlu1 }
 0x8d6   :  { %8179 = vmatprep.mubr.msk.f32.mxu1 %vm1826_vm15, %v1812_v29 }
 0x8d9   :  { %v1813_v19 = vpop.trf.xlu0  ;;  %v2220_v51 = vpop.trf.xlu1 }
 0x8da   :  { %8180 = vmatmul.mubr.msk.f32.gmra.mrb[38].mxu1 %vm1826_vm15, %v1813_v19 }
 0x8dd   :  { %v1814_v28 = vpop.trf.xlu0  ;;  %v2221_v37 = vpop.trf.xlu1 }
 0x8de   :  { %8182 = vmatprep.mubr.msk.f32.mxu1 %vm1826_vm15, %v1814_v28 }
 0x8e1   :  { %v1815_v10 = vpop.trf.xlu0  ;;  %v2222_v40 = vpop.trf.xlu1 }
 0x8e2   :  { %8183 = vmatmul.mubr.msk.f32.gmra.mrb[40].mxu1 %vm1826_vm15, %v1815_v10 }
 0x8e5   :  { %v1816_v36 = vpop.trf.xlu0  ;;  %v2223_v63 = vpop.trf.xlu1 }
 0x8e6   :  { %8185 = vmatprep.mubr.msk.f32.mxu1 %vm1826_vm15, %v1816_v36 }
 0x8e9   :  { %v1817_v26 = vpop.trf.xlu0  ;;  %v2224_v56 = vpop.trf.xlu1 }
 0x8ea   :  { %8186 = vmatmul.mubr.msk.f32.gmra.mrb[42].mxu1 %vm1826_vm15, %v1817_v26 }
 0x8ed   :  { %v1818_v41 = vpop.trf.xlu0  ;;  %v2225_v17 = vpop.trf.xlu1 }
 0x8ee   :  { %8188 = vmatprep.mubr.msk.f32.mxu1 %vm1826_vm15, %v1818_v41 }
 0x8f1   :  { %v1819_v50 = vpop.trf.xlu0  ;;  %v2226_v38 = vpop.trf.xlu1 }
 0x8f2   :  { %8189 = vmatmul.mubr.msk.f32.gmra.mrb[44].mxu1 %vm1826_vm15, %v1819_v50 }
 0x8f5   :  { %v1820_v48 = vpop.trf.xlu0  ;;  %v2227_v55 = vpop.trf.xlu1 }
 0x8f6   :  { %8191 = vmatprep.mubr.msk.f32.mxu1 %vm1826_vm15, %v1820_v48 }
 0x8f9   :  { %v1821_v15 = vpop.trf.xlu0  ;;  %v2228_v24 = vpop.trf.xlu1 }
 0x8fa   :  { %8192 = vmatmul.mubr.msk.f32.gmra.mrb[46].mxu1 %vm1826_vm15, %v1821_v15 }
 0x8fd   :  { %v1822_v35 = vpop.trf.xlu0  ;;  %v2229_v0 = vpop.trf.xlu1 }
 0x8fe   :  { %8194 = vmatprep.mubr.msk.f32.mxu1 %vm1826_vm15, %v1822_v35 }
 0x901   :  { %v1823_v46 = vpop.trf.xlu0 }
 0x902   :  { %8195 = vmatmul.mubr.msk.f32.gmra.mrb[48].mxu1 %vm1826_vm15, %v1823_v46 }
 0x905   :  { %v1824_v52 = vpop.trf.xlu0 }
 0x906   :  { %8197 = vmatprep.mubr.msk.f32.mxu1 %vm1826_vm15, %v1824_v52 }
 0x909   :  { %v1825_v1 = vpop.trf.xlu0 }
 0x90a   :  { %8198 = vmatmul.mubr.msk.f32.gmra.mrb[50].mxu1 %vm1826_vm15, %v1825_v1 }
 0x90b   :  { %8225 = vmatprep.mubr.msk.f32.mxu1 %vm1826_vm15, %v1824_v52 }
 0x932   :  { %v10463_v42 = vpop.f32.mrb[32].mxu1 }
 0x933   :  { %13906 = vst [vmem:[#allocation39_spill] sm:$0xff] %v10463_v42  ;;  %v10465_v47 = vpop.f32.mrb[33].mxu1 }
 0x934   :  { %13907 = vst [vmem:[#allocation40_spill] sm:$0xff] %v10465_v47  ;;  %v8748_v18 = vpack.c.bf16 %v10463_v42, %v10465_v47 }
 0x936   :  { %v10469_v7 = vpop.f32.mrb[34].mxu1  ;;  %8749 = vmatprep.subr.bf16.mxu0 %v8748_v18  ;;  %9054 = vmatprep.subr.bf16.mxu1 %v8748_v18 }
 0x937   :  { %13908 = vst [vmem:[#allocation41_spill] sm:$0xff] %v10469_v7  ;;  %v10471_v52 = vpop.f32.mrb[35].mxu1  ;;  %8751 = vmatpush3.bf16.msra.mxu0 %v8748_v18  ;;  %9055 = vmatpush3.bf16.msra.mxu1 %v8748_v18  ;;  %v13910_v18 = vmov 0.0|0.0  }
 0x938   :  { %13909 = vst [vmem:[#allocation42_spill] sm:$0xff] %v10471_v52  ;;  %v8756_v9 = vpack.c.bf16 %v10469_v7, %v10471_v52  ;;  %8753 = vmatprep.subr.bf16.mxu1 %v10368_v33 }
 0x93a   :  { %8205 = vmatmul.mubr.msk.f32.vlgmr.msra.gmra.mrb[40].mxu0 %vm1826_vm15, %v1811_v25  ;;  %8226 = vmatmul.mubr.msk.f32.vlgmr.msra.gmra.mrb[52].mxu1 %vm1826_vm15, %v1825_v1  ;;  %v2230_v25 = vpop.trf.xlu1 }
 0x93b   :  { %8755 = vmatpush3.bf16.msra.mxu1 %v10368_v33  ;;  %8207 = vmatprep.mubr.msk.f32.mxu0 %vm1826_vm15, %v1812_v29 }
 0x93c   :  { %8757 = vmatprep.subr.bf16.mxu0 %v8756_v9  ;;  %8232 = vmatprep.mubr.msk.f32.mxu1 %vm1826_vm15, %v2219_v34 }
 0x93d   :  { %8759 = vmatpush3.bf16.msra.mxu0 %v8756_v9 }
 0x93e   :  { %8208 = vmatmul.mubr.msk.f32.gmra.mrb[42].mxu0 %vm1826_vm15, %v1813_v19  ;;  %8233 = vmatmul.mubr.msk.f32.vlgmr.msra.gmra.mrb[54].mxu1 %vm1826_vm15, %v2220_v51  ;;  %v2231_v9 = vpop.trf.xlu1 }
 0x93f   :  { %8210 = vmatprep.mubr.msk.f32.mxu0 %vm1826_vm15, %v1814_v28  ;;  %8235 = vmatprep.mubr.msk.f32.mxu1 %vm1826_vm15, %v2221_v37  ;;  %v3700_v28 = vld [vmem:[%s13652_s5] sm:$0xff] }
 0x940   :  { %8770 = vmatprep.subr.bf16.mxu0 %v13910_v18 }
 0x942   :  { %8211 = vmatmul.mubr.msk.f32.gmra.mrb[44].mxu0 %vm1826_vm15, %v1815_v10  ;;  %8236 = vmatmul.mubr.msk.f32.gmra.mrb[56].mxu1 %vm1826_vm15, %v2222_v40  ;;  %v2232_v33 = vpop.trf.xlu1 }
 0x943   :  { %8213 = vmatprep.mubr.msk.f32.mxu0 %vm1826_vm15, %v1816_v36  ;;  %8238 = vmatprep.mubr.msk.f32.mxu1 %vm1826_vm15, %v2223_v63  ;;  %v3703_v36 = vld [vmem:[%s13652_s5 + $0x18] sm:$0x3f] }
 0x946   :  { %8214 = vmatmul.mubr.msk.f32.gmra.mrb[46].mxu0 %vm1826_vm15, %v1817_v26  ;;  %8239 = vmatmul.mubr.msk.f32.gmra.mrb[58].mxu1 %vm1826_vm15, %v2224_v56  ;;  %v2233_v29 = vpop.trf.xlu1 }
 0x947   :  { %8216 = vmatprep.mubr.msk.f32.mxu0 %vm1826_vm15, %v1818_v41  ;;  %8241 = vmatprep.mubr.msk.f32.mxu1 %vm1826_vm15, %v2225_v17  ;;  %v13911_v41 = vmov 0 }
 0x948   :  { %v13912_v41 = vsel %vm10536_vm3, 4294967295, %v13911_v41 }
 0x949   :  { %13913 = vst [vmem:[#allocation43_spill] sm:$0xff] %v13912_v41 }
 0x94a   :  { %8217 = vmatmul.mubr.msk.f32.gmra.mrb[48].mxu0 %vm1826_vm15, %v1819_v50  ;;  %8242 = vmatmul.mubr.msk.f32.gmra.mrb[60].mxu1 %vm1826_vm15, %v2226_v38  ;;  %v2234_v19 = vpop.trf.xlu1 }
 0x94b   :  { %8219 = vmatprep.mubr.msk.f32.mxu0 %vm1826_vm15, %v1820_v48  ;;  %8244 = vmatprep.mubr.msk.f32.mxu1 %vm1826_vm15, %v2227_v55 }
 0x94e   :  { %8220 = vmatmul.mubr.msk.f32.gmra.mrb[50].mxu0 %vm1826_vm15, %v1821_v15  ;;  %8245 = vmatmul.mubr.msk.f32.gmra.mrb[62].mxu1 %vm1826_vm15, %v2228_v24 }
 0x94f   :  { %8222 = vmatprep.mubr.msk.f32.mxu0 %vm1826_vm15, %v1822_v35  ;;  %8247 = vmatprep.mubr.msk.f32.mxu1 %vm1826_vm15, %v2229_v0 }
 0x952   :  { %8223 = vmatmul.mubr.msk.f32.gmra.mrb[52].mxu0 %vm1826_vm15, %v1823_v46  ;;  %8248 = vmatmul.mubr.msk.f32.gmra.mrb[64].mxu1 %vm1826_vm15, %v2230_v25 }
 0x953   :  { %8260 = vmatprep.mubr.msk.f32.mxu0 %vm1826_vm15, %v2219_v34  ;;  %8250 = vmatprep.mubr.msk.f32.mxu1 %vm1826_vm15, %v2231_v9 }
 0x956   :  { %8261 = vmatmul.mubr.msk.f32.vlgmr.msra.gmra.mrb[54].mxu0 %vm1826_vm15, %v2220_v51  ;;  %8251 = vmatmul.mubr.msk.f32.gmra.mrb[66].mxu1 %vm1826_vm15, %v2232_v33 }
 0x957   :  { %8263 = vmatprep.mubr.msk.f32.mxu0 %vm1826_vm15, %v2221_v37  ;;  %8253 = vmatprep.mubr.msk.f32.mxu1 %vm1826_vm15, %v2233_v29 }
 0x95a   :  { %8264 = vmatmul.mubr.msk.f32.gmra.mrb[56].mxu0 %vm1826_vm15, %v2222_v40  ;;  %8254 = vmatmul.mubr.msk.f32.gmra.mrb[68].mxu1 %vm1826_vm15, %v2234_v19 }
 0x95b   :  { %8266 = vmatprep.mubr.msk.f32.mxu0 %vm1826_vm15, %v2223_v63 }
 0x95e   :  { %8267 = vmatmul.mubr.msk.f32.gmra.mrb[58].mxu0 %vm1826_vm15, %v2224_v56 }
 0x95f   :  { %8269 = vmatprep.mubr.msk.f32.mxu0 %vm1826_vm15, %v2225_v17 }
 0x962   :  { %8270 = vmatmul.mubr.msk.f32.gmra.mrb[60].mxu0 %vm1826_vm15, %v2226_v38 }
 0x963   :  { %8272 = vmatprep.mubr.msk.f32.mxu0 %vm1826_vm15, %v2227_v55 }
 0x966   :  { %8273 = vmatmul.mubr.msk.f32.gmra.mrb[62].mxu0 %vm1826_vm15, %v2228_v24  ;;  %v3701_v24 = vld [vmem:[%s13652_s5 + $0x8] sm:$0xff] }
 0x967   :  { %8275 = vmatprep.mubr.msk.f32.mxu0 %vm1826_vm15, %v2229_v0  ;;  %v8760_v10 = vpack.c.bf16 %v3701_v24, %v3700_v28  ;;  %v3702_v0 = vld [vmem:[%s13652_s5 + $0x10] sm:$0xff] }
 0x968   :  { %v8764_v26 = vpack.c.bf16 %v3703_v36, %v3702_v0  ;;  %v2614_v36 = vadd.s32 56, %v9327_v5 }
 0x969   :  { %8761 = vmatprep.subr.bf16.mxu1 %v8760_v10 }
 0x96a   :  { %8276 = vmatmul.mubr.msk.f32.gmra.mrb[64].mxu0 %vm1826_vm15, %v2230_v25  ;;  %8763 = vmatpush3.bf16.msra.mxu1 %v8760_v10  ;;  %vm2650_vm7 = vcmp.eq.s32.totalorder %v2614_v36, %v9329_v6 }
 0x96b   :  { %8278 = vmatprep.mubr.msk.f32.mxu0 %vm1826_vm15, %v2231_v9  ;;  %8766 = vmatprep.subr.msk.bf16.mxu1 %vm10536_vm3, %v8764_v26  ;;  %v2612_v9 = vadd.s32 40, %v9327_v5 }
 0x96d   :  { %vm2646_vm5 = vcmp.eq.s32.totalorder %v2612_v9, %v9329_v6 }
 0x96e   :  { %8279 = vmatmul.mubr.msk.f32.gmra.mrb[66].mxu0 %vm1826_vm15, %v2232_v33  ;;  %8769 = vmatpush3.bf16.msk.msra.mxu1 %vm10536_vm3, %v8764_v26 }
 0x96f   :  { %8281 = vmatprep.mubr.msk.f32.mxu0 %vm1826_vm15, %v2233_v29  ;;  %v2611_v29 = vadd.s32 32, %v9327_v5 }
 0x971   :  { %vm2644_vm6 = vcmp.eq.s32.totalorder %v2611_v29, %v9329_v6 }
 0x972   :  { %8282 = vmatmul.mubr.msk.f32.gmra.mrb[68].mxu0 %vm1826_vm15, %v2234_v19 }
 0x9a5   :  { %v8178_v50 = vpop.f32.mrb[36].mxu1 }
 0x9a6   :  { %v1941_v48 = vpop.f32.mrb[37].mxu1 }
 0x9a7   :  { %8292 = vmatprep.mubr.msk.f32.mxu1 %vm3707_vm4, %v1941_v48 }
 0x9a8   :  { %8293 = vmatmul.mubr.msk.f32.vlgmr.msra.gmra.mrb[70].mxu1 %vm3707_vm4, %v8178_v50  ;;  %v2613_v50 = vadd.s32 48, %v9327_v5 }
 0x9aa   :  { %vm2648_vm8 = vcmp.eq.s32.totalorder %v2613_v50, %v9329_v6  ;;  %v2617_v50 = vadd.s32 80, %v9327_v5 }
 0x9ac   :  { %vm2656_vm12 = vcmp.eq.s32.totalorder %v2617_v50, %v9329_v6  ;;  %v2621_v50 = vadd.s32 112, %v9327_v5 }
 0x9ad   :  { %v8181_v15 = vpop.f32.mrb[38].mxu1 }
 0x9ae   :  { %v1951_v35 = vpop.f32.mrb[39].mxu1  ;;  %vm2664_vm2 = vcmp.eq.s32.totalorder %v2621_v50, %v9329_v6 }
 0x9af   :  { %8295 = vmatprep.mubr.msk.f32.mxu1 %vm3707_vm4, %v1951_v35 }
 0x9b0   :  { %8296 = vmatmul.mubr.msk.f32.gmra.mrb[72].mxu1 %vm3707_vm4, %v8181_v15 }
 0x9b5   :  { %v8184_v34 = vpop.f32.mrb[40].mxu1 }
 0x9b6   :  { %v1961_v46 = vpop.f32.mrb[41].mxu1 }
 0x9b7   :  { %8298 = vmatprep.mubr.msk.f32.mxu1 %vm3707_vm4, %v1961_v46 }
 0x9b8   :  { %8299 = vmatmul.mubr.msk.f32.gmra.mrb[74].mxu1 %vm3707_vm4, %v8184_v34 }
 0x9bd   :  { %v8187_v51 = vpop.f32.mrb[42].mxu1 }
 0x9be   :  { %v1971_v1 = vpop.f32.mrb[43].mxu1 }
 0x9bf   :  { %8301 = vmatprep.mubr.msk.f32.mxu1 %vm3707_vm4, %v1971_v1 }
 0x9c0   :  { %8302 = vmatmul.mubr.msk.f32.gmra.mrb[76].mxu1 %vm3707_vm4, %v8187_v51  ;;  %v13914_v51 = vmov 0.0  }
 0x9c1   :  { %v10587_v1 = vsel %vm2646_vm5, 1.0, %v13914_v51  ;;  %v10607_v29 = vsel %vm2650_vm7, 1.0, %v13914_v51  ;;  %v10655_v13 = vsel %vm2656_vm12, 1.0, %v13914_v51  ;;  %v10694_v50 = vsel %vm2664_vm2, 1.0, %v13914_v51 }
 0x9c5   :  { %v8190_v37 = vpop.f32.mrb[44].mxu1 }
 0x9c6   :  { %v1981_v40 = vpop.f32.mrb[45].mxu1 }
 0x9c7   :  { %8304 = vmatprep.mubr.msk.f32.mxu1 %vm3707_vm4, %v1981_v40  ;;  %v2616_v40 = vadd.s32 72, %v9327_v5 }
 0x9c8   :  { %8305 = vmatmul.mubr.msk.f32.gmra.mrb[78].mxu1 %vm3707_vm4, %v8190_v37  ;;  %v10591_v37 = vsel %vm2644_vm6, 1.0, %v13914_v51 }
 0x9c9   :  { %vm2654_vm9 = vcmp.eq.s32.totalorder %v2616_v40, %v9329_v6 }
 0x9cd   :  { %v8193_v63 = vpop.f32.mrb[46].mxu1 }
 0x9ce   :  { %v1991_v56 = vpop.f32.mrb[47].mxu1 }
 0x9cf   :  { %8307 = vmatprep.mubr.msk.f32.mxu1 %vm3707_vm4, %v1991_v56  ;;  %v2615_v56 = vadd.s32 64, %v9327_v5 }
 0x9d0   :  { %8308 = vmatmul.mubr.msk.f32.gmra.mrb[80].mxu1 %vm3707_vm4, %v8193_v63 }
 0x9d1   :  { %vm2652_vm10 = vcmp.eq.s32.totalorder %v2615_v56, %v9329_v6 }
 0x9d2   :  { %v10631_v56 = vsel %vm2652_vm10, 1.0, %v13914_v51 }
 0x9d5   :  { %v8196_v17 = vpop.f32.mrb[48].mxu1 }
 0x9d6   :  { %v2001_v38 = vpop.f32.mrb[49].mxu1 }
 0x9d7   :  { %8310 = vmatprep.mubr.msk.f32.mxu1 %vm3707_vm4, %v2001_v38 }
 0x9d8   :  { %8311 = vmatmul.mubr.msk.f32.gmra.mrb[82].mxu1 %vm3707_vm4, %v8196_v17 }
 0x9dd   :  { %v8199_v55 = vpop.f32.mrb[50].mxu1 }
 0x9de   :  { %v2011_v25 = vpop.f32.mrb[51].mxu1 }
 0x9df   :  { %8313 = vmatprep.mubr.msk.f32.mxu1 %vm3707_vm4, %v2011_v25 }
 0x9e0   :  { %8314 = vmatmul.mubr.msk.f32.gmra.mrb[84].mxu1 %vm3707_vm4, %v8199_v55 }
 0xa0d   :  { %v10561_v33 = vpop.f32.mrb[40].mxu0  ;;  %v10564_v19 = vpop.f32.mrb[52].mxu1 }
 0xa0e   :  { %v10566_v28 = vpop.f32.mrb[41].mxu0  ;;  %v2822_v24 = vmul.f32 %v10561_v33, %v9393_v31  ;;  %v10570_v10 = vpop.f32.mrb[53].mxu1 }
 0xa0f   :  { %v2820_v0 = vmul.f32 %v9361_v20, %v10566_v28 }
 0xa10   :  { %2888 = vadd.xlane.f32.xlu1 %v2822_v24  ;;  %v10611_v24 = vsel %vm2648_vm8, 1.0, %v13914_v51 }
 0xa11   :  { %2885 = vadd.xlane.f32.xlu0 %v2820_v0  ;;  %v10576_v26 = vpop.f32.mrb[42].mxu0  ;;  %v8234_v48 = vpop.f32.mrb[54].mxu1  ;;  %v2618_v0 = vadd.s32 88, %v9327_v5 }
 0xa12   :  { %v10580_v15 = vpop.f32.mrb[43].mxu0  ;;  %v2826_v35 = vmul.f32 %v10576_v26, %v9396_v32  ;;  %v2349_v34 = vpop.f32.mrb[55].mxu1 }
 0xa13   :  { %v2824_v46 = vmul.f32 %v9390_v30, %v10580_v15  ;;  %8316 = vmatprep.mubr.msk.f32.mxu1 %vm3707_vm4, %v2349_v34  ;;  %vm2658_vm11 = vcmp.eq.s32.totalorder %v2618_v0, %v9329_v6  ;;  %v2622_v0 = vadd.s32 120, %v9327_v5 }
 0xa14   :  { %2894 = vadd.xlane.f32.xlu1 %v2826_v35  ;;  %8317 = vmatmul.mubr.msk.f32.gmra.mrb[86].mxu1 %vm3707_vm4, %v8234_v48 }
 0xa15   :  { %2891 = vadd.xlane.f32.xlu0 %v2824_v46  ;;  %v10596_v63 = vpop.f32.mrb[44].mxu0  ;;  %v8237_v17 = vpop.f32.mrb[56].mxu1  ;;  %vm2666_vm1 = vcmp.eq.s32.totalorder %v2622_v0, %v9329_v6 }
 0xa16   :  { %v10600_v38 = vpop.f32.mrb[45].mxu0  ;;  %v2830_v55 = vmul.f32 %v10596_v63, %v10587_v1  ;;  %v2359_v25 = vpop.f32.mrb[57].mxu1  ;;  %v10687_v45 = vsel %vm2666_vm1, 1.0, %v13914_v51 }
 0xa17   :  { %v2828_v9 = vmul.f32 %v10591_v37, %v10600_v38  ;;  %8319 = vmatprep.mubr.msk.f32.mxu1 %vm3707_vm4, %v2359_v25  ;;  %v2850_v59 = vmul.f32 %v10564_v19, %v10687_v45 }
 0xa18   :  { %2900 = vadd.xlane.f32.xlu1 %v2830_v55  ;;  %8320 = vmatmul.mubr.msk.f32.gmra.mrb[88].mxu1 %vm3707_vm4, %v8237_v17  ;;  %v10627_v55 = vsel %vm2654_vm9, 1.0, %v13914_v51  ;;  %v2620_v17 = vadd.s32 104, %v9327_v5 }
 0xa19   :  { %2897 = vadd.xlane.f32.xlu0 %v2828_v9  ;;  %v10616_v36 = vpop.f32.mrb[46].mxu0  ;;  %v8240_v48 = vpop.f32.mrb[58].mxu1  ;;  %v10640_v9 = vadd.s32 96, %v9327_v5 }
 0xa1a   :  { %v10620_v35 = vpop.f32.mrb[47].mxu0  ;;  %v2834_v34 = vmul.f32 %v10616_v36, %v10607_v29  ;;  %v2369_v46 = vpop.f32.mrb[59].mxu1  ;;  %vm2662_vm13 = vcmp.eq.s32.totalorder %v2620_v17, %v9329_v6  ;;  %v10670_v17 = vadd.s32 128, %v9329_v6 }
 0xa1b   :  { %v2832_v40 = vmul.f32 %v10611_v24, %v10620_v35  ;;  %8322 = vmatprep.mubr.msk.f32.mxu1 %vm3707_vm4, %v2369_v46  ;;  %13915 = vst [vmem:[#allocation44_spill] sm:$0xff] %v10640_v9  ;;  %vm2660_vm15 = vcmp.eq.s32.totalorder %v10640_v9, %v9329_v6  ;;  %v10675_v3 = vsel %vm2662_vm13, 1.0, %v13914_v51 }
 0xa1c   :  { %2906 = vadd.xlane.f32.xlu1 %v2834_v34  ;;  %8323 = vmatmul.mubr.msk.f32.gmra.mrb[90].mxu1 %vm3707_vm4, %v8240_v48  ;;  %v10681_v0 = vsel %vm2660_vm15, 1.0, %v13914_v51  ;;  %vm2669_vm6 = vcmp.eq.s32.totalorder %v2623_v23, %v10670_v17 }
 0xa1d   :  { %2903 = vadd.xlane.f32.xlu0 %v2832_v40  ;;  %v10636_v25 = vpop.f32.mrb[48].mxu0  ;;  %v8243_v2 = vpop.f32.mrb[60].mxu1  ;;  %v10650_v40 = vsel %vm2658_vm11, 1.0, %v13914_v51 }
 0xa1e   :  { %v10642_v46 = vpop.f32.mrb[49].mxu0  ;;  %v2838_v34 = vmul.f32 %v10636_v25, %v10627_v55  ;;  %v2379_v60 = vpop.f32.mrb[61].mxu1 }
 0xa1f   :  { %v2836_v48 = vmul.f32 %v10631_v56, %v10642_v46  ;;  %8325 = vmatprep.mubr.msk.f32.mxu1 %vm3707_vm4, %v2379_v60 }
 0xa20   :  { %2912 = vadd.xlane.f32.xlu1 %v2838_v34  ;;  %8326 = vmatmul.mubr.msk.f32.gmra.mrb[92].mxu1 %vm3707_vm4, %v8243_v2  ;;  %v2624_v34 = vadd.s32 136, %v9327_v5 }
 0xa21   :  { %2909 = vadd.xlane.f32.xlu0 %v2836_v48  ;;  %v10659_v21 = vpop.f32.mrb[50].mxu0  ;;  %v8246_v49 = vpop.f32.mrb[62].mxu1 }
 0xa22   :  { %v10663_v8 = vpop.f32.mrb[51].mxu0  ;;  %v2842_v60 = vmul.f32 %v10659_v21, %v10650_v40  ;;  %v2389_v2 = vpop.f32.mrb[63].mxu1  ;;  %vm2671_vm5 = vcmp.eq.s32.totalorder %v2624_v34, %v10670_v17  ;;  %v2848_v34 = vmul.f32 %v10694_v50, %v10570_v10 }
 0xa23   :  { %v2840_v48 = vmul.f32 %v10655_v13, %v10663_v8  ;;  %8328 = vmatprep.mubr.msk.f32.mxu1 %vm3707_vm4, %v2389_v2  ;;  %v10711_v9 = vsel %vm2671_vm5, 1.0, %v13914_v51 }
 0xa24   :  { %2918 = vadd.xlane.f32.xlu1 %v2842_v60  ;;  %8329 = vmatmul.mubr.msk.f32.gmra.mrb[94].mxu1 %vm3707_vm4, %v8246_v49  ;;  %v2626_v60 = vadd.s32 152, %v9327_v5 }
 0xa25   :  { %2915 = vadd.xlane.f32.xlu0 %v2840_v48  ;;  %v10684_v22 = vpop.f32.mrb[52].mxu0  ;;  %v8249_v58 = vpop.f32.mrb[64].mxu1  ;;  %v2625_v48 = vadd.s32 144, %v9327_v5 }
 0xa26   :  { %v10689_v14 = vpop.f32.mrb[53].mxu0  ;;  %v2846_v6 = vmul.f32 %v10684_v22, %v10675_v3  ;;  %v2399_v49 = vpop.f32.mrb[65].mxu1  ;;  %vm2675_vm7 = vcmp.eq.s32.totalorder %v2626_v60, %v10670_v17 }
 0xa27   :  { %v2844_v2 = vmul.f32 %v10681_v0, %v10689_v14  ;;  %8331 = vmatprep.mubr.msk.f32.mxu1 %vm3707_vm4, %v2399_v49  ;;  %v10716_v49 = vsel %vm2669_vm6, 1.0, %v13914_v51  ;;  %vm2673_vm8 = vcmp.eq.s32.totalorder %v2625_v48, %v10670_v17  ;;  %v10731_v57 = vsel %vm2675_vm7, 1.0, %v13914_v51 }
 0xa28   :  { %2924 = vadd.xlane.f32.xlu1 %v2846_v6  ;;  %8332 = vmatmul.mubr.msk.f32.gmra.mrb[96].mxu1 %vm3707_vm4, %v8249_v58  ;;  %v2628_v6 = vadd.s32 168, %v9327_v5 }
 0xa29   :  { %2921 = vadd.xlane.f32.xlu0 %v2844_v2  ;;  %v10708_v53 = vpop.f32.mrb[54].mxu0  ;;  %v8252_v23 = vpop.f32.mrb[66].mxu1  ;;  %v2627_v2 = vadd.s32 160, %v9327_v5 }
 0xa2a   :  { %v10713_v41 = vpop.f32.mrb[55].mxu0  ;;  %v2409_v58 = vpop.f32.mrb[67].mxu1  ;;  %v2855_v44 = vmul.f32 %v10708_v53, %v10711_v9  ;;  %vm2679_vm9 = vcmp.eq.s32.totalorder %v2628_v6, %v10670_v17 }
 0xa2b   :  { %8334 = vmatprep.mubr.msk.f32.mxu1 %vm3707_vm4, %v2409_v58  ;;  %v2853_v11 = vmul.f32 %v10716_v49, %v10713_v41  ;;  %v10736_v58 = vsel %vm2673_vm8, 1.0, %v13914_v51  ;;  %vm2677_vm10 = vcmp.eq.s32.totalorder %v2627_v2, %v10670_v17  ;;  %v10751_v7 = vsel %vm2679_vm9, 1.0, %v13914_v51 }
 0xa2c   :  { %2930 = vadd.xlane.f32.xlu1 %v2850_v59  ;;  %8335 = vmatmul.mubr.msk.f32.gmra.mrb[98].mxu1 %vm3707_vm4, %v8252_v23  ;;  %v2630_v59 = vadd.s32 184, %v9327_v5  ;;  %v10756_v39 = vsel %vm2677_vm10, 1.0, %v13914_v51 }
 0xa2d   :  { %2927 = vadd.xlane.f32.xlu0 %v2848_v34  ;;  %v10728_v60 = vpop.f32.mrb[56].mxu0  ;;  %v8255_v48 = vpop.f32.mrb[68].mxu1  ;;  %v2629_v34 = vadd.s32 176, %v9327_v5 }
 0xa2e   :  { %v10733_v52 = vpop.f32.mrb[57].mxu0  ;;  %v2419_v23 = vpop.f32.mrb[69].mxu1  ;;  %v2859_v62 = vmul.f32 %v10728_v60, %v10731_v57  ;;  %vm2683_vm11 = vcmp.eq.s32.totalorder %v2630_v59, %v10670_v17 }
 0xa2f   :  { %8337 = vmatprep.mubr.msk.f32.mxu1 %vm3707_vm4, %v2419_v23  ;;  %v2857_v27 = vmul.f32 %v10736_v58, %v10733_v52  ;;  %vm2681_vm12 = vcmp.eq.s32.totalorder %v2629_v34, %v10670_v17  ;;  %v10769_v16 = vsel %vm2683_vm11, 1.0, %v13914_v51 }
 0xa30   :  { %2936 = vadd.xlane.f32.xlu1 %v2855_v44  ;;  %8338 = vmatmul.mubr.msk.f32.gmra.mrb[100].mxu1 %vm3707_vm4, %v8255_v48  ;;  %v2632_v44 = vadd.s32 200, %v9327_v5  ;;  %v10774_v42 = vsel %vm2681_vm12, 1.0, %v13914_v51 }
 0xa31   :  { %2933 = vadd.xlane.f32.xlu0 %v2853_v11  ;;  %v10748_v6 = vpop.f32.mrb[58].mxu0  ;;  %v2631_v11 = vadd.s32 192, %v9327_v5  ;;  %13918 = vst [vmem:[#allocation47_spill] sm:$0xff] %v10774_v42 }
 0xa32   :  { %v10753_v2 = vpop.f32.mrb[59].mxu0  ;;  %v2863_v48 = vmul.f32 %v10748_v6, %v10751_v7  ;;  %vm2687_vm13 = vcmp.eq.s32.totalorder %v2632_v44, %v10670_v17 }
 0xa33   :  { %v2861_v23 = vmul.f32 %v10756_v39, %v10753_v2  ;;  %vm2685_vm15 = vcmp.eq.s32.totalorder %v2631_v11, %v10670_v17  ;;  %v10787_v54 = vsel %vm2687_vm13, 1.0, %v13914_v51  ;;  %v2636_v11 = vadd.s32 232, %v9327_v5 }
 0xa34   :  { %2942 = vadd.xlane.f32.xlu1 %v2859_v62  ;;  %v2634_v62 = vadd.s32 216, %v9327_v5  ;;  %13920 = vst [vmem:[#allocation49_spill] sm:$0xff] %v10787_v54  ;;  %v10792_v12 = vsel %vm2685_vm15, 1.0, %v13914_v51 }
 0xa35   :  { %2939 = vadd.xlane.f32.xlu0 %v2857_v27  ;;  %v10766_v47 = vpop.f32.mrb[60].mxu0  ;;  %v2633_v27 = vadd.s32 208, %v9327_v5  ;;  %13922 = vst [vmem:[#allocation51_spill] sm:$0xff] %v10792_v12  ;;  %vm2695_vm5 = vcmp.eq.s32.totalorder %v2636_v11, %v10670_v17 }
 0xa36   :  { %13916 = vst [vmem:[#allocation45_spill] sm:$0xff] %v10766_v47  ;;  %v10771_v59 = vpop.f32.mrb[61].mxu0  ;;  %v2867_v34 = vmul.f32 %v10766_v47, %v10769_v16  ;;  %vm2691_vm1 = vcmp.eq.s32.totalorder %v2634_v62, %v10670_v17 }
 0xa37   :  { %13917 = vst [vmem:[#allocation46_spill] sm:$0xff] %v10771_v59  ;;  %v2865_v4 = vmul.f32 %v10774_v42, %v10771_v59  ;;  %vm2689_vm2 = vcmp.eq.s32.totalorder %v2633_v27, %v10670_v17  ;;  %v10807_v47 = vsel %vm2691_vm1, 1.0, %v13914_v51 }
 0xa38   :  { %2948 = vadd.xlane.f32.xlu1 %v2863_v48  ;;  %v10798_v48 = vadd.s32 224, %v9327_v5  ;;  %v10812_v27 = vsel %vm2689_vm2, 1.0, %v13914_v51 }
 0xa39   :  { %2945 = vadd.xlane.f32.xlu0 %v2861_v23  ;;  %v10784_v43 = vpop.f32.mrb[62].mxu0 }
 0xa3a   :  { %13919 = vst [vmem:[#allocation48_spill] sm:$0xff] %v10784_v43  ;;  %v10789_v44 = vpop.f32.mrb[63].mxu0  ;;  %13923 = vst [vmem:[#allocation52_spill] sm:$0xff] %v10798_v48  ;;  %v2871_v23 = vmul.f32 %v10784_v43, %v10787_v54  ;;  %vm2693_vm6 = vcmp.eq.s32.totalorder %v10798_v48, %v10670_v17  ;;  %v10826_v54 = vsel %vm2695_vm5, 1.0, %v13914_v51 }
 0xa3b   :  { %13921 = vst [vmem:[#allocation50_spill] sm:$0xff] %v10789_v44  ;;  %v2869_v61 = vmul.f32 %v10792_v12, %v10789_v44  ;;  %13927 = vst [vmem:[#allocation56_spill] sm:$0xff] %v10826_v54  ;;  %v10831_v42 = vsel %vm2693_vm6, 1.0, %v13914_v51 }
 0xa3c   :  { %2954 = vadd.xlane.f32.xlu1 %v2867_v34  ;;  %v2638_v34 = vadd.s32 248, %v9327_v5  ;;  %13929 = vst [vmem:[#allocation58_spill] sm:$0xff] %v10831_v42 }
 0xa3d   :  { %2951 = vadd.xlane.f32.xlu0 %v2865_v4  ;;  %v10804_v59 = vpop.f32.mrb[64].mxu0  ;;  %v2637_v4 = vadd.s32 240, %v9327_v5 }
 0xa3e   :  { %13924 = vst [vmem:[#allocation53_spill] sm:$0xff] %v10804_v59  ;;  %v10809_v62 = vpop.f32.mrb[65].mxu0  ;;  %v2875_v44 = vmul.f32 %v10804_v59, %v10807_v47  ;;  %vm2699_vm7 = vcmp.eq.s32.totalorder %v2638_v34, %v10670_v17 }
 0xa3f   :  { %13925 = vst [vmem:[#allocation54_spill] sm:$0xff] %v10809_v62  ;;  %v2873_v12 = vmul.f32 %v10812_v27, %v10809_v62  ;;  %vm2697_vm8 = vcmp.eq.s32.totalorder %v2637_v4, %v10670_v17  ;;  %v10842_v48 = vsel %vm2699_vm7, 1.0, %v13914_v51 }
 0xa40   :  { %2960 = vadd.xlane.f32.xlu1 %v2871_v23  ;;  %13931 = vst [vmem:[#allocation60_spill] sm:$0xff] %v10842_v48  ;;  %v10847_v59 = vsel %vm2697_vm8, 1.0, %v13914_v51 }
 0xa41   :  { %2957 = vadd.xlane.f32.xlu0 %v2869_v61  ;;  %v10823_v43 = vpop.f32.mrb[66].mxu0  ;;  %13933 = vst [vmem:[#allocation62_spill] sm:$0xff] %v10847_v59 }
 0xa42   :  { %13926 = vst [vmem:[#allocation55_spill] sm:$0xff] %v10823_v43  ;;  %v10828_v11 = vpop.f32.mrb[67].mxu0  ;;  %v2879_v5 = vmul.f32 %v10823_v43, %v10826_v54 }
 0xa43   :  { %13928 = vst [vmem:[#allocation57_spill] sm:$0xff] %v10828_v11  ;;  %v2877_v61 = vmul.f32 %v10831_v42, %v10828_v11 }
 0xa44   :  { %2966 = vadd.xlane.f32.xlu1 %v2875_v44 }
 0xa45   :  { %2963 = vadd.xlane.f32.xlu0 %v2873_v12  ;;  %v10839_v23 = vpop.f32.mrb[68].mxu0 }
 0xa46   :  { %13930 = vst [vmem:[#allocation59_spill] sm:$0xff] %v10839_v23  ;;  %v10844_v62 = vpop.f32.mrb[69].mxu0  ;;  %v2883_v17 = vmul.f32 %v10839_v23, %v10842_v48 }
 0xa47   :  { %13932 = vst [vmem:[#allocation61_spill] sm:$0xff] %v10844_v62  ;;  %v2881_v12 = vmul.f32 %v10847_v59, %v10844_v62 }
 0xa48   :  { %2972 = vadd.xlane.f32.xlu1 %v2879_v5 }
 0xa49   :  { %2969 = vadd.xlane.f32.xlu0 %v2877_v61 }
 0xa4c   :  { %2978 = vadd.xlane.f32.xlu1 %v2883_v17 }
 0xa4d   :  { %2975 = vadd.xlane.f32.xlu0 %v2881_v12 }
 0xa7b   :  { %v8294_v44 = vpop.f32.mrb[70].mxu1 }
 0xa7c   :  { %v3874_v34 = vpop.f32.mrb[71].mxu1 }
 0xa7d   :  { %v8771_v4 = vpack.c.bf16 %v8294_v44, %v3874_v34 }
 0xa7f   :  { %8772 = vmatpush1.bf16.msra.mxu0 %v8771_v4 }
 0xa80   :  { %8773 = vmatprep.subr.bf16.mxu0 %v13910_v18 }
 0xa83   :  { %v8297_v11 = vpop.f32.mrb[72].mxu1 }
 0xa84   :  { %v3884_v42 = vpop.f32.mrb[73].mxu1 }
 0xa85   :  { %v8774_v43 = vpack.c.bf16 %v8297_v11, %v3884_v42 }
 0xa87   :  { %8775 = vmatpush1.bf16.msra.mxu0 %v8774_v43 }
 0xa88   :  { %8776 = vmatprep.subr.bf16.mxu0 %v13910_v18 }
 0xa8b   :  { %v8300_v5 = vpop.f32.mrb[74].mxu1 }
 0xa8c   :  { %v3894_v23 = vpop.f32.mrb[75].mxu1 }
 0xa8d   :  { %v8777_v61 = vpack.c.bf16 %v8300_v5, %v3894_v23 }
 0xa8f   :  { %8778 = vmatpush1.bf16.msra.mxu0 %v8777_v61 }
 0xa90   :  { %8779 = vmatprep.subr.bf16.mxu0 %v13910_v18 }
 0xa93   :  { %v8303_v17 = vpop.f32.mrb[76].mxu1 }
 0xa94   :  { %v3904_v12 = vpop.f32.mrb[77].mxu1 }
 0xa95   :  { %v8780_v62 = vpack.c.bf16 %v8303_v17, %v3904_v12 }
 0xa97   :  { %8781 = vmatpush1.bf16.msra.mxu0 %v8780_v62 }
 0xa98   :  { %8782 = vmatprep.subr.bf16.mxu0 %v13910_v18 }
 0xa9b   :  { %v8306_v44 = vpop.f32.mrb[78].mxu1 }
 0xa9c   :  { %v3914_v34 = vpop.f32.mrb[79].mxu1 }
 0xa9d   :  { %v2889_v4 = vpop.xlane.xlu1 %2888  ;;  %v8783_v59 = vpack.c.bf16 %v8306_v44, %v3914_v34 }
 0xa9e   :  { %vm2981_vm9 = vcmp.eq.f32.partialorder %v2889_v4, 0.0  ;;  %v2886_v43 = vpop.xlane.xlu0 %2885 }
 0xa9f   :  { %v3013_v42 = vsel %vm2981_vm9, 1.0, %v13914_v51  ;;  %vm2980_vm10 = vcmp.eq.f32.partialorder %v2886_v43, 0.0  ;;  %8784 = vmatpush1.bf16.msra.mxu0 %v8783_v59 }
 0xaa0   :  { %v3046_v11 = vmul.f32 %v9393_v31, %v3013_v42  ;;  %v10859_v23 = vmul.f32 0.0, %v3013_v42  ;;  %v3012_v5 = vsel %vm2980_vm10, 1.0, %v13914_v51  ;;  %8785 = vmatprep.subr.bf16.mxu0 %v13910_v18 }
 0xaa1   :  { %v3044_v62 = vmul.f32 %v9361_v20, %v3012_v5  ;;  %v10864_v61 = vmul.f32 0.0, %v3012_v5  ;;  %v2895_v17 = vpop.xlane.xlu1 %2894 }
 0xaa2   :  { %13934 = vst [vmem:[#allocation63_spill] sm:$0xff] %v10859_v23  ;;  %v10867_v12 = vadd.f32 %v10561_v33, %v3046_v11  ;;  %vm2983_vm11 = vcmp.eq.f32.partialorder %v2895_v17, 0.0  ;;  %v2892_v44 = vpop.xlane.xlu0 %2891 }
 0xaa3   :  { %13935 = vst [vmem:[#allocation64_spill] sm:$0xff] %v10864_v61  ;;  %v10870_v59 = vadd.f32 %v3044_v62, %v10566_v28  ;;  %v3015_v31 = vsel %vm2983_vm11, 1.0, %v13914_v51  ;;  %vm2982_vm12 = vcmp.eq.f32.partialorder %v2892_v44, 0.0  ;;  %v8309_v34 = vpop.f32.mrb[80].mxu1  ;;  %v3305_v4 = vadd.f32 %v10859_v23, %v10864_v61 }
 0xaa4   :  { %v3050_v20 = vmul.f32 %v9396_v32, %v3015_v31  ;;  %v3014_v43 = vsel %vm2982_vm12, 1.0, %v13914_v51  ;;  %v3175_v33 = vadd.f32 %v10867_v12, %v10859_v23  ;;  %v3924_v42 = vpop.f32.mrb[81].mxu1  ;;  %v10879_v11 = vmul.f32 0.0, %v3015_v31 }
 0xaa5   :  { %v3048_v28 = vmul.f32 %v9390_v30, %v3014_v43  ;;  %v10882_v5 = vmul.f32 0.0, %v3014_v43  ;;  %v2901_v62 = vpop.xlane.xlu1 %2900  ;;  %v3172_v17 = vadd.f32 %v10870_v59, %v10864_v61  ;;  %v3268_v44 = vadd.f32 %v10867_v12, %v10870_v59 }
 0xaa6   :  { %v10889_v32 = vadd.f32 %v10576_v26, %v3050_v20  ;;  %vm2985_vm13 = vcmp.eq.f32.partialorder %v2901_v62, 0.0  ;;  %v2898_v48 = vpop.xlane.xlu0 %2897  ;;  %3176 = vadd.xlane.f32.xlu1 %v3175_v33  ;;  %v8786_v23 = vpack.c.bf16 %v8309_v34, %v3924_v42 }
 0xaa7   :  { %v10892_v31 = vadd.f32 %v3048_v28, %v10580_v15  ;;  %v3306_v30 = vadd.f32 %v3305_v4, %v10882_v5  ;;  %v3017_v43 = vsel %vm2985_vm13, 1.0, %v13914_v51  ;;  %vm2984_vm15 = vcmp.eq.f32.partialorder %v2898_v48, 0.0  ;;  %3173 = vadd.xlane.f32.xlu0 %v3172_v17 }
 0xaa8   :  { %v3054_v61 = vmul.f32 %v10587_v1, %v3017_v43  ;;  %v10897_v54 = vmul.f32 0.0, %v3017_v43  ;;  %v3016_v26 = vsel %vm2984_vm15, 1.0, %v13914_v51  ;;  %v3181_v20 = vadd.f32 %v10889_v32, %v10879_v11  ;;  %8787 = vmatpush1.bf16.msra.mxu0 %v8786_v23 }
 0xaa9   :  { %v3269_v34 = vadd.f32 %v3268_v44, %v10892_v31  ;;  %v3052_v15 = vmul.f32 %v10591_v37, %v3016_v26  ;;  %v2907_v33 = vpop.xlane.xlu1 %2906  ;;  %8788 = vmatprep.subr.bf16.mxu0 %v13910_v18  ;;  %v3178_v4 = vadd.f32 %v10892_v31, %v10882_v5  ;;  %v10911_v28 = vmul.f32 0.0, %v3016_v26 }
 0xaaa   :  { %v10906_v48 = vadd.f32 %v10596_v63, %v3054_v61  ;;  %vm2987_vm1 = vcmp.eq.f32.partialorder %v2907_v33, 0.0  ;;  %v2904_v1 = vpop.xlane.xlu0 %2903  ;;  %3182 = vadd.xlane.f32.xlu1 %v3181_v20  ;;  %v3307_v17 = vadd.f32 %v3306_v30, %v10879_v11 }
 0xaab   :  { %v3270_v42 = vadd.f32 %v3269_v34, %v10889_v32  ;;  %v10914_v23 = vadd.f32 %v3052_v15, %v10600_v38  ;;  %v3019_v37 = vsel %vm2987_vm1, 1.0, %v13914_v51  ;;  %v8312_v62 = vpop.f32.mrb[82].mxu1  ;;  %vm2986_vm2 = vcmp.eq.f32.partialorder %v2904_v1, 0.0  ;;  %3179 = vadd.xlane.f32.xlu0 %v3178_v4 }
 0xaac   :  { %v3058_v63 = vmul.f32 %v10607_v29, %v3019_v37  ;;  %v3187_v61 = vadd.f32 %v10906_v48, %v10897_v54  ;;  %v3934_v44 = vpop.f32.mrb[83].mxu1  ;;  %v10922_v26 = vmul.f32 0.0, %v3019_v37  ;;  %v3018_v38 = vsel %vm2986_vm2, 1.0, %v13914_v51 }
 0xaad   :  { %13936 = vst [vmem:[#allocation65_spill] sm:$0xff] %v10914_v23  ;;  %v3271_v43 = vadd.f32 %v3270_v42, %v10914_v23  ;;  %v2913_v20 = vpop.xlane.xlu1 %2912  ;;  %v3184_v34 = vadd.f32 %v10914_v23, %v10911_v28  ;;  %v3056_v29 = vmul.f32 %v10611_v24, %v3018_v38  ;;  %v8789_v4 = vpack.c.bf16 %v8312_v62, %v3934_v44 }
 0xaae   :  { %v10928_v30 = vadd.f32 %v10616_v36, %v3058_v63  ;;  %vm2989_vm5 = vcmp.eq.f32.partialorder %v2913_v20, 0.0  ;;  %v2910_v15 = vpop.xlane.xlu0 %2909  ;;  %3188 = vadd.xlane.f32.xlu1 %v3187_v61  ;;  %v3308_v42 = vadd.f32 %v3307_v17, %v10911_v28  ;;  %v10938_v36 = vmul.f32 0.0, %v3018_v38 }
 0xaaf   :  { %v3272_v33 = vadd.f32 %v3271_v43, %v10906_v48  ;;  %v3021_v1 = vsel %vm2989_vm5, 1.0, %v13914_v51  ;;  %vm2988_vm6 = vcmp.eq.f32.partialorder %v2910_v15, 0.0  ;;  %v10935_v37 = vadd.f32 %v3056_v29, %v10620_v35  ;;  %3185 = vadd.xlane.f32.xlu0 %v3184_v34  ;;  %8790 = vmatpush1.bf16.msra.mxu0 %v8789_v4 }
 0xab0   :  { %v3062_v23 = vmul.f32 %v10627_v55, %v3021_v1  ;;  %v3020_v24 = vsel %vm2988_vm6, 1.0, %v13914_v51  ;;  %v3193_v61 = vadd.f32 %v10928_v30, %v10922_v26  ;;  %v10944_v62 = vmul.f32 0.0, %v3021_v1  ;;  %8791 = vmatprep.subr.bf16.mxu0 %v13910_v18 }
 0xab1   :  { %v2919_v63 = vpop.xlane.xlu1 %2918  ;;  %v3273_v43 = vadd.f32 %v3272_v33, %v10935_v37  ;;  %v3060_v35 = vmul.f32 %v10631_v56, %v3020_v24  ;;  %v3190_v44 = vadd.f32 %v10935_v37, %v10938_v36  ;;  %v3309_v20 = vadd.f32 %v3308_v42, %v10897_v54 }
 0xab2   :  { %v10947_v17 = vadd.f32 %v10636_v25, %v3062_v23  ;;  %v2916_v55 = vpop.xlane.xlu0 %2915  ;;  %vm2991_vm7 = vcmp.eq.f32.partialorder %v2919_v63, 0.0  ;;  %3194 = vadd.xlane.f32.xlu1 %v3193_v61  ;;  %v10970_v61 = vmul.f32 0.0, %v3020_v24 }
 0xab3   :  { %vm2990_vm8 = vcmp.eq.f32.partialorder %v2916_v55, 0.0  ;;  %v10953_v38 = vpop.f32.mrb[84].mxu1  ;;  %v3023_v34 = vsel %vm2991_vm7, 1.0, %v13914_v51  ;;  %v10961_v56 = vadd.f32 %v3060_v35, %v10642_v46  ;;  %3191 = vadd.xlane.f32.xlu0 %v3190_v44  ;;  %v3274_v4 = vadd.f32 %v3273_v43, %v10928_v30 }
 0xab4   :  { %v3022_v25 = vsel %vm2990_vm8, 1.0, %v13914_v51  ;;  %v10958_v23 = vpop.f32.mrb[85].mxu1  ;;  %v3066_v29 = vmul.f32 %v10650_v40, %v3023_v34  ;;  %v10964_v15 = vmul.f32 0.0, %v3023_v34  ;;  %v3199_v63 = vadd.f32 %v10947_v17, %v10944_v62 }
 0xab5   :  { %v3064_v33 = vmul.f32 %v10655_v13, %v3022_v25  ;;  %v2925_v1 = vpop.xlane.xlu1 %2924  ;;  %v3310_v13 = vadd.f32 %v3309_v20, %v10938_v36  ;;  %v10981_v43 = vmul.f32 0.0, %v3022_v25  ;;  %v3196_v24 = vadd.f32 %v10961_v56, %v10970_v61 }
 0xab6   :  { %13937 = vst [vmem:[#allocation66_spill] sm:$0xff] %v10964_v15  ;;  %vm2993_vm9 = vcmp.eq.f32.partialorder %v2925_v1, 0.0  ;;  %v2922_v42 = vpop.xlane.xlu0 %2921  ;;  %v10973_v46 = vadd.f32 %v10659_v21, %v3066_v29  ;;  %3200 = vadd.xlane.f32.xlu1 %v3199_v63  ;;  %v3275_v34 = vadd.f32 %v3274_v4, %v10961_v56 }
 0xab7   :  { %v10976_v40 = vadd.f32 %v3064_v33, %v10663_v8  ;;  %v3025_v35 = vsel %vm2993_vm9, 1.0, %v13914_v51  ;;  %vm2992_vm10 = vcmp.eq.f32.partialorder %v2922_v42, 0.0  ;;  %13940 = vst [vmem:[#allocation69_spill] sm:$0xff] %v10981_v43  ;;  %3197 = vadd.xlane.f32.xlu0 %v3196_v24  ;;  %v3311_v1 = vadd.f32 %v3310_v13, %v10922_v26 }
 0xab8   :  { %13938 = vst [vmem:[#allocation67_spill] sm:$0xff] %v10973_v46  ;;  %v3070_v55 = vmul.f32 %v10675_v3, %v3025_v35  ;;  %v3024_v44 = vsel %vm2992_vm10, 1.0, %v13914_v51  ;;  %v3205_v8 = vadd.f32 %v10973_v46, %v10964_v15  ;;  %v10989_v29 = vmul.f32 0.0, %v3025_v35 }
 0xab9   :  { %13939 = vst [vmem:[#allocation68_spill] sm:$0xff] %v10976_v40  ;;  %v2931_v21 = vpop.xlane.xlu1 %2930  ;;  %v3068_v3 = vmul.f32 %v10681_v0, %v3024_v44  ;;  %v3202_v33 = vadd.f32 %v10976_v40, %v10981_v43  ;;  %v3276_v24 = vadd.f32 %v3275_v34, %v10947_v17 }
 0xaba   :  { %13941 = vst [vmem:[#allocation70_spill] sm:$0xff] %v10989_v29  ;;  %v10992_v20 = vadd.f32 %v10684_v22, %v3070_v55  ;;  %v2928_v25 = vpop.xlane.xlu0 %2927  ;;  %vm2995_vm11 = vcmp.eq.f32.partialorder %v2931_v21, 0.0  ;;  %3206 = vadd.xlane.f32.xlu1 %v3205_v8 }
 0xabb   :  { %vm2994_vm12 = vcmp.eq.f32.partialorder %v2928_v25, 0.0  ;;  %v3027_v42 = vsel %vm2995_vm11, 1.0, %v13914_v51  ;;  %v11001_v63 = vadd.f32 %v3068_v3, %v10689_v14  ;;  %v11010_v25 = vmul.f32 0.0, %v3024_v44  ;;  %3203 = vadd.xlane.f32.xlu0 %v3202_v33 }
 0xabc   :  { %13942 = vst [vmem:[#allocation71_spill] sm:$0xff] %v10992_v20  ;;  %v3026_v4 = vsel %vm2994_vm12, 1.0, %v13914_v51  ;;  %v3074_v22 = vmul.f32 %v10687_v45, %v3027_v42  ;;  %v11004_v0 = vmul.f32 0.0, %v3027_v42  ;;  %v3211_v13 = vadd.f32 %v10992_v20, %v10989_v29 }
 0xabd   :  { %13943 = vst [vmem:[#allocation72_spill] sm:$0xff] %v11001_v63  ;;  %v3072_v35 = vmul.f32 %v10694_v50, %v3026_v4  ;;  %v2937_v55 = vpop.xlane.xlu1 %2936  ;;  %13945 = vst [vmem:[#allocation74_spill] sm:$0xff] %v11010_v25  ;;  %v3312_v50 = vadd.f32 %v3311_v1, %v10970_v61  ;;  %v11021_v3 = vmul.f32 0.0, %v3026_v4  ;;  %v3277_v33 = vadd.f32 %v3276_v24, %v10976_v40  ;;  %v13974_v40 = vld [vmem:[#allocation57_spill] sm:$0xff] }
 0xabe   :  { %13944 = vst [vmem:[#allocation73_spill] sm:$0xff] %v11004_v0  ;;  %vm2997_vm13 = vcmp.eq.f32.partialorder %v2937_v55, 0.0  ;;  %v2934_v21 = vpop.xlane.xlu0 %2933  ;;  %v11013_v8 = vadd.f32 %v10564_v19, %v3074_v22  ;;  %3212 = vadd.xlane.f32.xlu1 %v3211_v13  ;;  %v3208_v19 = vadd.f32 %v11001_v63, %v11010_v25 }
 0xabf   :  { %v11016_v14 = vadd.f32 %v3072_v35, %v10570_v10  ;;  %v3029_v45 = vsel %vm2997_vm13, 1.0, %v13914_v51  ;;  %vm2996_vm15 = vcmp.eq.f32.partialorder %v2934_v21, 0.0  ;;  %13948 = vst [vmem:[#allocation77_spill] sm:$0xff] %v11021_v3  ;;  %v3313_v55 = vadd.f32 %v3312_v50, %v10944_v62 }
 0xac0   :  { %13946 = vst [vmem:[#allocation75_spill] sm:$0xff] %v11013_v8  ;;  %v3079_v34 = vmul.f32 %v10711_v9, %v3029_v45  ;;  %v3028_v44 = vsel %vm2996_vm15, 1.0, %v13914_v51  ;;  %v3217_v10 = vadd.f32 %v11013_v8, %v11004_v0  ;;  %v11029_v22 = vmul.f32 0.0, %v3029_v45  ;;  %3209 = vadd.xlane.f32.xlu0 %v3208_v19 }
 0xac1   :  { %13947 = vst [vmem:[#allocation76_spill] sm:$0xff] %v11016_v14  ;;  %v2943_v42 = vpop.xlane.xlu1 %2942  ;;  %v3077_v9 = vmul.f32 %v10716_v49, %v3028_v44  ;;  %v3214_v35 = vadd.f32 %v11016_v14, %v11021_v3  ;;  %v11038_v21 = vmul.f32 0.0, %v3028_v44 }
 0xac2   :  { %13949 = vst [vmem:[#allocation78_spill] sm:$0xff] %v11029_v22  ;;  %v11032_v1 = vadd.f32 %v10708_v53, %v3079_v34  ;;  %v2940_v4 = vpop.xlane.xlu0 %2939  ;;  %vm2999_vm1 = vcmp.eq.f32.partialorder %v2943_v42, 0.0  ;;  %3218 = vadd.xlane.f32.xlu1 %v3217_v10  ;;  %v3278_v42 = vadd.f32 %v3277_v33, %v10973_v46 }
 0xac3   :  { %vm2998_vm2 = vcmp.eq.f32.partialorder %v2940_v4, 0.0  ;;  %13951 = vst [vmem:[#allocation80_spill] sm:$0xff] %v11038_v21  ;;  %v3031_v24 = vsel %vm2999_vm1, 1.0, %v13914_v51  ;;  %v11043_v53 = vadd.f32 %v3077_v9, %v10713_v41 }
 0xac4   :  { %13950 = vst [vmem:[#allocation79_spill] sm:$0xff] %v11032_v1  ;;  %v3030_v13 = vsel %vm2998_vm2, 1.0, %v13914_v51  ;;  %v11045_v49 = vmul.f32 0.0, %v3031_v24  ;;  %v3083_v45 = vmul.f32 %v10731_v57, %v3031_v24  ;;  %v3223_v4 = vadd.f32 %v11032_v1, %v11029_v22  ;;  %3215 = vadd.xlane.f32.xlu0 %v3214_v35 }
 0xac5   :  { %13952 = vst [vmem:[#allocation81_spill] sm:$0xff] %v11043_v53  ;;  %v3081_v34 = vmul.f32 %v10736_v58, %v3030_v13  ;;  %v2949_v19 = vpop.xlane.xlu1 %2948  ;;  %v11050_v50 = vmul.f32 0.0, %v3030_v13  ;;  %v3314_v58 = vadd.f32 %v3313_v55, %v10981_v43  ;;  %v3220_v24 = vadd.f32 %v11043_v53, %v11038_v21 }
 0xac6   :  { %13953 = vst [vmem:[#allocation82_spill] sm:$0xff] %v11045_v49  ;;  %vm3001_vm5 = vcmp.eq.f32.partialorder %v2949_v19, 0.0  ;;  %v2946_v44 = vpop.xlane.xlu0 %2945  ;;  %v11055_v10 = vadd.f32 %v10728_v60, %v3083_v45  ;;  %3224 = vadd.xlane.f32.xlu1 %v3223_v4  ;;  %v8792_v19 = vpack.c.bf16 %v10953_v38, %v10958_v23  ;;  %v13961_v23 = vld [vmem:[#allocation47_spill] sm:$0xff] }
 0xac7   :  { %13954 = vst [vmem:[#allocation83_spill] sm:$0xff] %v11050_v50  ;;  %v11058_v41 = vadd.f32 %v3081_v34, %v10733_v52  ;;  %v3033_v57 = vsel %vm3001_vm5, 1.0, %v13914_v51  ;;  %vm3000_vm6 = vcmp.eq.f32.partialorder %v2946_v44, 0.0  ;;  %v3279_v52 = vadd.f32 %v3278_v42, %v11001_v63 }
 0xac8   :  { %13955 = vst [vmem:[#allocation84_spill] sm:$0xff] %v11055_v10  ;;  %v3087_v33 = vmul.f32 %v10751_v7, %v3033_v57  ;;  %v3032_v9 = vsel %vm3000_vm6, 1.0, %v13914_v51  ;;  %v3229_v60 = vadd.f32 %v11055_v10, %v11045_v49  ;;  %v11069_v35 = vmul.f32 0.0, %v3033_v57  ;;  %3221 = vadd.xlane.f32.xlu0 %v3220_v24  ;;  %8793 = vmatpush1.bf16.msra.mxu0 %v8792_v19 }
 0xac9   :  { %13956 = vst [vmem:[#allocation85_spill] sm:$0xff] %v11058_v41  ;;  %v2955_v13 = vpop.xlane.xlu1 %2954  ;;  %v3226_v7 = vadd.f32 %v11058_v41, %v11050_v50  ;;  %v3085_v34 = vmul.f32 %v10756_v39, %v3032_v9  ;;  %v3315_v44 = vadd.f32 %v3314_v58, %v10964_v15  ;;  %v3280_v38 = vadd.f32 %v3279_v52, %v10992_v20 }
 0xaca   :  { %13957 = vst [vmem:[#allocation86_spill] sm:$0xff] %v11069_v35  ;;  %v11072_v45 = vadd.f32 %v10748_v6, %v3087_v33  ;;  %v2952_v55 = vpop.xlane.xlu0 %2951  ;;  %vm3003_vm7 = vcmp.eq.f32.partialorder %v2955_v13, 0.0  ;;  %3230 = vadd.xlane.f32.xlu1 %v3229_v60  ;;  %v11082_v6 = vmul.f32 0.0, %v3032_v9  ;;  %8794 = vmatprep.subr.bf16.mxu0 %v13910_v18  ;;  %v13962_v9 = vld [vmem:[#allocation45_spill] sm:$0xff] }
 0xacb   :  { %vm3002_vm8 = vcmp.eq.f32.partialorder %v2952_v55, 0.0  ;;  %v3035_v42 = vsel %vm3003_vm7, 1.0, %v13914_v51  ;;  %v11085_v57 = vadd.f32 %v3085_v34, %v10753_v2  ;;  %v3316_v52 = vadd.f32 %v3315_v44, %v11010_v25  ;;  %v13964_v34 = vld [vmem:[#allocation46_spill] sm:$0xff]  ;;  %v13966_v44 = vld [vmem:[#allocation48_spill] sm:$0xff] }
 0xacc   :  { %13958 = vst [vmem:[#allocation87_spill] sm:$0xff] %v11072_v45  ;;  %v3034_v4 = vsel %vm3002_vm8, 1.0, %v13914_v51  ;;  %13959 = vst [vmem:[#allocation88_spill] sm:$0xff] %v11082_v6  ;;  %v11087_v33 = vmul.f32 0.0, %v3035_v42  ;;  %v3091_v39 = vmul.f32 %v10769_v16, %v3035_v42  ;;  %v3235_v60 = vadd.f32 %v11072_v45, %v11069_v35  ;;  %3227 = vadd.xlane.f32.xlu0 %v3226_v7  ;;  %v13965_v42 = vld [vmem:[#allocation49_spill] sm:$0xff] }
 0xacd   :  { %13960 = vst [vmem:[#allocation89_spill] sm:$0xff] %v11085_v57  ;;  %v2961_v24 = vpop.xlane.xlu1 %2960  ;;  %v3089_v58 = vmul.f32 %v13961_v23, %v3034_v4  ;;  %v11098_v55 = vmul.f32 0.0, %v3034_v4  ;;  %v3281_v4 = vadd.f32 %v3280_v38, %v11016_v14  ;;  %v3317_v63 = vadd.f32 %v3316_v52, %v10989_v29 }
 0xace   :  { %vm3005_vm9 = vcmp.eq.f32.partialorder %v2961_v24, 0.0  ;;  %v2958_v13 = vpop.xlane.xlu0 %2957  ;;  %v11096_v2 = vadd.f32 %v13962_v9, %v3091_v39  ;;  %3236 = vadd.xlane.f32.xlu1 %v3235_v60  ;;  %v3232_v39 = vadd.f32 %v11085_v57, %v11082_v6 }
 0xacf   :  { %13963 = vst [vmem:[#allocation47_spill] sm:$0xff] %v11098_v55  ;;  %v3037_v16 = vsel %vm3005_vm9, 1.0, %v13914_v51  ;;  %vm3004_vm10 = vcmp.eq.f32.partialorder %v2958_v13, 0.0  ;;  %v11103_v19 = vadd.f32 %v3089_v58, %v13964_v34  ;;  %v13967_v58 = vld [vmem:[#allocation51_spill] sm:$0xff] }
 0xad0   :  { %v3095_v24 = vmul.f32 %v13965_v42, %v3037_v16  ;;  %v3036_v23 = vsel %vm3004_vm10, 1.0, %v13914_v51  ;;  %v3241_v7 = vadd.f32 %v11096_v2, %v11087_v33  ;;  %v11112_v13 = vmul.f32 0.0, %v3037_v16  ;;  %3233 = vadd.xlane.f32.xlu0 %v3232_v39 }
 0xad1   :  { %v2967_v9 = vpop.xlane.xlu1 %2966  ;;  %v3093_v34 = vmul.f32 %v13967_v58, %v3036_v23  ;;  %v3238_v60 = vadd.f32 %v11103_v19, %v11098_v55  ;;  %v11123_v16 = vmul.f32 0.0, %v3036_v23 }
 0xad2   :  { %v11115_v20 = vadd.f32 %v13966_v44, %v3095_v24  ;;  %v2964_v42 = vpop.xlane.xlu0 %2963  ;;  %vm3007_vm11 = vcmp.eq.f32.partialorder %v2967_v9, 0.0  ;;  %3242 = vadd.xlane.f32.xlu1 %v3241_v7  ;;  %v13968_v24 = vld [vmem:[#allocation50_spill] sm:$0xff]  ;;  %v13969_v7 = vld [vmem:[#allocation53_spill] sm:$0xff] }
 0xad3   :  { %vm3006_vm12 = vcmp.eq.f32.partialorder %v2964_v42, 0.0  ;;  %v3039_v25 = vsel %vm3007_vm11, 1.0, %v13914_v51  ;;  %v11126_v44 = vadd.f32 %v3093_v34, %v13968_v24  ;;  %v3282_v42 = vadd.f32 %v3281_v4, %v11013_v8 }
 0xad4   :  { %v3038_v38 = vsel %vm3006_vm12, 1.0, %v13914_v51  ;;  %v11128_v58 = vmul.f32 0.0, %v3039_v25  ;;  %v3099_v39 = vmul.f32 %v10807_v47, %v3039_v25  ;;  %v3247_v29 = vadd.f32 %v11115_v20, %v11112_v13  ;;  %3239 = vadd.xlane.f32.xlu0 %v3238_v60  ;;  %v13970_v25 = vld [vmem:[#allocation54_spill] sm:$0xff] }
 0xad5   :  { %v2973_v9 = vpop.xlane.xlu1 %2972  ;;  %v3097_v14 = vmul.f32 %v10812_v27, %v3038_v38  ;;  %v11138_v46 = vmul.f32 0.0, %v3038_v38  ;;  %v3318_v47 = vadd.f32 %v3317_v63, %v11021_v3  ;;  %v13971_v27 = vld [vmem:[#allocation56_spill] sm:$0xff]  ;;  %v3283_v38 = vadd.f32 %v3282_v42, %v11038_v21  ;;  %v13972_v63 = vld [vmem:[#allocation55_spill] sm:$0xff] }
 0xad6   :  { %vm3009_vm13 = vcmp.eq.f32.partialorder %v2973_v9, 0.0  ;;  %v2970_v52 = vpop.xlane.xlu0 %2969  ;;  %v11136_v23 = vadd.f32 %v13969_v7, %v3099_v39  ;;  %3248 = vadd.xlane.f32.xlu1 %v3247_v29  ;;  %v3244_v39 = vadd.f32 %v11126_v44, %v11123_v16 }
 0xad7   :  { %v3041_v34 = vsel %vm3009_vm13, 1.0, %v13914_v51  ;;  %vm3008_vm15 = vcmp.eq.f32.partialorder %v2970_v52, 0.0  ;;  %v11143_v4 = vadd.f32 %v3097_v14, %v13970_v25  ;;  %v13973_v14 = vld [vmem:[#allocation58_spill] sm:$0xff]  ;;  %v3319_v15 = vadd.f32 %v3318_v47, %v11004_v0 }
 0xad8   :  { %v3103_v24 = vmul.f32 %v13971_v27, %v3041_v34  ;;  %v3040_v9 = vsel %vm3008_vm15, 1.0, %v13914_v51  ;;  %v3253_v60 = vadd.f32 %v11136_v23, %v11128_v58  ;;  %v11152_v52 = vmul.f32 0.0, %v3041_v34  ;;  %3245 = vadd.xlane.f32.xlu0 %v3244_v39 }
 0xad9   :  { %v2979_v7 = vpop.xlane.xlu1 %2978  ;;  %v3101_v25 = vmul.f32 %v13973_v14, %v3040_v9  ;;  %v11158_v29 = vmul.f32 0.0, %v3040_v9  ;;  %v3250_v3 = vadd.f32 %v11143_v4, %v11138_v46  ;;  %v13975_v9 = vld [vmem:[#allocation60_spill] sm:$0xff]  ;;  %v3320_v39 = vadd.f32 %v3319_v15, %v11043_v53 }
 0xada   :  { %v11155_v8 = vadd.f32 %v13972_v63, %v3103_v24  ;;  %v2976_v27 = vpop.xlane.xlu0 %2975  ;;  %vm3011_vm1 = vcmp.eq.f32.partialorder %v2979_v7, 0.0  ;;  %3254 = vadd.xlane.f32.xlu1 %v3253_v60  ;;  %v13976_v7 = vld [vmem:[#allocation62_spill] sm:$0xff]  ;;  %v3284_v47 = vadd.f32 %v3283_v38, %v11029_v22  ;;  %v13979_v15 = vld [vmem:[#allocation32_spill] sm:$0xff] }
 0xadb   :  { %vm3010_vm2 = vcmp.eq.f32.partialorder %v2976_v27, 0.0  ;;  %v11164_v42 = vadd.f32 %v3101_v25, %v13974_v40  ;;  %v3043_v34 = vsel %vm3011_vm1, 1.0, %v13914_v51  ;;  %v13977_v40 = vld [vmem:[#allocation59_spill] sm:$0xff]  ;;  %9101 = vlog2.f32 %v13979_v15 }
 0xadc   :  { %v3042_v24 = vsel %vm3010_vm2, 1.0, %v13914_v51  ;;  %v11168_v63 = vmul.f32 0.0, %v3043_v34  ;;  %v3107_v14 = vmul.f32 %v13975_v9, %v3043_v34  ;;  %v3259_v21 = vadd.f32 %v11155_v8, %v11152_v52  ;;  %3251 = vadd.xlane.f32.xlu0 %v3250_v3  ;;  %v13978_v51 = vld [vmem:[#allocation61_spill] sm:$0xff] }
 0xadd   :  { %v3105_v27 = vmul.f32 %v13976_v7, %v3042_v24  ;;  %v11179_v0 = vmul.f32 0.0, %v3042_v24  ;;  %v3256_v60 = vadd.f32 %v11164_v42, %v11158_v29  ;;  %v3321_v38 = vadd.f32 %v3320_v39, %v11032_v1  ;;  %v13980_v24 = vld [vmem:[#allocation31_spill] sm:$0xff]  ;;  %v13981_v7 = vld [vmem:[#allocation34_spill] sm:$0xff] }
 0xade   :  { %v11177_v25 = vadd.f32 %v13977_v40, %v3107_v14  ;;  %3260 = vadd.xlane.f32.xlu1 %v3259_v21  ;;  %v3285_v14 = vadd.f32 %v3284_v47, %v11050_v50  ;;  %9103 = vlog2.f32 %v13980_v24  ;;  %v13982_v40 = vld [vmem:[#allocation33_spill] sm:$0xff]  ;;  %v9193_v24 = vld [vmem:[%s13647_s0 + $0x18] sm:$0xff] }
 0xadf   :  { %v11184_v34 = vadd.f32 %v3105_v27, %v13978_v51  ;;  %9105 = vlog2.f32 %v13981_v7  ;;  %v9191_v51 = vld [vmem:[%s13647_s0 + $0x8] sm:$0xff]  ;;  %v3322_v27 = vadd.f32 %v3321_v38, %v11058_v41  ;;  %v1791_v38 = vsel %vm69_vm0, %v9193_v24, 0.0  ;;  %v13985_v41 = vld [vmem:[#allocation35_spill] sm:$0xff] }
 0xae0   :  { %v3265_v9 = vadd.f32 %v11177_v25, %v11168_v63  ;;  %3257 = vadd.xlane.f32.xlu0 %v3256_v60  ;;  %v1785_v21 = vsel %vm69_vm0, %v9191_v51, 0.0  ;;  %v3286_v39 = vadd.f32 %v3285_v14, %v11045_v49  ;;  %9107 = vlog2.f32 %v13982_v40  ;;  %v9192_v60 = vld [vmem:[%s13647_s0] sm:$0xff]  ;;  %v9194_v40 = vld [vmem:[%s13647_s0 + $0x10] sm:$0xff] }
 0xae1   :  { %v3262_v3 = vadd.f32 %v11184_v34, %v11179_v0  ;;  %v1782_v15 = vsel %vm69_vm0, %v9192_v60, 0.0  ;;  %v3323_v14 = vadd.f32 %v3322_v27, %v11055_v10  ;;  %v1788_v60 = vsel %vm69_vm0, %v9194_v40, 0.0  ;;  %v13983_v27 = vld [vmem:[#allocation36_spill] sm:$0xff]  ;;  %v13984_v10 = vld [vmem:[#allocation39_spill] sm:$0xff] }
 0xae2   :  { %3266 = vadd.xlane.f32.xlu1 %v3265_v9  ;;  %v3287_v51 = vadd.f32 %v3286_v39, %v11082_v6  ;;  %v2174_v50 = vmul.f32 %v13984_v10, %v13983_v27 }
 0xae3   :  { %v3324_v39 = vadd.f32 %v3323_v14, %v11085_v57  ;;  %v13987_v14 = vld [vmem:[#allocation38_spill] sm:$0xff]  ;;  %v13988_v57 = vld [vmem:[#allocation41_spill] sm:$0xff] }
 0xae4   :  { %3263 = vadd.xlane.f32.xlu0 %v3262_v3  ;;  %v2582_v53 = vmul.f32 %v13988_v57, %v13987_v14  ;;  %v13992_v57 = vld [vmem:[#allocation27_spill] sm:$0xff] }
 0xae5   :  { %v9102_v3 = vpop.eup %9101 }
 0xae6   :  { %1786 = vadd.xlane.f32.xlu1 %v1785_v21 }
 0xae7   :  { %v8318_v47 = vpop.f32.mrb[86].mxu1 }
 0xae8   :  { %v3954_v9 = vpop.f32.mrb[87].mxu1  ;;  %1783 = vadd.xlane.f32.xlu0 %v1782_v15 }
 0xae9   :  { %v8795_v7 = vpack.c.bf16 %v8318_v47, %v3954_v9  ;;  %v9104_v47 = vpop.eup %9103  ;;  %v1651_v9 = vmul.f32 0.6931472, %v9102_v3  ;;  %v1661_v3 = vsub.f32 0.0, %v13983_v27 }
 0xaea   :  { %1792 = vadd.xlane.f32.xlu1 %v1791_v38  ;;  %v9106_v15 = vpop.eup %9105  ;;  %v3288_v38 = vadd.f32 %v3287_v51, %v11069_v35  ;;  %v1649_v40 = vmul.f32 0.6931472, %v9104_v47  ;;  %v3325_v51 = vadd.f32 %v3324_v39, %v11072_v45  ;;  %v13994_v45 = vld [vmem:[#allocation29_spill] sm:$0xff] }
 0xaeb   :  { %8796 = vmatpush1.bf16.msra.mxu0 %v8795_v7  ;;  %v8321_v21 = vpop.f32.mrb[88].mxu1  ;;  %v9108_v10 = vpop.eup %9107  ;;  %v1655_v1 = vmul.f32 0.6931472, %v9106_v15  ;;  %v13990_v15 = vld [vmem:[#allocation37_spill] sm:$0xff] }
 0xaec   :  { %v3964_v49 = vpop.f32.mrb[89].mxu1  ;;  %8797 = vmatprep.subr.bf16.mxu0 %v13910_v18  ;;  %1789 = vadd.xlane.f32.xlu0 %v1788_v60  ;;  %v13989_v60 = vld [vmem:[#allocation28_spill] sm:$0xff]  ;;  %v1656_v43 = vsub.f32 %v13992_v57, %v1649_v40 }
 0xaed   :  { %v8798_v24 = vpack.c.bf16 %v8321_v21, %v3964_v49  ;;  %v13986_v49 = vld [vmem:[#allocation40_spill] sm:$0xff] }
 0xaee   :  { %2177 = vadd.xlane.f32.xlu1 %v2174_v50  ;;  %v2173_v21 = vmul.f32 %v13986_v49, %v13985_v41  ;;  %v3289_v50 = vadd.f32 %v3288_v38, %v11098_v55  ;;  %v1660_v49 = vsub.f32 0.0, %v13985_v41  ;;  %v13993_v38 = vld [vmem:[#allocation30_spill] sm:$0xff] }
 0xaef   :  { %8799 = vmatpush1.bf16.msra.mxu0 %v8798_v24  ;;  %v8324_v7 = vpop.f32.mrb[90].mxu1  ;;  %v1657_v24 = vsub.f32 %v13989_v60, %v1651_v9  ;;  %v3326_v9 = vadd.f32 %v3325_v51, %v11103_v19 }
 0xaf0   :  { %v3974_v6 = vpop.f32.mrb[91].mxu1  ;;  %8800 = vmatprep.subr.bf16.mxu0 %v13910_v18  ;;  %2175 = vadd.xlane.f32.xlu0 %v2173_v21  ;;  %v1659_v21 = vsub.f32 %v13993_v38, %v1655_v1 }
 0xaf1   :  { %v8801_v22 = vpack.c.bf16 %v8324_v7, %v3974_v6  ;;  %v1653_v6 = vmul.f32 0.6931472, %v9108_v10  ;;  %v13991_v7 = vld [vmem:[#allocation42_spill] sm:$0xff]  ;;  %v1665_v60 = vmul.f32 %v1661_v3, %v1657_v24  ;;  %v3327_v3 = vadd.f32 %v3326_v9, %v11096_v2 }
 0xaf2   :  { %2585 = vadd.xlane.f32.xlu1 %v2582_v53  ;;  %v2581_v27 = vmul.f32 %v13991_v7, %v13990_v15  ;;  %v3290_v53 = vadd.f32 %v3289_v50, %v11087_v33  ;;  %v1664_v7 = vmul.f32 %v1660_v49, %v1656_v43 }
 0xaf3   :  { %8802 = vmatpush1.bf16.msra.mxu0 %v8801_v22  ;;  %v8327_v47 = vpop.f32.mrb[92].mxu1  ;;  %v1663_v22 = vsub.f32 0.0, %v13987_v14  ;;  %v1658_v40 = vsub.f32 %v13994_v45, %v1653_v6  ;;  %v3328_v43 = vadd.f32 %v3327_v3, %v11126_v44 }
 0xaf4   :  { %v3984_v35 = vpop.f32.mrb[93].mxu1  ;;  %8803 = vmatprep.subr.bf16.mxu0 %v13910_v18  ;;  %2583 = vadd.xlane.f32.xlu0 %v2581_v27  ;;  %v3291_v24 = vadd.f32 %v3290_v53, %v11123_v16 }
 0xaf5   :  { %v8804_v39 = vpack.c.bf16 %v8327_v47, %v3984_v35  ;;  %v1662_v35 = vsub.f32 0.0, %v13990_v15  ;;  %v1667_v1 = vmul.f32 %v1663_v22, %v1659_v21 }
 0xaf6   :  { %1670 = vadd.xlane.f32.xlu1 %v1665_v60  ;;  %v3292_v45 = vadd.f32 %v3291_v24, %v11112_v13 }
 0xaf7   :  { %8805 = vmatpush1.bf16.msra.mxu0 %v8804_v39  ;;  %v8330_v55 = vpop.f32.mrb[94].mxu1  ;;  %v1666_v47 = vmul.f32 %v1662_v35, %v1658_v40  ;;  %v3329_v39 = vadd.f32 %v3328_v43, %v11115_v20 }
 0xaf8   :  { %v3994_v10 = vpop.f32.mrb[95].mxu1  ;;  %8806 = vmatprep.subr.bf16.mxu0 %v13910_v18  ;;  %1668 = vadd.xlane.f32.xlu0 %v1664_v7  ;;  %v3293_v9 = vadd.f32 %v3292_v45, %v11138_v46 }
 0xaf9   :  { %v8807_v51 = vpack.c.bf16 %v8330_v55, %v3994_v10  ;;  %v3330_v22 = vadd.f32 %v3329_v39, %v11143_v4 }
 0xafa   :  { %1674 = vadd.xlane.f32.xlu1 %v1667_v1  ;;  %v3294_v53 = vadd.f32 %v3293_v9, %v11128_v58 }
 0xafb   :  { %8808 = vmatpush1.bf16.msra.mxu0 %v8807_v51  ;;  %v8333_v27 = vpop.f32.mrb[96].mxu1  ;;  %v3331_v10 = vadd.f32 %v3330_v22, %v11136_v23 }
 0xafc   :  { %v4004_v50 = vpop.f32.mrb[97].mxu1  ;;  %8809 = vmatprep.subr.bf16.mxu0 %v13910_v18  ;;  %1672 = vadd.xlane.f32.xlu0 %v1666_v47  ;;  %v3295_v7 = vadd.f32 %v3294_v53, %v11158_v29 }
 0xafd   :  { %v8810_v57 = vpack.c.bf16 %v8333_v27, %v4004_v50  ;;  %v3332_v40 = vadd.f32 %v3331_v10, %v11164_v42 }
 0xafe   :  { %v3296_v35 = vadd.f32 %v3295_v7, %v11152_v52 }
 0xaff   :  { %v8336_v55 = vpop.f32.mrb[98].mxu1  ;;  %8811 = vmatpush1.bf16.msra.mxu0 %v8810_v57  ;;  %v3333_v51 = vadd.f32 %v3332_v40, %v11155_v8 }
 0xb00   :  { %v4014_v49 = vpop.f32.mrb[99].mxu1  ;;  %8812 = vmatprep.subr.bf16.mxu0 %v13910_v18  ;;  %v3297_v3 = vadd.f32 %v3296_v35, %v11179_v0 }
 0xb01   :  { %v8813_v6 = vpack.c.bf16 %v8336_v55, %v4014_v49  ;;  %v3334_v1 = vadd.f32 %v3333_v51, %v11184_v34 }
 0xb02   :  { %v3298_v24 = vadd.f32 %v3297_v3, %v11168_v63 }
 0xb03   :  { %v8339_v60 = vpop.f32.mrb[100].mxu1  ;;  %8814 = vmatpush1.bf16.msra.mxu0 %v8813_v6  ;;  %v3335_v27 = vadd.f32 %v3334_v1, %v11177_v25 }
 0xb04   :  { %v4024_v38 = vpop.f32.mrb[101].mxu1  ;;  %8815 = vmatprep.subr.bf16.mxu0 %v13910_v18  ;;  %v3299_v50 = vrot.slane %v3298_v24, 4 }
 0xb05   :  { %v8816_v21 = vpack.c.bf16 %v8339_v60, %v4024_v38  ;;  %v3336_v47 = vrot.slane %v3335_v27, 4 }
 0xb06   :  { %v3300_v57 = vadd.f32 %v3299_v50, %v3298_v24 }
 0xb07   :  { %8817 = vmatpush1.bf16.msra.mxu0 %v8816_v21  ;;  %v3337_v43 = vadd.f32 %v3336_v47, %v3335_v27 }
 0xb08   :  { %v3301_v45 = vrot.slane %v3300_v57, 2 }
 0xb09   :  { %v3338_v55 = vrot.slane %v3337_v43, 2 }
 0xb0a   :  { %v3302_v49 = vadd.f32 %v3301_v45, %v3300_v57  ;;  %v13995_v57 = vld [vmem:[#allocation64_spill] sm:$0xff] }
 0xb0b   :  { %v3339_v6 = vadd.f32 %v3338_v55, %v3337_v43  ;;  %v13996_v55 = vld [vmem:[#allocation63_spill] sm:$0xff] }
 0xb0c   :  { %v3303_v39 = vrot.slane %v3302_v49, 1 }
 0xb0d   :  { %v3340_v9 = vrot.slane %v3339_v6, 1 }
 0xb0e   :  { %v3304_v60 = vadd.f32 %v3303_v39, %v3302_v49 }
 0xb0f   :  { %v3341_v38 = vadd.f32 %v3340_v9, %v3339_v6 }
 0xb10   :  { %9109 = vrsqrt.f32 %v3304_v60  ;;  %vm3438_vm7 = vcmp.gt.f32.partialorder %v3304_v60, 0.0 }
 0xb11   :  { %vm3439_vm8 = vcmp.gt.f32.partialorder %v3341_v38, 0.0 }
 0xb1a   :  { %v9110_v40 = vpop.eup %9109 }
 0xb1b   :  { %v11266_v45 = vsel %vm3438_vm7, %v9110_v40, 0.0 }
 0xb33   :  { %v3177_v21 = vpop.xlane.xlu1 %3176 }
 0xb34   :  { %9111 = vrsqrt.f32 %v3177_v21  ;;  %v3174_v22 = vpop.xlane.xlu0 %3173  ;;  %vm3343_vm5 = vcmp.gt.f32.partialorder %v3177_v21, 0.0 }
 0xb35   :  { %9113 = vrsqrt.f32 %v3174_v22  ;;  %vm3342_vm6 = vcmp.gt.f32.partialorder %v3174_v22, 0.0 }
 0xb36   :  { %9115 = vrsqrt.f32 %v3341_v38 }
 0xb37   :  { %v3183_v53 = vpop.xlane.xlu1 %3182 }
 0xb38   :  { %9117 = vrsqrt.f32 %v3183_v53  ;;  %v3180_v10 = vpop.xlane.xlu0 %3179  ;;  %vm3345_vm10 = vcmp.gt.f32.partialorder %v3183_v53, 0.0 }
 0xb39   :  { %9119 = vrsqrt.f32 %v3180_v10  ;;  %vm3344_vm9 = vcmp.gt.f32.partialorder %v3180_v10, 0.0 }
 0xb3b   :  { %v3189_v7 = vpop.xlane.xlu1 %3188 }
 0xb3c   :  { %v3186_v35 = vpop.xlane.xlu0 %3185  ;;  %vm3347_vm12 = vcmp.gt.f32.partialorder %v3189_v7, 0.0 }
 0xb3d   :  { %9121 = vrsqrt.f32 %v3186_v35  ;;  %vm3346_vm11 = vcmp.gt.f32.partialorder %v3186_v35, 0.0 }
 0xb3e   :  { %v9112_v51 = vpop.eup %9111  ;;  %9123 = vrsqrt.f32 %v3189_v7 }
 0xb3f   :  { %v9114_v3 = vpop.eup %9113  ;;  %v3407_v1 = vsel %vm3343_vm5, %v9112_v51, 0.0  ;;  %v11262_v50 = vpop.xlane.xlu1 %3194 }
 0xb40   :  { %v9116_v24 = vpop.eup %9115  ;;  %v3406_v27 = vsel %vm3342_vm6, %v9114_v3, 0.0  ;;  %v3447_v49 = vmul.f32 %v3407_v1, %v13996_v55  ;;  %v3192_v6 = vpop.xlane.xlu0 %3191  ;;  %vm3349_vm15 = vcmp.gt.f32.partialorder %v11262_v50, 0.0 }
 0xb41   :  { %v3444_v47 = vmul.f32 %v3406_v27, %v10870_v59  ;;  %v3445_v43 = vmul.f32 %v3406_v27, %v13995_v57  ;;  %v11269_v9 = vsel %vm3439_vm8, %v9116_v24, 0.0  ;;  %v3446_v59 = vmul.f32 %v3407_v1, %v10867_v12 }
 0xb42   :  { %v9118_v39 = vpop.eup %9117  ;;  %9125 = vrsqrt.f32 %v3192_v6  ;;  %v11283_v3 = vmul.f32 %v3447_v49, %v11269_v9  ;;  %vm3348_vm13 = vcmp.gt.f32.partialorder %v3192_v6, 0.0 }
 0xb43   :  { %v11272_v21 = vmul.f32 %v3444_v47, %v11266_v45  ;;  %v9120_v22 = vpop.eup %9119  ;;  %v11275_v60 = vmul.f32 %v3445_v43, %v11269_v9  ;;  %v11278_v40 = vpop.xlane.xlu1 %3200  ;;  %v3409_v24 = vsel %vm3345_vm10, %v9118_v39, 0.0  ;;  %v11291_v53 = vmul.f32 %v3446_v59, %v11266_v45 }
 0xb44   :  { %v3408_v38 = vsel %vm3344_vm9, %v9120_v22, 0.0  ;;  %v3198_v27 = vpop.xlane.xlu0 %3197  ;;  %9127 = vrsqrt.f32 %v11262_v50  ;;  %vm3351_vm2 = vcmp.gt.f32.partialorder %v11278_v40, 0.0 }
 0xb45   :  { %v3449_v51 = vmul.f32 %v3408_v38, %v10882_v5  ;;  %4101 = vmatprep.mubr.f32.mxu0 %v11275_v60  ;;  %v3448_v12 = vmul.f32 %v3408_v38, %v10892_v31  ;;  %13997 = vst [vmem:[#allocation45_spill] sm:$0xff] %v11291_v53  ;;  %v3451_v5 = vmul.f32 %v3409_v24, %v10879_v11  ;;  %9129 = vrsqrt.f32 %v3198_v27 }
 0xb46   :  { %4102 = vmatmul.mubr.f32.vlgmr.msra.gmra.mrb[70].mxu0 %v11272_v21  ;;  %v3450_v31 = vmul.f32 %v3409_v24, %v10889_v32  ;;  %v14001_v32 = vld [vmem:[#allocation65_spill] sm:$0xff]  ;;  %9131 = vrsqrt.f32 %v11278_v40  ;;  %vm3350_vm1 = vcmp.gt.f32.partialorder %v3198_v27, 0.0 }
 0xb47   :  { %v9122_v10 = vpop.eup %9121  ;;  %4106 = vmatprep.mubr.f32.mxu0 %v11283_v3  ;;  %v11288_v1 = vpop.xlane.xlu1 %3206  ;;  %v11296_v47 = vmul.f32 %v3449_v51, %v11269_v9  ;;  %v11306_v11 = vmul.f32 %v3448_v12, %v11266_v45  ;;  %v11310_v39 = vmul.f32 %v3451_v5, %v11269_v9 }
 0xb48   :  { %v3410_v57 = vsel %vm3346_vm11, %v9122_v10, 0.0  ;;  %v9124_v43 = vpop.eup %9123  ;;  %v11299_v55 = vpop.xlane.xlu0 %3203  ;;  %v11320_v7 = vmul.f32 %v3450_v31, %v11266_v45  ;;  %vm3353_vm6 = vcmp.gt.f32.partialorder %v11288_v1, 0.0 }
 0xb49   :  { %13998 = vst [vmem:[#allocation46_spill] sm:$0xff] %v11296_v47  ;;  %13999 = vst [vmem:[#allocation49_spill] sm:$0xff] %v11306_v11  ;;  %v3453_v35 = vmul.f32 %v3410_v57, %v10911_v28  ;;  %v3411_v22 = vsel %vm3347_vm12, %v9124_v43, 0.0  ;;  %v3452_v51 = vmul.f32 %v3410_v57, %v14001_v32  ;;  %9133 = vrsqrt.f32 %v11299_v55 }
 0xb4a   :  { %4107 = vmatmul.mubr.f32.gmra.mrb[72].mxu0 %v11291_v53  ;;  %14000 = vst [vmem:[#allocation48_spill] sm:$0xff] %v11310_v39  ;;  %14002 = vst [vmem:[#allocation51_spill] sm:$0xff] %v11320_v7  ;;  %v3455_v28 = vmul.f32 %v3411_v22, %v10897_v54  ;;  %v3454_v57 = vmul.f32 %v3411_v22, %v10906_v48  ;;  %9135 = vrsqrt.f32 %v11288_v1  ;;  %vm3352_vm5 = vcmp.gt.f32.partialorder %v11299_v55, 0.0  ;;  %v14013_v55 = vld [vmem:[#allocation69_spill] sm:$0xff] }
 0xb4b   :  { %4111 = vmatprep.mubr.f32.mxu0 %v11296_v47  ;;  %v11303_v49 = vpop.xlane.xlu1 %3212  ;;  %v11325_v10 = vmul.f32 %v3453_v35, %v11269_v9  ;;  %v11335_v54 = vmul.f32 %v3452_v51, %v11266_v45 }
 0xb4c   :  { %v9126_v59 = vpop.eup %9125  ;;  %v11341_v35 = vmul.f32 %v3455_v28, %v11269_v9  ;;  %v11351_v50 = vmul.f32 %v3454_v57, %v11266_v45  ;;  %vm3355_vm8 = vcmp.gt.f32.partialorder %v11303_v49, 0.0 }
 0xb4d   :  { %v11313_v38 = vpop.xlane.xlu0 %3209  ;;  %14003 = vst [vmem:[#allocation50_spill] sm:$0xff] %v11325_v10  ;;  %v3412_v12 = vsel %vm3348_vm13, %v9126_v59, 0.0  ;;  %14004 = vst [vmem:[#allocation53_spill] sm:$0xff] %v11335_v54 }
 0xb4e   :  { %4112 = vmatmul.mubr.f32.gmra.mrb[74].mxu0 %v11306_v11  ;;  %v9128_v5 = vpop.eup %9127  ;;  %v3457_v6 = vmul.f32 %v3412_v12, %v10938_v36  ;;  %14005 = vst [vmem:[#allocation54_spill] sm:$0xff] %v11341_v35  ;;  %v3456_v48 = vmul.f32 %v3412_v12, %v10935_v37  ;;  %14006 = vst [vmem:[#allocation56_spill] sm:$0xff] %v11351_v50  ;;  %9137 = vrsqrt.f32 %v11313_v38  ;;  %vm3354_vm7 = vcmp.gt.f32.partialorder %v11313_v38, 0.0  ;;  %v14021_v38 = vld [vmem:[#allocation74_spill] sm:$0xff] }
 0xb4f   :  { %4116 = vmatprep.mubr.f32.mxu0 %v11310_v39  ;;  %v11317_v24 = vpop.xlane.xlu1 %3218  ;;  %v3413_v59 = vsel %vm3349_vm15, %v9128_v5, 0.0  ;;  %v9130_v32 = vpop.eup %9129  ;;  %9139 = vrsqrt.f32 %v11303_v49 }
 0xb50   :  { %v3459_v36 = vmul.f32 %v3413_v59, %v10922_v26  ;;  %v11356_v51 = vmul.f32 %v3457_v6, %v11269_v9  ;;  %v3414_v28 = vsel %vm3350_vm1, %v9130_v32, 0.0  ;;  %v9132_v5 = vpop.eup %9131  ;;  %v3458_v37 = vmul.f32 %v3413_v59, %v10928_v30 }
 0xb51   :  { %v11328_v43 = vpop.xlane.xlu0 %3215  ;;  %v11366_v26 = vmul.f32 %v3456_v48, %v11266_v45  ;;  %v3461_v27 = vmul.f32 %v3414_v28, %v10970_v61  ;;  %v3415_v6 = vsel %vm3351_vm2, %v9132_v5, 0.0  ;;  %v3460_v30 = vmul.f32 %v3414_v28, %v10961_v56 }
 0xb52   :  { %4117 = vmatmul.mubr.f32.gmra.mrb[76].mxu0 %v11320_v7  ;;  %14007 = vst [vmem:[#allocation55_spill] sm:$0xff] %v11356_v51  ;;  %v11372_v57 = vmul.f32 %v3459_v36, %v11269_v9  ;;  %v11382_v40 = vmul.f32 %v3458_v37, %v11266_v45  ;;  %v3463_v61 = vmul.f32 %v3415_v6, %v10944_v62  ;;  %9141 = vrsqrt.f32 %v11328_v43  ;;  %v14029_v7 = vld [vmem:[#allocation77_spill] sm:$0xff] }
 0xb53   :  { %4121 = vmatprep.mubr.f32.mxu0 %v11325_v10  ;;  %v11332_v31 = vpop.xlane.xlu1 %3224  ;;  %14008 = vst [vmem:[#allocation58_spill] sm:$0xff] %v11366_v26  ;;  %v9134_v32 = vpop.eup %9133  ;;  %v11388_v48 = vmul.f32 %v3461_v27, %v11269_v9  ;;  %v3462_v56 = vmul.f32 %v3415_v6, %v10947_v17  ;;  %v11398_v62 = vmul.f32 %v3460_v30, %v11266_v45  ;;  %v14015_v17 = vld [vmem:[#allocation68_spill] sm:$0xff]  ;;  %9143 = vrsqrt.f32 %v11317_v24 }
 0xb54   :  { %14009 = vst [vmem:[#allocation57_spill] sm:$0xff] %v11372_v57  ;;  %14010 = vst [vmem:[#allocation60_spill] sm:$0xff] %v11382_v40  ;;  %v3416_v36 = vsel %vm3352_vm5, %v9134_v32, 0.0  ;;  %v9136_v5 = vpop.eup %9135  ;;  %v11404_v27 = vmul.f32 %v3463_v61, %v11269_v9  ;;  %vm3356_vm9 = vcmp.gt.f32.partialorder %v11328_v43, 0.0  ;;  %vm3357_vm10 = vcmp.gt.f32.partialorder %v11317_v24, 0.0  ;;  %v14032_v24 = vld [vmem:[#allocation73_spill] sm:$0xff] }
 0xb55   :  { %v11344_v10 = vpop.xlane.xlu0 %3221  ;;  %14011 = vst [vmem:[#allocation62_spill] sm:$0xff] %v11388_v48  ;;  %14012 = vst [vmem:[#allocation59_spill] sm:$0xff] %v11398_v62  ;;  %v3465_v37 = vmul.f32 %v3416_v36, %v14013_v55  ;;  %v3417_v32 = vsel %vm3353_vm6, %v9136_v5, 0.0  ;;  %v3464_v6 = vmul.f32 %v3416_v36, %v14015_v17  ;;  %v11415_v30 = vmul.f32 %v3462_v56, %v11266_v45  ;;  %v14017_v55 = vld [vmem:[#allocation66_spill] sm:$0xff]  ;;  %v14019_v36 = vld [vmem:[#allocation67_spill] sm:$0xff] }
 0xb56   :  { %4122 = vmatmul.mubr.f32.gmra.mrb[78].mxu0 %v11335_v54  ;;  %14014 = vst [vmem:[#allocation61_spill] sm:$0xff] %v11404_v27  ;;  %v3467_v61 = vmul.f32 %v3417_v32, %v14017_v55  ;;  %v3466_v17 = vmul.f32 %v3417_v32, %v14019_v36  ;;  %9145 = vrsqrt.f32 %v11344_v10  ;;  %v14023_v32 = vld [vmem:[#allocation72_spill] sm:$0xff]  ;;  %vm3358_vm11 = vcmp.gt.f32.partialorder %v11344_v10, 0.0 }
 0xb57   :  { %4126 = vmatprep.mubr.f32.mxu0 %v11341_v35  ;;  %v11348_v22 = vpop.xlane.xlu1 %3230  ;;  %14016 = vst [vmem:[#allocation32_spill] sm:$0xff] %v11415_v30  ;;  %v11420_v5 = vmul.f32 %v3465_v37, %v11269_v9  ;;  %v11430_v56 = vmul.f32 %v3464_v6, %v11266_v45  ;;  %9147 = vrsqrt.f32 %v11332_v31  ;;  %vm3359_vm12 = vcmp.gt.f32.partialorder %v11332_v31, 0.0 }
 0xb58   :  { %v11446_v49 = vmul.f32 %v3466_v17, %v11266_v45  ;;  %vm3361_vm15 = vcmp.gt.f32.partialorder %v11348_v22, 0.0 }
 0xb59   :  { %v11359_v35 = vpop.xlane.xlu0 %3227  ;;  %14018 = vst [vmem:[#allocation31_spill] sm:$0xff] %v11420_v5  ;;  %14020 = vst [vmem:[#allocation34_spill] sm:$0xff] %v11430_v56 }
 0xb5a   :  { %4127 = vmatmul.mubr.f32.gmra.mrb[80].mxu0 %v11351_v50  ;;  %14024 = vst [vmem:[#allocation39_spill] sm:$0xff] %v11446_v49  ;;  %9149 = vrsqrt.f32 %v11359_v35  ;;  %vm3360_vm13 = vcmp.gt.f32.partialorder %v11359_v35, 0.0 }
 0xb5b   :  { %4131 = vmatprep.mubr.f32.mxu0 %v11356_v51  ;;  %v11363_v12 = vpop.xlane.xlu1 %3236  ;;  %9151 = vrsqrt.f32 %v11348_v22 }
 0xb5c   :  { %vm3363_vm2 = vcmp.gt.f32.partialorder %v11363_v12, 0.0 }
 0xb5d   :  { %v11375_v51 = vpop.xlane.xlu0 %3233 }
 0xb5e   :  { %4132 = vmatmul.mubr.f32.gmra.mrb[82].mxu0 %v11366_v26  ;;  %9153 = vrsqrt.f32 %v11375_v51  ;;  %vm3362_vm1 = vcmp.gt.f32.partialorder %v11375_v51, 0.0  ;;  %v14052_v51 = vld [vmem:[#allocation82_spill] sm:$0xff] }
 0xb5f   :  { %4136 = vmatprep.mubr.f32.mxu0 %v11372_v57  ;;  %v11379_v59 = vpop.xlane.xlu1 %3242  ;;  %9155 = vrsqrt.f32 %v11363_v12  ;;  %v14058_v12 = vld [vmem:[#allocation87_spill] sm:$0xff] }
 0xb60   :  { %vm3365_vm6 = vcmp.gt.f32.partialorder %v11379_v59, 0.0 }
 0xb61   :  { %v11391_v57 = vpop.xlane.xlu0 %3239 }
 0xb62   :  { %4137 = vmatmul.mubr.f32.gmra.mrb[84].mxu0 %v11382_v40  ;;  %9157 = vrsqrt.f32 %v11391_v57  ;;  %vm3364_vm5 = vcmp.gt.f32.partialorder %v11391_v57, 0.0 }
 0xb63   :  { %4141 = vmatprep.mubr.f32.mxu0 %v11388_v48  ;;  %v11395_v28 = vpop.xlane.xlu1 %3248  ;;  %v9138_v48 = vpop.eup %9137  ;;  %9159 = vrsqrt.f32 %v11379_v59 }
 0xb65   :  { %v11407_v40 = vpop.xlane.xlu0 %3245 }
 0xb66   :  { %4142 = vmatmul.mubr.f32.gmra.mrb[86].mxu0 %v11398_v62  ;;  %v3418_v62 = vsel %vm3354_vm7, %v9138_v48, 0.0  ;;  %v11436_v48 = vmul.f32 %v3467_v61, %v11269_v9  ;;  %9161 = vrsqrt.f32 %v11407_v40  ;;  %vm3366_vm7 = vcmp.gt.f32.partialorder %v11407_v40, 0.0 }
 0xb67   :  { %4146 = vmatprep.mubr.f32.mxu0 %v11404_v27  ;;  %v11412_v1 = vpop.xlane.xlu1 %3254  ;;  %v9140_v27 = vpop.eup %9139  ;;  %v3469_v37 = vmul.f32 %v3418_v62, %v14021_v38  ;;  %v3468_v6 = vmul.f32 %v3418_v62, %v14023_v32  ;;  %v14025_v38 = vld [vmem:[#allocation70_spill] sm:$0xff]  ;;  %v14027_v62 = vld [vmem:[#allocation71_spill] sm:$0xff]  ;;  %9163 = vrsqrt.f32 %v11395_v28 }
 0xb68   :  { %14022 = vst [vmem:[#allocation33_spill] sm:$0xff] %v11436_v48  ;;  %v3419_v55 = vsel %vm3355_vm8, %v9140_v27, 0.0  ;;  %vm3367_vm8 = vcmp.gt.f32.partialorder %v11395_v28, 0.0 }
 0xb69   :  { %v11423_v26 = vpop.xlane.xlu0 %3251  ;;  %v3471_v54 = vmul.f32 %v3419_v55, %v14025_v38  ;;  %v11452_v27 = vmul.f32 %v3469_v37, %v11269_v9  ;;  %v3470_v17 = vmul.f32 %v3419_v55, %v14027_v62  ;;  %v11461_v43 = vmul.f32 %v3468_v6, %v11266_v45  ;;  %v14033_v6 = vld [vmem:[#allocation76_spill] sm:$0xff] }
 0xb6a   :  { %4147 = vmatmul.mubr.f32.gmra.mrb[88].mxu0 %v11415_v30  ;;  %9165 = vrsqrt.f32 %v11423_v26 }
 0xb6b   :  { %4151 = vmatprep.mubr.f32.mxu0 %v11420_v5  ;;  %v11427_v50 = vpop.xlane.xlu1 %3260  ;;  %v9142_v5 = vpop.eup %9141  ;;  %14026 = vst [vmem:[#allocation35_spill] sm:$0xff] %v11452_v27  ;;  %14028 = vst [vmem:[#allocation40_spill] sm:$0xff] %v11461_v43  ;;  %9167 = vrsqrt.f32 %v11412_v1 }
 0xb6c   :  { %v9144_v61 = vpop.eup %9143 }
 0xb6d   :  { %v11439_v30 = vpop.xlane.xlu0 %3257  ;;  %v3421_v38 = vsel %vm3357_vm10, %v9144_v61, 0.0  ;;  %vm3369_vm10 = vcmp.gt.f32.partialorder %v11412_v1, 0.0 }
 0xb6e   :  { %4152 = vmatmul.mubr.f32.gmra.mrb[90].mxu0 %v11430_v56  ;;  %v3420_v56 = vsel %vm3356_vm9, %v9142_v5, 0.0  ;;  %v11466_v5 = vmul.f32 %v3471_v54, %v11269_v9  ;;  %v3475_v62 = vmul.f32 %v3421_v38, %v14032_v24  ;;  %9169 = vrsqrt.f32 %v11439_v30 }
 0xb6f   :  { %4156 = vmatprep.mubr.f32.mxu0 %v11436_v48  ;;  %v11443_v36 = vpop.xlane.xlu1 %3266  ;;  %v3473_v37 = vmul.f32 %v3420_v56, %v14029_v7  ;;  %v3472_v11 = vmul.f32 %v3420_v56, %v14033_v6  ;;  %v11476_v7 = vmul.f32 %v3470_v17, %v11266_v45  ;;  %v14036_v17 = vld [vmem:[#allocation75_spill] sm:$0xff]  ;;  %vm3368_vm9 = vcmp.gt.f32.partialorder %v11423_v26, 0.0 }
 0xb70   :  { %14030 = vst [vmem:[#allocation38_spill] sm:$0xff] %v11466_v5  ;;  %v3474_v10 = vmul.f32 %v3421_v38, %v14036_v17  ;;  %9171 = vrsqrt.f32 %v11427_v50 }
 0xb71   :  { %v11455_v48 = vpop.xlane.xlu0 %3263  ;;  %14034 = vst [vmem:[#allocation41_spill] sm:$0xff] %v11476_v7 }
 0xb72   :  { %4157 = vmatmul.mubr.f32.gmra.mrb[92].mxu0 %v11446_v49  ;;  %v9146_v49 = vpop.eup %9145  ;;  %9173 = vrsqrt.f32 %v11455_v48 }
 0xb73   :  { %4161 = vmatprep.mubr.f32.mxu0 %v11452_v27  ;;  %v1787_v32 = vpop.xlane.xlu1 %1786  ;;  %v14031_v27 = vld [vmem:[#allocation36_spill] sm:$0xff]  ;;  %v9148_v24 = vpop.eup %9147  ;;  %9175 = vrsqrt.f32 %v11443_v36 }
 0xb74   :  { %v2187_v39 = vmul.f32 %v1787_v32, %v14031_v27  ;;  %v11482_v27 = vmul.f32 %v3473_v37, %v11269_v9  ;;  %v11493_v37 = vmul.f32 %v3475_v62, %v11269_v9  ;;  %v9150_v38 = vpop.eup %9149 }
 0xb75   :  { %v1784_v55 = vpop.xlane.xlu0 %1783 }
 0xb76   :  { %4162 = vmatmul.mubr.f32.gmra.mrb[94].mxu0 %v11461_v43  ;;  %v11473_v61 = vadd.f32 %v1787_v32, %v1784_v55  ;;  %v2186_v54 = vmul.f32 %v1784_v55, %v13985_v41  ;;  %14035 = vst [vmem:[#allocation28_spill] sm:$0xff] %v11482_v27  ;;  %v11490_v41 = vmul.f32 %v3472_v11, %v11266_v45  ;;  %14038 = vst [vmem:[#allocation42_spill] sm:$0xff] %v11493_v37  ;;  %v14040_v11 = vld [vmem:[#allocation80_spill] sm:$0xff] }
 0xb77   :  { %4166 = vmatprep.mubr.f32.mxu0 %v11466_v5  ;;  %v1793_v43 = vpop.xlane.xlu1 %1792  ;;  %v3422_v5 = vsel %vm3358_vm11, %v9146_v49, 0.0  ;;  %v14039_v49 = vld [vmem:[#allocation81_spill] sm:$0xff]  ;;  %vm3370_vm11 = vcmp.gt.f32.partialorder %v11439_v30, 0.0 }
 0xb78   :  { %v2188_v56 = vadd.f32 %v2187_v39, %v2186_v54  ;;  %v2595_v6 = vmul.f32 %v1793_v43, %v13987_v14  ;;  %14037 = vst [vmem:[#allocation37_spill] sm:$0xff] %v11490_v41  ;;  %v3477_v55 = vmul.f32 %v3422_v5, %v14039_v49  ;;  %v3423_v39 = vsel %vm3359_vm12, %v9148_v24, 0.0 }
 0xb79   :  { %v1790_v32 = vpop.xlane.xlu0 %1789  ;;  %v3476_v17 = vmul.f32 %v3422_v5, %v14040_v11  ;;  %v11505_v49 = vmul.f32 %v3474_v10, %v11266_v45  ;;  %v14044_v5 = vld [vmem:[#allocation78_spill] sm:$0xff]  ;;  %vm3371_vm12 = vcmp.gt.f32.partialorder %v11427_v50, 0.0 }
 0xb7a   :  { %4167 = vmatmul.mubr.f32.gmra.mrb[96].mxu0 %v11476_v7  ;;  %v2189_v7 = vrot.slane %v2188_v56, 4  ;;  %v11497_v31 = vadd.f32 %v1793_v43, %v1790_v32  ;;  %v2594_v54 = vmul.f32 %v1790_v32, %v13990_v15  ;;  %v11510_v15 = vmul.f32 %v3477_v55, %v11269_v9 }
 0xb7b   :  { %4171 = vmatprep.mubr.f32.mxu0 %v11482_v27  ;;  %14041 = vst [vmem:[#allocation27_spill] sm:$0xff] %v11505_v49  ;;  %v14042_v27 = vld [vmem:[#allocation79_spill] sm:$0xff]  ;;  %v3424_v32 = vsel %vm3360_vm13, %v9150_v38, 0.0  ;;  %vm3372_vm13 = vcmp.gt.f32.partialorder %v11455_v48, 0.0 }
 0xb7c   :  { %v2190_v14 = vadd.f32 %v2189_v7, %v2188_v56  ;;  %v2596_v62 = vadd.f32 %v2595_v6, %v2594_v54  ;;  %v3479_v43 = vmul.f32 %v3423_v39, %v14042_v27  ;;  %14043 = vst [vmem:[#allocation30_spill] sm:$0xff] %v11510_v15  ;;  %v9152_v56 = vpop.eup %9151  ;;  %v3478_v6 = vmul.f32 %v3423_v39, %v14044_v5  ;;  %v14046_v54 = vld [vmem:[#allocation85_spill] sm:$0xff]  ;;  %v14048_v39 = vld [vmem:[#allocation83_spill] sm:$0xff] }
 0xb7d   :  { %v11517_v27 = vmul.f32 %v3476_v17, %v11266_v45  ;;  %v3481_v11 = vmul.f32 %v3424_v32, %v14046_v54 }
 0xb7e   :  { %4172 = vmatmul.mubr.f32.gmra.mrb[98].mxu0 %v11490_v41  ;;  %v2191_v24 = vrot.slane %v2190_v14, 2  ;;  %v2597_v7 = vrot.slane %v2596_v62, 4  ;;  %v11522_v55 = vmul.f32 %v3479_v43, %v11269_v9  ;;  %v11529_v17 = vmul.f32 %v3478_v6, %v11266_v45 }
 0xb7f   :  { %4176 = vmatprep.mubr.f32.mxu0 %v11493_v37  ;;  %14045 = vst [vmem:[#allocation29_spill] sm:$0xff] %v11517_v27  ;;  %v11534_v5 = vmul.f32 %v3481_v11, %v11269_v9 }
 0xb80   :  { %v2192_v35 = vadd.f32 %v2191_v24, %v2190_v14  ;;  %v2598_v10 = vadd.f32 %v2597_v7, %v2596_v62  ;;  %14047 = vst [vmem:[#allocation64_spill] sm:$0xff] %v11522_v55  ;;  %v9154_v14 = vpop.eup %9153  ;;  %v3480_v62 = vmul.f32 %v3424_v32, %v14048_v39  ;;  %14049 = vst [vmem:[#allocation63_spill] sm:$0xff] %v11529_v17  ;;  %v14050_v7 = vld [vmem:[#allocation84_spill] sm:$0xff] }
 0xb81   :  { %14051 = vst [vmem:[#allocation65_spill] sm:$0xff] %v11534_v5  ;;  %v3426_v54 = vsel %vm3362_vm1, %v9154_v14, 0.0  ;;  %vm7476_vm1 = vcmask 0  }
 0xb82   :  { %4177 = vmatmul.mubr.f32.gmra.mrb[100].mxu0 %v11505_v49  ;;  %v2193_v38 = vrot.slane %v2192_v35, 1  ;;  %v3425_v49 = vsel %vm3361_vm15, %v9152_v56, 0.0  ;;  %v2599_v37 = vrot.slane %v2598_v10, 2  ;;  %vm3373_vm15 = vcmp.gt.f32.partialorder %v11443_v36, 0.0 }
 0xb83   :  { %4181 = vmatprep.mubr.f32.mxu0 %v11510_v15  ;;  %v3483_v43 = vmul.f32 %v3425_v49, %v14050_v7  ;;  %v3482_v32 = vmul.f32 %v3425_v49, %v14052_v51  ;;  %v14056_v49 = vld [vmem:[#allocation88_spill] sm:$0xff] }
 0xb84   :  { %v2194_v22 = vadd.f32 %v2193_v38, %v2192_v35  ;;  %v2600_v24 = vadd.f32 %v2599_v37, %v2598_v10  ;;  %v9156_v38 = vpop.eup %9155  ;;  %v11540_v37 = vmul.f32 %v3480_v62, %v11266_v45  ;;  %v14054_v10 = vld [vmem:[#allocation89_spill] sm:$0xff] }
 0xb85   :  { %v11546_v11 = vmul.f32 %v3483_v43, %v11269_v9  ;;  %v3427_v14 = vsel %vm3363_vm2, %v9156_v38, 0.0  ;;  %v9158_v7 = vpop.eup %9157  ;;  %v11552_v62 = vmul.f32 %v3482_v32, %v11266_v45 }
 0xb86   :  { %4182 = vmatmul.mubr.f32.gmra.mrb[102].mxu0 %v11517_v27  ;;  %v2195_v56 = vmul.f32 %v2194_v22, %v2194_v22  ;;  %v2601_v35 = vrot.slane %v2600_v24, 1  ;;  %14053 = vst [vmem:[#allocation69_spill] sm:$0xff] %v11540_v37  ;;  %v3485_v22 = vmul.f32 %v3426_v54, %v14054_v10  ;;  %v9160_v38 = vpop.eup %9159 }
 0xb87   :  { %4186 = vmatprep.mubr.f32.mxu0 %v11522_v55  ;;  %14055 = vst [vmem:[#allocation68_spill] sm:$0xff] %v11546_v11  ;;  %14057 = vst [vmem:[#allocation66_spill] sm:$0xff] %v11552_v62  ;;  %v3429_v10 = vsel %vm3365_vm6, %v9160_v38, 0.0 }
 0xb88   :  { %2196 = vadd.xlane.f32.xlu0 %v2195_v56  ;;  %v2602_v6 = vadd.f32 %v2601_v35, %v2600_v24  ;;  %v3484_v24 = vmul.f32 %v3426_v54, %v14056_v49  ;;  %v3487_v56 = vmul.f32 %v3427_v14, %v14058_v12  ;;  %v11558_v43 = vmul.f32 %v3485_v22, %v11269_v9  ;;  %v14060_v54 = vld [vmem:[#allocation86_spill] sm:$0xff]  ;;  %v9162_v22 = vpop.eup %9161 }
 0xb89   :  { %v3428_v35 = vsel %vm3364_vm5, %v9158_v7, 0.0  ;;  %v3486_v51 = vmul.f32 %v3427_v14, %v14060_v54  ;;  %v3491_v59 = vmul.f32 %v3429_v10, %v11096_v2  ;;  %v3430_v49 = vsel %vm3366_vm7, %v9162_v22, 0.0 }
 0xb8a   :  { %4187 = vmatmul.mubr.f32.gmra.mrb[104].mxu0 %v11529_v17  ;;  %v2603_v39 = vmul.f32 %v2602_v6, %v2602_v6  ;;  %14059 = vst [vmem:[#allocation67_spill] sm:$0xff] %v11558_v43  ;;  %v11564_v32 = vmul.f32 %v3484_v24, %v11266_v45  ;;  %v3489_v57 = vmul.f32 %v3428_v35, %v11103_v19  ;;  %v9164_v24 = vpop.eup %9163 }
 0xb8b   :  { %4191 = vmatprep.mubr.f32.mxu0 %v11534_v5  ;;  %v11570_v6 = vmul.f32 %v3487_v56, %v11269_v9  ;;  %v11576_v7 = vmul.f32 %v3486_v51, %v11266_v45  ;;  %v3490_v12 = vmul.f32 %v3429_v10, %v11087_v33  ;;  %v3493_v2 = vmul.f32 %v3430_v49, %v11126_v44  ;;  %v9166_v38 = vpop.eup %9165 }
 0xb8c   :  { %2604 = vadd.xlane.f32.xlu1 %v2603_v39  ;;  %14061 = vst [vmem:[#allocation74_spill] sm:$0xff] %v11564_v32  ;;  %v14063_v39 = vld [vmem:[#allocation47_spill] sm:$0xff]  ;;  %v11582_v19 = vmul.f32 %v3489_v57, %v11269_v9  ;;  %v11594_v40 = vmul.f32 %v3491_v59, %v11269_v9  ;;  %v3492_v33 = vmul.f32 %v3430_v49, %v11123_v16  ;;  %v3432_v51 = vsel %vm3368_vm9, %v9166_v38, 0.0  ;;  %v9168_v57 = vpop.eup %9167 }
 0xb8d   :  { %14062 = vst [vmem:[#allocation72_spill] sm:$0xff] %v11570_v6  ;;  %v3488_v14 = vmul.f32 %v3428_v35, %v14063_v39  ;;  %14064 = vst [vmem:[#allocation70_spill] sm:$0xff] %v11576_v7  ;;  %v3431_v35 = vsel %vm3367_vm8, %v9164_v24, 0.0  ;;  %v11600_v54 = vmul.f32 %v3490_v12, %v11266_v45  ;;  %v11606_v44 = vmul.f32 %v3493_v2, %v11269_v9  ;;  %v9170_v39 = vpop.eup %9169 }
 0xb8e   :  { %4192 = vmatmul.mubr.f32.gmra.mrb[106].mxu0 %v11540_v37  ;;  %14065 = vst [vmem:[#allocation71_spill] sm:$0xff] %v11582_v19  ;;  %14067 = vst [vmem:[#allocation36_spill] sm:$0xff] %v11594_v40  ;;  %v3495_v28 = vmul.f32 %v3431_v35, %v11115_v20  ;;  %v3494_v16 = vmul.f32 %v3431_v35, %v11112_v13  ;;  %v11612_v10 = vmul.f32 %v3492_v33, %v11266_v45  ;;  %v9172_v49 = vpop.eup %9171  ;;  %vm7392_vm8 = vcmask 408576  }
 0xb8f   :  { %4196 = vmatprep.mubr.f32.mxu0 %v11546_v11  ;;  %v11588_v56 = vmul.f32 %v3488_v14, %v11266_v45  ;;  %14068 = vst [vmem:[#allocation73_spill] sm:$0xff] %v11600_v54  ;;  %14069 = vst [vmem:[#allocation76_spill] sm:$0xff] %v11606_v44  ;;  %v3497_v20 = vmul.f32 %v3432_v51, %v11143_v4  ;;  %v3433_v22 = vsel %vm3369_vm10, %v9168_v57, 0.0  ;;  %v3434_v59 = vsel %vm3370_vm11, %v9170_v39, 0.0  ;;  %v9174_v2 = vpop.eup %9173  ;;  %v2176_v39 = vpop.xlane.xlu0 %2175 }
 0xb90   :  { %14070 = vst [vmem:[#allocation75_spill] sm:$0xff] %v11612_v10  ;;  %v11618_v26 = vmul.f32 %v3495_v28, %v11269_v9  ;;  %v3496_v13 = vmul.f32 %v3432_v51, %v11138_v46  ;;  %v11624_v14 = vmul.f32 %v3494_v16, %v11266_v45  ;;  %v3499_v1 = vmul.f32 %v3433_v22, %v11136_v23  ;;  %v9176_v33 = vpop.eup %9175 }
 0xb91   :  { %14066 = vst [vmem:[#allocation77_spill] sm:$0xff] %v11588_v56  ;;  %v11630_v4 = vmul.f32 %v3497_v20, %v11269_v9  ;;  %v3498_v46 = vmul.f32 %v3433_v22, %v11128_v58  ;;  %v3501_v23 = vmul.f32 %v3434_v59, %v11164_v42  ;;  %v3435_v12 = vsel %vm3371_vm12, %v9172_v49, 0.0 }
 0xb92   :  { %4197 = vmatmul.mubr.f32.gmra.mrb[108].mxu0 %v11552_v62  ;;  %14071 = vst [vmem:[#allocation81_spill] sm:$0xff] %v11618_v26  ;;  %14072 = vst [vmem:[#allocation80_spill] sm:$0xff] %v11624_v14  ;;  %v11636_v24 = vmul.f32 %v3496_v13, %v11266_v45  ;;  %v11641_v30 = vmul.f32 %v3499_v1, %v11269_v9  ;;  %v3500_v35 = vmul.f32 %v3434_v59, %v11158_v29  ;;  %v2178_v1 = vpop.xlane.xlu1 %2177 }
 0xb93   :  { %4201 = vmatprep.mubr.f32.mxu0 %v11558_v43  ;;  %14073 = vst [vmem:[#allocation79_spill] sm:$0xff] %v11630_v4  ;;  %v11647_v58 = vmul.f32 %v3498_v46, %v11266_v45  ;;  %v3503_v38 = vmul.f32 %v3435_v12, %v11155_v8  ;;  %v11652_v42 = vmul.f32 %v3501_v23, %v11269_v9  ;;  %v3436_v50 = vsel %vm3372_vm13, %v9174_v2, 0.0  ;;  %v2584_v49 = vpop.xlane.xlu0 %2583 }
 0xb94   :  { %14074 = vst [vmem:[#allocation78_spill] sm:$0xff] %v11636_v24  ;;  %14075 = vst [vmem:[#allocation85_spill] sm:$0xff] %v11641_v30  ;;  %v3502_v28 = vmul.f32 %v3435_v12, %v11152_v52  ;;  %v11658_v29 = vmul.f32 %v3500_v35, %v11266_v45  ;;  %v3505_v8 = vmul.f32 %v3436_v50, %v11184_v34  ;;  %v3437_v51 = vsel %vm3373_vm15, %v9176_v33, 0.0 }
 0xb95   :  { %14076 = vst [vmem:[#allocation83_spill] sm:$0xff] %v11647_v58  ;;  %14077 = vst [vmem:[#allocation84_spill] sm:$0xff] %v11652_v42  ;;  %v11663_v48 = vmul.f32 %v3503_v38, %v11269_v9  ;;  %v3504_v57 = vmul.f32 %v3436_v50, %v11179_v0  ;;  %v3507_v52 = vmul.f32 %v3437_v51, %v11177_v25  ;;  %v2166_v25 = vrot.slane %v11473_v61, 4 }
 0xb96   :  { %4202 = vmatmul.mubr.f32.gmra.mrb[110].mxu0 %v11564_v32  ;;  %14078 = vst [vmem:[#allocation82_spill] sm:$0xff] %v11658_v29  ;;  %v11669_v16 = vmul.f32 %v3502_v28, %v11266_v45  ;;  %v11673_v20 = vmul.f32 %v3505_v8, %v11269_v9  ;;  %v3506_v34 = vmul.f32 %v3437_v51, %v11168_v63  ;;  %v2574_v13 = vrot.slane %v11497_v31, 4  ;;  %v2586_v12 = vpop.xlane.xlu1 %2585 }
 0xb97   :  { %4206 = vmatprep.mubr.f32.mxu0 %v11570_v6  ;;  %14079 = vst [vmem:[#allocation89_spill] sm:$0xff] %v11663_v48  ;;  %v11679_v36 = vmul.f32 %v3504_v57, %v11266_v45  ;;  %v11682_v22 = vmul.f32 %v3507_v52, %v11269_v9  ;;  %v2167_v63 = vadd.f32 %v2166_v25, %v11473_v61  ;;  %v1669_v2 = vpop.xlane.xlu0 %1668 }
 0xb98   :  { %14080 = vst [vmem:[#allocation88_spill] sm:$0xff] %v11669_v16  ;;  %14081 = vst [vmem:[#allocation87_spill] sm:$0xff] %v11673_v20  ;;  %v11687_v0 = vmul.f32 %v3506_v34, %v11266_v45  ;;  %v2575_v9 = vadd.f32 %v2574_v13, %v11497_v31  ;;  %v2179_v50 = vadd.f32 %v2178_v1, %v2176_v39 }
 0xb99   :  { %14082 = vst [vmem:[#allocation86_spill] sm:$0xff] %v11679_v36  ;;  %14083 = vst [vmem:[#allocation47_spill] sm:$0xff] %v11682_v22  ;;  %v2168_v59 = vrot.slane %v2167_v63, 2  ;;  %v2587_v51 = vadd.f32 %v2586_v12, %v2584_v49 }
 0xb9a   :  { %4207 = vmatmul.mubr.f32.gmra.mrb[112].mxu0 %v11576_v7  ;;  %14084 = vst [vmem:[#allocation90_spill] sm:$0xff] %v11687_v0  ;;  %v2576_v23 = vrot.slane %v2575_v9, 2  ;;  %v1671_v38 = vpop.xlane.xlu1 %1670  ;;  %v2180_v57 = vrot.slane %v2179_v50, 4 }
 0xb9b   :  { %4211 = vmatprep.mubr.f32.mxu0 %v11582_v19  ;;  %v2169_v46 = vadd.f32 %v2168_v59, %v2167_v63  ;;  %v1673_v8 = vpop.xlane.xlu0 %1672  ;;  %v1676_v61 = vadd.f32 %v1671_v38, %v1669_v2 }
 0xb9c   :  { %v2577_v35 = vadd.f32 %v2576_v23, %v2575_v9  ;;  %v2181_v13 = vadd.f32 %v2180_v57, %v2179_v50 }
 0xb9d   :  { %v2170_v45 = vrot.slane %v2169_v46, 1  ;;  %v1677_v52 = vadd.f32 %v1676_v61, %v1673_v8 }
 0xb9e   :  { %4212 = vmatmul.mubr.f32.gmra.mrb[114].mxu0 %v11588_v56  ;;  %v2578_v28 = vrot.slane %v2577_v35, 1  ;;  %v1675_v31 = vpop.xlane.xlu1 %1674 }
 0xb9f   :  { %4216 = vmatprep.mubr.f32.mxu0 %v11594_v40  ;;  %v2171_v33 = vadd.f32 %v2170_v45, %v2169_v46  ;;  %v1678_v63 = vadd.f32 %v1677_v52, %v1675_v31 }
 0xba0   :  { %v2579_v25 = vadd.f32 %v2578_v28, %v2577_v35  ;;  %v7808_v35 = vld [vmem:[%s13652_s5 + $0x20] sm:$0xff] }
 0xba1   :  { %v2172_v34 = vmax.f32 %v2171_v33, 1e-12  ;;  %v1679_v9 = vrot.slane %v1678_v63, 4 }
 0xba2   :  { %4217 = vmatmul.mubr.f32.gmra.mrb[116].mxu0 %v11600_v54  ;;  %v2580_v59 = vmax.f32 %v2579_v25, 1e-12 }
 0xba3   :  { %4221 = vmatprep.mubr.f32.mxu0 %v11606_v44  ;;  %9177 = vrcp.f32 %v2172_v34  ;;  %v1680_v46 = vadd.f32 %v1679_v9, %v1678_v63 }
 0xba4   :  { %9179 = vrcp.f32 %v2580_v59 }
 0xba5   :  { %v1681_v12 = vrot.slane %v1680_v46, 2 }
 0xba6   :  { %4222 = vmatmul.mubr.f32.gmra.mrb[118].mxu0 %v11612_v10 }
 0xba7   :  { %4226 = vmatprep.mubr.f32.mxu0 %v11618_v26 }
 0xbaa   :  { %4227 = vmatmul.mubr.f32.gmra.mrb[120].mxu0 %v11624_v14 }
 0xbab   :  { %4231 = vmatprep.mubr.f32.mxu0 %v11630_v4 }
 0xbad   :  { %v9178_v49 = vpop.eup %9177 }
 0xbae   :  { %4232 = vmatmul.mubr.f32.gmra.mrb[122].mxu0 %v11636_v24 }
 0xbaf   :  { %4236 = vmatprep.mubr.f32.mxu0 %v11641_v30 }
 0xbb2   :  { %4237 = vmatmul.mubr.f32.gmra.mrb[124].mxu0 %v11647_v58 }
 0xbb3   :  { %4241 = vmatprep.mubr.f32.mxu0 %v11652_v42 }
 0xbb6   :  { %4242 = vmatmul.mubr.f32.gmra.mrb[126].mxu0 %v11658_v29 }
 0xbb7   :  { %4246 = vmatprep.mubr.f32.mxu0 %v11663_v48 }
 0xbba   :  { %4247 = vmatmul.mubr.f32.gmra.mrb[128].mxu0 %v11669_v16 }
 0xbbb   :  { %4251 = vmatprep.mubr.f32.mxu0 %v11673_v20 }
 0xbbe   :  { %4252 = vmatmul.mubr.f32.gmra.mrb[130].mxu0 %v11679_v36  ;;  %v2182_v36 = vrot.slane %v2181_v13, 2 }
 0xbbf   :  { %4256 = vmatprep.mubr.f32.mxu0 %v11682_v22 }
 0xbc0   :  { %v2183_v1 = vadd.f32 %v2182_v36, %v2181_v13  ;;  %v9180_v36 = vpop.eup %9179 }
 0xbc2   :  { %4257 = vmatmul.mubr.f32.gmra.mrb[132].mxu0 %v11687_v0  ;;  %v2588_v0 = vrot.slane %v2587_v51, 4  ;;  %v2184_v2 = vrot.slane %v2183_v1, 1 }
 0xbc4   :  { %v2589_v22 = vadd.f32 %v2588_v0, %v2587_v51  ;;  %v7809_v0 = vld [vmem:[%s13652_s5 + $0x28] sm:$0xff]  ;;  %v1682_v51 = vadd.f32 %v1681_v12, %v1680_v46 }
 0xbc5   :  { %v8818_v8 = vpack.c.bf16 %v7809_v0, %v7808_v35 }
 0xbc6   :  { %v2590_v39 = vrot.slane %v2589_v22, 2  ;;  %v1683_v63 = vrot.slane %v1682_v51, 1 }
 0xbc7   :  { %8819 = vmatprep.subr.bf16.mxu1 %v8818_v8 }
 0xbc8   :  { %v2591_v23 = vadd.f32 %v2590_v39, %v2589_v22  ;;  %v2185_v22 = vadd.f32 %v2184_v2, %v2183_v1  ;;  %8821 = vmatpush3.bf16.msra.mxu1 %v8818_v8 }
 0xbca   :  { %v2592_v33 = vrot.slane %v2591_v23, 1 }
 0xbcc   :  { %v2593_v34 = vadd.f32 %v2592_v33, %v2591_v23 }
 0xc15   :  { %v2197_v45 = vpop.xlane.xlu0 %2196 }
 0xc16   :  { %v2199_v50 = vmul.f32 %v9178_v49, %v2197_v45 }
 0xc18   :  { %v2200_v52 = vsub.f32 %v2185_v22, %v2199_v50 }
 0xc19   :  { %v4103_v38 = vpop.f32.mrb[70].mxu0  ;;  %v2605_v61 = vpop.xlane.xlu1 %2604 }
 0xc1a   :  { %v4105_v28 = vpop.f32.mrb[71].mxu0  ;;  %v2607_v25 = vmul.f32 %v9180_v36, %v2605_v61  ;;  %v2201_v9 = vmul.f32 %v9178_v49, %v2200_v52 }
 0xc1b   :  { %v1684_v28 = vadd.f32 %v1683_v63, %v1682_v51 }
 0xc1c   :  { %v2608_v13 = vsub.f32 %v2593_v34, %v2607_v25 }
 0xc1d   :  { %v4108_v57 = vpop.f32.mrb[72].mxu0  ;;  %v7472_v1 = vmul.f32 0.03125, %v1684_v28 }
 0xc1e   :  { %v4110_v31 = vpop.f32.mrb[73].mxu0  ;;  %v2609_v39 = vmul.f32 %v9180_v36, %v2608_v13 }
 0xc20   :  { %v2610_v20 = vadd.f32 %v2609_v39, %v2201_v9 }
 0xc21   :  { %v4113_v59 = vpop.f32.mrb[74].mxu0 }
 0xc22   :  { %v4115_v45 = vpop.f32.mrb[75].mxu0  ;;  %v7473_v46 = vsub.f32 0.0, %v2610_v20  ;;  %v11703_v20 = vld [vmem:[%s13653_s6] ss:$0 sm:$0xff] }
 0xc23   :  { %v11706_v31 = vadd.f32 %v11703_v20, %v4108_v57  ;;  %v11709_v9 = vadd.f32 %v11703_v20, %v4103_v38  ;;  %v11712_v39 = vadd.f32 %v11703_v20, %v4113_v59 }
 0xc24   :  { %v7474_v12 = vmul.f32 0.5, %v7473_v46 }
 0xc25   :  { %v4118_v35 = vpop.f32.mrb[76].mxu0  ;;  %v4364_v45 = vmul.f32 %v11706_v31, %v11706_v31  ;;  %v4363_v57 = vmul.f32 %v11709_v9, %v11709_v9  ;;  %v4365_v38 = vmul.f32 %v11712_v39, %v11712_v39 }
 0xc26   :  { %v4120_v0 = vpop.f32.mrb[77].mxu0  ;;  %v7475_v50 = vadd.f32 %v7474_v12, %v7472_v1  ;;  %v4295_v1 = vsel %vm3707_vm4, %v11706_v31, 0.0  ;;  %v4294_v12 = vsel %vm3707_vm4, %v11709_v9, 0.0 }
 0xc27   :  { %v11719_v0 = vadd.f32 %v11703_v20, %v4118_v35 }
 0xc28   :  { %7477 = vst.msk [vmem:[#allocation4] sm:$0x1] %vm7476_vm1, %v7475_v50  ;;  %v7810_v50 = vld [vmem:[%s13652_s5 + $0x30] sm:$0xff] }
 0xc29   :  { %v4123_v2 = vpop.f32.mrb[78].mxu0  ;;  %v4299_v16 = vsel %vm3707_vm4, %v11719_v0, 0.0 }
 0xc2a   :  { %v4125_v8 = vpop.f32.mrb[79].mxu0  ;;  %v11728_v59 = vadd.f32 %v11703_v20, %v4123_v2  ;;  %v4366_v2 = vmul.f32 %v11719_v0, %v11719_v0 }
 0xc2b   :  { %v4396_v8 = vsel %vm3707_vm4, %v4364_v45, 0.0  ;;  %v4296_v45 = vadd.f32 %v4295_v1, %v4294_v12 }
 0xc2c   :  { %v4367_v48 = vmul.f32 %v11728_v59, %v11728_v59  ;;  %v4400_v1 = vsel %vm3707_vm4, %v4366_v2, 0.0 }
 0xc2d   :  { %v4128_v23 = vpop.f32.mrb[80].mxu0 }
 0xc2e   :  { %v4130_v33 = vpop.f32.mrb[81].mxu0 }
 0xc2f   :  { %v7811_v33 = vld [vmem:[%s13652_s5 + $0x38] sm:$0x3f] }
 0xc31   :  { %v4133_v22 = vpop.f32.mrb[82].mxu0 }
 0xc32   :  { %v4135_v61 = vpop.f32.mrb[83].mxu0  ;;  %v11753_v29 = vadd.f32 %v11703_v20, %v4133_v22 }
 0xc33   :  { %v4297_v61 = vsel %vm3707_vm4, %v11712_v39, 0.0 }
 0xc35   :  { %v4138_v34 = vpop.f32.mrb[84].mxu0 }
 0xc36   :  { %v4140_v49 = vpop.f32.mrb[85].mxu0  ;;  %v11766_v12 = vadd.f32 %v11703_v20, %v4138_v34 }
 0xc37   :  { %v11744_v49 = vadd.f32 %v11703_v20, %v4128_v23  ;;  %v14086_v23 = vld [vmem:[#allocation44_spill] sm:$0xff] }
 0xc39   :  { %v4143_v36 = vpop.f32.mrb[86].mxu0  ;;  %v4368_v22 = vmul.f32 %v11744_v49, %v11744_v49  ;;  %v4303_v2 = vsel %vm3707_vm4, %v11744_v49, 0.0 }
 0xc3a   :  { %v4145_v52 = vpop.f32.mrb[87].mxu0 }
 0xc3d   :  { %v4148_v25 = vpop.f32.mrb[88].mxu0 }
 0xc3e   :  { %v4150_v51 = vpop.f32.mrb[89].mxu0  ;;  %v11778_v34 = vadd.f32 %v11703_v20, %v4148_v25  ;;  %v4307_v25 = vsel %vm3707_vm4, %v11766_v12, 0.0 }
 0xc3f   :  { %v8822_v51 = vpack.c.bf16 %v7811_v33, %v7810_v50  ;;  %v4298_v33 = vadd.f32 %v4297_v61, %v4296_v45  ;;  %v4369_v45 = vmul.f32 %v11753_v29, %v11753_v29 }
 0xc41   :  { %v4153_v13 = vpop.f32.mrb[90].mxu0  ;;  %8824 = vmatprep.subr.msk.bf16.mxu1 %vm10536_vm3, %v8822_v51  ;;  %v4300_v61 = vadd.f32 %v4299_v16, %v4298_v33  ;;  %v4305_v16 = vsel %vm3707_vm4, %v11753_v29, 0.0 }
 0xc42   :  { %v4155_v63 = vpop.f32.mrb[91].mxu0  ;;  %8827 = vmatpush3.bf16.msk.msra.mxu1 %vm10536_vm3, %v8822_v51  ;;  %v4402_v51 = vsel %vm3707_vm4, %v4367_v48, 0.0  ;;  %v4370_v48 = vmul.f32 %v11766_v12, %v11766_v12 }
 0xc43   :  { %v4395_v63 = vsel %vm3707_vm4, %v4363_v57, 0.0  ;;  %8828 = vmatprep.subr.bf16.mxu1 %v13910_v18 }
 0xc44   :  { %v4397_v50 = vadd.f32 %v4396_v8, %v4395_v63  ;;  %v11770_v63 = vadd.f32 %v11703_v20, %v4143_v36 }
 0xc45   :  { %v11716_v28 = vpop.f32.mrb[92].mxu0 }
 0xc46   :  { %v4160_v46 = vpop.f32.mrb[93].mxu0 }
 0xc47   :  { %v4398_v46 = vsel %vm3707_vm4, %v4365_v38, 0.0  ;;  %v4301_v38 = vsel %vm3707_vm4, %v11728_v59, 0.0 }
 0xc48   :  { %v4399_v8 = vadd.f32 %v4398_v46, %v4397_v50  ;;  %v4302_v42 = vadd.f32 %v4301_v38, %v4300_v61  ;;  %v4404_v46 = vsel %vm3707_vm4, %v4368_v22, 0.0  ;;  %v4406_v38 = vsel %vm3707_vm4, %v4369_v45, 0.0 }
 0xc49   :  { %v4163_v35 = vpop.f32.mrb[94].mxu0  ;;  %v11791_v22 = vadd.f32 %v11703_v20, %v4153_v13  ;;  %v4408_v45 = vsel %vm3707_vm4, %v4370_v48, 0.0  ;;  %v11806_v13 = vadd.f32 %v11703_v20, %v11716_v28 }
 0xc4a   :  { %v4165_v52 = vpop.f32.mrb[95].mxu0  ;;  %v4304_v33 = vadd.f32 %v4303_v2, %v4302_v42  ;;  %v14087_v42 = vmov 0.0  }
 0xc4b   :  { %v3584_v52 = vand.u32 127, %v14086_v23  ;;  %v4401_v23 = vadd.f32 %v4400_v1, %v4399_v8  ;;  %v4371_v1 = vmul.f32 %v11770_v63, %v11770_v63  ;;  %v11794_v8 = vadd.f32 %v11703_v20, %v4163_v35 }
 0xc4c   :  { %v4306_v30 = vadd.f32 %v4305_v16, %v4304_v33  ;;  %v4311_v33 = vsel %vm3707_vm4, %v11778_v34, 0.0  ;;  %v4373_v48 = vmul.f32 %v11791_v22, %v11791_v22 }
 0xc4d   :  { %v4168_v57 = vpop.f32.mrb[96].mxu0  ;;  %vm3616_vm2 = vcmp.lt.s32.totalorder %v3584_v52, 100  ;;  %v4403_v50 = vadd.f32 %v4402_v51, %v4401_v23  ;;  %v4372_v52 = vmul.f32 %v11778_v34, %v11778_v34  ;;  %v4309_v23 = vsel %vm3707_vm4, %v11770_v63, 0.0 }
 0xc4e   :  { %v4170_v58 = vpop.f32.mrb[97].mxu0  ;;  %v11799_v51 = vsel %vm3616_vm2, 1.0, %v14087_v42  ;;  %v11809_v35 = vadd.f32 %v11703_v20, %v4168_v57 }
 0xc4f   :  { %v4405_v61 = vadd.f32 %v4404_v46, %v4403_v50  ;;  %v4410_v50 = vsel %vm3707_vm4, %v4371_v1, 0.0  ;;  %v4274_v24 = vmul.f32 %v11799_v51, %v11794_v8  ;;  %v4374_v1 = vmul.f32 %v11806_v13, %v11806_v13 }
 0xc50   :  { %vm6441_vm6 = vcmp.gt.f32.partialorder %v11799_v51, 0.0 }
 0xc51   :  { %v4173_v58 = vpop.f32.mrb[98].mxu0  ;;  %v4407_v16 = vadd.f32 %v4406_v38, %v4405_v61  ;;  %v4416_v54 = vsel %vm3707_vm4, %v4374_v1, 0.0  ;;  %v4317_v40 = vsel %vm3707_vm4, %v4274_v24, 0.0 }
 0xc52   :  { %v4175_v36 = vpop.f32.mrb[99].mxu0  ;;  %v11819_v28 = vadd.f32 %v11703_v20, %v4173_v58 }
 0xc53   :  { %v4308_v36 = vadd.f32 %v4307_v25, %v4306_v30  ;;  %v4409_v4 = vadd.f32 %v4408_v45, %v4407_v16  ;;  %v4313_v30 = vsel %vm3707_vm4, %v11791_v22, 0.0  ;;  %v4275_v25 = vmul.f32 0.0, %v11809_v35 }
 0xc54   :  { %v4414_v45 = vsel %vm3707_vm4, %v4373_v48, 0.0  ;;  %v4276_v16 = vmul.f32 0.0, %v11819_v28 }
 0xc55   :  { %v4178_v2 = vpop.f32.mrb[100].mxu0  ;;  %v4310_v57 = vadd.f32 %v4309_v23, %v4308_v36  ;;  %v4411_v26 = vadd.f32 %v4410_v50, %v4409_v4  ;;  %v4375_v23 = vmul.f32 %v4274_v24, %v4274_v24 }
 0xc56   :  { %v4180_v46 = vpop.f32.mrb[101].mxu0  ;;  %v11828_v61 = vadd.f32 %v11703_v20, %v4178_v2  ;;  %v4376_v2 = vmul.f32 %v4275_v25, %v4275_v25  ;;  %v4377_v56 = vmul.f32 %v4276_v16, %v4276_v16 }
 0xc57   :  { %v4412_v46 = vsel %vm3707_vm4, %v4372_v52, 0.0  ;;  %v4312_v58 = vadd.f32 %v4311_v33, %v4310_v57  ;;  %v4315_v52 = vsel %vm3707_vm4, %v11806_v13, 0.0  ;;  %v4418_v48 = vsel %vm3707_vm4, %v4375_v23, 0.0 }
 0xc58   :  { %v4413_v36 = vadd.f32 %v4412_v46, %v4411_v26  ;;  %v4319_v57 = vsel %vm3707_vm4, %v4275_v25, 0.0  ;;  %v4420_v46 = vsel %vm3707_vm4, %v4376_v2, 0.0 }
 0xc59   :  { %v4183_v38 = vpop.f32.mrb[102].mxu0  ;;  %v4314_v10 = vadd.f32 %v4313_v30, %v4312_v58  ;;  %v4321_v30 = vsel %vm3707_vm4, %v4276_v16, 0.0 }
 0xc5a   :  { %v4185_v14 = vpop.f32.mrb[103].mxu0  ;;  %v4415_v50 = vadd.f32 %v4414_v45, %v4413_v36  ;;  %v11842_v24 = vadd.f32 %v11703_v20, %v4183_v38 }
 0xc5b   :  { %v4277_v14 = vmul.f32 0.0, %v11828_v61  ;;  %v4316_v33 = vadd.f32 %v4315_v52, %v4314_v10  ;;  %v4422_v10 = vsel %vm3707_vm4, %v4377_v56, 0.0 }
 0xc5c   :  { %v4417_v19 = vadd.f32 %v4416_v54, %v4415_v50  ;;  %v4379_v16 = vmul.f32 %v11842_v24, %v11842_v24  ;;  %v4325_v56 = vsel %vm3707_vm4, %v11842_v24, 0.0 }
 0xc5d   :  { %v4188_v44 = vpop.f32.mrb[104].mxu0  ;;  %v4318_v7 = vadd.f32 %v4317_v40, %v4316_v33  ;;  %v4378_v1 = vmul.f32 %v4277_v14, %v4277_v14  ;;  %v4323_v52 = vsel %vm3707_vm4, %v4277_v14, 0.0 }
 0xc5e   :  { %v4190_v4 = vpop.f32.mrb[105].mxu0  ;;  %v11847_v25 = vadd.f32 %v11703_v20, %v4188_v44 }
 0xc5f   :  { %v4419_v4 = vadd.f32 %v4418_v48, %v4417_v19  ;;  %v4320_v45 = vadd.f32 %v4319_v57, %v4318_v7  ;;  %v4424_v36 = vsel %vm3707_vm4, %v4378_v1, 0.0  ;;  %v4426_v48 = vsel %vm3707_vm4, %v4379_v16, 0.0 }
 0xc60   :  { %v4380_v44 = vmul.f32 %v11847_v25, %v11847_v25  ;;  %v4327_v57 = vsel %vm3707_vm4, %v11847_v25, 0.0 }
 0xc61   :  { %v4193_v26 = vpop.f32.mrb[106].mxu0  ;;  %v4421_v40 = vadd.f32 %v4420_v46, %v4419_v4  ;;  %v4322_v54 = vadd.f32 %v4321_v30, %v4320_v45 }
 0xc62   :  { %v4195_v58 = vpop.f32.mrb[107].mxu0  ;;  %v11853_v38 = vadd.f32 %v11703_v20, %v4193_v26 }
 0xc63   :  { %v4423_v7 = vadd.f32 %v4422_v10, %v4421_v40  ;;  %v4324_v2 = vadd.f32 %v4323_v52, %v4322_v54  ;;  %v4428_v58 = vsel %vm3707_vm4, %v4380_v44, 0.0 }
 0xc64   :  { %v4381_v26 = vmul.f32 %v11853_v38, %v11853_v38  ;;  %v4329_v4 = vsel %vm3707_vm4, %v11853_v38, 0.0 }
 0xc65   :  { %v4198_v23 = vpop.f32.mrb[108].mxu0  ;;  %v4425_v50 = vadd.f32 %v4424_v36, %v4423_v7  ;;  %v4326_v1 = vadd.f32 %v4325_v56, %v4324_v2 }
 0xc66   :  { %v4200_v19 = vpop.f32.mrb[109].mxu0  ;;  %v11860_v14 = vadd.f32 %v11703_v20, %v4198_v23  ;;  %v4430_v54 = vsel %vm3707_vm4, %v4381_v26, 0.0 }
 0xc67   :  { %v4427_v10 = vadd.f32 %v4426_v48, %v4425_v50  ;;  %v4328_v52 = vadd.f32 %v4327_v57, %v4326_v1 }
 0xc68   :  { %v4382_v45 = vmul.f32 %v11860_v14, %v11860_v14  ;;  %v4331_v23 = vsel %vm3707_vm4, %v11860_v14, 0.0 }
 0xc69   :  { %v4203_v33 = vpop.f32.mrb[110].mxu0  ;;  %v4429_v7 = vadd.f32 %v4428_v58, %v4427_v10  ;;  %v4330_v2 = vadd.f32 %v4329_v4, %v4328_v52 }
 0xc6a   :  { %v11868_v46 = vadd.f32 %v11703_v20, %v4203_v33  ;;  %v4205_v30 = vpop.f32.mrb[111].mxu0  ;;  %v4432_v56 = vsel %vm3707_vm4, %v4382_v45, 0.0 }
 0xc6b   :  { %v4431_v33 = vadd.f32 %v4430_v54, %v4429_v7  ;;  %v4332_v48 = vadd.f32 %v4331_v23, %v4330_v2 }
 0xc6c   :  { %v4383_v36 = vmul.f32 %v11868_v46, %v11868_v46  ;;  %v4333_v44 = vsel %vm3707_vm4, %v11868_v46, 0.0 }
 0xc6d   :  { %v4208_v40 = vpop.f32.mrb[112].mxu0  ;;  %v4433_v4 = vadd.f32 %v4432_v56, %v4431_v33  ;;  %v4334_v45 = vadd.f32 %v4333_v44, %v4332_v48 }
 0xc6e   :  { %v11881_v16 = vadd.f32 %v11703_v20, %v4208_v40  ;;  %v4210_v19 = vpop.f32.mrb[113].mxu0  ;;  %v4434_v26 = vsel %vm3707_vm4, %v4383_v36, 0.0 }
 0xc6f   :  { %v4435_v54 = vadd.f32 %v4434_v26, %v4433_v4 }
 0xc70   :  { %v4384_v50 = vmul.f32 %v11881_v16, %v11881_v16  ;;  %v4335_v30 = vsel %vm3707_vm4, %v11881_v16, 0.0 }
 0xc71   :  { %v4213_v57 = vpop.f32.mrb[114].mxu0  ;;  %v4336_v23 = vadd.f32 %v4335_v30, %v4334_v45 }
 0xc72   :  { %v11892_v1 = vadd.f32 %v11703_v20, %v4213_v57  ;;  %v4215_v58 = vpop.f32.mrb[115].mxu0  ;;  %v4436_v10 = vsel %vm3707_vm4, %v4384_v50, 0.0 }
 0xc73   :  { %v4437_v57 = vadd.f32 %v4436_v10, %v4435_v54 }
 0xc74   :  { %v4337_v52 = vsel %vm3707_vm4, %v11892_v1, 0.0  ;;  %v4385_v40 = vmul.f32 %v11892_v1, %v11892_v1 }
 0xc75   :  { %v4218_v36 = vpop.f32.mrb[116].mxu0  ;;  %v4338_v56 = vadd.f32 %v4337_v52, %v4336_v23 }
 0xc76   :  { %v4438_v19 = vsel %vm3707_vm4, %v4385_v40, 0.0  ;;  %v11901_v7 = vadd.f32 %v11703_v20, %v4218_v36  ;;  %v4220_v2 = vpop.f32.mrb[117].mxu0 }
 0xc77   :  { %v4439_v33 = vadd.f32 %v4438_v19, %v4437_v57 }
 0xc78   :  { %v4339_v44 = vsel %vm3707_vm4, %v11901_v7, 0.0  ;;  %v4386_v50 = vmul.f32 %v11901_v7, %v11901_v7 }
 0xc79   :  { %v4340_v48 = vadd.f32 %v4339_v44, %v4338_v56  ;;  %v4223_v58 = vpop.f32.mrb[118].mxu0 }
 0xc7a   :  { %v4440_v26 = vsel %vm3707_vm4, %v4386_v50, 0.0  ;;  %v11909_v30 = vadd.f32 %v11703_v20, %v4223_v58  ;;  %v4225_v4 = vpop.f32.mrb[119].mxu0 }
 0xc7b   :  { %v4441_v45 = vadd.f32 %v4440_v26, %v4439_v33  ;;  %v14088_v33 = vld [vmem:[#allocation52_spill] sm:$0xff] }
 0xc7c   :  { %v4341_v10 = vsel %vm3707_vm4, %v11909_v30, 0.0  ;;  %v4387_v52 = vmul.f32 %v11909_v30, %v11909_v30  ;;  %v3600_v58 = vand.u32 127, %v14088_v33 }
 0xc7d   :  { %v4342_v40 = vadd.f32 %v4341_v10, %v4340_v48  ;;  %v4228_v54 = vpop.f32.mrb[120].mxu0 }
 0xc7e   :  { %v4442_v23 = vsel %vm3707_vm4, %v4387_v52, 0.0  ;;  %v11917_v36 = vadd.f32 %v11703_v20, %v4228_v54  ;;  %v4230_v19 = vpop.f32.mrb[121].mxu0  ;;  %vm3632_vm5 = vcmp.lt.s32.totalorder %v3600_v58, 100 }
 0xc7f   :  { %v4443_v2 = vadd.f32 %v4442_v23, %v4441_v45 }
 0xc80   :  { %v4343_v57 = vsel %vm3707_vm4, %v11917_v36, 0.0  ;;  %v4388_v56 = vmul.f32 %v11917_v36, %v11917_v36 }
 0xc81   :  { %v4344_v44 = vadd.f32 %v4343_v57, %v4342_v40  ;;  %v4233_v50 = vpop.f32.mrb[122].mxu0 }
 0xc82   :  { %v4444_v48 = vsel %vm3707_vm4, %v4388_v56, 0.0  ;;  %v11926_v26 = vadd.f32 %v11703_v20, %v4233_v50  ;;  %v4235_v4 = vpop.f32.mrb[123].mxu0 }
 0xc83   :  { %v4445_v10 = vadd.f32 %v4444_v48, %v4443_v2  ;;  %v11941_v48 = vsel %vm3632_vm5, 1.0, %v14087_v42 }
 0xc84   :  { %v4345_v45 = vsel %vm3707_vm4, %v11926_v26, 0.0  ;;  %v4389_v52 = vmul.f32 %v11926_v26, %v11926_v26  ;;  %vm6457_vm7 = vcmp.gt.f32.partialorder %v11941_v48, 0.0 }
 0xc85   :  { %v4346_v54 = vadd.f32 %v4345_v45, %v4344_v44  ;;  %v4238_v23 = vpop.f32.mrb[124].mxu0 }
 0xc86   :  { %v4446_v40 = vsel %vm3707_vm4, %v4389_v52, 0.0  ;;  %v11934_v19 = vadd.f32 %v11703_v20, %v4238_v23  ;;  %v4240_v57 = vpop.f32.mrb[125].mxu0 }
 0xc87   :  { %v4447_v56 = vadd.f32 %v4446_v40, %v4445_v10 }
 0xc88   :  { %v4347_v50 = vsel %vm3707_vm4, %v11934_v19, 0.0  ;;  %v4390_v2 = vmul.f32 %v11934_v19, %v11934_v19 }
 0xc89   :  { %v4348_v33 = vadd.f32 %v4347_v50, %v4346_v54  ;;  %v4243_v44 = vpop.f32.mrb[126].mxu0 }
 0xc8a   :  { %v4448_v4 = vsel %vm3707_vm4, %v4390_v2, 0.0  ;;  %v11945_v45 = vadd.f32 %v11703_v20, %v4243_v44  ;;  %v4245_v52 = vpop.f32.mrb[127].mxu0 }
 0xc8b   :  { %v4449_v23 = vadd.f32 %v4448_v4, %v4447_v56 }
 0xc8c   :  { %v4290_v58 = vmul.f32 %v11941_v48, %v11945_v45 }
 0xc8d   :  { %v4248_v10 = vpop.f32.mrb[128].mxu0 }
 0xc8e   :  { %v4349_v40 = vsel %vm3707_vm4, %v4290_v58, 0.0  ;;  %v4391_v57 = vmul.f32 %v4290_v58, %v4290_v58  ;;  %v11951_v54 = vadd.f32 %v11703_v20, %v4248_v10  ;;  %v4250_v50 = vpop.f32.mrb[129].mxu0 }
 0xc8f   :  { %v4350_v42 = vadd.f32 %v4349_v40, %v4348_v33 }
 0xc90   :  { %v4450_v6 = vsel %vm3707_vm4, %v4391_v57, 0.0  ;;  %v4291_v2 = vmul.f32 0.0, %v11951_v54 }
 0xc91   :  { %v4451_v44 = vadd.f32 %v4450_v6, %v4449_v23  ;;  %v4253_v32 = vpop.f32.mrb[130].mxu0 }
 0xc92   :  { %v4351_v56 = vsel %vm3707_vm4, %v4291_v2, 0.0  ;;  %v4392_v4 = vmul.f32 %v4291_v2, %v4291_v2  ;;  %v11957_v52 = vadd.f32 %v11703_v20, %v4253_v32  ;;  %v4255_v43 = vpop.f32.mrb[131].mxu0 }
 0xc93   :  { %v4352_v62 = vadd.f32 %v4351_v56, %v4350_v42 }
 0xc94   :  { %v4452_v58 = vsel %vm3707_vm4, %v4392_v4, 0.0  ;;  %v4292_v10 = vmul.f32 0.0, %v11957_v52 }
 0xc95   :  { %v4453_v50 = vadd.f32 %v4452_v58, %v4451_v44  ;;  %v4258_v33 = vpop.f32.mrb[132].mxu0 }
 0xc96   :  { %v4353_v40 = vsel %vm3707_vm4, %v4292_v10, 0.0  ;;  %v4393_v57 = vmul.f32 %v4292_v10, %v4292_v10  ;;  %v11963_v6 = vadd.f32 %v11703_v20, %v4258_v33  ;;  %v4260_v23 = vpop.f32.mrb[133].mxu0 }
 0xc97   :  { %v4354_v11 = vadd.f32 %v4353_v40, %v4352_v62 }
 0xc98   :  { %v4454_v2 = vsel %vm3707_vm4, %v4393_v57, 0.0  ;;  %v4293_v32 = vmul.f32 0.0, %v11963_v6 }
 0xc99   :  { %v4455_v43 = vadd.f32 %v4454_v2, %v4453_v50 }
 0xc9a   :  { %v4355_v42 = vsel %vm3707_vm4, %v4293_v32, 0.0  ;;  %v4394_v56 = vmul.f32 %v4293_v32, %v4293_v32 }
 0xc9b   :  { %v4356_v4 = vadd.f32 %v4355_v42, %v4354_v11 }
 0xc9c   :  { %v4456_v44 = vsel %vm3707_vm4, %v4394_v56, 0.0 }
 0xc9d   :  { %v4357_v58 = vrot.slane %v4356_v4, 4  ;;  %v4457_v37 = vadd.f32 %v4456_v44, %v4455_v43 }
 0xc9f   :  { %v4358_v5 = vadd.f32 %v4357_v58, %v4356_v4  ;;  %v4458_v10 = vrot.slane %v4457_v37, 4 }
 0xca1   :  { %v4359_v17 = vrot.slane %v4358_v5, 2  ;;  %v4459_v20 = vadd.f32 %v4458_v10, %v4457_v37 }
 0xca3   :  { %v4360_v33 = vadd.f32 %v4359_v17, %v4358_v5  ;;  %v4460_v23 = vrot.slane %v4459_v20, 2 }
 0xca5   :  { %v4361_v62 = vrot.slane %v4360_v33, 1  ;;  %v4461_v40 = vadd.f32 %v4460_v23, %v4459_v20  ;;  %v14089_v20 = vld [vmem:[#allocation8_spill] sm:$0xff] }
 0xca7   :  { %v4362_v57 = vadd.f32 %v4361_v62, %v4360_v33  ;;  %v4462_v55 = vrot.slane %v4461_v40, 1 }
 0xca9   :  { %v4463_v27 = vadd.f32 %v4462_v55, %v4461_v40  ;;  %v11969_v50 = vmul.f32 0.005, %v4362_v57 }
 0xcab   :  { %v4465_v2 = vmul.f32 0.005, %v4463_v27  ;;  %v4466_v11 = vmul.f32 %v11969_v50, %v11969_v50  ;;  %v4500_v32 = vsub.f32 %v11963_v6, %v11969_v50  ;;  %v4491_v17 = vsub.f32 %v11892_v1, %v11969_v50 }
 0xcac   :  { %v4492_v5 = vsub.f32 %v11901_v7, %v11969_v50  ;;  %v4493_v55 = vsub.f32 %v11909_v30, %v11969_v50  ;;  %v4494_v27 = vsub.f32 %v11917_v36, %v11969_v50  ;;  %v4495_v37 = vsub.f32 %v11926_v26, %v11969_v50  ;;  %v3705_v30 = vld [vmem:[%s13653_s6 + $0x1] sm:$0x1] }
 0xcad   :  { %v4467_v43 = vsub.f32 %v4465_v2, %v4466_v11  ;;  %v4496_v6 = vsub.f32 %v11934_v19, %v11969_v50  ;;  %v4497_v4 = vsub.f32 %v11945_v45, %v11969_v50  ;;  %v4498_v1 = vsub.f32 %v11951_v54, %v11969_v50 }
 0xcae   :  { %v4499_v7 = vsub.f32 %v11957_v52, %v11969_v50  ;;  %v4469_v36 = vsub.f32 %v11709_v9, %v11969_v50  ;;  %v4470_v26 = vsub.f32 %v11706_v31, %v11969_v50  ;;  %v4471_v19 = vsub.f32 %v11712_v39, %v11969_v50 }
 0xcaf   :  { %v4468_v42 = vmax.f32 %v4467_v43, 0.0  ;;  %v4472_v54 = vsub.f32 %v11719_v0, %v11969_v50  ;;  %v4473_v52 = vsub.f32 %v11728_v59, %v11969_v50  ;;  %v4474_v44 = vsub.f32 %v11744_v49, %v11969_v50 }
 0xcb0   :  { %v4475_v58 = vsub.f32 %v11753_v29, %v11969_v50  ;;  %v4476_v31 = vsub.f32 %v11766_v12, %v11969_v50  ;;  %v4477_v39 = vsub.f32 %v11770_v63, %v11969_v50  ;;  %v4478_v10 = vsub.f32 %v11778_v34, %v11969_v50 }
 0xcb1   :  { %v4501_v56 = vadd.f32 1e-05, %v4468_v42  ;;  %v4479_v0 = vsub.f32 %v11791_v22, %v11969_v50  ;;  %v4480_v59 = vsub.f32 %v11806_v13, %v11969_v50  ;;  %v4481_v49 = vsub.f32 %v11794_v8, %v11969_v50 }
 0xcb2   :  { %v4482_v29 = vsub.f32 %v11809_v35, %v11969_v50  ;;  %v4483_v63 = vsub.f32 %v11819_v28, %v11969_v50  ;;  %v4484_v34 = vsub.f32 %v11828_v61, %v11969_v50  ;;  %v4485_v22 = vsub.f32 %v11842_v24, %v11969_v50 }
 0xcb3   :  { %9181 = vrsqrt.f32 %v4501_v56  ;;  %v4486_v13 = vsub.f32 %v11847_v25, %v11969_v50  ;;  %v4487_v8 = vsub.f32 %v11853_v38, %v11969_v50  ;;  %v4488_v35 = vsub.f32 %v11860_v14, %v11969_v50 }
 0xcb4   :  { %v4489_v28 = vsub.f32 %v11868_v46, %v11969_v50  ;;  %v4490_v25 = vsub.f32 %v11881_v16, %v11969_v50 }
 0xcbd   :  { %v9182_v45 = vpop.eup %9181 }
 0xcbe   :  { %v4503_v9 = vmul.f32 %v9182_v45, %v3705_v30 }
 0xcc0   :  { %v4507_v12 = vrot.slane %v4503_v9, %v14089_v20 }
 0xcc2   :  { %v12040_v33 = vmul.f32 %v4507_v12, %v4500_v32  ;;  %v4508_v61 = vmul.f32 %v4507_v12, %v4469_v36  ;;  %v4509_v23 = vmul.f32 %v4507_v12, %v4470_v26  ;;  %v4510_v62 = vmul.f32 %v4507_v12, %v4471_v19  ;;  %v12053_v19 = vld [vmem:[%s13653_s6 + $0x2] ss:$0 sm:$0xff] }
 0xcc3   :  { %v4511_v24 = vmul.f32 %v4507_v12, %v4472_v54  ;;  %v4512_v40 = vmul.f32 %v4507_v12, %v4473_v52  ;;  %v4513_v57 = vmul.f32 %v4507_v12, %v4474_v44  ;;  %v4514_v2 = vmul.f32 %v4507_v12, %v4475_v58 }
 0xcc4   :  { %v4515_v11 = vmul.f32 %v4507_v12, %v4476_v31  ;;  %v4516_v38 = vmul.f32 %v4507_v12, %v4477_v39  ;;  %v4517_v43 = vmul.f32 %v4507_v12, %v4478_v10  ;;  %v4518_v42 = vmul.f32 %v4507_v12, %v4479_v0 }
 0xcc5   :  { %v4519_v14 = vmul.f32 %v4507_v12, %v4480_v59  ;;  %v4520_v56 = vmul.f32 %v4507_v12, %v4481_v49  ;;  %v12044_v30 = vmul.f32 %v4507_v12, %v4482_v29  ;;  %v12046_v46 = vmul.f32 %v4507_v12, %v4483_v63 }
 0xcc6   :  { %v12048_v32 = vmul.f32 %v4507_v12, %v4484_v34  ;;  %v4524_v36 = vmul.f32 %v4507_v12, %v4485_v22  ;;  %v4525_v26 = vmul.f32 %v4507_v12, %v4486_v13  ;;  %v4526_v16 = vmul.f32 %v4507_v12, %v4487_v8 }
 0xcc7   :  { %v4527_v50 = vmul.f32 %v4507_v12, %v4488_v35  ;;  %v12055_v45 = vmul.f32 %v4507_v12, %v4489_v28  ;;  %v12057_v54 = vmul.f32 %v4507_v12, %v4490_v25  ;;  %v12059_v52 = vmul.f32 %v4507_v12, %v4491_v17 }
 0xcc8   :  { %v12061_v44 = vmul.f32 %v4507_v12, %v4492_v5  ;;  %v12063_v58 = vmul.f32 %v4507_v12, %v4493_v55  ;;  %v12065_v9 = vmul.f32 %v4507_v12, %v4494_v27  ;;  %v12067_v31 = vmul.f32 %v4507_v12, %v4495_v37 }
 0xcc9   :  { %v12069_v39 = vmul.f32 %v4507_v12, %v4496_v6  ;;  %v4536_v10 = vmul.f32 %v4507_v12, %v4497_v4  ;;  %v12071_v0 = vmul.f32 %v4507_v12, %v4498_v1  ;;  %v12074_v59 = vmul.f32 %v4507_v12, %v4499_v7 }
 0xcca   :  { %v4545_v17 = vadd.f32 %v12053_v19, %v4509_v23  ;;  %v12078_v5 = vadd.f32 %v12053_v19, %v4520_v56  ;;  %v4544_v37 = vadd.f32 %v12053_v19, %v4508_v61  ;;  %v9246_v6 = vmov -inf  }
 0xccb   :  { %v12081_v55 = vadd.f32 %v12053_v19, %v4536_v10  ;;  %v12088_v4 = vsel %vm3707_vm4, -1e+30, %v9246_v6  ;;  %v4546_v49 = vadd.f32 %v12053_v19, %v4510_v62  ;;  %v4547_v29 = vadd.f32 %v12053_v19, %v4511_v24 }
 0xccc   :  { %v6537_v27 = vsel %vm6441_vm6, %v12078_v5, -1e+30  ;;  %v6558_v7 = vsel %vm3707_vm4, %v4545_v17, -inf  ;;  %8348 = vmatprep.mubr.msk.f32.mxu1 %vm3707_vm4, %v4544_v37  ;;  %v6557_v63 = vsel %vm3707_vm4, %v4544_v37, -inf  ;;  %v4548_v34 = vadd.f32 %v12053_v19, %v4512_v40 }
 0xccd   :  { %v12093_v1 = vsel %vm6457_vm7, %v12081_v55, -1e+30  ;;  %v6577_v12 = vsel %vm3707_vm4, %v6537_v27, -inf  ;;  %v4549_v22 = vadd.f32 %v12053_v19, %v4513_v57  ;;  %8349 = vmatmul.mubr.msk.f32.vlgmr.msra.gmra.mrb[102].mxu1 %vm3707_vm4, %v4545_v17  ;;  %v6559_v13 = vsel %vm3707_vm4, %v4546_v49, -inf }
 0xcce   :  { %v6560_v8 = vsel %vm3707_vm4, %v4547_v29, -inf  ;;  %v4550_v35 = vadd.f32 %v12053_v19, %v4514_v2  ;;  %v4551_v28 = vadd.f32 %v12053_v19, %v4515_v11  ;;  %8351 = vmatprep.mubr.msk.f32.mxu1 %vm3707_vm4, %v4546_v49  ;;  %v6561_v61 = vsel %vm3707_vm4, %v4548_v34, -inf }
 0xccf   :  { %v6563_v23 = vsel %vm3707_vm4, %v4549_v22, -inf  ;;  %v4552_v62 = vadd.f32 %v12053_v19, %v4516_v38  ;;  %v4553_v24 = vadd.f32 %v12053_v19, %v4517_v43  ;;  %v6562_v40 = vmax.f32 %v6557_v63, %v6561_v61 }
 0xcd0   :  { %v6564_v57 = vmax.f32 %v6558_v7, %v6563_v23  ;;  %v6565_v25 = vsel %vm3707_vm4, %v4550_v35, -inf  ;;  %v6567_v56 = vsel %vm3707_vm4, %v4551_v28, -inf  ;;  %v4554_v38 = vadd.f32 %v12053_v19, %v4518_v42 }
 0xcd1   :  { %v6566_v10 = vmax.f32 %v6559_v13, %v6565_v25  ;;  %v6568_v2 = vmax.f32 %v6560_v8, %v6567_v56  ;;  %v6569_v11 = vsel %vm3707_vm4, %v4552_v62, -inf  ;;  %v6571_v17 = vsel %vm3707_vm4, %v4553_v24, -inf  ;;  %8352 = vmatmul.mubr.msk.f32.gmra.mrb[104].mxu1 %vm3707_vm4, %v4547_v29 }
 0xcd2   :  { %v6570_v27 = vmax.f32 %v6562_v40, %v6569_v11  ;;  %v6572_v37 = vmax.f32 %v6564_v57, %v6571_v17  ;;  %v4555_v43 = vadd.f32 %v12053_v19, %v4519_v14  ;;  %8354 = vmatprep.mubr.msk.f32.mxu1 %vm3707_vm4, %v4548_v34  ;;  %v12122_v6 = vadd.f32 %v12053_v19, %v4524_v36 }
 0xcd3   :  { %v12125_v7 = vadd.f32 %v12053_v19, %v4525_v26  ;;  %v12128_v49 = vadd.f32 %v12053_v19, %v4526_v16  ;;  %v12131_v63 = vadd.f32 %v12053_v19, %v4527_v50  ;;  %v6573_v42 = vsel %vm3707_vm4, %v4554_v38, -inf }
 0xcd4   :  { %v6578_v29 = vmax.f32 %v6570_v27, %v6577_v12  ;;  %v6580_v13 = vmax.f32 %v6572_v37, %v12088_v4  ;;  %v6575_v14 = vsel %vm3707_vm4, %v4555_v43, -inf  ;;  %v6574_v34 = vmax.f32 %v6566_v10, %v6573_v42 }
 0xcd5   :  { %v6576_v8 = vmax.f32 %v6568_v2, %v6575_v14  ;;  %v6594_v36 = vsel %vm3707_vm4, %v12122_v6, -inf  ;;  %v6595_v26 = vsel %vm3707_vm4, %v12125_v7, -inf  ;;  %8355 = vmatmul.mubr.msk.f32.gmra.mrb[106].mxu1 %vm3707_vm4, %v4549_v22  ;;  %v6596_v50 = vsel %vm3707_vm4, %v12128_v49, -inf }
 0xcd6   :  { %v6585_v16 = vmax.f32 %v6578_v29, %v6580_v13  ;;  %v6597_v12 = vsel %vm3707_vm4, %v12131_v63, -inf  ;;  %v12147_v61 = vadd.f32 %v12053_v19, %v12055_v45  ;;  %8357 = vmatprep.mubr.msk.f32.mxu1 %vm3707_vm4, %v4550_v35  ;;  %v6582_v23 = vmax.f32 %v6574_v34, %v12088_v4 }
 0xcd7   :  { %v6584_v40 = vmax.f32 %v6576_v8, %v12088_v4  ;;  %v12154_v22 = vadd.f32 %v12053_v19, %v12057_v54  ;;  %v12158_v57 = vadd.f32 %v12053_v19, %v12059_v52  ;;  %v4567_v45 = vadd.f32 %v12053_v19, %v12061_v44 }
 0xcd8   :  { %v6598_v25 = vsel %vm3707_vm4, %v12147_v61, -inf  ;;  %v4568_v35 = vadd.f32 %v12053_v19, %v12063_v58  ;;  %v4569_v56 = vadd.f32 %v12053_v19, %v12065_v9  ;;  %v4570_v29 = vadd.f32 %v12053_v19, %v12067_v31 }
 0xcd9   :  { %v6586_v10 = vmax.f32 %v6582_v23, %v6584_v40  ;;  %v6599_v2 = vmax.f32 %v6594_v36, %v6598_v25  ;;  %v6600_v54 = vsel %vm3707_vm4, %v12154_v22, -inf  ;;  %v6602_v52 = vsel %vm3707_vm4, %v12158_v57, -inf  ;;  %8358 = vmatmul.mubr.msk.f32.gmra.mrb[108].mxu1 %vm3707_vm4, %v4551_v28 }
 0xcda   :  { %v6601_v11 = vmax.f32 %v6595_v26, %v6600_v54  ;;  %v6603_v17 = vmax.f32 %v6596_v50, %v6602_v52  ;;  %v6604_v44 = vsel %vm3707_vm4, %v4567_v45, -inf  ;;  %v6606_v27 = vsel %vm3707_vm4, %v4568_v35, -inf  ;;  %8360 = vmatprep.mubr.msk.f32.mxu1 %vm3707_vm4, %v4552_v62 }
 0xcdb   :  { %v6605_v58 = vmax.f32 %v6597_v12, %v6604_v44  ;;  %v6607_v9 = vmax.f32 %v6599_v2, %v6606_v27  ;;  %v6608_v37 = vsel %vm3707_vm4, %v4569_v56, -inf  ;;  %v6614_v13 = vsel %vm3707_vm4, %v12093_v1, -inf }
 0xcdc   :  { %v6609_v42 = vmax.f32 %v6601_v11, %v6608_v37  ;;  %v4571_v28 = vadd.f32 %v12053_v19, %v12069_v39  ;;  %v6587_v14 = vmax.f32 %v6585_v16, %v6586_v10  ;;  %v6610_v8 = vsel %vm3707_vm4, %v4570_v29, -inf }
 0xcdd   :  { %v6615_v34 = vmax.f32 %v6607_v9, %v6614_v13  ;;  %8361 = vmatmul.mubr.msk.f32.gmra.mrb[110].mxu1 %vm3707_vm4, %v4553_v24  ;;  %v6611_v36 = vmax.f32 %v6603_v17, %v6610_v8  ;;  %v4557_v40 = vadd.f32 %v12053_v19, %v12044_v30 }
 0xcde   :  { %v6617_v62 = vmax.f32 %v6609_v42, %v12088_v4  ;;  %v6612_v26 = vsel %vm3707_vm4, %v4571_v28, -inf  ;;  %v6588_v50 = vrot.slane %v6587_v14, 4  ;;  %8363 = vmatprep.mubr.msk.f32.mxu1 %vm3707_vm4, %v4554_v38  ;;  %v4558_v38 = vadd.f32 %v12053_v19, %v12046_v46 }
 0xcdf   :  { %v6613_v31 = vmax.f32 %v6605_v58, %v6612_v26  ;;  %v6619_v12 = vmax.f32 %v6611_v36, %v12088_v4 }
 0xce0   :  { %v6622_v1 = vmax.f32 %v6615_v34, %v6617_v62  ;;  %v6589_v23 = vmax.f32 %v6587_v14, %v6588_v50 }
 0xce1   :  { %v6621_v39 = vmax.f32 %v6613_v31, %v12088_v4  ;;  %8364 = vmatmul.mubr.msk.f32.gmra.mrb[112].mxu1 %vm3707_vm4, %v4555_v43  ;;  %v4559_v43 = vadd.f32 %v12053_v19, %v12048_v32 }
 0xce2   :  { %8366 = vmatprep.mubr.msk.f32.mxu1 %vm3707_vm4, %v12078_v5  ;;  %v6590_v16 = vrot.slane %v6589_v23, 2 }
 0xce3   :  { %v6623_v24 = vmax.f32 %v6619_v12, %v6621_v39 }
 0xce4   :  { %v6591_v10 = vmax.f32 %v6589_v23, %v6590_v16 }
 0xce5   :  { %v6624_v25 = vmax.f32 %v6622_v1, %v6623_v24  ;;  %8367 = vmatmul.mubr.msk.f32.gmra.mrb[114].mxu1 %vm3707_vm4, %v4557_v40 }
 0xce6   :  { %8369 = vmatprep.mubr.msk.f32.mxu1 %vm3707_vm4, %v4558_v38  ;;  %v6592_v30 = vrot.slane %v6591_v10, 1 }
 0xce7   :  { %v6625_v2 = vrot.slane %v6624_v25, 4 }
 0xce8   :  { %v6593_v46 = vmax.f32 %v6591_v10, %v6592_v30 }
 0xce9   :  { %v6626_v54 = vmax.f32 %v6624_v25, %v6625_v2  ;;  %8370 = vmatmul.mubr.msk.f32.gmra.mrb[116].mxu1 %vm3707_vm4, %v4559_v43 }
 0xcea   :  { %8372 = vmatprep.mubr.msk.f32.mxu1 %vm3707_vm4, %v12122_v6  ;;  %v4573_v6 = vadd.f32 %v12053_v19, %v12071_v0 }
 0xceb   :  { %v6627_v5 = vrot.slane %v6626_v54, 2 }
 0xced   :  { %v6628_v52 = vmax.f32 %v6626_v54, %v6627_v5  ;;  %8373 = vmatmul.mubr.msk.f32.gmra.mrb[118].mxu1 %vm3707_vm4, %v12125_v7  ;;  %v4574_v7 = vadd.f32 %v12053_v19, %v12074_v59 }
 0xcee   :  { %8375 = vmatprep.mubr.msk.f32.mxu1 %vm3707_vm4, %v12128_v49  ;;  %v4575_v49 = vadd.f32 %v12053_v19, %v12040_v33 }
 0xcef   :  { %v6629_v11 = vrot.slane %v6628_v52, 1 }
 0xcf1   :  { %v6630_v17 = vmax.f32 %v6628_v52, %v6629_v11  ;;  %8376 = vmatmul.mubr.msk.f32.gmra.mrb[120].mxu1 %vm3707_vm4, %v12131_v63 }
 0xcf2   :  { %8378 = vmatprep.mubr.msk.f32.mxu1 %vm3707_vm4, %v12147_v61 }
 0xcf3   :  { %v12213_v32 = vsel %vm6358_vm14, %v6593_v46, %v6630_v17  ;;  %v7886_v17 = vld [vmem:[%s13654_s7 + $0xa0] sm:$0xff] }
 0xcf5   :  { %8379 = vmatmul.mubr.msk.f32.gmra.mrb[122].mxu1 %vm3707_vm4, %v12154_v22 }
 0xcf6   :  { %8381 = vmatprep.mubr.msk.f32.mxu1 %vm3707_vm4, %v12158_v57 }
 0xcf9   :  { %8382 = vmatmul.mubr.msk.f32.gmra.mrb[124].mxu1 %vm3707_vm4, %v4567_v45 }
 0xcfa   :  { %8384 = vmatprep.mubr.msk.f32.mxu1 %vm3707_vm4, %v4568_v35 }
 0xcfd   :  { %8385 = vmatmul.mubr.msk.f32.gmra.mrb[126].mxu1 %vm3707_vm4, %v4569_v56 }
 0xcfe   :  { %8387 = vmatprep.mubr.msk.f32.mxu1 %vm3707_vm4, %v4570_v29 }
 0xd01   :  { %8388 = vmatmul.mubr.msk.f32.gmra.mrb[128].mxu1 %vm3707_vm4, %v4571_v28 }
 0xd02   :  { %8390 = vmatprep.mubr.msk.f32.mxu1 %vm3707_vm4, %v12081_v55 }
 0xd05   :  { %8391 = vmatmul.mubr.msk.f32.gmra.mrb[130].mxu1 %vm3707_vm4, %v4573_v6  ;;  %v7887_v6 = vld [vmem:[%s13654_s7 + $0xa8] sm:$0xff] }
 0xd06   :  { %8393 = vmatprep.mubr.msk.f32.mxu1 %vm3707_vm4, %v4574_v7 }
 0xd09   :  { %8394 = vmatmul.mubr.msk.f32.gmra.mrb[132].mxu1 %vm3707_vm4, %v4575_v49  ;;  %v8935_v49 = vpack.c.bf16 %v7887_v6, %v7886_v17  ;;  %v14110_v17 = vld [vmem:[#allocation40_spill] sm:$0xff]  ;;  %v14111_v6 = vld [vmem:[#allocation38_spill] sm:$0xff] }
 0xd0a   :  { %4976 = vmatprep.mubr.f32.mxu1 %v11275_v60 }
 0xda0   :  { %v8350_v63 = vpop.f32.mrb[102].mxu1 }
 0xda1   :  { %v4749_v61 = vpop.f32.mrb[103].mxu1 }
 0xda2   :  { %v8829_v55 = vpack.c.bf16 %v8350_v63, %v4749_v61  ;;  %v7888_v63 = vld [vmem:[%s13654_s7 + $0xb0] sm:$0xff]  ;;  %v7889_v61 = vld [vmem:[%s13654_s7 + $0xb8] sm:$0xff] }
 0xda4   :  { %v8353_v22 = vpop.f32.mrb[104].mxu1  ;;  %8830 = vmatpush1.bf16.msra.mxu1 %v8829_v55  ;;  %v8938_v55 = vpack.c.bf16 %v7889_v61, %v7888_v63  ;;  %v14114_v63 = vld [vmem:[#allocation42_spill] sm:$0xff]  ;;  %v14115_v61 = vld [vmem:[#allocation27_spill] sm:$0xff] }
 0xda5   :  { %v4759_v0 = vpop.f32.mrb[105].mxu1  ;;  %8831 = vmatprep.subr.bf16.mxu1 %v13910_v18 }
 0xda6   :  { %v8832_v59 = vpack.c.bf16 %v8353_v22, %v4759_v0  ;;  %v7890_v22 = vld [vmem:[%s13654_s7 + $0xc0] sm:$0xff]  ;;  %v7891_v0 = vld [vmem:[%s13654_s7 + $0xc8] sm:$0xff] }
 0xda8   :  { %v8356_v57 = vpop.f32.mrb[106].mxu1  ;;  %8833 = vmatpush1.bf16.msra.mxu1 %v8832_v59  ;;  %v8941_v59 = vpack.c.bf16 %v7891_v0, %v7890_v22  ;;  %v14117_v22 = vld [vmem:[#allocation64_spill] sm:$0xff]  ;;  %v14118_v0 = vld [vmem:[#allocation63_spill] sm:$0xff] }
 0xda9   :  { %v4769_v45 = vpop.f32.mrb[107].mxu1  ;;  %8834 = vmatprep.subr.bf16.mxu1 %v13910_v18 }
 0xdaa   :  { %v8835_v35 = vpack.c.bf16 %v8356_v57, %v4769_v45  ;;  %v7892_v57 = vld [vmem:[%s13654_s7 + $0xd0] sm:$0xff]  ;;  %v7893_v45 = vld [vmem:[%s13654_s7 + $0xd8] sm:$0xff] }
 0xdac   :  { %v8359_v33 = vpop.f32.mrb[108].mxu1  ;;  %8836 = vmatpush1.bf16.msra.mxu1 %v8835_v35  ;;  %v14090_v35 = vld [vmem:[#allocation49_spill] sm:$0xff] }
 0xdad   :  { %v4779_v19 = vpop.f32.mrb[109].mxu1  ;;  %8837 = vmatprep.subr.bf16.mxu1 %v13910_v18 }
 0xdae   :  { %v8838_v56 = vpack.c.bf16 %v8359_v33, %v4779_v19  ;;  %v14091_v33 = vld [vmem:[#allocation48_spill] sm:$0xff]  ;;  %v8944_v19 = vpack.c.bf16 %v7893_v45, %v7892_v57  ;;  %v14120_v57 = vld [vmem:[#allocation69_spill] sm:$0xff] }
 0xdaf   :  { %v14121_v45 = vld [vmem:[#allocation68_spill] sm:$0xff] }
 0xdb0   :  { %v8362_v44 = vpop.f32.mrb[110].mxu1  ;;  %8839 = vmatpush1.bf16.msra.mxu1 %v8838_v56  ;;  %v7894_v56 = vld [vmem:[%s13654_s7 + $0xe0] sm:$0xff] }
 0xdb1   :  { %v4789_v27 = vpop.f32.mrb[111].mxu1  ;;  %8840 = vmatprep.subr.bf16.mxu1 %v13910_v18 }
 0xdb2   :  { %v8841_v58 = vpack.c.bf16 %v8362_v44, %v4789_v27  ;;  %v7895_v44 = vld [vmem:[%s13654_s7 + $0xe8] sm:$0xff]  ;;  %v14092_v27 = vld [vmem:[#allocation51_spill] sm:$0xff] }
 0xdb4   :  { %v8365_v9 = vpop.f32.mrb[112].mxu1  ;;  %8842 = vmatpush1.bf16.msra.mxu1 %v8841_v58  ;;  %v14093_v58 = vld [vmem:[#allocation50_spill] sm:$0xff] }
 0xdb5   :  { %v4799_v37 = vpop.f32.mrb[113].mxu1  ;;  %8843 = vmatprep.subr.bf16.mxu1 %v13910_v18 }
 0xdb6   :  { %v8844_v29 = vpack.c.bf16 %v8365_v9, %v4799_v37  ;;  %v8947_v9 = vpack.c.bf16 %v7895_v44, %v7894_v56  ;;  %v7896_v37 = vld [vmem:[%s13654_s7 + $0xf0] sm:$0xff]  ;;  %v14123_v56 = vld [vmem:[#allocation67_spill] sm:$0xff] }
 0xdb7   :  { %v14124_v44 = vld [vmem:[#allocation74_spill] sm:$0xff] }
 0xdb8   :  { %v8368_v13 = vpop.f32.mrb[114].mxu1  ;;  %8845 = vmatpush1.bf16.msra.mxu1 %v8844_v29  ;;  %v7897_v29 = vld [vmem:[%s13654_s7 + $0xf8] sm:$0xff] }
 0xdb9   :  { %v4809_v42 = vpop.f32.mrb[115].mxu1  ;;  %8846 = vmatprep.subr.bf16.mxu1 %v13910_v18 }
 0xdba   :  { %v8847_v28 = vpack.c.bf16 %v8368_v13, %v4809_v42  ;;  %v14094_v13 = vld [vmem:[#allocation53_spill] sm:$0xff]  ;;  %v14095_v42 = vld [vmem:[#allocation54_spill] sm:$0xff] }
 0xdbc   :  { %v8371_v14 = vpop.f32.mrb[116].mxu1  ;;  %8848 = vmatpush1.bf16.msra.mxu1 %v8847_v28  ;;  %v8950_v28 = vpack.c.bf16 %v7897_v29, %v7896_v37  ;;  %v14126_v37 = vld [vmem:[#allocation70_spill] sm:$0xff]  ;;  %v14127_v29 = vld [vmem:[#allocation71_spill] sm:$0xff] }
 0xdbd   :  { %v4819_v34 = vpop.f32.mrb[117].mxu1  ;;  %8849 = vmatprep.subr.bf16.mxu1 %v13910_v18 }
 0xdbe   :  { %v8850_v8 = vpack.c.bf16 %v8371_v14, %v4819_v34  ;;  %v7898_v14 = vld [vmem:[%s13654_s7 + $0x100] sm:$0xff]  ;;  %v7899_v34 = vld [vmem:[%s13654_s7 + $0x108] sm:$0xff] }
 0xdc0   :  { %v8374_v62 = vpop.f32.mrb[118].mxu1  ;;  %8851 = vmatpush1.bf16.msra.mxu1 %v8850_v8  ;;  %v14096_v8 = vld [vmem:[#allocation56_spill] sm:$0xff] }
 0xdc1   :  { %v4829_v36 = vpop.f32.mrb[119].mxu1  ;;  %8852 = vmatprep.subr.bf16.mxu1 %v13910_v18 }
 0xdc2   :  { %v8853_v26 = vpack.c.bf16 %v8374_v62, %v4829_v36  ;;  %v14097_v62 = vld [vmem:[#allocation55_spill] sm:$0xff]  ;;  %v8953_v36 = vpack.c.bf16 %v7899_v34, %v7898_v14  ;;  %v14129_v14 = vld [vmem:[#allocation36_spill] sm:$0xff]  ;;  %v14130_v34 = vld [vmem:[#allocation73_spill] sm:$0xff] }
 0xdc4   :  { %v8377_v50 = vpop.f32.mrb[120].mxu1  ;;  %8854 = vmatpush1.bf16.msra.mxu1 %v8853_v26  ;;  %v7900_v26 = vld [vmem:[%s13654_s7 + $0x110] sm:$0xff] }
 0xdc5   :  { %v4839_v31 = vpop.f32.mrb[121].mxu1  ;;  %8855 = vmatprep.subr.bf16.mxu1 %v13910_v18 }
 0xdc6   :  { %v8856_v1 = vpack.c.bf16 %v8377_v50, %v4839_v31  ;;  %v7901_v50 = vld [vmem:[%s13654_s7 + $0x118] sm:$0xff] }
 0xdc7   :  { %v14098_v31 = vld [vmem:[#allocation58_spill] sm:$0xff] }
 0xdc8   :  { %v8380_v12 = vpop.f32.mrb[122].mxu1  ;;  %8857 = vmatpush1.bf16.msra.mxu1 %v8856_v1  ;;  %v14099_v1 = vld [vmem:[#allocation57_spill] sm:$0xff] }
 0xdc9   :  { %v4849_v23 = vpop.f32.mrb[123].mxu1  ;;  %8858 = vmatprep.subr.bf16.mxu1 %v13910_v18 }
 0xdca   :  { %v8859_v39 = vpack.c.bf16 %v8380_v12, %v4849_v23  ;;  %v8956_v12 = vpack.c.bf16 %v7901_v50, %v7900_v26  ;;  %v7902_v23 = vld [vmem:[%s13654_s7 + $0x120] sm:$0xff] }
 0xdcb   :  { %v14132_v50 = vld [vmem:[#allocation19_spill] sm:$0xff] }
 0xdcc   :  { %v8383_v24 = vpop.f32.mrb[124].mxu1  ;;  %8860 = vmatpush1.bf16.msra.mxu1 %v8859_v39  ;;  %v7903_v39 = vld [vmem:[%s13654_s7 + $0x128] sm:$0xff] }
 0xdcd   :  { %v4859_v16 = vpop.f32.mrb[125].mxu1  ;;  %8861 = vmatprep.subr.bf16.mxu1 %v13910_v18 }
 0xdce   :  { %v8862_v40 = vpack.c.bf16 %v8383_v24, %v4859_v16  ;;  %v14100_v24 = vld [vmem:[#allocation60_spill] sm:$0xff]  ;;  %v14101_v16 = vld [vmem:[#allocation62_spill] sm:$0xff] }
 0xdd0   :  { %v8386_v38 = vpop.f32.mrb[126].mxu1  ;;  %8863 = vmatpush1.bf16.msra.mxu1 %v8862_v40  ;;  %v8959_v40 = vpack.c.bf16 %v7903_v39, %v7902_v23  ;;  %v14133_v23 = vld [vmem:[#allocation21_spill] sm:$0xff] }
 0xdd1   :  { %v4869_v25 = vpop.f32.mrb[127].mxu1  ;;  %8864 = vmatprep.subr.bf16.mxu1 %v13910_v18  ;;  %v6384_v39 = vsel %vm69_vm0, %v14133_v23, -inf }
 0xdd2   :  { %v8865_v10 = vpack.c.bf16 %v8386_v38, %v4869_v25  ;;  %v7904_v38 = vld [vmem:[%s13654_s7 + $0x130] sm:$0xff]  ;;  %v7905_v25 = vld [vmem:[%s13654_s7 + $0x138] sm:$0xff] }
 0xdd4   :  { %v8389_v2 = vpop.f32.mrb[128].mxu1  ;;  %8866 = vmatpush1.bf16.msra.mxu1 %v8865_v10  ;;  %v14102_v10 = vld [vmem:[#allocation59_spill] sm:$0xff] }
 0xdd5   :  { %v4879_v43 = vpop.f32.mrb[129].mxu1  ;;  %8867 = vmatprep.subr.bf16.mxu1 %v13910_v18 }
 0xdd6   :  { %v8868_v54 = vpack.c.bf16 %v8389_v2, %v4879_v43  ;;  %v14103_v2 = vld [vmem:[#allocation61_spill] sm:$0xff]  ;;  %v8962_v43 = vpack.c.bf16 %v7905_v25, %v7904_v38  ;;  %v14135_v25 = vld [vmem:[#allocation76_spill] sm:$0xff] }
 0xdd8   :  { %v8392_v30 = vpop.f32.mrb[130].mxu1  ;;  %8869 = vmatpush1.bf16.msra.mxu1 %v8868_v54  ;;  %v14104_v54 = vld [vmem:[#allocation32_spill] sm:$0xff] }
 0xdd9   :  { %v4889_v5 = vpop.f32.mrb[131].mxu1  ;;  %8870 = vmatprep.subr.bf16.mxu1 %v13910_v18 }
 0xdda   :  { %v8871_v52 = vpack.c.bf16 %v8392_v30, %v4889_v5  ;;  %v14105_v30 = vld [vmem:[#allocation31_spill] sm:$0xff]  ;;  %v14106_v5 = vld [vmem:[#allocation34_spill] sm:$0xff] }
 0xddc   :  { %v8395_v46 = vpop.f32.mrb[132].mxu1  ;;  %8872 = vmatpush1.bf16.msra.mxu1 %v8871_v52  ;;  %v14107_v52 = vld [vmem:[#allocation33_spill] sm:$0xff] }
 0xddd   :  { %v4899_v11 = vpop.f32.mrb[133].mxu1  ;;  %8873 = vmatprep.subr.bf16.mxu1 %v13910_v18 }
 0xdde   :  { %v8874_v7 = vpack.c.bf16 %v8395_v46, %v4899_v11  ;;  %v14108_v46 = vld [vmem:[#allocation39_spill] sm:$0xff] }
 0xddf   :  { %v14109_v11 = vld [vmem:[#allocation35_spill] sm:$0xff] }
 0xde0   :  { %8875 = vmatpush1.bf16.msra.mxu1 %v8874_v7  ;;  %v14112_v7 = vld [vmem:[#allocation41_spill] sm:$0xff] }
 0xde1   :  { %8934 = vmatprep.subr.bf16.mxu1 %v13910_v18 }
 0xde3   :  { %4977 = vmatmul.mubr.f32.vlgmr.msra.gmra.mrb[134].mxu1 %v11272_v21 }
 0xde4   :  { %4981 = vmatprep.mubr.f32.mxu1 %v11283_v3  ;;  %8936 = vmatpush1.bf16.msra.mxu1 %v8935_v49  ;;  %v14113_v49 = vld [vmem:[#allocation28_spill] sm:$0xff] }
 0xde5   :  { %8937 = vmatprep.subr.bf16.mxu1 %v13910_v18 }
 0xde7   :  { %4982 = vmatmul.mubr.f32.gmra.mrb[136].mxu1 %v11291_v53 }
 0xde8   :  { %4986 = vmatprep.mubr.f32.mxu1 %v11296_v47  ;;  %8939 = vmatpush1.bf16.msra.mxu1 %v8938_v55  ;;  %v14116_v55 = vld [vmem:[#allocation29_spill] sm:$0xff] }
 0xde9   :  { %8940 = vmatprep.subr.bf16.mxu1 %v13910_v18 }
 0xdeb   :  { %4987 = vmatmul.mubr.f32.gmra.mrb[138].mxu1 %v14090_v35 }
 0xdec   :  { %4991 = vmatprep.mubr.f32.mxu1 %v14091_v33  ;;  %8942 = vmatpush1.bf16.msra.mxu1 %v8941_v59  ;;  %v14119_v59 = vld [vmem:[#allocation65_spill] sm:$0xff] }
 0xded   :  { %8943 = vmatprep.subr.bf16.mxu1 %v13910_v18 }
 0xdef   :  { %4992 = vmatmul.mubr.f32.gmra.mrb[140].mxu1 %v14092_v27 }
 0xdf0   :  { %4996 = vmatprep.mubr.f32.mxu1 %v14093_v58  ;;  %8945 = vmatpush1.bf16.msra.mxu1 %v8944_v19  ;;  %v14122_v19 = vld [vmem:[#allocation66_spill] sm:$0xff] }
 0xdf1   :  { %8946 = vmatprep.subr.bf16.mxu1 %v13910_v18 }
 0xdf3   :  { %4997 = vmatmul.mubr.f32.gmra.mrb[142].mxu1 %v14094_v13 }
 0xdf4   :  { %5001 = vmatprep.mubr.f32.mxu1 %v14095_v42  ;;  %8948 = vmatpush1.bf16.msra.mxu1 %v8947_v9  ;;  %v14125_v9 = vld [vmem:[#allocation72_spill] sm:$0xff] }
 0xdf5   :  { %8949 = vmatprep.subr.bf16.mxu1 %v13910_v18 }
 0xdf7   :  { %5002 = vmatmul.mubr.f32.gmra.mrb[144].mxu1 %v14096_v8 }
 0xdf8   :  { %5006 = vmatprep.mubr.f32.mxu1 %v14097_v62  ;;  %8951 = vmatpush1.bf16.msra.mxu1 %v8950_v28  ;;  %v14128_v28 = vld [vmem:[#allocation77_spill] sm:$0xff] }
 0xdf9   :  { %8952 = vmatprep.subr.bf16.mxu1 %v13910_v18 }
 0xdfb   :  { %5007 = vmatmul.mubr.f32.gmra.mrb[146].mxu1 %v14098_v31 }
 0xdfc   :  { %5011 = vmatprep.mubr.f32.mxu1 %v14099_v1  ;;  %8954 = vmatpush1.bf16.msra.mxu1 %v8953_v36  ;;  %v14131_v36 = vld [vmem:[#allocation17_spill] sm:$0xff] }
 0xdfd   :  { %8955 = vmatprep.subr.bf16.mxu1 %v13910_v18  ;;  %v6368_v26 = vsel %vm69_vm0, %v14131_v36, -inf }
 0xdff   :  { %5012 = vmatmul.mubr.f32.gmra.mrb[148].mxu1 %v14100_v24 }
 0xe00   :  { %5016 = vmatprep.mubr.f32.mxu1 %v14101_v16  ;;  %8957 = vmatpush1.bf16.msra.mxu1 %v8956_v12  ;;  %v6369_v12 = vsel %vm69_vm0, %v14132_v50, -inf }
 0xe01   :  { %8958 = vmatprep.subr.bf16.mxu1 %v13910_v18 }
 0xe03   :  { %5017 = vmatmul.mubr.f32.gmra.mrb[150].mxu1 %v14102_v10 }
 0xe04   :  { %5021 = vmatprep.mubr.f32.mxu1 %v14103_v2  ;;  %8960 = vmatpush1.bf16.msra.mxu1 %v8959_v40  ;;  %v14134_v40 = vld [vmem:[#allocation23_spill] sm:$0xff] }
 0xe05   :  { %8961 = vmatprep.subr.bf16.mxu1 %v13910_v18  ;;  %v6385_v38 = vsel %vm69_vm0, %v14134_v40, -inf  ;;  %v14142_v40 = vld [vmem:[#allocation20_spill] sm:$0xff] }
 0xe07   :  { %5022 = vmatmul.mubr.f32.gmra.mrb[152].mxu1 %v14104_v54 }
 0xe08   :  { %5026 = vmatprep.mubr.f32.mxu1 %v14105_v30  ;;  %8963 = vmatpush1.bf16.msra.mxu1 %v8962_v43  ;;  %v6370_v43 = vmax.f32 %v6368_v26, %v6369_v12  ;;  %v14144_v12 = vld [vmem:[#allocation24_spill] sm:$0xff] }
 0xe09   :  { %8964 = vmatprep.subr.bf16.mxu1 %v13910_v18 }
 0xe0b   :  { %5027 = vmatmul.mubr.f32.gmra.mrb[154].mxu1 %v14106_v5 }
 0xe0c   :  { %5031 = vmatprep.mubr.f32.mxu1 %v14107_v52 }
 0xe0f   :  { %5032 = vmatmul.mubr.f32.gmra.mrb[156].mxu1 %v14108_v46 }
 0xe10   :  { %5036 = vmatprep.mubr.f32.mxu1 %v14109_v11 }
 0xe13   :  { %5037 = vmatmul.mubr.f32.gmra.mrb[158].mxu1 %v14110_v17 }
 0xe14   :  { %5041 = vmatprep.mubr.f32.mxu1 %v14111_v6 }
 0xe17   :  { %5042 = vmatmul.mubr.f32.gmra.mrb[160].mxu1 %v14112_v7 }
 0xe18   :  { %5046 = vmatprep.mubr.f32.mxu1 %v14113_v49 }
 0xe1b   :  { %5047 = vmatmul.mubr.f32.gmra.mrb[162].mxu1 %v11490_v41 }
 0xe1c   :  { %5051 = vmatprep.mubr.f32.mxu1 %v14114_v63 }
 0xe1f   :  { %5052 = vmatmul.mubr.f32.gmra.mrb[164].mxu1 %v14115_v61  ;;  %v14152_v61 = vld [vmem:[#allocation82_spill] sm:$0xff] }
 0xe20   :  { %5056 = vmatprep.mubr.f32.mxu1 %v11510_v15 }
 0xe23   :  { %5057 = vmatmul.mubr.f32.gmra.mrb[166].mxu1 %v14116_v55 }
 0xe24   :  { %5061 = vmatprep.mubr.f32.mxu1 %v14117_v22 }
 0xe27   :  { %5062 = vmatmul.mubr.f32.gmra.mrb[168].mxu1 %v14118_v0  ;;  %v14148_v0 = vld [vmem:[#allocation78_spill] sm:$0xff] }
 0xe28   :  { %5066 = vmatprep.mubr.f32.mxu1 %v14119_v59 }
 0xe2b   :  { %5067 = vmatmul.mubr.f32.gmra.mrb[170].mxu1 %v14120_v57  ;;  %v14147_v57 = vld [vmem:[#allocation79_spill] sm:$0xff] }
 0xe2c   :  { %5071 = vmatprep.mubr.f32.mxu1 %v14121_v45  ;;  %v6371_v45 = vrot.slane %v6370_v43, 4 }
 0xe2f   :  { %5072 = vmatmul.mubr.f32.gmra.mrb[172].mxu1 %v14122_v19 }
 0xe30   :  { %5076 = vmatprep.mubr.f32.mxu1 %v14123_v56  ;;  %v14141_v56 = vld [vmem:[#allocation81_spill] sm:$0xff] }
 0xe33   :  { %5077 = vmatmul.mubr.f32.gmra.mrb[174].mxu1 %v14124_v44  ;;  %v14140_v44 = vld [vmem:[#allocation15_spill] sm:$0xff] }
 0xe34   :  { %5081 = vmatprep.mubr.f32.mxu1 %v14125_v9  ;;  %v14139_v9 = vld [vmem:[#allocation13_spill] sm:$0xff]  ;;  %v6350_v23 = vsel %vm69_vm0, %v14140_v44, -inf  ;;  %v6372_v44 = vmax.f32 %v6370_v43, %v6371_v45 }
 0xe35   :  { %v6349_v50 = vsel %vm69_vm0, %v14139_v9, -inf }
 0xe36   :  { %v6351_v19 = vmax.f32 %v6349_v50, %v6350_v23 }
 0xe37   :  { %5082 = vmatmul.mubr.f32.gmra.mrb[176].mxu1 %v14126_v37  ;;  %v14138_v37 = vld [vmem:[#allocation11_spill] sm:$0xff] }
 0xe38   :  { %5086 = vmatprep.mubr.f32.mxu1 %v14127_v29  ;;  %v14136_v29 = vld [vmem:[#allocation75_spill] sm:$0xff]  ;;  %v6334_v36 = vsel %vm69_vm0, %v14138_v37, -inf  ;;  %v6352_v55 = vrot.slane %v6351_v19, 4 }
 0xe3b   :  { %5087 = vmatmul.mubr.f32.gmra.mrb[178].mxu1 %v14128_v28  ;;  %v6386_v28 = vmax.f32 %v6384_v39, %v6385_v38  ;;  %v14145_v39 = vld [vmem:[#allocation22_spill] sm:$0xff] }
 0xe3c   :  { %5091 = vmatprep.mubr.f32.mxu1 %v14129_v14  ;;  %v14137_v14 = vld [vmem:[#allocation9_spill] sm:$0xff]  ;;  %v6377_v38 = vmax.f32 %v14145_v39, %v14144_v12  ;;  %v6353_v39 = vmax.f32 %v6351_v19, %v6352_v55  ;;  %v14155_v19 = vld [vmem:[#allocation87_spill] sm:$0xff] }
 0xe3d   :  { %v6387_v37 = vrot.slane %v6386_v28, 4 }
 0xe3e   :  { %v6378_v59 = vrot.slane %v6377_v38, 4 }
 0xe3f   :  { %5092 = vmatmul.mubr.f32.gmra.mrb[180].mxu1 %v14130_v34  ;;  %v6333_v34 = vsel %vm69_vm0, %v14137_v14, -inf  ;;  %v14146_v14 = vld [vmem:[#allocation80_spill] sm:$0xff] }
 0xe40   :  { %5096 = vmatprep.mubr.f32.mxu1 %v14135_v25  ;;  %v14143_v25 = vld [vmem:[#allocation18_spill] sm:$0xff]  ;;  %v6379_v12 = vmax.f32 %v6377_v38, %v6378_v59  ;;  %v14154_v38 = vld [vmem:[#allocation88_spill] sm:$0xff] }
 0xe41   :  { %v6361_v26 = vmax.f32 %v14143_v25, %v14142_v40  ;;  %v14149_v25 = vld [vmem:[#allocation85_spill] sm:$0xff] }
 0xe42   :  { %v6380_v15 = vrot.slane %v6379_v12, 2 }
 0xe43   :  { %5097 = vmatmul.mubr.f32.gmra.mrb[182].mxu1 %v14136_v29  ;;  %v6335_v29 = vmax.f32 %v6333_v34, %v6334_v36  ;;  %v6362_v9 = vrot.slane %v6361_v26, 4  ;;  %v14150_v34 = vld [vmem:[#allocation83_spill] sm:$0xff]  ;;  %v6373_v36 = vrot.slane %v6372_v44, 2 }
 0xe44   :  { %5101 = vmatprep.mubr.f32.mxu1 %v14141_v56  ;;  %v6388_v56 = vmax.f32 %v6386_v28, %v6387_v37  ;;  %v6354_v37 = vrot.slane %v6353_v39, 2  ;;  %v6381_v59 = vmax.f32 %v6379_v12, %v6380_v15  ;;  %v6846_v15 = vld [vmem:[%s13654_s7] sm:$0xff] }
 0xe45   :  { %v6336_v22 = vrot.slane %v6335_v29, 4  ;;  %v6363_v40 = vmax.f32 %v6361_v26, %v6362_v9  ;;  %v6374_v45 = vmax.f32 %v6372_v44, %v6373_v36 }
 0xe46   :  { %v6389_v50 = vrot.slane %v6388_v56, 2  ;;  %v6355_v55 = vmax.f32 %v6353_v39, %v6354_v37  ;;  %v6849_v37 = vld [vmem:[%s13654_s7 + $0x18] sm:$0xff] }
 0xe47   :  { %5102 = vmatmul.mubr.f32.gmra.mrb[184].mxu1 %v14146_v14  ;;  %v6337_v23 = vmax.f32 %v6335_v29, %v6336_v22  ;;  %v14151_v14 = vld [vmem:[#allocation84_spill] sm:$0xff]  ;;  %v6375_v9 = vrot.slane %v6374_v45, 1 }
 0xe48   :  { %5106 = vmatprep.mubr.f32.mxu1 %v14147_v57  ;;  %v6364_v57 = vrot.slane %v6363_v40, 2  ;;  %v6390_v28 = vmax.f32 %v6388_v56, %v6389_v50  ;;  %v6356_v50 = vrot.slane %v6355_v55, 1 }
 0xe49   :  { %v6338_v43 = vrot.slane %v6337_v23, 2  ;;  %v6376_v44 = vmax.f32 %v6374_v45, %v6375_v9  ;;  %v6850_v9 = vld [vmem:[%s13654_s7 + $0x20] sm:$0xff] }
 0xe4a   :  { %v6365_v26 = vmax.f32 %v6363_v40, %v6364_v57  ;;  %v6847_v57 = vld [vmem:[%s13654_s7 + $0x8] sm:$0xff] }
 0xe4b   :  { %5107 = vmatmul.mubr.f32.gmra.mrb[186].mxu1 %v14148_v0  ;;  %v14153_v0 = vld [vmem:[#allocation89_spill] sm:$0xff]  ;;  %v6339_v22 = vmax.f32 %v6337_v23, %v6338_v43  ;;  %v14158_v23 = vld [vmem:[#allocation90_spill] sm:$0xff] }
 0xe4c   :  { %5111 = vmatprep.mubr.f32.mxu1 %v14149_v25  ;;  %v6366_v29 = vrot.slane %v6365_v26, 1  ;;  %v14156_v25 = vld [vmem:[#allocation86_spill] sm:$0xff] }
 0xe4d   :  { %v6340_v36 = vrot.slane %v6339_v22, 1  ;;  %v6848_v43 = vld [vmem:[%s13654_s7 + $0x10] sm:$0xff] }
 0xe4e   :  { %v6367_v40 = vmax.f32 %v6365_v26, %v6366_v29  ;;  %v6852_v29 = vld [vmem:[%s13654_s7 + $0x30] sm:$0xff] }
 0xe4f   :  { %5112 = vmatmul.mubr.f32.gmra.mrb[188].mxu1 %v14150_v34  ;;  %v6391_v34 = vrot.slane %v6390_v28, 1  ;;  %v6341_v45 = vmax.f32 %v6339_v22, %v6340_v36  ;;  %v6851_v22 = vld [vmem:[%s13654_s7 + $0x28] sm:$0xff]  ;;  %v6854_v36 = vld [vmem:[%s13654_s7 + $0x40] sm:$0xff] }
 0xe50   :  { %5116 = vmatprep.mubr.f32.mxu1 %v14151_v14  ;;  %v6382_v14 = vrot.slane %v6381_v59, 1 }
 0xe51   :  { %v6392_v56 = vmax.f32 %v6390_v28, %v6391_v34  ;;  %v6357_v34 = vmax.f32 %v6355_v55, %v6356_v50  ;;  %v8965_v28 = vpack.c.bf16 %v6847_v57, %v6846_v15  ;;  %v8971_v55 = vpack.c.bf16 %v6851_v22, %v6850_v9  ;;  %v6855_v50 = vld [vmem:[%s13654_s7 + $0x48] sm:$0xff]  ;;  %v14160_v57 = vld [vmem:[#allocation10_spill] sm:$0xff] }
 0xe52   :  { %v6383_v12 = vmax.f32 %v6381_v59, %v6382_v14  ;;  %v8968_v59 = vpack.c.bf16 %v6849_v37, %v6848_v43  ;;  %v14159_v15 = vld [vmem:[#allocation12_spill] sm:$0xff]  ;;  %v6857_v43 = vld [vmem:[%s13654_s7 + $0x58] sm:$0xff] }
 0xe53   :  { %5117 = vmatmul.mubr.f32.gmra.mrb[190].mxu1 %v14152_v61  ;;  %v14157_v61 = vld [vmem:[#allocation47_spill] sm:$0xff]  ;;  %v6394_v39 = vsel %vm6358_vm14, %v6376_v44, %v6392_v56  ;;  %v6360_v14 = vsel %vm6358_vm14, %v6341_v45, %v6357_v34  ;;  %v8977_v34 = vpack.c.bf16 %v6855_v50, %v6854_v36  ;;  %v6859_v9 = vld [vmem:[%s13654_s7 + $0x68] sm:$0xff]  ;;  %v6860_v50 = vld [vmem:[%s13654_s7 + $0x70] sm:$0xff] }
 0xe54   :  { %5121 = vmatprep.mubr.f32.mxu1 %v14153_v0  ;;  %v6393_v26 = vsel %vm6358_vm14, %v6367_v40, %v6383_v12  ;;  %v6853_v44 = vld [vmem:[%s13654_s7 + $0x38] sm:$0xff]  ;;  %v6326_v40 = vmax.f32 %v14160_v57, %v14159_v15  ;;  %v14161_v12 = vld [vmem:[#allocation16_spill] sm:$0xff] }
 0xe55   :  { %v8974_v56 = vpack.c.bf16 %v6853_v44, %v6852_v29  ;;  %v7847_v29 = vld [vmem:[%s13652_s5 + $0x40] sm:$0xff]  ;;  %v7848_v44 = vld [vmem:[%s13652_s5 + $0x48] sm:$0xff]  ;;  %v6861_v15 = vld [vmem:[%s13654_s7 + $0x78] sm:$0xff] }
 0xe56   :  { %v6327_v37 = vrot.slane %v6326_v40, 4 }
 0xe57   :  { %5122 = vmatmul.mubr.f32.gmra.mrb[192].mxu1 %v14154_v38 }
 0xe58   :  { %5126 = vmatprep.mubr.f32.mxu1 %v14155_v19  ;;  %v6328_v22 = vmax.f32 %v6326_v40, %v6327_v37  ;;  %v6864_v37 = vld [vmem:[%s13654_s7 + $0x90] sm:$0xff] }
 0xe5a   :  { %v6329_v57 = vrot.slane %v6328_v22, 2 }
 0xe5b   :  { %5127 = vmatmul.mubr.f32.gmra.mrb[194].mxu1 %v14156_v25 }
 0xe5c   :  { %5131 = vmatprep.mubr.f32.mxu1 %v14157_v61 }
 0xe5f   :  { %5132 = vmatmul.mubr.f32.gmra.mrb[196].mxu1 %v14158_v23 }
 0xe60   :  { %7906 = vmatprep.mubr.msk.f32.mxu1 %vm69_vm0, %v6394_v39  ;;  %v14162_v39 = vld [vmem:[#allocation14_spill] sm:$0xff] }
 0xe61   :  { %v6342_v45 = vmax.f32 %v14162_v39, %v14161_v12  ;;  %v8986_v12 = vpack.c.bf16 %v6861_v15, %v6860_v50  ;;  %v6862_v39 = vld [vmem:[%s13654_s7 + $0x80] sm:$0xff]  ;;  %v7911_v50 = vld [vmem:[%s13654_s7 + $0x158] sm:$0xff] }
 0xe63   :  { %6955 = vmatmul.mubr.f32.vlgmr.msra.gmra.mrb[198].mxu1 %v6393_v26  ;;  %v6343_v26 = vrot.slane %v6342_v45, 4 }
 0xe64   :  { %8966 = vmatpush1.bf16.msra.mxu1 %v8965_v28  ;;  %7907 = vmatprep.mubr.msk.f32.mxu1 %vm69_vm0, %v6360_v14  ;;  %v6856_v28 = vld [vmem:[%s13654_s7 + $0x50] sm:$0xff] }
 0xe65   :  { %8967 = vmatprep.subr.bf16.mxu1 %v13910_v18  ;;  %v8980_v14 = vpack.c.bf16 %v6857_v43, %v6856_v28 }
 0xe68   :  { %8969 = vmatpush1.bf16.msra.mxu1 %v8968_v59  ;;  %v6858_v59 = vld [vmem:[%s13654_s7 + $0x60] sm:$0xff] }
 0xe69   :  { %8970 = vmatprep.subr.bf16.mxu1 %v13910_v18  ;;  %v8983_v36 = vpack.c.bf16 %v6859_v9, %v6858_v59 }
 0xe6c   :  { %8972 = vmatpush1.bf16.msra.mxu1 %v8971_v55  ;;  %v6344_v55 = vmax.f32 %v6342_v45, %v6343_v26  ;;  %v6863_v45 = vld [vmem:[%s13654_s7 + $0x88] sm:$0xff]  ;;  %v6865_v26 = vld [vmem:[%s13654_s7 + $0x98] sm:$0xff] }
 0xe6d   :  { %8973 = vmatprep.subr.bf16.mxu1 %v13910_v18  ;;  %v8989_v43 = vpack.c.bf16 %v6863_v45, %v6862_v39  ;;  %v8992_v9 = vpack.c.bf16 %v6865_v26, %v6864_v37  ;;  %v7913_v39 = vld [vmem:[%s13654_s7 + $0x168] sm:$0xff]  ;;  %v7916_v37 = vld [vmem:[%s13654_s7 + $0x180] sm:$0xff] }
 0xe6e   :  { %v6345_v40 = vrot.slane %v6344_v55, 2  ;;  %v7917_v26 = vld [vmem:[%s13654_s7 + $0x188] sm:$0xff] }
 0xe70   :  { %8975 = vmatpush1.bf16.msra.mxu1 %v8974_v56  ;;  %v8876_v56 = vpack.c.bf16 %v7848_v44, %v7847_v29  ;;  %v6346_v28 = vmax.f32 %v6344_v55, %v6345_v40  ;;  %v7909_v55 = vld [vmem:[%s13654_s7 + $0x148] sm:$0xff] }
 0xe71   :  { %8976 = vmatprep.subr.bf16.mxu1 %v13910_v18 }
 0xe72   :  { %8877 = vmatprep.subr.bf16.mxu0 %v8876_v56  ;;  %v6347_v59 = vrot.slane %v6346_v28, 1 }
 0xe73   :  { %8879 = vmatpush3.bf16.msra.mxu0 %v8876_v56 }
 0xe74   :  { %8978 = vmatpush1.bf16.msra.mxu1 %v8977_v34  ;;  %v6330_v34 = vmax.f32 %v6328_v22, %v6329_v57  ;;  %v7908_v22 = vld [vmem:[%s13654_s7 + $0x140] sm:$0xff]  ;;  %v6348_v44 = vmax.f32 %v6346_v28, %v6347_v59  ;;  %v14163_v57 = vld [vmem:[#allocation26_spill] sm:$0xff] }
 0xe75   :  { %8979 = vmatprep.subr.bf16.mxu1 %v13910_v18  ;;  %v8995_v56 = vpack.c.bf16 %v7909_v55, %v7908_v22  ;;  %v7915_v28 = vld [vmem:[%s13654_s7 + $0x178] sm:$0xff]  ;;  %v7918_v59 = vld [vmem:[%s13654_s7 + $0x190] sm:$0xff]  ;;  %v7920_v55 = vld [vmem:[%s13654_s7 + $0x1a0] sm:$0xff] }
 0xe78   :  { %8981 = vmatpush1.bf16.msra.mxu1 %v8980_v14  ;;  %v6331_v14 = vrot.slane %v6330_v34, 1 }
 0xe79   :  { %8982 = vmatprep.subr.bf16.mxu1 %v13910_v18 }
 0xe7a   :  { %v6332_v29 = vmax.f32 %v6330_v34, %v6331_v14  ;;  %v7914_v34 = vld [vmem:[%s13654_s7 + $0x170] sm:$0xff]  ;;  %v9007_v14 = vpack.c.bf16 %v7917_v26, %v7916_v37  ;;  %v7131_v26 = vld [vmem:[%s13655_s8 + $0x18] sm:$0x3f] }
 0xe7b   :  { %v7130_v37 = vld [vmem:[%s13655_s8 + $0x10] sm:$0xff] }
 0xe7c   :  { %8984 = vmatpush1.bf16.msra.mxu1 %v8983_v36  ;;  %v7910_v36 = vld [vmem:[%s13654_s7 + $0x150] sm:$0xff]  ;;  %v6359_v15 = vsel %vm6358_vm14, %v6332_v29, %v6348_v44  ;;  %v7921_v29 = vld [vmem:[%s13654_s7 + $0x1a8] sm:$0xff] }
 0xe7d   :  { %8985 = vmatprep.subr.bf16.mxu1 %v13910_v18  ;;  %v8998_v40 = vpack.c.bf16 %v7911_v50, %v7910_v36  ;;  %v9013_v44 = vpack.c.bf16 %v7921_v29, %v7920_v55  ;;  %v7923_v36 = vld [vmem:[%s13654_s7 + $0x1b8] sm:$0xff]  ;;  %v7849_v55 = vld [vmem:[%s13652_s5 + $0x50] sm:$0xff] }
 0xe7e   :  { %v7850_v29 = vld [vmem:[%s13652_s5 + $0x58] sm:$0x3f] }
 0xe80   :  { %8987 = vmatpush1.bf16.msra.mxu1 %v8986_v12  ;;  %v7912_v12 = vld [vmem:[%s13654_s7 + $0x160] sm:$0xff] }
 0xe81   :  { %8988 = vmatprep.subr.bf16.mxu1 %v13910_v18  ;;  %v9001_v45 = vpack.c.bf16 %v7913_v39, %v7912_v12  ;;  %v7926_v12 = vld [vmem:[%s13654_s7 + $0x1d0] sm:$0xff]  ;;  %v7927_v39 = vld [vmem:[%s13654_s7 + $0x1d8] sm:$0xff] }
 0xe84   :  { %8990 = vmatpush1.bf16.msra.mxu1 %v8989_v43  ;;  %v9004_v43 = vpack.c.bf16 %v7915_v28, %v7914_v34  ;;  %v7128_v34 = vld [vmem:[%s13655_s8] sm:$0xff]  ;;  %v7129_v28 = vld [vmem:[%s13655_s8 + $0x8] sm:$0xff] }
 0xe85   :  { %8991 = vmatprep.subr.bf16.mxu1 %v13910_v18 }
 0xe88   :  { %8993 = vmatpush1.bf16.msra.mxu1 %v8992_v9  ;;  %v7919_v9 = vld [vmem:[%s13654_s7 + $0x198] sm:$0xff] }
 0xe89   :  { %8994 = vmatprep.subr.bf16.mxu1 %v13910_v18  ;;  %v9010_v22 = vpack.c.bf16 %v7919_v9, %v7918_v59  ;;  %v9028_v59 = vpack.c.bf16 %v7131_v26, %v7130_v37  ;;  %v14165_v9 = vmov 0.0  }
 0xe8b   :  { %7028 = vmatmul.mubr.f32.vlgmr.msra.gmra.mrb[200].mxu1 %v6359_v15  ;;  %v7924_v15 = vld [vmem:[%s13654_s7 + $0x1c0] sm:$0xff] }
 0xe8c   :  { %8996 = vmatpush1.bf16.msra.mxu1 %v8995_v56  ;;  %7928 = vmatprep.mubr.msk.f32.mxu1 %vm69_vm0, %v14163_v57  ;;  %v7922_v56 = vld [vmem:[%s13654_s7 + $0x1b0] sm:$0xff]  ;;  %v7925_v57 = vld [vmem:[%s13654_s7 + $0x1c8] sm:$0xff]  ;;  %vm9247_vm0 = vmmov 0   ;;  %s9199_s7 = scalar_lea.vmem %s7495_s27, 32 }
 0xe8d   :  { %8997 = vmatprep.subr.bf16.mxu1 %v13910_v18  ;;  %v9016_v50 = vpack.c.bf16 %v7923_v36, %v7922_v56  ;;  %v8880_v56 = vpack.c.bf16 %v7850_v29, %v7849_v55  ;;  %p9201_p2 = scmp.lt.s32.totalorder %s9199_s7, %s9195_s28 }
 0xe8f   :  { %8882 = vmatprep.subr.msk.bf16.mxu0 %vm10536_vm3, %v8880_v56  ;;  %p9202_p3 = por %p9201_p2, %p9200_p1 }
 0xe90   :  { %8999 = vmatpush1.bf16.msra.mxu1 %v8998_v40  ;;  %v9019_v40 = vpack.c.bf16 %v7925_v57, %v7924_v15  ;;  %8885 = vmatpush3.bf16.msk.msra.mxu0 %vm10536_vm3, %v8880_v56 }
 0xe91   :  { %9000 = vmatprep.subr.bf16.mxu1 %v13910_v18  ;;  %8886 = vmatprep.subr.bf16.mxu0 %v13910_v18  ;;  %p9203_p4 = pnand %p9202_p3, %p9196_p0 }
 0xe94   :  { %9002 = vmatpush1.bf16.msra.mxu1 %v9001_v45  ;;  %v9022_v45 = vpack.c.bf16 %v7927_v39, %v7926_v12 }
 0xe95   :  { %9003 = vmatprep.subr.bf16.mxu1 %v13910_v18 }
 0xe98   :  { %9005 = vmatpush1.bf16.msra.mxu1 %v9004_v43  ;;  %v9025_v43 = vpack.c.bf16 %v7129_v28, %v7128_v34 }
 0xe99   :  { %9006 = vmatprep.subr.bf16.mxu1 %v13910_v18 }
 0xe9c   :  { %9008 = vmatpush1.bf16.msra.mxu1 %v9007_v14  ;;  %v14164_v14 = vld [vmem:[#allocation25_spill] sm:$0xff] }
 0xe9d   :  { %9009 = vmatprep.subr.bf16.mxu1 %v13910_v18 }
 0xea0   :  { %9011 = vmatpush1.bf16.msra.mxu1 %v9010_v22 }
 0xea1   :  { %9012 = vmatprep.subr.bf16.mxu1 %v13910_v18 }
 0xea4   :  { %9014 = vmatpush1.bf16.msra.mxu1 %v9013_v44 }
 0xea5   :  { %9015 = vmatprep.subr.bf16.mxu1 %v13910_v18 }
 0xea8   :  { %9017 = vmatpush1.bf16.msra.mxu1 %v9016_v50 }
 0xea9   :  { %9018 = vmatprep.subr.bf16.mxu1 %v13910_v18 }
 0xeac   :  { %9020 = vmatpush1.bf16.msra.mxu1 %v9019_v40 }
 0xead   :  { %9021 = vmatprep.subr.bf16.mxu1 %v13910_v18 }
 0xeb0   :  { %9023 = vmatpush1.bf16.msra.mxu1 %v9022_v45 }
 0xeb1   :  { %9024 = vmatprep.subr.bf16.mxu1 %v13910_v18 }
 0xeb3   :  { %7122 = vmatmul.mubr.f32.vlgmr.msra.gmra.mrb[202].mxu1 %v14164_v14 }
 0xeb4   :  { %9026 = vmatpush3.bf16.msra.mxu1 %v9025_v43  ;;  %8460 = vmatprep.mubr.msk.f32.mxu1 %vm9247_vm0, %v14165_v9 }
 0xeb5   :  { %9027 = vmatprep.subr.bf16.mxu1 %v13910_v18 }
 0xeb6   :  { %v4978_v22 = vpop.f32.mrb[134].mxu1 }
 0xeb7   :  { %v4980_v44 = vpop.f32.mrb[135].mxu1 }
 0xeb8   :  { %9030 = vmatpush3.bf16.msk.msra.mxu1 %vm10536_vm3, %v9028_v59  ;;  %v12600_v44 = vld [vmem:[%s13653_s6 + $0x3] ss:$0 sm:$0xff] }
 0xeb9   :  { %9031 = vmatprep.subr.bf16.mxu1 %v13910_v18 }
 0xeba   :  { %v4983_v50 = vpop.f32.mrb[136].mxu1 }
 0xebb   :  { %8461 = vmatmul.mubr.msk.f32.vlgmr.msra.gmra.mrb[204].mxu1 %vm3707_vm4, %v12213_v32  ;;  %v4985_v15 = vpop.f32.mrb[137].mxu1 }
 0xebc   :  { %8471 = vmatprep.mubr.msk.f32.mxu1 %vm9247_vm0, %v14165_v9  ;;  %v12603_v15 = vadd.f32 %v12600_v44, %v4983_v50 }
 0xebe   :  { %v4988_v57 = vpop.f32.mrb[138].mxu1  ;;  %v5170_v50 = vsel %vm3707_vm4, %v12603_v15, 0.0 }
 0xebf   :  { %v4990_v40 = vpop.f32.mrb[139].mxu1 }
 0xec0   :  { %v12606_v40 = vadd.f32 %v12600_v44, %v4978_v22 }
 0xec2   :  { %v4993_v12 = vpop.f32.mrb[140].mxu1  ;;  %v5169_v23 = vsel %vm3707_vm4, %v12606_v40, 0.0 }
 0xec3   :  { %v4995_v39 = vpop.f32.mrb[141].mxu1  ;;  %v5171_v0 = vadd.f32 %v5170_v50, %v5169_v23 }
 0xec6   :  { %v4998_v45 = vpop.f32.mrb[142].mxu1 }
 0xec7   :  { %v5000_v34 = vpop.f32.mrb[143].mxu1 }
 0xec8   :  { %v12609_v34 = vadd.f32 %v12600_v44, %v4988_v57  ;;  %v12623_v57 = vadd.f32 %v12600_v44, %v4998_v45 }
 0xeca   :  { %v5003_v28 = vpop.f32.mrb[144].mxu1  ;;  %v5240_v22 = vmul.f32 %v12609_v34, %v12609_v34  ;;  %v5172_v61 = vsel %vm3707_vm4, %v12609_v34, 0.0  ;;  %v5176_v23 = vsel %vm3707_vm4, %v12623_v57, 0.0 }
 0xecb   :  { %v5005_v43 = vpop.f32.mrb[145].mxu1  ;;  %v12633_v19 = vadd.f32 %v12600_v44, %v5003_v28  ;;  %v5173_v6 = vadd.f32 %v5172_v61, %v5171_v0 }
 0xecd   :  { %v5178_v61 = vsel %vm3707_vm4, %v12633_v19, 0.0 }
 0xece   :  { %v5008_v37 = vpop.f32.mrb[146].mxu1 }
 0xecf   :  { %v5010_v26 = vpop.f32.mrb[147].mxu1  ;;  %v12642_v41 = vadd.f32 %v12600_v44, %v5008_v37 }
 0xed0   :  { %v5239_v26 = vmul.f32 %v12603_v15, %v12603_v15 }
 0xed1   :  { %v5244_v0 = vmul.f32 %v12642_v41, %v12642_v41 }
 0xed2   :  { %v5013_v14 = vpop.f32.mrb[148].mxu1 }
 0xed3   :  { %v5015_v59 = vpop.f32.mrb[149].mxu1  ;;  %v12650_v50 = vadd.f32 %v12600_v44, %v5013_v14 }
 0xed4   :  { %v12614_v59 = vadd.f32 %v12600_v44, %v4993_v12  ;;  %v5271_v12 = vsel %vm3707_vm4, %v5239_v26, 0.0  ;;  %v5242_v26 = vmul.f32 %v12623_v57, %v12623_v57 }
 0xed6   :  { %v5018_v55 = vpop.f32.mrb[150].mxu1  ;;  %v5241_v25 = vmul.f32 %v12614_v59, %v12614_v59  ;;  %v5174_v63 = vsel %vm3707_vm4, %v12614_v59, 0.0 }
 0xed7   :  { %v5020_v32 = vpop.f32.mrb[151].mxu1  ;;  %v5175_v17 = vadd.f32 %v5174_v63, %v5173_v6  ;;  %v12653_v11 = vadd.f32 %v12600_v44, %v5018_v55  ;;  %v5245_v63 = vmul.f32 %v12650_v50, %v12650_v50 }
 0xed8   :  { %v5238_v32 = vmul.f32 %v12606_v40, %v12606_v40  ;;  %v5275_v28 = vsel %vm3707_vm4, %v5241_v25, 0.0 }
 0xeda   :  { %v5023_v29 = vpop.f32.mrb[152].mxu1  ;;  %v5270_v38 = vsel %vm3707_vm4, %v5238_v32, 0.0  ;;  %v5243_v32 = vmul.f32 %v12633_v19, %v12633_v19 }
 0xedb   :  { %v5025_v56 = vpop.f32.mrb[153].mxu1  ;;  %v5272_v7 = vadd.f32 %v5271_v12, %v5270_v38  ;;  %v5177_v12 = vadd.f32 %v5176_v23, %v5175_v17  ;;  %v12661_v14 = vadd.f32 %v12600_v44, %v5023_v29  ;;  %v5182_v17 = vsel %vm3707_vm4, %v12650_v50, 0.0 }
 0xedc   :  { %v5279_v6 = vsel %vm3707_vm4, %v5243_v32, 0.0 }
 0xede   :  { %v5028_v39 = vpop.f32.mrb[154].mxu1 }
 0xedf   :  { %v5030_v43 = vpop.f32.mrb[155].mxu1  ;;  %v12674_v29 = vadd.f32 %v12600_v44, %v5028_v39 }
 0xee2   :  { %v5033_v56 = vpop.f32.mrb[156].mxu1 }
 0xee3   :  { %v5035_v43 = vpop.f32.mrb[157].mxu1 }
 0xee4   :  { %v5273_v43 = vsel %vm3707_vm4, %v5240_v22, 0.0 }
 0xee5   :  { %v5274_v22 = vadd.f32 %v5273_v43, %v5272_v7  ;;  %v5180_v7 = vsel %vm3707_vm4, %v12642_v41, 0.0  ;;  %v5179_v43 = vadd.f32 %v5178_v61, %v5177_v12  ;;  %v5283_v61 = vsel %vm3707_vm4, %v5245_v63, 0.0 }
 0xee6   :  { %v5038_v45 = vpop.f32.mrb[158].mxu1  ;;  %v5248_v63 = vmul.f32 %v12674_v29, %v12674_v29 }
 0xee7   :  { %v5040_v49 = vpop.f32.mrb[159].mxu1  ;;  %v5276_v38 = vadd.f32 %v5275_v28, %v5274_v22  ;;  %v5281_v28 = vsel %vm3707_vm4, %v5244_v0, 0.0  ;;  %v12677_v23 = vadd.f32 %v12600_v44, %v5038_v45  ;;  %v5184_v0 = vsel %vm3707_vm4, %v12653_v11, 0.0 }
 0xee8   :  { %v5277_v49 = vsel %vm3707_vm4, %v5242_v26, 0.0  ;;  %v5246_v26 = vmul.f32 %v12653_v11, %v12653_v11 }
 0xee9   :  { %v5278_v55 = vadd.f32 %v5277_v49, %v5276_v38  ;;  %v5247_v49 = vmul.f32 %v12661_v14, %v12661_v14  ;;  %v12685_v38 = vadd.f32 %v12600_v44, %v5033_v56 }
 0xeea   :  { %v5043_v37 = vpop.f32.mrb[160].mxu1 }
 0xeeb   :  { %v5045_v25 = vpop.f32.mrb[161].mxu1  ;;  %v5280_v22 = vadd.f32 %v5279_v6, %v5278_v55  ;;  %v12688_v39 = vadd.f32 %v12600_v44, %v5043_v37  ;;  %v5149_v55 = vmul.f32 %v11799_v51, %v12677_v23 }
 0xeec   :  { %v5181_v25 = vadd.f32 %v5180_v7, %v5179_v43  ;;  %v5186_v7 = vsel %vm3707_vm4, %v12661_v14, 0.0 }
 0xeed   :  { %v5282_v12 = vadd.f32 %v5281_v28, %v5280_v22  ;;  %v5287_v28 = vsel %vm3707_vm4, %v5247_v49, 0.0  ;;  %v5150_v22 = vmul.f32 0.0, %v12688_v39  ;;  %v5250_v49 = vmul.f32 %v5149_v55, %v5149_v55 }
 0xeee   :  { %v5048_v46 = vpop.f32.mrb[162].mxu1  ;;  %v5183_v45 = vadd.f32 %v5182_v17, %v5181_v25  ;;  %v5249_v17 = vmul.f32 %v12685_v38, %v12685_v38  ;;  %v5192_v10 = vsel %vm3707_vm4, %v5149_v55, 0.0 }
 0xeef   :  { %v5050_v32 = vpop.f32.mrb[163].mxu1  ;;  %v12698_v56 = vadd.f32 %v12600_v44, %v5048_v46  ;;  %v5284_v37 = vadd.f32 %v5283_v61, %v5282_v12  ;;  %v5190_v61 = vsel %vm3707_vm4, %v12685_v38, 0.0  ;;  %v5194_v16 = vsel %vm3707_vm4, %v5150_v22, 0.0 }
 0xef0   :  { %v5285_v32 = vsel %vm3707_vm4, %v5246_v26, 0.0  ;;  %v5185_v52 = vadd.f32 %v5184_v0, %v5183_v45  ;;  %v5188_v26 = vsel %vm3707_vm4, %v12674_v29, 0.0  ;;  %v5291_v2 = vsel %vm3707_vm4, %v5249_v17, 0.0 }
 0xef1   :  { %v5286_v5 = vadd.f32 %v5285_v32, %v5284_v37  ;;  %v5151_v0 = vmul.f32 0.0, %v12698_v56 }
 0xef2   :  { %v5053_v6 = vpop.f32.mrb[164].mxu1  ;;  %v5187_v30 = vadd.f32 %v5186_v7, %v5185_v52 }
 0xef3   :  { %v5055_v43 = vpop.f32.mrb[165].mxu1  ;;  %v12707_v25 = vadd.f32 %v12600_v44, %v5053_v6  ;;  %v5288_v45 = vadd.f32 %v5287_v28, %v5286_v5  ;;  %v5251_v6 = vmul.f32 %v5150_v22, %v5150_v22  ;;  %v5252_v24 = vmul.f32 %v5151_v0, %v5151_v0 }
 0xef4   :  { %v5289_v43 = vsel %vm3707_vm4, %v5248_v63, 0.0  ;;  %v5189_v54 = vadd.f32 %v5188_v26, %v5187_v30  ;;  %v5293_v63 = vsel %vm3707_vm4, %v5250_v49, 0.0  ;;  %v5196_v5 = vsel %vm3707_vm4, %v5151_v0, 0.0 }
 0xef5   :  { %v5152_v32 = vmul.f32 0.0, %v12707_v25  ;;  %v5290_v52 = vadd.f32 %v5289_v43, %v5288_v45  ;;  %v5295_v30 = vsel %vm3707_vm4, %v5251_v6, 0.0  ;;  %v5297_v43 = vsel %vm3707_vm4, %v5252_v24, 0.0 }
 0xef6   :  { %v5058_v46 = vpop.f32.mrb[166].mxu1  ;;  %v5191_v7 = vadd.f32 %v5190_v61, %v5189_v54 }
 0xef7   :  { %v5060_v12 = vpop.f32.mrb[167].mxu1  ;;  %v5292_v31 = vadd.f32 %v5291_v2, %v5290_v52  ;;  %v5253_v28 = vmul.f32 %v5152_v32, %v5152_v32  ;;  %v12721_v55 = vadd.f32 %v12600_v44, %v5058_v46  ;;  %v5198_v61 = vsel %vm3707_vm4, %v5152_v32, 0.0 }
 0xef8   :  { %v5193_v12 = vadd.f32 %v5192_v10, %v5191_v7 }
 0xef9   :  { %v5294_v26 = vadd.f32 %v5293_v63, %v5292_v31  ;;  %v5299_v49 = vsel %vm3707_vm4, %v5253_v28, 0.0  ;;  %v5254_v0 = vmul.f32 %v12721_v55, %v12721_v55  ;;  %v5200_v24 = vsel %vm3707_vm4, %v12721_v55, 0.0 }
 0xefa   :  { %v5063_v37 = vpop.f32.mrb[168].mxu1  ;;  %v5195_v17 = vadd.f32 %v5194_v16, %v5193_v12 }
 0xefb   :  { %v5065_v1 = vpop.f32.mrb[169].mxu1  ;;  %v12726_v22 = vadd.f32 %v12600_v44, %v5063_v37  ;;  %v5296_v10 = vadd.f32 %v5295_v30, %v5294_v26  ;;  %v5301_v37 = vsel %vm3707_vm4, %v5254_v0, 0.0  ;;  %v7931_v30 = vld [vmem:[%s13655_s8 + $0x20] sm:$0xff] }
 0xefc   :  { %v5197_v2 = vadd.f32 %v5196_v5, %v5195_v17  ;;  %v7932_v5 = vld [vmem:[%s13655_s8 + $0x28] sm:$0xff] }
 0xefd   :  { %v5298_v31 = vadd.f32 %v5297_v43, %v5296_v10  ;;  %v5255_v6 = vmul.f32 %v12726_v22, %v12726_v22  ;;  %v5202_v63 = vsel %vm3707_vm4, %v12726_v22, 0.0  ;;  %v9032_v17 = vpack.c.bf16 %v7932_v5, %v7931_v30 }
 0xefe   :  { %v5068_v54 = vpop.f32.mrb[170].mxu1  ;;  %v5199_v16 = vadd.f32 %v5198_v61, %v5197_v2 }
 0xeff   :  { %v5070_v1 = vpop.f32.mrb[171].mxu1  ;;  %v12732_v46 = vadd.f32 %v12600_v44, %v5068_v54  ;;  %v5300_v7 = vadd.f32 %v5299_v49, %v5298_v31  ;;  %v5303_v54 = vsel %vm3707_vm4, %v5255_v6, 0.0  ;;  %9033 = vmatpush3.bf16.msra.mxu1 %v9032_v17 }
 0xf00   :  { %v5201_v28 = vadd.f32 %v5200_v24, %v5199_v16  ;;  %9034 = vmatprep.subr.bf16.mxu1 %v13910_v18  ;;  %v7934_v24 = vld [vmem:[%s13655_s8 + $0x38] sm:$0x3f] }
 0xf01   :  { %v5256_v12 = vmul.f32 %v12732_v46, %v12732_v46  ;;  %v5204_v43 = vsel %vm3707_vm4, %v12732_v46, 0.0  ;;  %v5302_v2 = vadd.f32 %v5301_v37, %v5300_v7 }
 0xf02   :  { %v5073_v45 = vpop.f32.mrb[172].mxu1  ;;  %v5203_v49 = vadd.f32 %v5202_v63, %v5201_v28 }
 0xf03   :  { %v12739_v32 = vadd.f32 %v12600_v44, %v5073_v45  ;;  %v5075_v52 = vpop.f32.mrb[173].mxu1  ;;  %v5305_v0 = vsel %vm3707_vm4, %v5256_v12, 0.0  ;;  %v7933_v45 = vld [vmem:[%s13655_s8 + $0x30] sm:$0xff]  ;;  %v5304_v6 = vadd.f32 %v5303_v54, %v5302_v2 }
 0xf04   :  { %v5205_v52 = vadd.f32 %v5204_v43, %v5203_v49  ;;  %v9035_v37 = vpack.c.bf16 %v7934_v24, %v7933_v45 }
 0xf05   :  { %v5257_v61 = vmul.f32 %v12739_v32, %v12739_v32  ;;  %v5206_v31 = vsel %vm3707_vm4, %v12739_v32, 0.0  ;;  %v5306_v28 = vadd.f32 %v5305_v0, %v5304_v6 }
 0xf06   :  { %v5078_v26 = vpop.f32.mrb[174].mxu1  ;;  %9037 = vmatpush3.bf16.msk.msra.mxu1 %vm10536_vm3, %v9035_v37 }
 0xf07   :  { %v12758_v1 = vadd.f32 %v12600_v44, %v5078_v26  ;;  %v5080_v10 = vpop.f32.mrb[175].mxu1  ;;  %v5307_v63 = vsel %vm3707_vm4, %v5257_v61, 0.0  ;;  %v5207_v26 = vadd.f32 %v5206_v31, %v5205_v52  ;;  %9038 = vmatprep.subr.bf16.mxu1 %v13910_v18 }
 0xf08   :  { %v5308_v61 = vadd.f32 %v5307_v63, %v5306_v28 }
 0xf09   :  { %v5258_v16 = vmul.f32 %v12758_v1, %v12758_v1  ;;  %v5208_v12 = vsel %vm3707_vm4, %v12758_v1, 0.0 }
 0xf0a   :  { %v5083_v7 = vpop.f32.mrb[176].mxu1  ;;  %v5209_v10 = vadd.f32 %v5208_v12, %v5207_v26 }
 0xf0b   :  { %v12776_v30 = vadd.f32 %v12600_v44, %v5083_v7  ;;  %v5085_v5 = vpop.f32.mrb[177].mxu1  ;;  %v5309_v17 = vsel %vm3707_vm4, %v5258_v16, 0.0 }
 0xf0c   :  { %v5310_v45 = vadd.f32 %v5309_v17, %v5308_v61 }
 0xf0d   :  { %v5210_v54 = vsel %vm3707_vm4, %v12776_v30, 0.0  ;;  %v5259_v43 = vmul.f32 %v12776_v30, %v12776_v30 }
 0xf0e   :  { %v5088_v2 = vpop.f32.mrb[178].mxu1  ;;  %v5211_v24 = vadd.f32 %v5210_v54, %v5209_v10 }
 0xf0f   :  { %v5311_v49 = vsel %vm3707_vm4, %v5259_v43, 0.0  ;;  %v12788_v0 = vadd.f32 %v12600_v44, %v5088_v2  ;;  %v5090_v31 = vpop.f32.mrb[179].mxu1 }
 0xf10   :  { %v5312_v52 = vadd.f32 %v5311_v49, %v5310_v45 }
 0xf11   :  { %v5212_v16 = vsel %vm3707_vm4, %v12788_v0, 0.0  ;;  %v5260_v6 = vmul.f32 %v12788_v0, %v12788_v0 }
 0xf12   :  { %v5213_v7 = vadd.f32 %v5212_v16, %v5211_v24  ;;  %v5093_v37 = vpop.f32.mrb[180].mxu1 }
 0xf13   :  { %v5313_v63 = vsel %vm3707_vm4, %v5260_v6, 0.0  ;;  %v12796_v12 = vadd.f32 %v12600_v44, %v5093_v37  ;;  %v5095_v5 = vpop.f32.mrb[181].mxu1 }
 0xf14   :  { %v5314_v28 = vadd.f32 %v5313_v63, %v5312_v52 }
 0xf15   :  { %v5214_v26 = vsel %vm3707_vm4, %v12796_v12, 0.0  ;;  %v5261_v17 = vmul.f32 %v12796_v12, %v12796_v12 }
 0xf16   :  { %v5215_v54 = vadd.f32 %v5214_v26, %v5213_v7  ;;  %v5098_v43 = vpop.f32.mrb[182].mxu1 }
 0xf17   :  { %v5315_v61 = vsel %vm3707_vm4, %v5261_v17, 0.0  ;;  %v12804_v10 = vadd.f32 %v12600_v44, %v5098_v43  ;;  %v5100_v2 = vpop.f32.mrb[183].mxu1 }
 0xf18   :  { %v5316_v49 = vadd.f32 %v5315_v61, %v5314_v28 }
 0xf19   :  { %v5216_v31 = vsel %vm3707_vm4, %v12804_v10, 0.0  ;;  %v5262_v45 = vmul.f32 %v12804_v10, %v12804_v10 }
 0xf1a   :  { %v5217_v24 = vadd.f32 %v5216_v31, %v5215_v54  ;;  %v5103_v16 = vpop.f32.mrb[184].mxu1 }
 0xf1b   :  { %v5317_v6 = vsel %vm3707_vm4, %v5262_v45, 0.0  ;;  %v12812_v52 = vadd.f32 %v12600_v44, %v5103_v16  ;;  %v5105_v7 = vpop.f32.mrb[185].mxu1 }
 0xf1c   :  { %v5318_v37 = vadd.f32 %v5317_v6, %v5316_v49 }
 0xf1d   :  { %v5218_v63 = vsel %vm3707_vm4, %v12812_v52, 0.0  ;;  %v5263_v5 = vmul.f32 %v12812_v52, %v12812_v52 }
 0xf1e   :  { %v5219_v28 = vadd.f32 %v5218_v63, %v5217_v24  ;;  %v5108_v26 = vpop.f32.mrb[186].mxu1 }
 0xf1f   :  { %v5319_v17 = vsel %vm3707_vm4, %v5263_v5, 0.0  ;;  %v12820_v54 = vadd.f32 %v12600_v44, %v5108_v26  ;;  %v5110_v43 = vpop.f32.mrb[187].mxu1 }
 0xf20   :  { %v5320_v61 = vadd.f32 %v5319_v17, %v5318_v37 }
 0xf21   :  { %v5220_v2 = vsel %vm3707_vm4, %v12820_v54, 0.0  ;;  %v5264_v49 = vmul.f32 %v12820_v54, %v12820_v54 }
 0xf22   :  { %v5221_v31 = vadd.f32 %v5220_v2, %v5219_v28  ;;  %v5113_v45 = vpop.f32.mrb[188].mxu1 }
 0xf23   :  { %v5321_v16 = vsel %vm3707_vm4, %v5264_v49, 0.0  ;;  %v12828_v24 = vadd.f32 %v12600_v44, %v5113_v45  ;;  %v5115_v6 = vpop.f32.mrb[189].mxu1 }
 0xf24   :  { %v5322_v7 = vadd.f32 %v5321_v16, %v5320_v61 }
 0xf25   :  { %v5222_v63 = vsel %vm3707_vm4, %v12828_v24, 0.0  ;;  %v5265_v37 = vmul.f32 %v12828_v24, %v12828_v24 }
 0xf26   :  { %v5223_v5 = vadd.f32 %v5222_v63, %v5221_v31  ;;  %v5118_v26 = vpop.f32.mrb[190].mxu1 }
 0xf27   :  { %v5323_v17 = vsel %vm3707_vm4, %v5265_v37, 0.0  ;;  %v12836_v28 = vadd.f32 %v12600_v44, %v5118_v26  ;;  %v5120_v43 = vpop.f32.mrb[191].mxu1 }
 0xf28   :  { %v5324_v2 = vadd.f32 %v5323_v17, %v5322_v7 }
 0xf29   :  { %v5165_v49 = vmul.f32 %v11941_v48, %v12836_v28 }
 0xf2a   :  { %v5123_v45 = vpop.f32.mrb[192].mxu1 }
 0xf2b   :  { %v5224_v61 = vsel %vm3707_vm4, %v5165_v49, 0.0  ;;  %v5266_v16 = vmul.f32 %v5165_v49, %v5165_v49  ;;  %v12842_v6 = vadd.f32 %v12600_v44, %v5123_v45  ;;  %v5125_v36 = vpop.f32.mrb[193].mxu1 }
 0xf2c   :  { %v5225_v31 = vadd.f32 %v5224_v61, %v5223_v5 }
 0xf2d   :  { %v5325_v63 = vsel %vm3707_vm4, %v5266_v16, 0.0  ;;  %v5166_v37 = vmul.f32 0.0, %v12842_v6 }
 0xf2e   :  { %v5326_v26 = vadd.f32 %v5325_v63, %v5324_v2  ;;  %v5128_v62 = vpop.f32.mrb[194].mxu1 }
 0xf2f   :  { %v5226_v7 = vsel %vm3707_vm4, %v5166_v37, 0.0  ;;  %v5267_v17 = vmul.f32 %v5166_v37, %v5166_v37  ;;  %v12848_v43 = vadd.f32 %v12600_v44, %v5128_v62  ;;  %v5130_v8 = vpop.f32.mrb[195].mxu1 }
 0xf30   :  { %v5227_v42 = vadd.f32 %v5226_v7, %v5225_v31 }
 0xf31   :  { %v5327_v49 = vsel %vm3707_vm4, %v5267_v17, 0.0  ;;  %v5167_v45 = vmul.f32 0.0, %v12848_v43 }
 0xf32   :  { %v5328_v36 = vadd.f32 %v5327_v49, %v5326_v26  ;;  %v5133_v5 = vpop.f32.mrb[196].mxu1 }
 0xf33   :  { %v5228_v61 = vsel %vm3707_vm4, %v5167_v45, 0.0  ;;  %v5268_v16 = vmul.f32 %v5167_v45, %v5167_v45  ;;  %v12854_v2 = vadd.f32 %v12600_v44, %v5133_v5  ;;  %v5135_v63 = vpop.f32.mrb[197].mxu1 }
 0xf34   :  { %v5229_v13 = vadd.f32 %v5228_v61, %v5227_v42 }
 0xf35   :  { %v5329_v37 = vsel %vm3707_vm4, %v5268_v16, 0.0  ;;  %v5168_v62 = vmul.f32 0.0, %v12854_v2 }
 0xf36   :  { %v5330_v8 = vadd.f32 %v5329_v37, %v5328_v36  ;;  %v12858_v31 = vpop.f32.mrb[198].mxu1 }
 0xf37   :  { %v5230_v7 = vsel %vm3707_vm4, %v5168_v62, 0.0  ;;  %v5269_v17 = vmul.f32 %v5168_v62, %v5168_v62  ;;  %v6958_v26 = vpop.f32.mrb[199].mxu1 }
 0xf38   :  { %v5231_v49 = vadd.f32 %v5230_v7, %v5229_v13 }
 0xf39   :  { %v5331_v58 = vsel %vm3707_vm4, %v5269_v17, 0.0 }
 0xf3a   :  { %v5232_v45 = vrot.slane %v5231_v49, 4  ;;  %v5332_v27 = vadd.f32 %v5331_v58, %v5330_v8 }
 0xf3c   :  { %v5233_v44 = vadd.f32 %v5232_v45, %v5231_v49  ;;  %v5333_v5 = vrot.slane %v5332_v27, 4 }
 0xf3e   :  { %v5234_v63 = vrot.slane %v5233_v44, 2  ;;  %v5334_v42 = vadd.f32 %v5333_v5, %v5332_v27 }
 0xf40   :  { %v5235_v61 = vadd.f32 %v5234_v63, %v5233_v44  ;;  %v5335_v16 = vrot.slane %v5334_v42, 2 }
 0xf42   :  { %v5236_v33 = vrot.slane %v5235_v61, 1  ;;  %v5336_v35 = vadd.f32 %v5335_v16, %v5334_v42 }
 0xf44   :  { %v5237_v36 = vadd.f32 %v5236_v33, %v5235_v61  ;;  %v5337_v37 = vrot.slane %v5336_v35, 1 }
 0xf46   :  { %v5338_v47 = vadd.f32 %v5337_v37, %v5336_v35  ;;  %v12862_v53 = vmul.f32 0.005, %v5237_v36 }
 0xf48   :  { %v5340_v62 = vmul.f32 0.005, %v5338_v47  ;;  %v5341_v13 = vmul.f32 %v12862_v53, %v12862_v53  ;;  %v5375_v58 = vsub.f32 %v12854_v2, %v12862_v53  ;;  %v5365_v27 = vsub.f32 %v12776_v30, %v12862_v53 }
 0xf49   :  { %v5366_v33 = vsub.f32 %v12788_v0, %v12862_v53  ;;  %v5367_v35 = vsub.f32 %v12796_v12, %v12862_v53  ;;  %v5368_v47 = vsub.f32 %v12804_v10, %v12862_v53  ;;  %v5369_v26 = vsub.f32 %v12812_v52, %v12862_v53  ;;  %v4582_v10 = vld [vmem:[%s13653_s6 + $0x4] sm:$0x1] }
 0xf4a   :  { %v5342_v8 = vsub.f32 %v5340_v62, %v5341_v13  ;;  %v5370_v2 = vsub.f32 %v12820_v54, %v12862_v53  ;;  %v5371_v49 = vsub.f32 %v12828_v24, %v12862_v53  ;;  %v5372_v30 = vsub.f32 %v12836_v28, %v12862_v53 }
 0xf4b   :  { %v5373_v0 = vsub.f32 %v12842_v6, %v12862_v53  ;;  %v5374_v12 = vsub.f32 %v12848_v43, %v12862_v53  ;;  %v5344_v52 = vsub.f32 %v12606_v40, %v12862_v53  ;;  %v5345_v54 = vsub.f32 %v12603_v15, %v12862_v53 }
 0xf4c   :  { %v5343_v7 = vmax.f32 %v5342_v8, 0.0  ;;  %v5346_v28 = vsub.f32 %v12609_v34, %v12862_v53  ;;  %v5347_v6 = vsub.f32 %v12614_v59, %v12862_v53  ;;  %v5348_v43 = vsub.f32 %v12623_v57, %v12862_v53 }
 0xf4d   :  { %v5349_v45 = vsub.f32 %v12633_v19, %v12862_v53  ;;  %v5350_v40 = vsub.f32 %v12642_v41, %v12862_v53  ;;  %v5351_v15 = vsub.f32 %v12650_v50, %v12862_v53  ;;  %v5352_v5 = vsub.f32 %v12653_v11, %v12862_v53 }
 0xf4e   :  { %v5376_v17 = vadd.f32 1e-05, %v5343_v7  ;;  %v5353_v34 = vsub.f32 %v12661_v14, %v12862_v53  ;;  %v5354_v59 = vsub.f32 %v12674_v29, %v12862_v53  ;;  %v5355_v57 = vsub.f32 %v12685_v38, %v12862_v53 }
 0xf4f   :  { %v5356_v19 = vsub.f32 %v12677_v23, %v12862_v53  ;;  %v5357_v50 = vsub.f32 %v12688_v39, %v12862_v53  ;;  %v5358_v11 = vsub.f32 %v12698_v56, %v12862_v53  ;;  %v5359_v14 = vsub.f32 %v12707_v25, %v12862_v53 }
 0xf50   :  { %9183 = vrsqrt.f32 %v5376_v17  ;;  %v5360_v29 = vsub.f32 %v12721_v55, %v12862_v53  ;;  %v5361_v38 = vsub.f32 %v12726_v22, %v12862_v53  ;;  %v5362_v23 = vsub.f32 %v12732_v46, %v12862_v53 }
 0xf51   :  { %v5363_v63 = vsub.f32 %v12739_v32, %v12862_v53  ;;  %v5364_v32 = vsub.f32 %v12758_v1, %v12862_v53 }
 0xf5a   :  { %v9184_v24 = vpop.eup %9183 }
 0xf5b   :  { %v5378_v44 = vmul.f32 %v9184_v24, %v4582_v10 }
 0xf5d   :  { %v5382_v41 = vrot.slane %v5378_v44, %v14089_v20 }
 0xf5e   :  { %v12932_v42 = vpop.f32.mrb[200].mxu1 }
 0xf5f   :  { %v12934_v39 = vmul.f32 %v5382_v41, %v5375_v58  ;;  %v12936_v56 = vmul.f32 %v5382_v41, %v5344_v52  ;;  %v5384_v61 = vmul.f32 %v5382_v41, %v5345_v54  ;;  %v12938_v25 = vmul.f32 %v5382_v41, %v5346_v28  ;;  %v7031_v16 = vpop.f32.mrb[201].mxu1 }
 0xf60   :  { %v12940_v55 = vmul.f32 %v5382_v41, %v5347_v6  ;;  %v12942_v36 = vmul.f32 %v5382_v41, %v5348_v43  ;;  %v12944_v22 = vmul.f32 %v5382_v41, %v5349_v45  ;;  %v12946_v46 = vmul.f32 %v5382_v41, %v5350_v40  ;;  %v12969_v43 = vld [vmem:[%s13653_s6 + $0x5] ss:$0 sm:$0xff] }
 0xf61   :  { %v12950_v37 = vmul.f32 %v5382_v41, %v5351_v15  ;;  %v12952_v62 = vmul.f32 %v5382_v41, %v5352_v5  ;;  %v12954_v13 = vmul.f32 %v5382_v41, %v5353_v34  ;;  %v12956_v58 = vmul.f32 %v5382_v41, %v5354_v59 }
 0xf62   :  { %v12958_v8 = vmul.f32 %v5382_v41, %v5355_v57  ;;  %v5395_v7 = vmul.f32 %v5382_v41, %v5356_v19  ;;  %v12960_v17 = vmul.f32 %v5382_v41, %v5357_v50  ;;  %v12962_v10 = vmul.f32 %v5382_v41, %v5358_v11 }
 0xf63   :  { %v12964_v52 = vmul.f32 %v5382_v41, %v5359_v14  ;;  %v5399_v54 = vmul.f32 %v5382_v41, %v5360_v29  ;;  %v5400_v24 = vmul.f32 %v5382_v41, %v5361_v38  ;;  %v5401_v53 = vmul.f32 %v5382_v41, %v5362_v23 }
 0xf64   :  { %v5402_v1 = vmul.f32 %v5382_v41, %v5363_v63  ;;  %v5403_v28 = vmul.f32 %v5382_v41, %v5364_v32  ;;  %v5404_v6 = vmul.f32 %v5382_v41, %v5365_v27  ;;  %v5405_v45 = vmul.f32 %v5382_v41, %v5366_v33 }
 0xf65   :  { %v5406_v44 = vmul.f32 %v5382_v41, %v5367_v35  ;;  %v5407_v40 = vmul.f32 %v5382_v41, %v5368_v47  ;;  %v5408_v15 = vmul.f32 %v5382_v41, %v5369_v26  ;;  %v5409_v5 = vmul.f32 %v5382_v41, %v5370_v2 }
 0xf66   :  { %v5410_v34 = vmul.f32 %v5382_v41, %v5371_v49  ;;  %v5411_v59 = vmul.f32 %v5382_v41, %v5372_v30  ;;  %v12971_v57 = vmul.f32 %v5382_v41, %v5373_v0  ;;  %v12973_v19 = vmul.f32 %v5382_v41, %v5374_v12 }
 0xf67   :  { %v12976_v50 = vadd.f32 %v12969_v43, %v5395_v7  ;;  %v12979_v27 = vadd.f32 %v12969_v43, %v5399_v54  ;;  %v5420_v11 = vadd.f32 %v12969_v43, %v5384_v61  ;;  %v12983_v33 = vadd.f32 %v12969_v43, %v5400_v24 }
 0xf68   :  { %v12986_v35 = vadd.f32 %v12969_v43, %v5401_v53  ;;  %v12989_v47 = vadd.f32 %v12969_v43, %v5402_v1  ;;  %v12992_v26 = vadd.f32 %v12969_v43, %v5403_v28  ;;  %v12995_v2 = vadd.f32 %v12969_v43, %v5404_v6 }
 0xf69   :  { %v12998_v49 = vadd.f32 %v12969_v43, %v5405_v45  ;;  %v13001_v30 = vadd.f32 %v12969_v43, %v5406_v44  ;;  %v13004_v0 = vadd.f32 %v12969_v43, %v5407_v40  ;;  %v13007_v12 = vadd.f32 %v12969_v43, %v5408_v15 }
 0xf6a   :  { %v13010_v41 = vadd.f32 %v12969_v43, %v5411_v59  ;;  %v13013_v14 = vadd.f32 %v12969_v43, %v5409_v5  ;;  %v13016_v29 = vadd.f32 %v12969_v43, %v5410_v34  ;;  %v6644_v38 = vsel %vm6441_vm6, %v12976_v50, -1e+30 }
 0xf6b   :  { %v6701_v23 = vsel %vm3707_vm4, %v12979_v27, -inf  ;;  %v13027_v61 = vsel %vm3707_vm4, %v5420_v11, -inf  ;;  %v6702_v16 = vsel %vm3707_vm4, %v12983_v33, -inf  ;;  %v6703_v32 = vsel %vm3707_vm4, %v12986_v35, -inf }
 0xf6c   :  { %v6660_v63 = vsel %vm6457_vm7, %v13010_v41, -1e+30  ;;  %v6704_v7 = vsel %vm3707_vm4, %v12989_v47, -inf  ;;  %v6705_v54 = vsel %vm3707_vm4, %v12992_v26, -inf  ;;  %v6707_v24 = vsel %vm3707_vm4, %v12995_v2, -inf }
 0xf6d   :  { %v6709_v53 = vsel %vm3707_vm4, %v12998_v49, -inf  ;;  %v6706_v1 = vmax.f32 %v6701_v23, %v6705_v54  ;;  %v6708_v28 = vmax.f32 %v6702_v16, %v6707_v24  ;;  %v6711_v45 = vsel %vm3707_vm4, %v13001_v30, -inf }
 0xf6e   :  { %v6710_v6 = vmax.f32 %v6703_v32, %v6709_v53  ;;  %v6712_v44 = vmax.f32 %v6704_v7, %v6711_v45  ;;  %v6713_v40 = vsel %vm3707_vm4, %v13004_v0, -inf  ;;  %v6715_v15 = vsel %vm3707_vm4, %v13007_v12, -inf }
 0xf6f   :  { %v6717_v5 = vsel %vm3707_vm4, %v13013_v14, -inf  ;;  %v6714_v34 = vmax.f32 %v6706_v1, %v6713_v40  ;;  %v6716_v59 = vmax.f32 %v6708_v28, %v6715_v15  ;;  %v6719_v23 = vsel %vm3707_vm4, %v13016_v29, -inf }
 0xf70   :  { %v6718_v20 = vmax.f32 %v6710_v6, %v6717_v5  ;;  %v6720_v16 = vmax.f32 %v6712_v44, %v6719_v23  ;;  %v6721_v32 = vsel %vm3707_vm4, %v6660_v63, -inf  ;;  %v13054_v7 = vadd.f32 %v12932_v42, %v12858_v31 }
 0xf71   :  { %v5419_v54 = vadd.f32 %v12969_v43, %v12936_v56  ;;  %v6722_v24 = vmax.f32 %v6714_v34, %v6721_v32  ;;  %v6724_v53 = vmax.f32 %v6716_v59, %v12088_v4  ;;  %v5421_v28 = vadd.f32 %v12969_v43, %v12938_v25 }
 0xf72   :  { %v6726_v1 = vmax.f32 %v6718_v20, %v12088_v4  ;;  %v6728_v6 = vmax.f32 %v6720_v16, %v12088_v4  ;;  %v5422_v31 = vadd.f32 %v12969_v43, %v12940_v55  ;;  %v5423_v42 = vadd.f32 %v12969_v43, %v12942_v36 }
 0xf73   :  { %8404 = vmatprep.mubr.msk.f32.mxu0 %vm3707_vm4, %v5419_v54  ;;  %v6664_v63 = vsel %vm3707_vm4, %v5419_v54, -inf  ;;  %v6729_v56 = vmax.f32 %v6722_v24, %v6724_v53  ;;  %v6666_v20 = vsel %vm3707_vm4, %v5421_v28, -inf  ;;  %v5424_v25 = vadd.f32 %v12969_v43, %v12944_v22 }
 0xf74   :  { %8405 = vmatmul.mubr.msk.f32.vlgmr.msra.gmra.mrb[134].mxu0 %vm3707_vm4, %v5420_v11  ;;  %v5425_v45 = vadd.f32 %v12969_v43, %v12946_v46  ;;  %v6730_v44 = vmax.f32 %v6726_v1, %v6728_v6  ;;  %v6667_v40 = vsel %vm3707_vm4, %v5422_v31, -inf  ;;  %v6668_v55 = vsel %vm3707_vm4, %v5423_v42, -inf }
 0xf75   :  { %8407 = vmatprep.mubr.msk.f32.mxu0 %vm3707_vm4, %v5421_v28  ;;  %v5426_v36 = vadd.f32 %v12969_v43, %v12950_v37  ;;  %v6669_v15 = vmax.f32 %v6664_v63, %v6668_v55  ;;  %v6670_v11 = vsel %vm3707_vm4, %v5424_v25, -inf  ;;  %v5427_v22 = vadd.f32 %v12969_v43, %v12952_v62 }
 0xf76   :  { %v6672_v5 = vsel %vm3707_vm4, %v5425_v45, -inf  ;;  %v6731_v34 = vmax.f32 %v6729_v56, %v6730_v44  ;;  %v6671_v46 = vmax.f32 %v13027_v61, %v6670_v11  ;;  %v5428_v37 = vadd.f32 %v12969_v43, %v12954_v13 }
 0xf77   :  { %v6673_v59 = vmax.f32 %v6666_v20, %v6672_v5  ;;  %v6674_v23 = vsel %vm3707_vm4, %v5426_v36, -inf  ;;  %v6676_v32 = vsel %vm3707_vm4, %v5427_v22, -inf  ;;  %v5429_v54 = vadd.f32 %v12969_v43, %v12956_v58 }
 0xf78   :  { %8408 = vmatmul.mubr.msk.f32.gmra.mrb[136].mxu0 %vm3707_vm4, %v5422_v31  ;;  %v6675_v16 = vmax.f32 %v6667_v40, %v6674_v23  ;;  %v6677_v62 = vmax.f32 %v6669_v15, %v6676_v32  ;;  %v5430_v61 = vadd.f32 %v12969_v43, %v12958_v8  ;;  %v6732_v24 = vrot.slane %v6731_v34, 4 }
 0xf79   :  { %8410 = vmatprep.mubr.msk.f32.mxu0 %vm3707_vm4, %v5423_v42  ;;  %v6684_v53 = vsel %vm3707_vm4, %v6644_v38, -inf  ;;  %v6678_v1 = vsel %vm3707_vm4, %v5428_v37, -inf  ;;  %v6680_v28 = vsel %vm3707_vm4, %v5429_v54, -inf  ;;  %v5433_v23 = vadd.f32 %v12969_v43, %v12962_v10 }
 0xf7a   :  { %v6685_v6 = vmax.f32 %v6677_v62, %v6684_v53  ;;  %v6679_v63 = vmax.f32 %v6671_v46, %v6678_v1  ;;  %v6681_v31 = vmax.f32 %v6673_v59, %v6680_v28  ;;  %v6682_v13 = vsel %vm3707_vm4, %v5430_v61, -inf }
 0xf7b   :  { %v6683_v58 = vmax.f32 %v6675_v16, %v6682_v13  ;;  %v6733_v42 = vmax.f32 %v6731_v34, %v6732_v24  ;;  %v5448_v10 = vadd.f32 %v12969_v43, %v12971_v57 }
 0xf7c   :  { %8411 = vmatmul.mubr.msk.f32.gmra.mrb[138].mxu0 %vm3707_vm4, %v5424_v25  ;;  %v6687_v8 = vmax.f32 %v6679_v63, %v12088_v4  ;;  %v6689_v56 = vmax.f32 %v6681_v31, %v12088_v4 }
 0xf7d   :  { %8413 = vmatprep.mubr.msk.f32.mxu0 %vm3707_vm4, %v5425_v45  ;;  %v6691_v38 = vmax.f32 %v6683_v58, %v12088_v4  ;;  %v6734_v40 = vrot.slane %v6733_v42, 2 }
 0xf7e   :  { %v6692_v20 = vmax.f32 %v6685_v6, %v6687_v8 }
 0xf7f   :  { %v6693_v44 = vmax.f32 %v6689_v56, %v6691_v38  ;;  %v6735_v15 = vmax.f32 %v6733_v42, %v6734_v40 }
 0xf80   :  { %8414 = vmatmul.mubr.msk.f32.gmra.mrb[140].mxu0 %vm3707_vm4, %v5426_v36 }
 0xf81   :  { %8416 = vmatprep.mubr.msk.f32.mxu0 %vm3707_vm4, %v5427_v22  ;;  %v6694_v55 = vmax.f32 %v6692_v20, %v6693_v44  ;;  %v6736_v36 = vrot.slane %v6735_v15, 1  ;;  %v5432_v22 = vadd.f32 %v12969_v43, %v12960_v17 }
 0xf83   :  { %v6695_v25 = vrot.slane %v6694_v55, 4  ;;  %v6737_v32 = vmax.f32 %v6735_v15, %v6736_v36 }
 0xf84   :  { %8417 = vmatmul.mubr.msk.f32.gmra.mrb[142].mxu0 %vm3707_vm4, %v5428_v37  ;;  %v5434_v37 = vadd.f32 %v12969_v43, %v12964_v52  ;;  %v5449_v52 = vadd.f32 %v12969_v43, %v12973_v19 }
 0xf85   :  { %8419 = vmatprep.mubr.msk.f32.mxu0 %vm3707_vm4, %v5429_v54  ;;  %v6696_v11 = vmax.f32 %v6694_v55, %v6695_v25 }
 0xf86   :  { %v7123_v45 = vpop.f32.mrb[202].mxu1 }
 0xf87   :  { %v7127_v5 = vadd.f32 %v7123_v45, %v13054_v7  ;;  %v7125_v34 = vpop.f32.mrb[203].mxu1  ;;  %v6697_v46 = vrot.slane %v6696_v11, 2 }
 0xf88   :  { %8420 = vmatmul.mubr.msk.f32.gmra.mrb[144].mxu0 %vm3707_vm4, %v5430_v61 }
 0xf89   :  { %8422 = vmatprep.mubr.msk.f32.mxu0 %vm3707_vm4, %v12976_v50  ;;  %v6698_v59 = vmax.f32 %v6696_v11, %v6697_v46 }
 0xf8b   :  { %v6699_v16 = vrot.slane %v6698_v59, 1 }
 0xf8c   :  { %8423 = vmatmul.mubr.msk.f32.gmra.mrb[146].mxu0 %vm3707_vm4, %v5432_v22 }
 0xf8d   :  { %8425 = vmatprep.mubr.msk.f32.mxu0 %vm3707_vm4, %v5433_v23  ;;  %v6700_v54 = vmax.f32 %v6698_v59, %v6699_v16 }
 0xf8e   :  { %v7204_v7 = vpop.f32.mrb[204].mxu1 }
 0xf8f   :  { %v13120_v62 = vadd.f32 %v7204_v7, %v7127_v5  ;;  %v8462_v50 = vpop.f32.mrb[205].mxu1  ;;  %v6738_v17 = vsel %vm6358_vm14, %v6700_v54, %v6737_v32 }
 0xf90   :  { %8426 = vmatmul.mubr.msk.f32.gmra.mrb[148].mxu0 %vm3707_vm4, %v5434_v37  ;;  %8472 = vmatmul.mubr.msk.f32.vlgmr.msra.gmra.mrb[206].mxu1 %vm3707_vm4, %v6738_v17  ;;  %v14168_v50 = vld [vmem:[#allocation46_spill] sm:$0xff]  ;;  %v14169_v17 = vld [vmem:[#allocation49_spill] sm:$0xff] }
 0xf91   :  { %8428 = vmatprep.mubr.msk.f32.mxu0 %vm3707_vm4, %v12979_v27  ;;  %8482 = vmatprep.mubr.msk.f32.mxu1 %vm9247_vm0, %v14165_v9  ;;  %v5450_v27 = vadd.f32 %v12969_v43, %v12934_v39 }
 0xf94   :  { %8429 = vmatmul.mubr.msk.f32.gmra.mrb[150].mxu0 %vm3707_vm4, %v12983_v33 }
 0xf95   :  { %8431 = vmatprep.mubr.msk.f32.mxu0 %vm3707_vm4, %v12986_v35 }
 0xf98   :  { %8432 = vmatmul.mubr.msk.f32.gmra.mrb[152].mxu0 %vm3707_vm4, %v12989_v47 }
 0xf99   :  { %8434 = vmatprep.mubr.msk.f32.mxu0 %vm3707_vm4, %v12992_v26 }
 0xf9c   :  { %8435 = vmatmul.mubr.msk.f32.gmra.mrb[154].mxu0 %vm3707_vm4, %v12995_v2 }
 0xf9d   :  { %8437 = vmatprep.mubr.msk.f32.mxu0 %vm3707_vm4, %v12998_v49 }
 0xfa0   :  { %8438 = vmatmul.mubr.msk.f32.gmra.mrb[156].mxu0 %vm3707_vm4, %v13001_v30 }
 0xfa1   :  { %8440 = vmatprep.mubr.msk.f32.mxu0 %vm3707_vm4, %v13004_v0 }
 0xfa4   :  { %8441 = vmatmul.mubr.msk.f32.gmra.mrb[158].mxu0 %vm3707_vm4, %v13007_v12 }
 0xfa5   :  { %8443 = vmatprep.mubr.msk.f32.mxu0 %vm3707_vm4, %v13013_v14 }
 0xfa8   :  { %8444 = vmatmul.mubr.msk.f32.gmra.mrb[160].mxu0 %vm3707_vm4, %v13016_v29 }
 0xfa9   :  { %8446 = vmatprep.mubr.msk.f32.mxu0 %vm3707_vm4, %v13010_v41 }
 0xfac   :  { %8447 = vmatmul.mubr.msk.f32.gmra.mrb[162].mxu0 %vm3707_vm4, %v5448_v10  ;;  %v14170_v10 = vld [vmem:[#allocation48_spill] sm:$0xff] }
 0xfad   :  { %8449 = vmatprep.mubr.msk.f32.mxu0 %vm3707_vm4, %v5449_v52  ;;  %v14171_v52 = vld [vmem:[#allocation51_spill] sm:$0xff] }
 0xfb0   :  { %8450 = vmatmul.mubr.msk.f32.gmra.mrb[164].mxu0 %vm3707_vm4, %v5450_v27  ;;  %v14172_v27 = vld [vmem:[#allocation50_spill] sm:$0xff] }
 0xfb1   :  { %5851 = vmatprep.mubr.f32.mxu0 %v11275_v60 }
0x1047   :  { %v8406_v33 = vpop.f32.mrb[134].mxu0 }
0x1048   :  { %v5624_v35 = vpop.f32.mrb[135].mxu0 }
0x1049   :  { %v8887_v47 = vpack.c.bf16 %v8406_v33, %v5624_v35  ;;  %v14173_v33 = vld [vmem:[#allocation53_spill] sm:$0xff]  ;;  %v14174_v35 = vld [vmem:[#allocation54_spill] sm:$0xff] }
0x104b   :  { %v8409_v26 = vpop.f32.mrb[136].mxu0  ;;  %8888 = vmatpush1.bf16.msra.mxu0 %v8887_v47  ;;  %v14175_v47 = vld [vmem:[#allocation56_spill] sm:$0xff] }
0x104c   :  { %v5634_v57 = vpop.f32.mrb[137].mxu0  ;;  %8889 = vmatprep.subr.bf16.mxu0 %v13910_v18 }
0x104d   :  { %v8890_v19 = vpack.c.bf16 %v8409_v26, %v5634_v57  ;;  %v14178_v26 = vld [vmem:[#allocation57_spill] sm:$0xff]  ;;  %v14179_v57 = vld [vmem:[#allocation60_spill] sm:$0xff] }
0x104f   :  { %v8412_v2 = vpop.f32.mrb[138].mxu0  ;;  %8891 = vmatpush1.bf16.msra.mxu0 %v8890_v19  ;;  %v14180_v19 = vld [vmem:[#allocation62_spill] sm:$0xff] }
0x1050   :  { %v5644_v49 = vpop.f32.mrb[139].mxu0  ;;  %8892 = vmatprep.subr.bf16.mxu0 %v13910_v18 }
0x1051   :  { %v8893_v30 = vpack.c.bf16 %v8412_v2, %v5644_v49  ;;  %v14181_v2 = vld [vmem:[#allocation59_spill] sm:$0xff]  ;;  %v14182_v49 = vld [vmem:[#allocation61_spill] sm:$0xff] }
0x1053   :  { %v8415_v39 = vpop.f32.mrb[140].mxu0  ;;  %8894 = vmatpush1.bf16.msra.mxu0 %v8893_v30  ;;  %v14183_v30 = vld [vmem:[#allocation32_spill] sm:$0xff] }
0x1054   :  { %v5654_v43 = vpop.f32.mrb[141].mxu0  ;;  %8895 = vmatprep.subr.bf16.mxu0 %v13910_v18 }
0x1055   :  { %v8896_v60 = vpack.c.bf16 %v8415_v39, %v5654_v43  ;;  %v14184_v39 = vld [vmem:[#allocation31_spill] sm:$0xff]  ;;  %v14185_v43 = vld [vmem:[#allocation34_spill] sm:$0xff] }
0x1057   :  { %v8418_v0 = vpop.f32.mrb[142].mxu0  ;;  %8897 = vmatpush1.bf16.msra.mxu0 %v8896_v60  ;;  %v14186_v60 = vld [vmem:[#allocation33_spill] sm:$0xff] }
0x1058   :  { %v5664_v12 = vpop.f32.mrb[143].mxu0  ;;  %8898 = vmatprep.subr.bf16.mxu0 %v13910_v18 }
0x1059   :  { %v8899_v41 = vpack.c.bf16 %v8418_v0, %v5664_v12  ;;  %v14187_v0 = vld [vmem:[#allocation39_spill] sm:$0xff] }
0x105a   :  { %v14188_v12 = vld [vmem:[#allocation35_spill] sm:$0xff] }
0x105b   :  { %v8421_v14 = vpop.f32.mrb[144].mxu0  ;;  %8900 = vmatpush1.bf16.msra.mxu0 %v8899_v41  ;;  %v14189_v41 = vld [vmem:[#allocation40_spill] sm:$0xff] }
0x105c   :  { %v5674_v29 = vpop.f32.mrb[145].mxu0  ;;  %8901 = vmatprep.subr.bf16.mxu0 %v13910_v18 }
0x105d   :  { %v8902_v61 = vpack.c.bf16 %v8421_v14, %v5674_v29  ;;  %v14190_v14 = vld [vmem:[#allocation38_spill] sm:$0xff]  ;;  %v14191_v29 = vld [vmem:[#allocation41_spill] sm:$0xff] }
0x105f   :  { %v8424_v24 = vpop.f32.mrb[146].mxu0  ;;  %8903 = vmatpush1.bf16.msra.mxu0 %v8902_v61  ;;  %v14192_v61 = vld [vmem:[#allocation28_spill] sm:$0xff] }
0x1060   :  { %v5684_v53 = vpop.f32.mrb[147].mxu0  ;;  %8904 = vmatprep.subr.bf16.mxu0 %v13910_v18 }
0x1061   :  { %v8905_v1 = vpack.c.bf16 %v8424_v24, %v5684_v53  ;;  %v14193_v24 = vld [vmem:[#allocation37_spill] sm:$0xff]  ;;  %v14194_v53 = vld [vmem:[#allocation42_spill] sm:$0xff] }
0x1063   :  { %v8427_v28 = vpop.f32.mrb[148].mxu0  ;;  %8906 = vmatpush1.bf16.msra.mxu0 %v8905_v1  ;;  %v7286_v6 = vpop.f32.mrb[206].mxu1  ;;  %v14195_v1 = vld [vmem:[#allocation27_spill] sm:$0xff] }
0x1064   :  { %v5694_v63 = vpop.f32.mrb[149].mxu0  ;;  %8907 = vmatprep.subr.bf16.mxu0 %v13910_v18  ;;  %v13171_v31 = vadd.f32 %v7286_v6, %v13120_v62  ;;  %v8473_v13 = vpop.f32.mrb[207].mxu1  ;;  %v14167_v62 = vld [vmem:[#allocation45_spill] sm:$0xff] }
0x1065   :  { %v8908_v58 = vpack.c.bf16 %v8427_v28, %v5694_v63  ;;  %v14196_v28 = vld [vmem:[#allocation30_spill] sm:$0xff]  ;;  %v14197_v6 = vld [vmem:[#allocation29_spill] sm:$0xff]  ;;  %v14198_v63 = vld [vmem:[#allocation64_spill] sm:$0xff] }
0x1066   :  { %v14199_v13 = vld [vmem:[#allocation63_spill] sm:$0xff] }
0x1067   :  { %v8430_v42 = vpop.f32.mrb[150].mxu0  ;;  %8909 = vmatpush1.bf16.msra.mxu0 %v8908_v58  ;;  %v14200_v58 = vld [vmem:[#allocation65_spill] sm:$0xff] }
0x1068   :  { %v5704_v8 = vpop.f32.mrb[151].mxu0  ;;  %8910 = vmatprep.subr.bf16.mxu0 %v13910_v18 }
0x1069   :  { %v8911_v56 = vpack.c.bf16 %v8430_v42, %v5704_v8  ;;  %v14201_v42 = vld [vmem:[#allocation69_spill] sm:$0xff]  ;;  %v14202_v8 = vld [vmem:[#allocation68_spill] sm:$0xff] }
0x106b   :  { %v8433_v38 = vpop.f32.mrb[152].mxu0  ;;  %8912 = vmatpush1.bf16.msra.mxu0 %v8911_v56  ;;  %v14203_v56 = vld [vmem:[#allocation66_spill] sm:$0xff] }
0x106c   :  { %v5714_v20 = vpop.f32.mrb[153].mxu0  ;;  %8913 = vmatprep.subr.bf16.mxu0 %v13910_v18 }
0x106d   :  { %v8914_v44 = vpack.c.bf16 %v8433_v38, %v5714_v20  ;;  %v14204_v38 = vld [vmem:[#allocation67_spill] sm:$0xff]  ;;  %v14205_v20 = vld [vmem:[#allocation74_spill] sm:$0xff] }
0x106f   :  { %v8436_v40 = vpop.f32.mrb[154].mxu0  ;;  %8915 = vmatpush1.bf16.msra.mxu0 %v8914_v44  ;;  %v14206_v44 = vld [vmem:[#allocation72_spill] sm:$0xff] }
0x1070   :  { %v5724_v55 = vpop.f32.mrb[155].mxu0  ;;  %8916 = vmatprep.subr.bf16.mxu0 %v13910_v18 }
0x1071   :  { %v8917_v25 = vpack.c.bf16 %v8436_v40, %v5724_v55  ;;  %v14207_v40 = vld [vmem:[#allocation70_spill] sm:$0xff]  ;;  %v14208_v55 = vld [vmem:[#allocation71_spill] sm:$0xff] }
0x1073   :  { %v8439_v15 = vpop.f32.mrb[156].mxu0  ;;  %8918 = vmatpush1.bf16.msra.mxu0 %v8917_v25  ;;  %v14209_v25 = vld [vmem:[#allocation77_spill] sm:$0xff] }
0x1074   :  { %v5734_v45 = vpop.f32.mrb[157].mxu0  ;;  %8919 = vmatprep.subr.bf16.mxu0 %v13910_v18 }
0x1075   :  { %v8920_v11 = vpack.c.bf16 %v8439_v15, %v5734_v45  ;;  %v14210_v15 = vld [vmem:[#allocation36_spill] sm:$0xff]  ;;  %v14211_v45 = vld [vmem:[#allocation73_spill] sm:$0xff] }
0x1077   :  { %v8442_v5 = vpop.f32.mrb[158].mxu0  ;;  %8921 = vmatpush1.bf16.msra.mxu0 %v8920_v11  ;;  %v14212_v11 = vld [vmem:[#allocation76_spill] sm:$0xff] }
0x1078   :  { %v5744_v34 = vpop.f32.mrb[159].mxu0  ;;  %8922 = vmatprep.subr.bf16.mxu0 %v13910_v18 }
0x1079   :  { %v8923_v46 = vpack.c.bf16 %v8442_v5, %v5744_v34  ;;  %v14213_v5 = vld [vmem:[#allocation75_spill] sm:$0xff]  ;;  %v14214_v34 = vld [vmem:[#allocation81_spill] sm:$0xff] }
0x107b   :  { %v8445_v36 = vpop.f32.mrb[160].mxu0  ;;  %8924 = vmatpush1.bf16.msra.mxu0 %v8923_v46  ;;  %v14215_v46 = vld [vmem:[#allocation80_spill] sm:$0xff] }
0x107c   :  { %v5754_v22 = vpop.f32.mrb[161].mxu0  ;;  %8925 = vmatprep.subr.bf16.mxu0 %v13910_v18 }
0x107d   :  { %v8926_v59 = vpack.c.bf16 %v8445_v36, %v5754_v22  ;;  %v14216_v36 = vld [vmem:[#allocation79_spill] sm:$0xff]  ;;  %v14217_v22 = vld [vmem:[#allocation78_spill] sm:$0xff] }
0x107f   :  { %v8448_v23 = vpop.f32.mrb[162].mxu0  ;;  %8927 = vmatpush1.bf16.msra.mxu0 %v8926_v59  ;;  %v14218_v59 = vld [vmem:[#allocation85_spill] sm:$0xff] }
0x1080   :  { %v5764_v16 = vpop.f32.mrb[163].mxu0  ;;  %8928 = vmatprep.subr.bf16.mxu0 %v13910_v18 }
0x1081   :  { %v8929_v32 = vpack.c.bf16 %v8448_v23, %v5764_v16  ;;  %v14219_v23 = vld [vmem:[#allocation83_spill] sm:$0xff]  ;;  %v14220_v16 = vld [vmem:[#allocation84_spill] sm:$0xff] }
0x1083   :  { %v8451_v7 = vpop.f32.mrb[164].mxu0  ;;  %8930 = vmatpush1.bf16.msra.mxu0 %v8929_v32  ;;  %v14221_v32 = vld [vmem:[#allocation82_spill] sm:$0xff] }
0x1084   :  { %v5774_v37 = vpop.f32.mrb[165].mxu0  ;;  %8931 = vmatprep.subr.bf16.mxu0 %v13910_v18 }
0x1085   :  { %v8932_v54 = vpack.c.bf16 %v8451_v7, %v5774_v37  ;;  %v14222_v7 = vld [vmem:[#allocation89_spill] sm:$0xff]  ;;  %v14223_v37 = vld [vmem:[#allocation88_spill] sm:$0xff] }
0x1087   :  { %8933 = vmatpush1.bf16.msra.mxu0 %v8932_v54  ;;  %v14224_v54 = vld [vmem:[#allocation87_spill] sm:$0xff] }
0x1088   :  { %9045 = vmatprep.subr.bf16.mxu0 %v13910_v18 }
0x108a   :  { %5852 = vmatmul.mubr.f32.vlgmr.msra.gmra.mrb[166].mxu0 %v11272_v21  ;;  %v14176_v21 = vld [vmem:[#allocation55_spill] sm:$0xff] }
0x108b   :  { %5856 = vmatprep.mubr.f32.mxu0 %v11283_v3  ;;  %v14177_v3 = vld [vmem:[#allocation58_spill] sm:$0xff] }
0x108e   :  { %5857 = vmatmul.mubr.f32.gmra.mrb[168].mxu0 %v14167_v62  ;;  %v14225_v62 = vld [vmem:[#allocation86_spill] sm:$0xff] }
0x108f   :  { %5861 = vmatprep.mubr.f32.mxu0 %v14168_v50  ;;  %v14226_v50 = vld [vmem:[#allocation47_spill] sm:$0xff] }
0x1092   :  { %5862 = vmatmul.mubr.f32.gmra.mrb[170].mxu0 %v14169_v17  ;;  %v14227_v17 = vld [vmem:[#allocation90_spill] sm:$0xff] }
0x1093   :  { %5866 = vmatprep.mubr.f32.mxu0 %v14170_v10 }
0x1096   :  { %5867 = vmatmul.mubr.f32.gmra.mrb[172].mxu0 %v14171_v52 }
0x1097   :  { %5871 = vmatprep.mubr.f32.mxu0 %v14172_v27 }
0x109a   :  { %5872 = vmatmul.mubr.f32.gmra.mrb[174].mxu0 %v14173_v33 }
0x109b   :  { %5876 = vmatprep.mubr.f32.mxu0 %v14174_v35 }
0x109e   :  { %5877 = vmatmul.mubr.f32.gmra.mrb[176].mxu0 %v14175_v47 }
0x109f   :  { %5881 = vmatprep.mubr.f32.mxu0 %v14176_v21 }
0x10a2   :  { %5882 = vmatmul.mubr.f32.gmra.mrb[178].mxu0 %v14177_v3 }
0x10a3   :  { %5886 = vmatprep.mubr.f32.mxu0 %v14178_v26 }
0x10a6   :  { %5887 = vmatmul.mubr.f32.gmra.mrb[180].mxu0 %v14179_v57 }
0x10a7   :  { %5891 = vmatprep.mubr.f32.mxu0 %v14180_v19 }
0x10aa   :  { %5892 = vmatmul.mubr.f32.gmra.mrb[182].mxu0 %v14181_v2 }
0x10ab   :  { %5896 = vmatprep.mubr.f32.mxu0 %v14182_v49 }
0x10ae   :  { %5897 = vmatmul.mubr.f32.gmra.mrb[184].mxu0 %v14183_v30  ;;  %v13250_v30 = vld [vmem:[%s13653_s6 + $0x6] ss:$0 sm:$0xff] }
0x10af   :  { %5901 = vmatprep.mubr.f32.mxu0 %v14184_v39 }
0x10b2   :  { %5902 = vmatmul.mubr.f32.gmra.mrb[186].mxu0 %v14185_v43 }
0x10b3   :  { %5906 = vmatprep.mubr.f32.mxu0 %v14186_v60 }
0x10b6   :  { %5907 = vmatmul.mubr.f32.gmra.mrb[188].mxu0 %v14187_v0 }
0x10b7   :  { %5911 = vmatprep.mubr.f32.mxu0 %v14188_v12 }
0x10ba   :  { %5912 = vmatmul.mubr.f32.gmra.mrb[190].mxu0 %v14189_v41 }
0x10bb   :  { %5916 = vmatprep.mubr.f32.mxu0 %v14190_v14 }
0x10be   :  { %5917 = vmatmul.mubr.f32.gmra.mrb[192].mxu0 %v14191_v29 }
0x10bf   :  { %5921 = vmatprep.mubr.f32.mxu0 %v14192_v61 }
0x10c2   :  { %5922 = vmatmul.mubr.f32.gmra.mrb[194].mxu0 %v14193_v24 }
0x10c3   :  { %5926 = vmatprep.mubr.f32.mxu0 %v14194_v53 }
0x10c6   :  { %5927 = vmatmul.mubr.f32.gmra.mrb[196].mxu0 %v14195_v1 }
0x10c7   :  { %5931 = vmatprep.mubr.f32.mxu0 %v14196_v28 }
0x10ca   :  { %5932 = vmatmul.mubr.f32.gmra.mrb[198].mxu0 %v14197_v6 }
0x10cb   :  { %5936 = vmatprep.mubr.f32.mxu0 %v14198_v63 }
0x10ce   :  { %5937 = vmatmul.mubr.f32.gmra.mrb[200].mxu0 %v14199_v13 }
0x10cf   :  { %5941 = vmatprep.mubr.f32.mxu0 %v14200_v58 }
0x10d2   :  { %5942 = vmatmul.mubr.f32.gmra.mrb[202].mxu0 %v14201_v42 }
0x10d3   :  { %5946 = vmatprep.mubr.f32.mxu0 %v14202_v8 }
0x10d6   :  { %5947 = vmatmul.mubr.f32.gmra.mrb[204].mxu0 %v14203_v56 }
0x10d7   :  { %5951 = vmatprep.mubr.f32.mxu0 %v14204_v38 }
0x10da   :  { %5952 = vmatmul.mubr.f32.gmra.mrb[206].mxu0 %v14205_v20 }
0x10db   :  { %5956 = vmatprep.mubr.f32.mxu0 %v14206_v44 }
0x10de   :  { %5957 = vmatmul.mubr.f32.gmra.mrb[208].mxu0 %v14207_v40 }
0x10df   :  { %5961 = vmatprep.mubr.f32.mxu0 %v14208_v55 }
0x10e2   :  { %5962 = vmatmul.mubr.f32.gmra.mrb[210].mxu0 %v14209_v25 }
0x10e3   :  { %5966 = vmatprep.mubr.f32.mxu0 %v14210_v15 }
0x10e6   :  { %5967 = vmatmul.mubr.f32.gmra.mrb[212].mxu0 %v14211_v45 }
0x10e7   :  { %5971 = vmatprep.mubr.f32.mxu0 %v14212_v11 }
0x10ea   :  { %5972 = vmatmul.mubr.f32.gmra.mrb[214].mxu0 %v14213_v5 }
0x10eb   :  { %5976 = vmatprep.mubr.f32.mxu0 %v14214_v34 }
0x10ee   :  { %5977 = vmatmul.mubr.f32.gmra.mrb[216].mxu0 %v14215_v46 }
0x10ef   :  { %5981 = vmatprep.mubr.f32.mxu0 %v14216_v36 }
0x10f2   :  { %5982 = vmatmul.mubr.f32.gmra.mrb[218].mxu0 %v14217_v22  ;;  %v7937_v22 = vld [vmem:[%s13655_s8 + $0x40] sm:$0xff] }
0x10f3   :  { %5986 = vmatprep.mubr.f32.mxu0 %v14218_v59  ;;  %v7938_v59 = vld [vmem:[%s13655_s8 + $0x48] sm:$0xff] }
0x10f6   :  { %5987 = vmatmul.mubr.f32.gmra.mrb[220].mxu0 %v14219_v23  ;;  %v7939_v23 = vld [vmem:[%s13655_s8 + $0x50] sm:$0xff] }
0x10f7   :  { %5991 = vmatprep.mubr.f32.mxu0 %v14220_v16 }
0x10fa   :  { %5992 = vmatmul.mubr.f32.gmra.mrb[222].mxu0 %v14221_v32 }
0x10fb   :  { %5996 = vmatprep.mubr.f32.mxu0 %v14222_v7 }
0x10fe   :  { %5997 = vmatmul.mubr.f32.gmra.mrb[224].mxu0 %v14223_v37  ;;  %v9039_v37 = vpack.c.bf16 %v7938_v59, %v7937_v22 }
0x10ff   :  { %6001 = vmatprep.mubr.f32.mxu0 %v14224_v54  ;;  %v7940_v54 = vld [vmem:[%s13655_s8 + $0x58] sm:$0x3f] }
0x1100   :  { %9040 = vmatpush3.bf16.msra.mxu1 %v9039_v37 }
0x1101   :  { %9041 = vmatprep.subr.bf16.mxu1 %v13910_v18 }
0x1102   :  { %6002 = vmatmul.mubr.f32.gmra.mrb[226].mxu0 %v14225_v62 }
0x1103   :  { %6006 = vmatprep.mubr.f32.mxu0 %v14226_v50 }
0x1106   :  { %6007 = vmatmul.mubr.f32.gmra.mrb[228].mxu0 %v14227_v17 }
0x1107   :  { %8499 = vmatprep.mubr.msk.f32.mxu0 %vm9247_vm0, %v14165_v9 }
0x115d   :  { %v5853_v10 = vpop.f32.mrb[166].mxu0 }
0x115e   :  { %v5855_v52 = vpop.f32.mrb[167].mxu0  ;;  %v13256_v60 = vadd.f32 %v13250_v30, %v5853_v10 }
0x1160   :  { %v6113_v61 = vmul.f32 %v13256_v60, %v13256_v60  ;;  %v6044_v63 = vsel %vm3707_vm4, %v13256_v60, 0.0 }
0x1161   :  { %v5858_v27 = vpop.f32.mrb[168].mxu0 }
0x1162   :  { %v5860_v33 = vpop.f32.mrb[169].mxu0  ;;  %v13253_v43 = vadd.f32 %v13250_v30, %v5858_v27  ;;  %v6145_v56 = vsel %vm3707_vm4, %v6113_v61, 0.0 }
0x1164   :  { %v6114_v14 = vmul.f32 %v13253_v43, %v13253_v43  ;;  %v6045_v53 = vsel %vm3707_vm4, %v13253_v43, 0.0 }
0x1165   :  { %v5863_v35 = vpop.f32.mrb[170].mxu0  ;;  %v6046_v38 = vadd.f32 %v6045_v53, %v6044_v63 }
0x1166   :  { %v5865_v47 = vpop.f32.mrb[171].mxu0  ;;  %v13259_v12 = vadd.f32 %v13250_v30, %v5863_v35  ;;  %v6146_v13 = vsel %vm3707_vm4, %v6114_v14, 0.0  ;;  %v9042_v35 = vpack.c.bf16 %v7940_v54, %v7939_v23 }
0x1167   :  { %v6147_v45 = vadd.f32 %v6146_v13, %v6145_v56 }
0x1168   :  { %v6115_v1 = vmul.f32 %v13259_v12, %v13259_v12  ;;  %v6047_v58 = vsel %vm3707_vm4, %v13259_v12, 0.0  ;;  %9044 = vmatpush3.bf16.msk.msra.mxu1 %vm10536_vm3, %v9042_v35  ;;  %vm7396_vm3 = vcmask 1041408  }
0x1169   :  { %v5868_v21 = vpop.f32.mrb[172].mxu0  ;;  %v6048_v11 = vadd.f32 %v6047_v58, %v6046_v38 }
0x116a   :  { %v5870_v3 = vpop.f32.mrb[173].mxu0  ;;  %v13264_v29 = vadd.f32 %v13250_v30, %v5868_v21  ;;  %v6148_v44 = vsel %vm3707_vm4, %v6115_v1, 0.0 }
0x116b   :  { %v6149_v16 = vadd.f32 %v6148_v44, %v6147_v45 }
0x116c   :  { %v6116_v42 = vmul.f32 %v13264_v29, %v13264_v29  ;;  %v6049_v40 = vsel %vm3707_vm4, %v13264_v29, 0.0 }
0x116d   :  { %v5873_v26 = vpop.f32.mrb[174].mxu0  ;;  %v6050_v32 = vadd.f32 %v6049_v40, %v6048_v11 }
0x116e   :  { %v5875_v57 = vpop.f32.mrb[175].mxu0  ;;  %v13273_v28 = vadd.f32 %v13250_v30, %v5873_v26  ;;  %v6150_v5 = vsel %vm3707_vm4, %v6116_v42, 0.0 }
0x116f   :  { %v6151_v27 = vadd.f32 %v6150_v5, %v6149_v16 }
0x1170   :  { %v6117_v55 = vmul.f32 %v13273_v28, %v13273_v28  ;;  %v6051_v34 = vsel %vm3707_vm4, %v13273_v28, 0.0 }
0x1171   :  { %v5878_v19 = vpop.f32.mrb[176].mxu0  ;;  %v6052_v33 = vadd.f32 %v6051_v34, %v6050_v32 }
0x1172   :  { %v5880_v2 = vpop.f32.mrb[177].mxu0  ;;  %v13283_v8 = vadd.f32 %v13250_v30, %v5878_v19  ;;  %v6152_v62 = vsel %vm3707_vm4, %v6117_v55, 0.0 }
0x1173   :  { %v6153_v57 = vadd.f32 %v6152_v62, %v6151_v27 }
0x1174   :  { %v6118_v46 = vmul.f32 %v13283_v8, %v13283_v8  ;;  %v6053_v50 = vsel %vm3707_vm4, %v13283_v8, 0.0 }
0x1175   :  { %v5883_v49 = vpop.f32.mrb[178].mxu0  ;;  %v6054_v19 = vadd.f32 %v6053_v50, %v6052_v33 }
0x1176   :  { %v5885_v39 = vpop.f32.mrb[179].mxu0  ;;  %v13292_v25 = vadd.f32 %v13250_v30, %v5883_v49  ;;  %v6154_v47 = vsel %vm3707_vm4, %v6118_v46, 0.0 }
0x1177   :  { %v6155_v61 = vadd.f32 %v6154_v47, %v6153_v57 }
0x1178   :  { %v6119_v17 = vmul.f32 %v13292_v25, %v13292_v25  ;;  %v6055_v21 = vsel %vm3707_vm4, %v13292_v25, 0.0 }
0x1179   :  { %v5888_v0 = vpop.f32.mrb[180].mxu0 }
0x117a   :  { %v5890_v41 = vpop.f32.mrb[181].mxu0  ;;  %v13300_v36 = vadd.f32 %v13250_v30, %v5888_v0  ;;  %v6156_v49 = vsel %vm3707_vm4, %v6119_v17, 0.0 }
0x117b   :  { %v6157_v58 = vadd.f32 %v6156_v49, %v6155_v61 }
0x117c   :  { %v6120_v3 = vmul.f32 %v13300_v36, %v13300_v36  ;;  %v6057_v39 = vsel %vm3707_vm4, %v13300_v36, 0.0 }
0x117d   :  { %v5893_v24 = vpop.f32.mrb[182].mxu0 }
0x117e   :  { %v5895_v6 = vpop.f32.mrb[183].mxu0  ;;  %v13320_v10 = vadd.f32 %v13250_v30, %v5893_v24  ;;  %v6056_v24 = vadd.f32 %v6055_v21, %v6054_v19  ;;  %v6158_v1 = vsel %vm3707_vm4, %v6120_v3, 0.0 }
0x1180   :  { %v6121_v0 = vmul.f32 %v13320_v10, %v13320_v10  ;;  %v6059_v6 = vsel %vm3707_vm4, %v13320_v10, 0.0  ;;  %v6058_v42 = vadd.f32 %v6057_v39, %v6056_v24 }
0x1181   :  { %v5898_v20 = vpop.f32.mrb[184].mxu0 }
0x1182   :  { %v5900_v15 = vpop.f32.mrb[185].mxu0  ;;  %v13328_v26 = vadd.f32 %v13250_v30, %v5898_v20  ;;  %v6160_v38 = vsel %vm3707_vm4, %v6121_v0, 0.0  ;;  %v6060_v45 = vadd.f32 %v6059_v6, %v6058_v42 }
0x1183   :  { %v6159_v15 = vadd.f32 %v6158_v1, %v6157_v58 }
0x1184   :  { %v6122_v63 = vmul.f32 %v13328_v26, %v13328_v26  ;;  %v6061_v20 = vsel %vm3707_vm4, %v13328_v26, 0.0 }
0x1185   :  { %v5903_v7 = vpop.f32.mrb[186].mxu0  ;;  %v6161_v22 = vadd.f32 %v6160_v38, %v6159_v15  ;;  %v6062_v59 = vadd.f32 %v6061_v20, %v6060_v45 }
0x1186   :  { %v5905_v52 = vpop.f32.mrb[187].mxu0  ;;  %v13337_v41 = vadd.f32 %v13250_v30, %v5903_v7  ;;  %v6162_v11 = vsel %vm3707_vm4, %v6122_v63, 0.0 }
0x1187   :  { %v6163_v62 = vadd.f32 %v6162_v11, %v6161_v22 }
0x1188   :  { %v6123_v44 = vmul.f32 %v13337_v41, %v13337_v41  ;;  %v6063_v5 = vsel %vm3707_vm4, %v13337_v41, 0.0 }
0x1189   :  { %v5908_v2 = vpop.f32.mrb[188].mxu0  ;;  %v6064_v50 = vadd.f32 %v6063_v5, %v6062_v59 }
0x118a   :  { %v5910_v14 = vpop.f32.mrb[189].mxu0  ;;  %v13347_v13 = vadd.f32 %v13250_v30, %v5908_v2  ;;  %v6164_v16 = vsel %vm3707_vm4, %v6123_v44, 0.0 }
0x118b   :  { %v6165_v33 = vadd.f32 %v6164_v16, %v6163_v62 }
0x118c   :  { %v6124_v34 = vmul.f32 %v13347_v13, %v13347_v13  ;;  %v6065_v32 = vsel %vm3707_vm4, %v13347_v13, 0.0 }
0x118d   :  { %v5913_v56 = vpop.f32.mrb[190].mxu0  ;;  %v6066_v35 = vadd.f32 %v6065_v32, %v6064_v50 }
0x118e   :  { %v13355_v40 = vadd.f32 %v13250_v30, %v5913_v56  ;;  %v5915_v55 = vpop.f32.mrb[191].mxu0  ;;  %v6166_v17 = vsel %vm3707_vm4, %v6124_v34, 0.0 }
0x118f   :  { %v6167_v49 = vadd.f32 %v6166_v17, %v6165_v33 }
0x1190   :  { %v6024_v46 = vmul.f32 %v11799_v51, %v13355_v40 }
0x1191   :  { %v5918_v23 = vpop.f32.mrb[192].mxu0 }
0x1192   :  { %v6125_v7 = vmul.f32 %v6024_v46, %v6024_v46  ;;  %v5919_v37 = vadd.f32 %v13250_v30, %v5918_v23  ;;  %v5920_v54 = vpop.f32.mrb[193].mxu0  ;;  %v6067_v52 = vsel %vm3707_vm4, %v6024_v46, 0.0 }
0x1193   :  { %v6068_v39 = vadd.f32 %v6067_v52, %v6066_v35 }
0x1194   :  { %v6025_v27 = vmul.f32 0.0, %v5919_v37  ;;  %v6168_v21 = vsel %vm3707_vm4, %v6125_v7, 0.0 }
0x1195   :  { %v5923_v47 = vpop.f32.mrb[194].mxu0  ;;  %v6169_v61 = vadd.f32 %v6168_v21, %v6167_v49 }
0x1196   :  { %v6069_v3 = vsel %vm3707_vm4, %v6025_v27, 0.0  ;;  %v6126_v57 = vmul.f32 %v6025_v27, %v6025_v27  ;;  %v5924_v19 = vadd.f32 %v13250_v30, %v5923_v47  ;;  %v5925_v2 = vpop.f32.mrb[195].mxu0 }
0x1197   :  { %v6070_v24 = vadd.f32 %v6069_v3, %v6068_v39 }
0x1198   :  { %v6170_v0 = vsel %vm3707_vm4, %v6126_v57, 0.0  ;;  %v6026_v14 = vmul.f32 0.0, %v5924_v19 }
0x1199   :  { %v5928_v53 = vpop.f32.mrb[196].mxu0  ;;  %v6171_v42 = vadd.f32 %v6170_v0, %v6169_v61 }
0x119a   :  { %v6071_v1 = vsel %vm3707_vm4, %v6026_v14, 0.0  ;;  %v6127_v6 = vmul.f32 %v6026_v14, %v6026_v14  ;;  %v5929_v63 = vadd.f32 %v13250_v30, %v5928_v53  ;;  %v5930_v58 = vpop.f32.mrb[197].mxu0 }
0x119b   :  { %v6072_v56 = vadd.f32 %v6071_v1, %v6070_v24 }
0x119c   :  { %v6172_v38 = vsel %vm3707_vm4, %v6127_v6, 0.0  ;;  %v6027_v20 = vmul.f32 0.0, %v5929_v63 }
0x119d   :  { %v6173_v44 = vadd.f32 %v6172_v38, %v6171_v42  ;;  %v5933_v55 = vpop.f32.mrb[198].mxu0 }
0x119e   :  { %v6073_v15 = vsel %vm3707_vm4, %v6027_v20, 0.0  ;;  %v6128_v45 = vmul.f32 %v6027_v20, %v6027_v20  ;;  %v13379_v11 = vadd.f32 %v13250_v30, %v5933_v55  ;;  %v5935_v5 = vpop.f32.mrb[199].mxu0 }
0x119f   :  { %v6074_v34 = vadd.f32 %v6073_v15, %v6072_v56 }
0x11a0   :  { %v6174_v46 = vsel %vm3707_vm4, %v6128_v45, 0.0  ;;  %v6129_v22 = vmul.f32 %v13379_v11, %v13379_v11  ;;  %v6075_v16 = vsel %vm3707_vm4, %v13379_v11, 0.0 }
0x11a1   :  { %v6175_v59 = vadd.f32 %v6174_v46, %v6173_v44  ;;  %v5938_v23 = vpop.f32.mrb[200].mxu0  ;;  %v6076_v50 = vadd.f32 %v6075_v16, %v6074_v34  ;;  %v7381_v16 = vld [vmem:[%s13656_s9 + $0x8] sm:$0xff] }
0x11a2   :  { %v13387_v32 = vadd.f32 %v13250_v30, %v5938_v23  ;;  %v5940_v7 = vpop.f32.mrb[201].mxu0  ;;  %v6176_v37 = vsel %vm3707_vm4, %v6129_v22, 0.0  ;;  %v7380_v23 = vld [vmem:[%s13656_s9] sm:$0xff] }
0x11a3   :  { %v6177_v35 = vadd.f32 %v6176_v37, %v6175_v59  ;;  %v7382_v7 = vld [vmem:[%s13656_s9 + $0x10] sm:$0xff] }
0x11a4   :  { %v6077_v54 = vsel %vm3707_vm4, %v13387_v32, 0.0  ;;  %v6130_v62 = vmul.f32 %v13387_v32, %v13387_v32 }
0x11a5   :  { %v5943_v17 = vpop.f32.mrb[202].mxu0  ;;  %v6078_v47 = vadd.f32 %v6077_v54, %v6076_v50  ;;  %v9046_v50 = vpack.c.bf16 %v7381_v16, %v7380_v23 }
0x11a6   :  { %v6178_v52 = vsel %vm3707_vm4, %v6130_v62, 0.0  ;;  %v13396_v27 = vadd.f32 %v13250_v30, %v5943_v17  ;;  %v5945_v33 = vpop.f32.mrb[203].mxu0  ;;  %v7383_v17 = vld [vmem:[%s13656_s9 + $0x18] sm:$0xff] }
0x11a7   :  { %v6179_v57 = vadd.f32 %v6178_v52, %v6177_v35  ;;  %9047 = vmatpush3.bf16.msra.mxu0 %v9046_v50 }
0x11a8   :  { %v6079_v21 = vsel %vm3707_vm4, %v13396_v27, 0.0  ;;  %v6131_v3 = vmul.f32 %v13396_v27, %v13396_v27  ;;  %9048 = vmatprep.subr.bf16.mxu0 %v13910_v18 }
0x11a9   :  { %v6080_v19 = vadd.f32 %v6079_v21, %v6078_v47  ;;  %v5948_v2 = vpop.f32.mrb[204].mxu0  ;;  %v9049_v47 = vpack.c.bf16 %v7383_v17, %v7382_v7 }
0x11aa   :  { %v6180_v49 = vsel %vm3707_vm4, %v6131_v3, 0.0  ;;  %v13404_v39 = vadd.f32 %v13250_v30, %v5948_v2  ;;  %v5950_v0 = vpop.f32.mrb[205].mxu0 }
0x11ab   :  { %v6181_v14 = vadd.f32 %v6180_v49, %v6179_v57  ;;  %v7384_v57 = vld [vmem:[%s13656_s9 + $0x20] sm:$0xff]  ;;  %9050 = vmatpush3.bf16.msra.mxu0 %v9049_v47 }
0x11ac   :  { %v6081_v61 = vsel %vm3707_vm4, %v13404_v39, 0.0  ;;  %v6132_v24 = vmul.f32 %v13404_v39, %v13404_v39  ;;  %9051 = vmatprep.subr.bf16.mxu0 %v13910_v18  ;;  %v7386_v18 = vld [vmem:[%s13656_s9 + $0x30] sm:$0x3] }
0x11ad   :  { %v6082_v53 = vadd.f32 %v6081_v61, %v6080_v19  ;;  %v5953_v1 = vpop.f32.mrb[206].mxu0  ;;  %v7385_v19 = vld [vmem:[%s13656_s9 + $0x28] sm:$0xff] }
0x11ae   :  { %v6182_v6 = vsel %vm3707_vm4, %v6132_v24, 0.0  ;;  %v13412_v63 = vadd.f32 %v13250_v30, %v5953_v1  ;;  %v5955_v58 = vpop.f32.mrb[207].mxu0 }
0x11af   :  { %v6183_v42 = vadd.f32 %v6182_v6, %v6181_v14 }
0x11b0   :  { %v6083_v56 = vsel %vm3707_vm4, %v13412_v63, 0.0  ;;  %v6133_v38 = vmul.f32 %v13412_v63, %v13412_v63 }
0x11b1   :  { %v6084_v20 = vadd.f32 %v6083_v56, %v6082_v53  ;;  %v5958_v44 = vpop.f32.mrb[208].mxu0  ;;  %v9052_v53 = vpack.c.bf16 %v7385_v19, %v7384_v57 }
0x11b2   :  { %v6184_v55 = vsel %vm3707_vm4, %v6133_v38, 0.0  ;;  %v13420_v15 = vadd.f32 %v13250_v30, %v5958_v44  ;;  %v5960_v45 = vpop.f32.mrb[209].mxu0 }
0x11b3   :  { %v6185_v5 = vadd.f32 %v6184_v55, %v6183_v42  ;;  %9053 = vmatpush3.bf16.msra.mxu0 %v9052_v53 }
0x11b4   :  { %v6085_v34 = vsel %vm3707_vm4, %v13420_v15, 0.0  ;;  %v6134_v46 = vmul.f32 %v13420_v15, %v13420_v15  ;;  %8497 = vmatprep.subr.mxu0 %v14165_v9 }
0x11b5   :  { %v6086_v22 = vadd.f32 %v6085_v34, %v6084_v20  ;;  %v5963_v59 = vpop.f32.mrb[210].mxu0 }
0x11b6   :  { %v6186_v37 = vsel %vm3707_vm4, %v6134_v46, 0.0  ;;  %v13437_v54 = vadd.f32 %v13250_v30, %v5963_v59  ;;  %v5965_v62 = vpop.f32.mrb[211].mxu0 }
0x11b7   :  { %v6187_v52 = vadd.f32 %v6186_v37, %v6185_v5  ;;  %8498 = vmatpush3.msk.msra.mxu0 %vm7396_vm3, %v7386_v18 }
0x11b8   :  { %v6087_v33 = vsel %vm3707_vm4, %v13437_v54, 0.0  ;;  %v6135_v35 = vmul.f32 %v13437_v54, %v13437_v54 }
0x11b9   :  { %v6088_v21 = vadd.f32 %v6087_v33, %v6086_v22  ;;  %v5968_v3 = vpop.f32.mrb[212].mxu0 }
0x11ba   :  { %v6188_v2 = vsel %vm3707_vm4, %v6135_v35, 0.0  ;;  %v13455_v49 = vadd.f32 %v13250_v30, %v5968_v3  ;;  %v5970_v0 = vpop.f32.mrb[213].mxu0 }
0x11bb   :  { %v6189_v14 = vadd.f32 %v6188_v2, %v6187_v52 }
0x11bc   :  { %v6089_v61 = vsel %vm3707_vm4, %v13455_v49, 0.0  ;;  %v6136_v24 = vmul.f32 %v13455_v49, %v13455_v49 }
0x11bd   :  { %v6090_v1 = vadd.f32 %v6089_v61, %v6088_v21  ;;  %v5973_v6 = vpop.f32.mrb[214].mxu0 }
0x11be   :  { %v6190_v58 = vsel %vm3707_vm4, %v6136_v24, 0.0  ;;  %v13464_v42 = vadd.f32 %v13250_v30, %v5973_v6  ;;  %v5975_v56 = vpop.f32.mrb[215].mxu0 }
0x11bf   :  { %v6191_v38 = vadd.f32 %v6190_v58, %v6189_v14 }
0x11c0   :  { %v6091_v20 = vsel %vm3707_vm4, %v13464_v42, 0.0  ;;  %v6137_v44 = vmul.f32 %v13464_v42, %v13464_v42 }
0x11c1   :  { %v6092_v55 = vadd.f32 %v6091_v20, %v6090_v1  ;;  %v5978_v45 = vpop.f32.mrb[216].mxu0 }
0x11c2   :  { %v6192_v5 = vsel %vm3707_vm4, %v6137_v44, 0.0  ;;  %v13476_v34 = vadd.f32 %v13250_v30, %v5978_v45  ;;  %v5980_v46 = vpop.f32.mrb[217].mxu0 }
0x11c3   :  { %v6193_v22 = vadd.f32 %v6192_v5, %v6191_v38 }
0x11c4   :  { %v6093_v59 = vsel %vm3707_vm4, %v13476_v34, 0.0  ;;  %v6138_v23 = vmul.f32 %v13476_v34, %v13476_v34 }
0x11c5   :  { %v6094_v9 = vadd.f32 %v6093_v59, %v6092_v55  ;;  %v5983_v16 = vpop.f32.mrb[218].mxu0 }
0x11c6   :  { %v6194_v7 = vsel %vm3707_vm4, %v6138_v23, 0.0  ;;  %v13484_v37 = vadd.f32 %v13250_v30, %v5983_v16  ;;  %v5985_v62 = vpop.f32.mrb[219].mxu0 }
0x11c7   :  { %v6195_v50 = vadd.f32 %v6194_v7, %v6193_v22 }
0x11c8   :  { %v6095_v17 = vsel %vm3707_vm4, %v13484_v37, 0.0  ;;  %v6139_v52 = vmul.f32 %v13484_v37, %v13484_v37 }
0x11c9   :  { %v6096_v33 = vadd.f32 %v6095_v17, %v6094_v9  ;;  %v5988_v35 = vpop.f32.mrb[220].mxu0 }
0x11ca   :  { %v6196_v47 = vsel %vm3707_vm4, %v6139_v52, 0.0  ;;  %v13492_v21 = vadd.f32 %v13250_v30, %v5988_v35  ;;  %v5990_v3 = vpop.f32.mrb[221].mxu0 }
0x11cb   :  { %v6197_v57 = vadd.f32 %v6196_v47, %v6195_v50 }
0x11cc   :  { %v6097_v19 = vsel %vm3707_vm4, %v13492_v21, 0.0  ;;  %v6140_v2 = vmul.f32 %v13492_v21, %v13492_v21 }
0x11cd   :  { %v6098_v0 = vadd.f32 %v6097_v19, %v6096_v33  ;;  %v5993_v14 = vpop.f32.mrb[222].mxu0 }
0x11ce   :  { %v6198_v61 = vsel %vm3707_vm4, %v6140_v2, 0.0  ;;  %v13500_v24 = vadd.f32 %v13250_v30, %v5993_v14  ;;  %v5995_v53 = vpop.f32.mrb[223].mxu0 }
0x11cf   :  { %v6199_v1 = vadd.f32 %v6198_v61, %v6197_v57 }
0x11d0   :  { %v6040_v6 = vmul.f32 %v11941_v48, %v13500_v24 }
0x11d1   :  { %v5998_v58 = vpop.f32.mrb[224].mxu0 }
0x11d2   :  { %v6099_v56 = vsel %vm3707_vm4, %v6040_v6, 0.0  ;;  %v6141_v38 = vmul.f32 %v6040_v6, %v6040_v6  ;;  %v5999_v20 = vadd.f32 %v13250_v30, %v5998_v58  ;;  %v6000_v44 = vpop.f32.mrb[225].mxu0 }
0x11d3   :  { %v6100_v55 = vadd.f32 %v6099_v56, %v6098_v0 }
0x11d4   :  { %v6200_v45 = vsel %vm3707_vm4, %v6141_v38, 0.0  ;;  %v6041_v18 = vmul.f32 0.0, %v5999_v20 }
0x11d5   :  { %v6201_v5 = vadd.f32 %v6200_v45, %v6199_v1  ;;  %v6003_v46 = vpop.f32.mrb[226].mxu0 }
0x11d6   :  { %v6101_v22 = vsel %vm3707_vm4, %v6041_v18, 0.0  ;;  %v6142_v59 = vmul.f32 %v6041_v18, %v6041_v18  ;;  %v6004_v23 = vadd.f32 %v13250_v30, %v6003_v46  ;;  %v6005_v9 = vpop.f32.mrb[227].mxu0 }
0x11d7   :  { %v6102_v16 = vadd.f32 %v6101_v22, %v6100_v55 }
0x11d8   :  { %v6202_v7 = vsel %vm3707_vm4, %v6142_v59, 0.0  ;;  %v6042_v62 = vmul.f32 0.0, %v6004_v23 }
0x11d9   :  { %v6203_v50 = vadd.f32 %v6202_v7, %v6201_v5  ;;  %v6008_v17 = vpop.f32.mrb[228].mxu0 }
0x11da   :  { %v6103_v52 = vsel %vm3707_vm4, %v6042_v62, 0.0  ;;  %v6143_v33 = vmul.f32 %v6042_v62, %v6042_v62  ;;  %v6009_v35 = vadd.f32 %v13250_v30, %v6008_v17  ;;  %v6010_v47 = vpop.f32.mrb[229].mxu0 }
0x11db   :  { %v6104_v3 = vadd.f32 %v6103_v52, %v6102_v16 }
0x11dc   :  { %v6204_v57 = vsel %vm3707_vm4, %v6143_v33, 0.0  ;;  %v6043_v19 = vmul.f32 0.0, %v6009_v35 }
0x11dd   :  { %v6205_v2 = vadd.f32 %v6204_v57, %v6203_v50 }
0x11de   :  { %v6105_v0 = vsel %vm3707_vm4, %v6043_v19, 0.0  ;;  %v6144_v14 = vmul.f32 %v6043_v19, %v6043_v19 }
0x11df   :  { %v6106_v61 = vadd.f32 %v6105_v0, %v6104_v3 }
0x11e0   :  { %v6206_v53 = vsel %vm3707_vm4, %v6144_v14, 0.0 }
0x11e1   :  { %v6107_v1 = vrot.slane %v6106_v61, 4  ;;  %v6207_v6 = vadd.f32 %v6206_v53, %v6205_v2  ;;  %v14229_v2 = vld [vmem:[#allocation8_spill] sm:$0xff] }
0x11e3   :  { %v6108_v58 = vadd.f32 %v6107_v1, %v6106_v61  ;;  %v6208_v56 = vrot.slane %v6207_v6, 4 }
0x11e5   :  { %v6109_v38 = vrot.slane %v6108_v58, 2  ;;  %v6209_v20 = vadd.f32 %v6208_v56, %v6207_v6 }
0x11e7   :  { %v6110_v44 = vadd.f32 %v6109_v38, %v6108_v58  ;;  %v6210_v30 = vrot.slane %v6209_v20, 2 }
0x11e9   :  { %v6111_v55 = vrot.slane %v6110_v44, 1  ;;  %v6211_v45 = vadd.f32 %v6210_v30, %v6209_v20 }
0x11eb   :  { %v6112_v18 = vadd.f32 %v6111_v55, %v6110_v44  ;;  %v6212_v5 = vrot.slane %v6211_v45, 1 }
0x11ed   :  { %v6213_v46 = vadd.f32 %v6212_v5, %v6211_v45  ;;  %v13515_v22 = vmul.f32 0.005, %v6112_v18 }
0x11ef   :  { %v6215_v59 = vmul.f32 0.005, %v6213_v46  ;;  %v6216_v23 = vmul.f32 %v13515_v22, %v13515_v22  ;;  %v6237_v7 = vsub.f32 %v13396_v27, %v13515_v22  ;;  %v6238_v62 = vsub.f32 %v13404_v39, %v13515_v22 }
0x11f0   :  { %v6239_v50 = vsub.f32 %v13412_v63, %v13515_v22  ;;  %v6240_v17 = vsub.f32 %v13420_v15, %v13515_v22  ;;  %v6241_v52 = vsub.f32 %v13437_v54, %v13515_v22  ;;  %v6242_v35 = vsub.f32 %v13455_v49, %v13515_v22  ;;  %v5457_v54 = vld [vmem:[%s13653_s6 + $0x7] sm:$0x1] }
0x11f1   :  { %v6217_v9 = vsub.f32 %v6215_v59, %v6216_v23  ;;  %v6243_v47 = vsub.f32 %v13464_v42, %v13515_v22  ;;  %v6244_v27 = vsub.f32 %v13476_v34, %v13515_v22  ;;  %v6245_v39 = vsub.f32 %v13484_v37, %v13515_v22 }
0x11f2   :  { %v6246_v63 = vsub.f32 %v13492_v21, %v13515_v22  ;;  %v6247_v15 = vsub.f32 %v13500_v24, %v13515_v22  ;;  %v6219_v42 = vsub.f32 %v13256_v60, %v13515_v22  ;;  %v6220_v34 = vsub.f32 %v13253_v43, %v13515_v22 }
0x11f3   :  { %v6218_v16 = vmax.f32 %v6217_v9, 0.0  ;;  %v6221_v37 = vsub.f32 %v13259_v12, %v13515_v22  ;;  %v6222_v21 = vsub.f32 %v13264_v29, %v13515_v22  ;;  %v6223_v24 = vsub.f32 %v13273_v28, %v13515_v22 }
0x11f4   :  { %v6224_v57 = vsub.f32 %v13283_v8, %v13515_v22  ;;  %v6225_v19 = vsub.f32 %v13292_v25, %v13515_v22  ;;  %v6226_v60 = vsub.f32 %v13300_v36, %v13515_v22  ;;  %v6227_v12 = vsub.f32 %v13320_v10, %v13515_v22 }
0x11f5   :  { %v6251_v33 = vadd.f32 1e-05, %v6218_v16  ;;  %v6228_v29 = vsub.f32 %v13328_v26, %v13515_v22  ;;  %v6229_v28 = vsub.f32 %v13337_v41, %v13515_v22  ;;  %v6230_v8 = vsub.f32 %v13347_v13, %v13515_v22 }
0x11f6   :  { %v6231_v25 = vsub.f32 %v13355_v40, %v13515_v22  ;;  %v6235_v36 = vsub.f32 %v13379_v11, %v13515_v22  ;;  %v6236_v0 = vsub.f32 %v13387_v32, %v13515_v22  ;;  %v7885_v40 = vld [vmem:[%s13653_s6 + $0x8] ss:$0 sm:$0xff] }
0x11f7   :  { %9185 = vrsqrt.f32 %v6251_v33 }
0x1201   :  { %v9186_v49 = vpop.eup %9185 }
0x1202   :  { %v6253_v3 = vmul.f32 %v9186_v49, %v5457_v54 }
0x1204   :  { %v6257_v43 = vrot.slane %v6253_v3, %v14229_v2 }
0x1206   :  { %v6258_v14 = vmul.f32 %v6257_v43, %v6219_v42  ;;  %v6259_v10 = vmul.f32 %v6257_v43, %v6220_v34  ;;  %v6260_v61 = vmul.f32 %v6257_v43, %v6221_v37  ;;  %v6261_v53 = vmul.f32 %v6257_v43, %v6222_v21 }
0x1207   :  { %v6262_v26 = vmul.f32 %v6257_v43, %v6223_v24  ;;  %v6263_v1 = vmul.f32 %v6257_v43, %v6224_v57  ;;  %v6264_v6 = vmul.f32 %v6257_v43, %v6225_v19  ;;  %v6265_v41 = vmul.f32 %v6257_v43, %v6226_v60 }
0x1208   :  { %v6266_v58 = vmul.f32 %v6257_v43, %v6227_v12  ;;  %v6267_v56 = vmul.f32 %v6257_v43, %v6228_v29  ;;  %v6268_v13 = vmul.f32 %v6257_v43, %v6229_v28  ;;  %v6269_v38 = vmul.f32 %v6257_v43, %v6230_v8 }
0x1209   :  { %v6270_v11 = vmul.f32 %v6257_v43, %v6231_v25  ;;  %v6274_v20 = vmul.f32 %v6257_v43, %v6235_v36  ;;  %v6275_v44 = vmul.f32 %v6257_v43, %v6236_v0  ;;  %v6276_v32 = vmul.f32 %v6257_v43, %v6237_v7 }
0x120a   :  { %v6277_v30 = vmul.f32 %v6257_v43, %v6238_v62  ;;  %v6278_v55 = vmul.f32 %v6257_v43, %v6239_v50  ;;  %v6279_v45 = vmul.f32 %v6257_v43, %v6240_v17  ;;  %v6280_v18 = vmul.f32 %v6257_v43, %v6241_v52 }
0x120b   :  { %v6281_v5 = vmul.f32 %v6257_v43, %v6242_v35  ;;  %v6282_v46 = vmul.f32 %v6257_v43, %v6243_v47  ;;  %v6283_v22 = vmul.f32 %v6257_v43, %v6244_v27  ;;  %v6284_v59 = vmul.f32 %v6257_v43, %v6245_v39 }
0x120c   :  { %v6285_v23 = vmul.f32 %v6257_v43, %v6246_v63  ;;  %v6286_v9 = vmul.f32 %v6257_v43, %v6247_v15  ;;  %v6294_v16 = vadd.f32 %v7885_v40, %v6258_v14  ;;  %v6295_v33 = vadd.f32 %v7885_v40, %v6259_v10 }
0x120d   :  { %v6296_v54 = vadd.f32 %v7885_v40, %v6260_v61  ;;  %v6297_v49 = vadd.f32 %v7885_v40, %v6261_v53  ;;  %v6298_v42 = vadd.f32 %v7885_v40, %v6262_v26  ;;  %v6299_v3 = vadd.f32 %v7885_v40, %v6263_v1 }
0x120e   :  { %v6300_v34 = vadd.f32 %v7885_v40, %v6264_v6  ;;  %v6301_v37 = vadd.f32 %v7885_v40, %v6265_v41  ;;  %v6302_v21 = vadd.f32 %v7885_v40, %v6266_v58  ;;  %v6303_v7 = vadd.f32 %v7885_v40, %v6267_v56 }
0x120f   :  { %v6304_v62 = vadd.f32 %v7885_v40, %v6268_v13  ;;  %v6305_v50 = vadd.f32 %v7885_v40, %v6269_v38  ;;  %v6306_v17 = vadd.f32 %v7885_v40, %v6270_v11  ;;  %v6310_v52 = vadd.f32 %v7885_v40, %v6274_v20 }
0x1210   :  { %v6311_v35 = vadd.f32 %v7885_v40, %v6275_v44  ;;  %v6312_v47 = vadd.f32 %v7885_v40, %v6276_v32  ;;  %v6313_v27 = vadd.f32 %v7885_v40, %v6277_v30  ;;  %v6314_v39 = vadd.f32 %v7885_v40, %v6278_v55 }
0x1211   :  { %v6315_v63 = vadd.f32 %v7885_v40, %v6279_v45  ;;  %v6316_v15 = vadd.f32 %v7885_v40, %v6280_v18  ;;  %v6317_v24 = vadd.f32 %v7885_v40, %v6281_v5  ;;  %v6318_v57 = vadd.f32 %v7885_v40, %v6282_v46 }
0x1212   :  { %v6319_v19 = vadd.f32 %v7885_v40, %v6283_v22  ;;  %v6320_v60 = vadd.f32 %v7885_v40, %v6284_v59  ;;  %v6321_v2 = vadd.f32 %v7885_v40, %v6285_v23  ;;  %v6322_v43 = vadd.f32 %v7885_v40, %v6286_v9 }
0x1213   :  { %v6751_v12 = vsel %vm6441_vm6, %v6306_v17, -1e+30  ;;  %v6771_v29 = vsel %vm3707_vm4, %v6294_v16, -inf  ;;  %v6772_v28 = vsel %vm3707_vm4, %v6295_v33, -inf  ;;  %v6773_v8 = vsel %vm3707_vm4, %v6296_v54, -inf }
0x1214   :  { %v6767_v25 = vsel %vm6457_vm7, %v6322_v43, -1e+30  ;;  %v6774_v36 = vsel %vm3707_vm4, %v6297_v49, -inf  ;;  %v6775_v0 = vsel %vm3707_vm4, %v6298_v42, -inf  ;;  %v6777_v14 = vsel %vm3707_vm4, %v6299_v3, -inf }
0x1215   :  { %v6776_v10 = vmax.f32 %v6771_v29, %v6775_v0  ;;  %v6778_v61 = vmax.f32 %v6772_v28, %v6777_v14  ;;  %v6779_v51 = vsel %vm3707_vm4, %v6300_v34, -inf  ;;  %v6781_v53 = vsel %vm3707_vm4, %v6301_v37, -inf }
0x1216   :  { %v6780_v26 = vmax.f32 %v6773_v8, %v6779_v51  ;;  %v6782_v1 = vmax.f32 %v6774_v36, %v6781_v53  ;;  %v6783_v6 = vsel %vm3707_vm4, %v6302_v21, -inf  ;;  %v6785_v41 = vsel %vm3707_vm4, %v6303_v7, -inf }
0x1217   :  { %v6784_v48 = vmax.f32 %v6776_v10, %v6783_v6  ;;  %v6786_v58 = vmax.f32 %v6778_v61, %v6785_v41  ;;  %v6787_v56 = vsel %vm3707_vm4, %v6304_v62, -inf  ;;  %v6789_v13 = vsel %vm3707_vm4, %v6305_v50, -inf }
0x1218   :  { %v6788_v38 = vmax.f32 %v6780_v26, %v6787_v56  ;;  %v6790_v40 = vmax.f32 %v6782_v1, %v6789_v13  ;;  %v6791_v11 = vsel %vm3707_vm4, %v6751_v12, -inf  ;;  %v6808_v20 = vsel %vm3707_vm4, %v6310_v52, -inf }
0x1219   :  { %v6792_v44 = vmax.f32 %v6784_v48, %v6791_v11  ;;  %v6794_v32 = vmax.f32 %v6786_v58, %v12088_v4  ;;  %v6809_v30 = vsel %vm3707_vm4, %v6311_v35, -inf  ;;  %v6810_v55 = vsel %vm3707_vm4, %v6312_v47, -inf }
0x121a   :  { %v6796_v45 = vmax.f32 %v6788_v38, %v12088_v4  ;;  %v6798_v18 = vmax.f32 %v6790_v40, %v12088_v4  ;;  %v6811_v5 = vsel %vm3707_vm4, %v6313_v27, -inf  ;;  %v6812_v46 = vsel %vm3707_vm4, %v6314_v39, -inf }
0x121b   :  { %v6799_v22 = vmax.f32 %v6792_v44, %v6794_v32  ;;  %v6813_v59 = vmax.f32 %v6808_v20, %v6812_v46  ;;  %v6814_v23 = vsel %vm3707_vm4, %v6315_v63, -inf  ;;  %v6816_v9 = vsel %vm3707_vm4, %v6316_v15, -inf }
0x121c   :  { %v6800_v16 = vmax.f32 %v6796_v45, %v6798_v18  ;;  %v6815_v33 = vmax.f32 %v6809_v30, %v6814_v23  ;;  %v6817_v54 = vmax.f32 %v6810_v55, %v6816_v9  ;;  %v6818_v49 = vsel %vm3707_vm4, %v6317_v24, -inf }
0x121d   :  { %v6819_v42 = vmax.f32 %v6811_v5, %v6818_v49  ;;  %v6820_v3 = vsel %vm3707_vm4, %v6318_v57, -inf  ;;  %v6822_v34 = vsel %vm3707_vm4, %v6319_v19, -inf  ;;  %v6824_v37 = vsel %vm3707_vm4, %v6320_v60, -inf }
0x121e   :  { %v6801_v21 = vmax.f32 %v6799_v22, %v6800_v16  ;;  %v6821_v7 = vmax.f32 %v6813_v59, %v6820_v3  ;;  %v6823_v62 = vmax.f32 %v6815_v33, %v6822_v34  ;;  %v6825_v50 = vmax.f32 %v6817_v54, %v6824_v37 }
0x121f   :  { %v6826_v17 = vsel %vm3707_vm4, %v6321_v2, -inf  ;;  %v6828_v52 = vsel %vm3707_vm4, %v6767_v25, -inf }
0x1220   :  { %v6802_v35 = vrot.slane %v6801_v21, 4  ;;  %v6827_v47 = vmax.f32 %v6819_v42, %v6826_v17  ;;  %v6829_v27 = vmax.f32 %v6821_v7, %v6828_v52  ;;  %v6831_v39 = vmax.f32 %v6823_v62, %v12088_v4 }
0x1221   :  { %v6833_v63 = vmax.f32 %v6825_v50, %v12088_v4 }
0x1222   :  { %v6803_v15 = vmax.f32 %v6801_v21, %v6802_v35  ;;  %v6835_v24 = vmax.f32 %v6827_v47, %v12088_v4  ;;  %v6836_v57 = vmax.f32 %v6829_v27, %v6831_v39  ;;  %v7943_v4 = vld [vmem:[%s13657_s10 + $0x1] ss:$0 sm:$0xff] }
0x1224   :  { %v6804_v19 = vrot.slane %v6803_v15, 2  ;;  %v6837_v60 = vmax.f32 %v6833_v63, %v6835_v24 }
0x1226   :  { %v6838_v43 = vmax.f32 %v6836_v57, %v6837_v60  ;;  %v6805_v12 = vmax.f32 %v6803_v15, %v6804_v19 }
0x1228   :  { %v6839_v29 = vrot.slane %v6838_v43, 4  ;;  %v6806_v2 = vrot.slane %v6805_v12, 1 }
0x122a   :  { %v6840_v28 = vmax.f32 %v6838_v43, %v6839_v29  ;;  %v6807_v36 = vmax.f32 %v6805_v12, %v6806_v2 }
0x122c   :  { %v6841_v8 = vrot.slane %v6840_v28, 2 }
0x122e   :  { %v6842_v25 = vmax.f32 %v6840_v28, %v6841_v8 }
0x1230   :  { %v6843_v0 = vrot.slane %v6842_v25, 1 }
0x1232   :  { %v6844_v14 = vmax.f32 %v6842_v25, %v6843_v0 }
0x1234   :  { %v6845_v10 = vsel %vm6358_vm14, %v6807_v36, %v6844_v14 }
0x1235   :  { %8483 = vmatmul.mubr.msk.f32.vlgmr.msra.gmra.mrb[208].mxu1 %vm3707_vm4, %v6845_v10 }
0x1308   :  { %v7368_v61 = vpop.f32.mrb[208].mxu1 }
0x1309   :  { %v7372_v51 = vadd.f32 %v7368_v61, %v13171_v31  ;;  %v8484_v53 = vpop.f32.mrb[209].mxu1 }
0x130b   :  { %v7378_v26 = vadd.f32 %v7943_v4, %v7372_v51 }
0x130d   :  { %v7379_v1 = vmax.f32 %v7378_v26, 0.0 }
0x130f   :  { %8500 = vmatmul.mubr.msk.f32.vlgmr.msra.gmra.mrb[230].mxu0 %vm7392_vm8, %v7379_v1 }
0x1310   :  { %9206 = shalt.err (!%p9203_p4)
}
0x1311   :  { %s9207_s13 = scalar_lea.hbm %s13659_s12, 16 }
0x1312   :  { %p9208_p5 = scmp.ne.s32.totalorder %s13659_s12, %s9207_s13  ;;  %p9211_p6 = scmp.lt.u32.totalorder %s9207_s13, %s13659_s12 }
0x1314   :  { %p9213_p7 = pnand %p9211_p6, %p9208_p5 }
0x1316   :  { %9216 = shalt.err (!%p9213_p7)
}
0x1317   :  { %7497 = dma.vmem_to_hbm [thread:$0]  %s7495_s27, 16, %s13659_s12, [#allocation5]   ;;  %v7944_v31 = vld [vmem:[%s13657_s10 + $0x2] ss:$0 sm:$0xff]  ;;  %vm7470_vm14 = vcmask 41984  }
0x1318   :  { %s9249_s18 = smov [#allocation2]  }
0x1319   :  { %s7484_s19 = sshll.u32 %s9249_s18, 4  ;;  %s7485_s19 = int_to_ptr.vmem [resolvable:$true] %s7484_s19 }
0x131a   :  { %s9217_s4 = scalar_lea.vmem %s7485_s19, 32  ;;  %p9222_p9 = scmp.lt.s32.totalorder %s7485_s19, %s7485_s19 }
0x131b   :  { %p9218_p8 = scmp.ne.s32.totalorder %s7485_s19, %s9217_s4  ;;  %p9223_p10 = scmp.lt.s32.totalorder %s9217_s4, %s9217_s4 }
0x131d   :  { %p9224_p11 = por %p9223_p10, %p9222_p9 }
0x131f   :  { %p9225_p12 = pnand %p9224_p11, %p9218_p8 }
0x13e2   :  { %v7466_v6 = vpop.f32.mrb[230].mxu0 }
0x13e3   :  { %v7467_v41 = vadd.f32 %v7944_v31, %v7466_v6  ;;  %v8501_v48 = vpop.f32.mrb[231].mxu0 }
0x13e5   :  { %7471 = vst.msk [vmem:[#allocation2] sm:$0x3] %vm7470_vm14, %v7467_v41 }
0x13e6   :  { %9228 = shalt.err (!%p9225_p12)
}
0x13e7   :  { %s9229_s21 = scalar_lea.hbm %s13658_s11, 32 }
0x13e8   :  { %p9230_p13 = scmp.ne.s32.totalorder %s13658_s11, %s9229_s21  ;;  %p9233_p0 = scmp.lt.u32.totalorder %s9229_s21, %s13658_s11 }
0x13ea   :  { %p9235_p1 = pnand %p9233_p0, %p9230_p13 }
0x13ec   :  { %9238 = shalt.err (!%p9235_p1)
}
0x13ed   :  { %7487 = dma.vmem_to_hbm [thread:$0]  %s7485_s19, 32, %s13658_s11, [#allocation3]  }
0x13ee   :  { %9239 = dma.done.wait [#allocation3], 32  }
0x13ef   :  { %9240 = vsyncadd [#allocation3], 4294967264 }
0x13f0   :  { %9241 = dma.done.wait [#allocation5], 16  }
0x13f1   :  { %9242 = vsyncadd [#allocation5], 4294967280 }
0x13f2   :  { %7504 = vsyncpa [#allocation3], 1 }
0x13f3   :  { %7505 = vsyncpa [#allocation5], 1 }

</bundles_post_ra>
